<compile_context>
chip_gen: v6e
topology: v6e:2x2x1
jax: 0.10.0
libtpu: 0.0.40
codegen_flags: <defaults>
</compile_context>

<pallas_src>
import math

import jax
import jax.numpy as jnp
from jax.experimental import pallas as pl
from jax.experimental.pallas import tpu as pltpu


# ----------------------------------------------------------------------------
# Blob packing: row-stack 2-D arrays into one padded blob + a static layout map
# ----------------------------------------------------------------------------
def _round_up(n, m):
    return ((n + m - 1) // m) * m


class _Packer:
    """Row-stacks 2-D arrays into one (rows, lanes) blob of a single dtype.
    Every item starts at an 8-aligned row offset; lanes pad to a 128 multiple,
    so the in-kernel slices never cross (8,128) tile boundaries awkwardly."""

    def __init__(self, dtype):
        self.dtype = dtype
        self.items = []

    def add(self, name, arr):
        arr = jnp.asarray(arr, self.dtype)
        assert arr.ndim == 2, (name, arr.shape)
        self.items.append((name, arr))

    def finalize(self, blob_id, layout):
        if not self.items:
            return jnp.zeros((8, 128), self.dtype)
        lanes = _round_up(max(a.shape[1] for _, a in self.items), 128)
        rows, off = [], 0
        for name, a in self.items:
            r, c = a.shape
            rp = _round_up(r, 8)
            rows.append(jnp.pad(a, ((0, rp - r), (0, lanes - c))))
            layout[name] = (blob_id, off, r, c)
            off += rp
        return jnp.concatenate(rows, axis=0)


# ----------------------------------------------------------------------------
# The fused Pallas kernel: whole NavieUNet_V1 forward in one VMEM-resident call
# ----------------------------------------------------------------------------
def _make_kernel(layout):
    bf16 = jnp.bfloat16
    f32 = jnp.float32

    def kernel(x0_ref, ops_ref, pb_ref, ws_ref, wb_hbm_ref, out_ref,
               wb_vmem, dma_sem):
        # Stream the big (gp/fp2) weight blob HBM->VMEM while sa1/sa2/bn run.
        big_copy = pltpu.make_async_copy(wb_hbm_ref, wb_vmem, dma_sem)
        big_copy.start()

        refs = {"ops": ops_ref, "pb": pb_ref, "ws": ws_ref, "wb": wb_vmem}

        def take(name):
            blob, r0, nr, nc = layout[name]
            return refs[blob][r0:r0 + nr, :nc]          # static, aligned slice

        def mm(a, b):
            # bf16 MXU operands, fp32 accumulation.
            return jnp.dot(a, b, preferred_element_type=f32)

        def gcn(xb, a, w, b):
            # GCNConv + ReLU: relu(A_hat @ (X @ W) + b); returns bf16.
            h = mm(xb, take(w)).astype(bf16)
            return jnp.maximum(mm(take(a), h) + take(b), 0.0).astype(bf16)

        x0 = x0_ref[...]                                 # bf16 (N0, Cin)

        # --- sa1_module (skip_pos_encoding=True): 3 GCNs on the level-0 graph;
        #     the idx0 subsample is folded into the last layer's aggregation.
        h = gcn(x0, "a0", "sa1.w0", "sa1.b0")
        h = gcn(h, "a0", "sa1.w1", "sa1.b1")
        x1 = gcn(h, "a0g", "sa1.w2", "sa1.b2")           # (N1, 64)

        # --- sa2_module: input [x1 | pos1]; pos branch is the precomputed
        #     constant "sa2.penc" = A1 @ (pos1 @ Wp) + b0.  idx1 folded (a1g).
        h = mm(x1, take("sa2.w0x")).astype(bf16)
        h = jnp.maximum(mm(take("a1"), h) + take("sa2.penc"), 0.0).astype(bf16)
        h = gcn(h, "a1", "sa2.w1", "sa2.b1")
        x2 = gcn(h, "a1g", "sa2.w2", "sa2.b2")           # (N2, 128)

        # --- bn_module: input [x2 | pos2]; pos branch precomputed ("bn.penc").
        h = mm(x2, take("bn.w0x")).astype(bf16)
        h = jnp.maximum(mm(take("a2"), h) + take("bn.penc"), 0.0).astype(bf16)
        h = gcn(h, "a2", "bn.w1", "bn.b1")
        xbn = gcn(h, "a2", "bn.w2", "bn.b2")             # (N2, 256)

        # Everything below needs the streamed gp/fp2 weights.
        big_copy.wait()

        # --- gp1_module: MLP([131, 512, 1024, G]) on [x2 | pos2], then
        #     global max pool.  "gp.penc" = pos2 @ Wp + b0.
        # TODO(synk): PyG MLP's internal BatchNorm1d is treated as identity
        # (eval-mode defaults); trained BN stats have no clean equivalent here.
        h = jnp.maximum(mm(x2, take("gp.w0x")) + take("gp.penc"), 0.0).astype(bf16)
        h = jnp.maximum(mm(h, take("gp.w1")) + take("gp.b1"), 0.0).astype(bf16)
        h = mm(h, take("gp.w2")) + take("gp.b2")         # (N2, G), plain last
        g = jnp.max(h, axis=0, keepdims=True)            # global_max_pool (1,G)

        # --- fp2_module: first-layer input = [bcast(g) | m21 @ xbn | x1].
        #     Global token hits its weight at 1 row (broadcast in the add);
        #     interpolation reordered: m21 @ (xbn @ W).
        gv = mm(g.astype(bf16), take("fp2.w0g"))         # (1, 1024)
        hb = mm(xbn, take("fp2.w0bn")).astype(bf16)      # (N2, 1024)
        h = gv + mm(take("m21"), hb) + mm(x1, take("fp2.w0x1"))
        h = jnp.maximum(mm(take("a1"), h.astype(bf16)) + take("fp2.b0"),
                        0.0).astype(bf16)
        h = gcn(h, "a1", "fp2.w1", "fp2.b1")
        xf = gcn(h, "a1", "fp2.w2", "fp2.b2")            # (N1, 512)

        # --- fp1_module: first-layer input = [m10 @ xf | x0] (same reorder).
        hf = mm(xf, take("fp1.w0f")).astype(bf16)        # (N1, 256)
        h = mm(take("m10"), hf) + mm(x0, take("fp1.w0x"))
        h = jnp.maximum(mm(take("a0"), h.astype(bf16)) + take("fp1.b0"),
                        0.0).astype(bf16)
        h = gcn(h, "a0", "fp1.w1", "fp1.b1")
        h = gcn(h, "a0", "fp1.w2", "fp1.b2")             # (N0, 128)

        # --- final MLP([128, 64, out], norm=None): Linear -> ReLU -> Linear.
        h = jnp.maximum(mm(h, take("mlp.w0")) + take("mlp.b0"), 0.0).astype(bf16)
        out_ref[...] = (mm(h, take("mlp.w1")) + take("mlp.b1")).astype(out_ref.dtype)

    return kernel


def build_forward(layout, n0, out_channels):
    kernel = _make_kernel(layout)

    def fwd(x0, ops_blob, pb_blob, ws_blob, wb_blob):
        vmem = pltpu.MemorySpace.VMEM
        return pl.pallas_call(
            kernel,
            out_shape=jax.ShapeDtypeStruct((n0, out_channels), jnp.float32),
            in_specs=[
                pl.BlockSpec(memory_space=vmem),       # x0 (bf16)
                pl.BlockSpec(memory_space=vmem),       # operator blob
                pl.BlockSpec(memory_space=vmem),       # bias / pos-enc blob
                pl.BlockSpec(memory_space=vmem),       # small weight blob
                pl.BlockSpec(memory_space=pl.ANY),     # big weight blob (HBM)
            ],
            out_specs=pl.BlockSpec(memory_space=vmem),
            scratch_shapes=[
                pltpu.VMEM(wb_blob.shape, wb_blob.dtype),   # streamed weights
                pltpu.SemaphoreType.DMA(()),
            ],
            compiler_params=pltpu.CompilerParams(
                # Honest footprint today is ~10 MiB (blobs + streamed scratch);
                # stays well under v7x's 64 MiB physical VMEM.
                # TODO(synk): if N0 grows past a few thousand, the dense O(N^2)
                # operators must be tiled with a grid instead of staying whole.
                vmem_limit_bytes=32 * 1024 * 1024),
        )(x0, ops_blob, pb_blob, ws_blob, wb_blob)

    return jax.jit(fwd)


# ----------------------------------------------------------------------------
# Plain-JAX glue (built ONCE per topology/weights, hoisted out of the forward)
# ----------------------------------------------------------------------------
def gcn_norm_adj(edge_index, num_nodes):
    """Dense A_hat = D^{-1/2} (A + I) D^{-1/2} (PyG GCNConv default norm)."""
    src, dst = edge_index
    loop = jnp.arange(num_nodes)
    src = jnp.concatenate([src, loop])
    dst = jnp.concatenate([dst, loop])
    a = jnp.zeros((num_nodes, num_nodes), jnp.float32).at[dst, src].add(1.0)
    deg = jnp.sum(a, axis=1)
    dinv = jnp.where(deg > 0, 1.0 / jnp.sqrt(deg), 0.0)
    return dinv[:, None] * a * dinv[None, :]


def knn_interp_matrix(pos_src, pos_tgt, k):
    """Dense (N_tgt, N_src) inverse-squared-distance kNN interpolation weights."""
    nt, ns = pos_tgt.shape[0], pos_src.shape[0]
    k = min(k, ns)
    d2 = jnp.sum((pos_tgt[:, None, :] - pos_src[None, :, :]) ** 2, axis=-1)
    _, idx = jax.lax.top_k(-d2, k)
    d2k = jnp.take_along_axis(d2, idx, axis=1)
    w = 1.0 / jnp.maximum(d2k, 1e-16)
    m = jnp.zeros((nt, ns), jnp.float32)
    m = m.at[jnp.arange(nt)[:, None], idx].add(w)
    return m / jnp.sum(m, axis=1, keepdims=True)


def knn_graph(pos, k):
    """Symmetric k-NN edge_index (2, E) over positions (example-input glue)."""
    n = pos.shape[0]
    d2 = jnp.sum((pos[:, None, :] - pos[None, :, :]) ** 2, axis=-1)
    d2 = d2 + jnp.eye(n, dtype=jnp.float32) * 1e9
    _, idx = jax.lax.top_k(-d2, min(k, n - 1))
    dst = jnp.repeat(jnp.arange(n), idx.shape[1])
    src = idx.reshape(-1)
    return jnp.stack([jnp.concatenate([src, dst]),
                      jnp.concatenate([dst, src])])


# ----------------------------------------------------------------------------
# Parameters (deterministic init; shapes follow NavieUNet_V1.__init__)
# ----------------------------------------------------------------------------
def _init_linear(key, cin, cout):
    kw, kb = jax.random.split(key)
    s = 1.0 / math.sqrt(cin)
    w = jax.random.uniform(kw, (cin, cout), jnp.float32, -s, s)
    b = jax.random.uniform(kb, (cout,), jnp.float32, -s, s)
    return w, b


def init_params(key, in_channels, out_channels, global_token_dim):
    g = global_token_dim
    specs = {
        "sa1": [(in_channels, 32), (32, 32), (32, 64)],
        "sa2": [(64 + 3, 64), (64, 64), (64, 128)],
        "bn": [(128 + 3, 128), (128, 128), (128, 256)],
        "gp": [(128 + 3, 512), (512, 1024), (1024, g)],
        "fp2": [(g + 256 + 64, 1024), (1024, 1024), (1024, 512)],
        "fp1": [(512 + in_channels, 256), (256, 256), (256, 128)],
        "mlp": [(128, 64), (64, out_channels)],
    }
    params = {}
    for name, dims in specs.items():
        layers = []
        for cin, cout in dims:
            key, sub = jax.random.split(key)
            layers.append(_init_linear(sub, cin, cout))
        params[name] = layers
    return params


def prepare_inputs(params, pos, idx0, idx1, e0, e1, e2, global_token_dim):
    """Build the per-topology graph operators, fold the fixed-weight pos
    encodings, fold the subsample gathers into the adjacencies, and pack
    everything into 4 blobs + a static layout map.  Runs ONCE per
    (topology, weights), outside the jitted forward."""
    pos1, pos2 = pos[idx0], pos[idx0][idx1]
    n0, n1, n2 = pos.shape[0], pos1.shape[0], pos2.shape[0]
    g = global_token_dim

    a0 = gcn_norm_adj(e0, n0)
    a1 = gcn_norm_adj(e1, n1)
    a2 = gcn_norm_adj(e2, n2)
    a0g = a0[idx0]                      # gather folded into sa1's last GCN
    a1g = a1[idx1]                      # gather folded into sa2's last GCN
    m21 = knn_interp_matrix(pos2, pos1, k=3)     # level-2 -> level-1
    m10 = knn_interp_matrix(pos1, pos, k=3)      # level-1 -> level-0

    (w1a, b1a), (w1b, b1b), (w1c, b1c) = params["sa1"]
    (w2a, b2a), (w2b, b2b), (w2c, b2c) = params["sa2"]
    (wna, bna), (wnb, bnb), (wnc, bnc) = params["bn"]
    (wga, bga), (wgb, bgb), (wgc, bgc) = params["gp"]
    (wfa, bfa), (wfb, bfb), (wfc, bfc) = params["fp2"]
    (wea, bea), (web, beb), (wec, bec) = params["fp1"]
    (wma, bma), (wmb, bmb) = params["mlp"]

    # Fixed-weight pos-encoding branches precomputed as additive tensors (fp32).
    penc_sa2 = a1 @ (pos1 @ w2a[64:]) + b2a      # (n1, 64)
    penc_bn = a2 @ (pos2 @ wna[128:]) + bna      # (n2, 128)
    penc_gp = pos2 @ wga[128:] + bga             # (n2, 512)

    layout = {}

    ops = _Packer(jnp.bfloat16)
    for name, arr in [("a0", a0), ("a0g", a0g), ("a1", a1), ("a1g", a1g),
                      ("a2", a2), ("m21", m21), ("m10", m10)]:
        ops.add(name, arr)
    ops_blob = ops.finalize("ops", layout)

    pb = _Packer(jnp.float32)
    pb.add("sa2.penc", penc_sa2)
    pb.add("bn.penc", penc_bn)
    pb.add("gp.penc", penc_gp)
    for name, b in [("sa1.b0", b1a), ("sa1.b1", b1b), ("sa1.b2", b1c),
                    ("sa2.b1", b2b), ("sa2.b2", b2c),
                    ("bn.b1", bnb), ("bn.b2", bnc),
                    ("gp.b1", bgb), ("gp.b2", bgc),
                    ("fp2.b0", bfa), ("fp2.b1", bfb), ("fp2.b2", bfc),
                    ("fp1.b0", bea), ("fp1.b1", beb), ("fp1.b2", bec),
                    ("mlp.b0", bma), ("mlp.b1", bmb)]:
        pb.add(name, b.reshape(1, -1))
    pb_blob = pb.finalize("pb", layout)

    # Weight blobs: >256-wide layers (all gp/fp2, used only after the in-kernel
    # DMA wait) go to the streamed "big" blob; the rest load up front.
    small_p, big_p = _Packer(jnp.bfloat16), _Packer(jnp.bfloat16)
    weights = [
        ("sa1.w0", w1a), ("sa1.w1", w1b), ("sa1.w2", w1c),
        ("sa2.w0x", w2a[:64]), ("sa2.w1", w2b), ("sa2.w2", w2c),
        ("bn.w0x", wna[:128]), ("bn.w1", wnb), ("bn.w2", wnc),
        ("gp.w0x", wga[:128]), ("gp.w1", wgb), ("gp.w2", wgc),
        ("fp2.w0g", wfa[:g]), ("fp2.w0bn", wfa[g:g + 256]),
        ("fp2.w0x1", wfa[g + 256:]), ("fp2.w1", wfb), ("fp2.w2", wfc),
        ("fp1.w0f", wea[:512]), ("fp1.w0x", wea[512:]),
        ("fp1.w1", web), ("fp1.w2", wec),
        ("mlp.w0", wma), ("mlp.w1", wmb),
    ]
    for name, w in weights:
        (big_p if w.shape[1] > 256 else small_p).add(name, w)
    ws_blob = small_p.finalize("ws", layout)
    wb_blob = big_p.finalize("wb", layout)

    return ops_blob, pb_blob, ws_blob, wb_blob, layout


# ----------------------------------------------------------------------------
if __name__ == "__main__":
    key = jax.random.PRNGKey(0)
    in_channels, out_channels, global_token_dim = 6, 4, 64
    n0 = 64

    k_x, k_pos, k_params = jax.random.split(key, 3)
    x = jax.random.normal(k_x, (n0, in_channels), jnp.float32)   # data.x[:, :6]
    pos = jax.random.normal(k_pos, (n0, 3), jnp.float32)

    idx0 = jnp.arange(0, n0, 2)          # level-0 -> level-1 subsample (64->32)
    idx1 = jnp.arange(0, n0 // 2, 2)     # level-1 -> level-2 subsample (32->16)
    e0 = knn_graph(pos, k=6)
    e1 = knn_graph(pos[idx0], k=6)
    e2 = knn_graph(pos[idx0][idx1], k=6)

    params = init_params(k_params, in_channels, out_channels, global_token_dim)

    # Per-(topology, weights) packing — done once, outside the jitted forward.
    # (duplicate_edge_index is the identity for a single-graph batch.)
    ops_blob, pb_blob, ws_blob, wb_blob, layout = prepare_inputs(
        params, pos, idx0, idx1, e0, e1, e2, global_token_dim)

    fwd = build_forward(layout, n0, out_channels)
    out = fwd(x.astype(jnp.bfloat16), ops_blob, pb_blob, ws_blob, wb_blob)
    out = jax.block_until_ready(out)
    assert out.shape == (n0, out_channels), out.shape
    assert bool(jnp.all(jnp.isfinite(out)))
    print("KERNEL_OK")
</pallas_src>

<mosaic_0001>
module attributes {stable_mosaic.version = 11 : i64} {
  func.func @kernel(%arg0: memref<64x6xbf16, #tpu.memory_space<vmem>>, %arg1: memref<256x128xbf16, #tpu.memory_space<vmem>>, %arg2: memref<200x1024xf32, #tpu.memory_space<vmem>>, %arg3: memref<2896x256xbf16, #tpu.memory_space<vmem>>, %arg4: memref<3072x1024xbf16, #tpu.memory_space<any>>, %arg5: memref<64x4xf32, #tpu.memory_space<vmem>>, %arg6: memref<3072x1024xbf16, #tpu.memory_space<vmem>>, %arg7: memref<!tpu.dma_semaphore, #tpu.memory_space<semaphore_mem>>) attributes {dimension_semantics = [], scalar_prefetch = 0 : i64, scratch_operands = 2 : i64, tpu.core_type = #tpu.core_type<tc>} {
    tpu.enqueue_dma source(%arg4 : memref<3072x1024xbf16, #tpu.memory_space<any>>) target(%arg6 : memref<3072x1024xbf16, #tpu.memory_space<vmem>>) target_semaphore(%arg7 : memref<!tpu.dma_semaphore, #tpu.memory_space<semaphore_mem>>)
    %c0 = arith.constant 0 : index
    %c0_0 = arith.constant 0 : index
    %0 = vector.load %arg0[%c0, %c0_0] : memref<64x6xbf16, #tpu.memory_space<vmem>>, vector<64x6xbf16>
    %c0_1 = arith.constant 0 : index
    %c0_2 = arith.constant 0 : index
    %1 = vector.load %arg3[%c0_1, %c0_2] : memref<2896x256xbf16, #tpu.memory_space<vmem>>, vector<6x32xbf16>
    %cst = arith.constant dense<0.000000e+00> : vector<64x32xf32>
    %2 = tpu.matmul %0, %1, %cst {dimension_numbers = #tpu.dot_dimension_numbers<[1], [0], [0], [1], [0, 0, 1, 1], [], []>} : vector<64x6xbf16>, vector<6x32xbf16>, vector<64x32xf32> -> vector<64x32xf32>
    %3 = arith.truncf %2 : vector<64x32xf32> to vector<64x32xbf16>
    %c0_3 = arith.constant 0 : index
    %c0_4 = arith.constant 0 : index
    %4 = vector.load %arg1[%c0_3, %c0_4] : memref<256x128xbf16, #tpu.memory_space<vmem>>, vector<64x64xbf16>
    %cst_5 = arith.constant dense<0.000000e+00> : vector<64x32xf32>
    %5 = tpu.matmul %4, %3, %cst_5 {dimension_numbers = #tpu.dot_dimension_numbers<[1], [0], [0], [1], [0, 0, 1, 1], [], []>} : vector<64x64xbf16>, vector<64x32xbf16>, vector<64x32xf32> -> vector<64x32xf32>
    %c64 = arith.constant 64 : index
    %c0_6 = arith.constant 0 : index
    %6 = vector.load %arg2[%c64, %c0_6] : memref<200x1024xf32, #tpu.memory_space<vmem>>, vector<1x32xf32>
    %7 = vector.broadcast %6 : vector<1x32xf32> to vector<64x32xf32>
    %8 = arith.addf %5, %7 : vector<64x32xf32>
    %cst_7 = arith.constant 0.000000e+00 : f32
    %9 = vector.broadcast %cst_7 : f32 to vector<64x32xf32>
    %10 = arith.maximumf %8, %9 : vector<64x32xf32>
    %11 = arith.truncf %10 : vector<64x32xf32> to vector<64x32xbf16>
    %c8 = arith.constant 8 : index
    %c0_8 = arith.constant 0 : index
    %12 = vector.load %arg3[%c8, %c0_8] : memref<2896x256xbf16, #tpu.memory_space<vmem>>, vector<32x32xbf16>
    %cst_9 = arith.constant dense<0.000000e+00> : vector<64x32xf32>
    %13 = tpu.matmul %11, %12, %cst_9 {dimension_numbers = #tpu.dot_dimension_numbers<[1], [0], [0], [1], [0, 0, 1, 1], [], []>} : vector<64x32xbf16>, vector<32x32xbf16>, vector<64x32xf32> -> vector<64x32xf32>
    %14 = arith.truncf %13 : vector<64x32xf32> to vector<64x32xbf16>
    %c0_10 = arith.constant 0 : index
    %c0_11 = arith.constant 0 : index
    %15 = vector.load %arg1[%c0_10, %c0_11] : memref<256x128xbf16, #tpu.memory_space<vmem>>, vector<64x64xbf16>
    %cst_12 = arith.constant dense<0.000000e+00> : vector<64x32xf32>
    %16 = tpu.matmul %15, %14, %cst_12 {dimension_numbers = #tpu.dot_dimension_numbers<[1], [0], [0], [1], [0, 0, 1, 1], [], []>} : vector<64x64xbf16>, vector<64x32xbf16>, vector<64x32xf32> -> vector<64x32xf32>
    %c72 = arith.constant 72 : index
    %c0_13 = arith.constant 0 : index
    %17 = vector.load %arg2[%c72, %c0_13] : memref<200x1024xf32, #tpu.memory_space<vmem>>, vector<1x32xf32>
    %18 = vector.broadcast %17 : vector<1x32xf32> to vector<64x32xf32>
    %19 = arith.addf %16, %18 : vector<64x32xf32>
    %cst_14 = arith.constant 0.000000e+00 : f32
    %20 = vector.broadcast %cst_14 : f32 to vector<64x32xf32>
    %21 = arith.maximumf %19, %20 : vector<64x32xf32>
    %22 = arith.truncf %21 : vector<64x32xf32> to vector<64x32xbf16>
    %c40 = arith.constant 40 : index
    %c0_15 = arith.constant 0 : index
    %23 = vector.load %arg3[%c40, %c0_15] : memref<2896x256xbf16, #tpu.memory_space<vmem>>, vector<32x64xbf16>
    %cst_16 = arith.constant dense<0.000000e+00> : vector<64x64xf32>
    %24 = tpu.matmul %22, %23, %cst_16 {dimension_numbers = #tpu.dot_dimension_numbers<[1], [0], [0], [1], [0, 0, 1, 1], [], []>} : vector<64x32xbf16>, vector<32x64xbf16>, vector<64x64xf32> -> vector<64x64xf32>
    %25 = arith.truncf %24 : vector<64x64xf32> to vector<64x64xbf16>
    %c64_17 = arith.constant 64 : index
    %c0_18 = arith.constant 0 : index
    %26 = vector.load %arg1[%c64_17, %c0_18] : memref<256x128xbf16, #tpu.memory_space<vmem>>, vector<32x64xbf16>
    %cst_19 = arith.constant dense<0.000000e+00> : vector<32x64xf32>
    %27 = tpu.matmul %26, %25, %cst_19 {dimension_numbers = #tpu.dot_dimension_numbers<[1], [0], [0], [1], [0, 0, 1, 1], [], []>} : vector<32x64xbf16>, vector<64x64xbf16>, vector<32x64xf32> -> vector<32x64xf32>
    %c80 = arith.constant 80 : index
    %c0_20 = arith.constant 0 : index
    %28 = vector.load %arg2[%c80, %c0_20] : memref<200x1024xf32, #tpu.memory_space<vmem>>, vector<1x64xf32>
    %29 = vector.broadcast %28 : vector<1x64xf32> to vector<32x64xf32>
    %30 = arith.addf %27, %29 : vector<32x64xf32>
    %cst_21 = arith.constant 0.000000e+00 : f32
    %31 = vector.broadcast %cst_21 : f32 to vector<32x64xf32>
    %32 = arith.maximumf %30, %31 : vector<32x64xf32>
    %33 = arith.truncf %32 : vector<32x64xf32> to vector<32x64xbf16>
    %c72_22 = arith.constant 72 : index
    %c0_23 = arith.constant 0 : index
    %34 = vector.load %arg3[%c72_22, %c0_23] : memref<2896x256xbf16, #tpu.memory_space<vmem>>, vector<64x64xbf16>
    %cst_24 = arith.constant dense<0.000000e+00> : vector<32x64xf32>
    %35 = tpu.matmul %33, %34, %cst_24 {dimension_numbers = #tpu.dot_dimension_numbers<[1], [0], [0], [1], [0, 0, 1, 1], [], []>} : vector<32x64xbf16>, vector<64x64xbf16>, vector<32x64xf32> -> vector<32x64xf32>
    %36 = arith.truncf %35 : vector<32x64xf32> to vector<32x64xbf16>
    %c96 = arith.constant 96 : index
    %c0_25 = arith.constant 0 : index
    %37 = vector.load %arg1[%c96, %c0_25] : memref<256x128xbf16, #tpu.memory_space<vmem>>, vector<32x32xbf16>
    %cst_26 = arith.constant dense<0.000000e+00> : vector<32x64xf32>
    %38 = tpu.matmul %37, %36, %cst_26 {dimension_numbers = #tpu.dot_dimension_numbers<[1], [0], [0], [1], [0, 0, 1, 1], [], []>} : vector<32x32xbf16>, vector<32x64xbf16>, vector<32x64xf32> -> vector<32x64xf32>
    %c0_27 = arith.constant 0 : index
    %c0_28 = arith.constant 0 : index
    %39 = vector.load %arg2[%c0_27, %c0_28] : memref<200x1024xf32, #tpu.memory_space<vmem>>, vector<32x64xf32>
    %40 = arith.addf %38, %39 : vector<32x64xf32>
    %cst_29 = arith.constant 0.000000e+00 : f32
    %41 = vector.broadcast %cst_29 : f32 to vector<32x64xf32>
    %42 = arith.maximumf %40, %41 : vector<32x64xf32>
    %43 = arith.truncf %42 : vector<32x64xf32> to vector<32x64xbf16>
    %c136 = arith.constant 136 : index
    %c0_30 = arith.constant 0 : index
    %44 = vector.load %arg3[%c136, %c0_30] : memref<2896x256xbf16, #tpu.memory_space<vmem>>, vector<64x64xbf16>
    %cst_31 = arith.constant dense<0.000000e+00> : vector<32x64xf32>
    %45 = tpu.matmul %43, %44, %cst_31 {dimension_numbers = #tpu.dot_dimension_numbers<[1], [0], [0], [1], [0, 0, 1, 1], [], []>} : vector<32x64xbf16>, vector<64x64xbf16>, vector<32x64xf32> -> vector<32x64xf32>
    %46 = arith.truncf %45 : vector<32x64xf32> to vector<32x64xbf16>
    %c96_32 = arith.constant 96 : index
    %c0_33 = arith.constant 0 : index
    %47 = vector.load %arg1[%c96_32, %c0_33] : memref<256x128xbf16, #tpu.memory_space<vmem>>, vector<32x32xbf16>
    %cst_34 = arith.constant dense<0.000000e+00> : vector<32x64xf32>
    %48 = tpu.matmul %47, %46, %cst_34 {dimension_numbers = #tpu.dot_dimension_numbers<[1], [0], [0], [1], [0, 0, 1, 1], [], []>} : vector<32x32xbf16>, vector<32x64xbf16>, vector<32x64xf32> -> vector<32x64xf32>
    %c88 = arith.constant 88 : index
    %c0_35 = arith.constant 0 : index
    %49 = vector.load %arg2[%c88, %c0_35] : memref<200x1024xf32, #tpu.memory_space<vmem>>, vector<1x64xf32>
    %50 = vector.broadcast %49 : vector<1x64xf32> to vector<32x64xf32>
    %51 = arith.addf %48, %50 : vector<32x64xf32>
    %cst_36 = arith.constant 0.000000e+00 : f32
    %52 = vector.broadcast %cst_36 : f32 to vector<32x64xf32>
    %53 = arith.maximumf %51, %52 : vector<32x64xf32>
    %54 = arith.truncf %53 : vector<32x64xf32> to vector<32x64xbf16>
    %c200 = arith.constant 200 : index
    %c0_37 = arith.constant 0 : index
    %55 = vector.load %arg3[%c200, %c0_37] : memref<2896x256xbf16, #tpu.memory_space<vmem>>, vector<64x128xbf16>
    %cst_38 = arith.constant dense<0.000000e+00> : vector<32x128xf32>
    %56 = tpu.matmul %54, %55, %cst_38 {dimension_numbers = #tpu.dot_dimension_numbers<[1], [0], [0], [1], [0, 0, 1, 1], [], []>} : vector<32x64xbf16>, vector<64x128xbf16>, vector<32x128xf32> -> vector<32x128xf32>
    %57 = arith.truncf %56 : vector<32x128xf32> to vector<32x128xbf16>
    %c128 = arith.constant 128 : index
    %c0_39 = arith.constant 0 : index
    %58 = vector.load %arg1[%c128, %c0_39] : memref<256x128xbf16, #tpu.memory_space<vmem>>, vector<16x32xbf16>
    %cst_40 = arith.constant dense<0.000000e+00> : vector<16x128xf32>
    %59 = tpu.matmul %58, %57, %cst_40 {dimension_numbers = #tpu.dot_dimension_numbers<[1], [0], [0], [1], [0, 0, 1, 1], [], []>} : vector<16x32xbf16>, vector<32x128xbf16>, vector<16x128xf32> -> vector<16x128xf32>
    %c96_41 = arith.constant 96 : index
    %c0_42 = arith.constant 0 : index
    %60 = vector.load %arg2[%c96_41, %c0_42] : memref<200x1024xf32, #tpu.memory_space<vmem>>, vector<1x128xf32>
    %61 = vector.broadcast %60 : vector<1x128xf32> to vector<16x128xf32>
    %62 = arith.addf %59, %61 : vector<16x128xf32>
    %cst_43 = arith.constant 0.000000e+00 : f32
    %63 = vector.broadcast %cst_43 : f32 to vector<16x128xf32>
    %64 = arith.maximumf %62, %63 : vector<16x128xf32>
    %65 = arith.truncf %64 : vector<16x128xf32> to vector<16x128xbf16>
    %c264 = arith.constant 264 : index
    %c0_44 = arith.constant 0 : index
    %66 = vector.load %arg3[%c264, %c0_44] : memref<2896x256xbf16, #tpu.memory_space<vmem>>, vector<128x128xbf16>
    %cst_45 = arith.constant dense<0.000000e+00> : vector<16x128xf32>
    %67 = tpu.matmul %65, %66, %cst_45 {dimension_numbers = #tpu.dot_dimension_numbers<[1], [0], [0], [1], [0, 0, 1, 1], [], []>} : vector<16x128xbf16>, vector<128x128xbf16>, vector<16x128xf32> -> vector<16x128xf32>
    %68 = arith.truncf %67 : vector<16x128xf32> to vector<16x128xbf16>
    %c144 = arith.constant 144 : index
    %c0_46 = arith.constant 0 : index
    %69 = vector.load %arg1[%c144, %c0_46] : memref<256x128xbf16, #tpu.memory_space<vmem>>, vector<16x16xbf16>
    %cst_47 = arith.constant dense<0.000000e+00> : vector<16x128xf32>
    %70 = tpu.matmul %69, %68, %cst_47 {dimension_numbers = #tpu.dot_dimension_numbers<[1], [0], [0], [1], [0, 0, 1, 1], [], []>} : vector<16x16xbf16>, vector<16x128xbf16>, vector<16x128xf32> -> vector<16x128xf32>
    %c32 = arith.constant 32 : index
    %c0_48 = arith.constant 0 : index
    %71 = vector.load %arg2[%c32, %c0_48] : memref<200x1024xf32, #tpu.memory_space<vmem>>, vector<16x128xf32>
    %72 = arith.addf %70, %71 : vector<16x128xf32>
    %cst_49 = arith.constant 0.000000e+00 : f32
    %73 = vector.broadcast %cst_49 : f32 to vector<16x128xf32>
    %74 = arith.maximumf %72, %73 : vector<16x128xf32>
    %75 = arith.truncf %74 : vector<16x128xf32> to vector<16x128xbf16>
    %c392 = arith.constant 392 : index
    %c0_50 = arith.constant 0 : index
    %76 = vector.load %arg3[%c392, %c0_50] : memref<2896x256xbf16, #tpu.memory_space<vmem>>, vector<128x128xbf16>
    %cst_51 = arith.constant dense<0.000000e+00> : vector<16x128xf32>
    %77 = tpu.matmul %75, %76, %cst_51 {dimension_numbers = #tpu.dot_dimension_numbers<[1], [0], [0], [1], [0, 0, 1, 1], [], []>} : vector<16x128xbf16>, vector<128x128xbf16>, vector<16x128xf32> -> vector<16x128xf32>
    %78 = arith.truncf %77 : vector<16x128xf32> to vector<16x128xbf16>
    %c144_52 = arith.constant 144 : index
    %c0_53 = arith.constant 0 : index
    %79 = vector.load %arg1[%c144_52, %c0_53] : memref<256x128xbf16, #tpu.memory_space<vmem>>, vector<16x16xbf16>
    %cst_54 = arith.constant dense<0.000000e+00> : vector<16x128xf32>
    %80 = tpu.matmul %79, %78, %cst_54 {dimension_numbers = #tpu.dot_dimension_numbers<[1], [0], [0], [1], [0, 0, 1, 1], [], []>} : vector<16x16xbf16>, vector<16x128xbf16>, vector<16x128xf32> -> vector<16x128xf32>
    %c104 = arith.constant 104 : index
    %c0_55 = arith.constant 0 : index
    %81 = vector.load %arg2[%c104, %c0_55] : memref<200x1024xf32, #tpu.memory_space<vmem>>, vector<1x128xf32>
    %82 = vector.broadcast %81 : vector<1x128xf32> to vector<16x128xf32>
    %83 = arith.addf %80, %82 : vector<16x128xf32>
    %cst_56 = arith.constant 0.000000e+00 : f32
    %84 = vector.broadcast %cst_56 : f32 to vector<16x128xf32>
    %85 = arith.maximumf %83, %84 : vector<16x128xf32>
    %86 = arith.truncf %85 : vector<16x128xf32> to vector<16x128xbf16>
    %c520 = arith.constant 520 : index
    %c0_57 = arith.constant 0 : index
    %87 = vector.load %arg3[%c520, %c0_57] : memref<2896x256xbf16, #tpu.memory_space<vmem>>, vector<128x256xbf16>
    %cst_58 = arith.constant dense<0.000000e+00> : vector<16x256xf32>
    %88 = tpu.matmul %86, %87, %cst_58 {dimension_numbers = #tpu.dot_dimension_numbers<[1], [0], [0], [1], [0, 0, 1, 1], [], []>} : vector<16x128xbf16>, vector<128x256xbf16>, vector<16x256xf32> -> vector<16x256xf32>
    %89 = arith.truncf %88 : vector<16x256xf32> to vector<16x256xbf16>
    %c144_59 = arith.constant 144 : index
    %c0_60 = arith.constant 0 : index
    %90 = vector.load %arg1[%c144_59, %c0_60] : memref<256x128xbf16, #tpu.memory_space<vmem>>, vector<16x16xbf16>
    %cst_61 = arith.constant dense<0.000000e+00> : vector<16x256xf32>
    %91 = tpu.matmul %90, %89, %cst_61 {dimension_numbers = #tpu.dot_dimension_numbers<[1], [0], [0], [1], [0, 0, 1, 1], [], []>} : vector<16x16xbf16>, vector<16x256xbf16>, vector<16x256xf32> -> vector<16x256xf32>
    %c112 = arith.constant 112 : index
    %c0_62 = arith.constant 0 : index
    %92 = vector.load %arg2[%c112, %c0_62] : memref<200x1024xf32, #tpu.memory_space<vmem>>, vector<1x256xf32>
    %93 = vector.broadcast %92 : vector<1x256xf32> to vector<16x256xf32>
    %94 = arith.addf %91, %93 : vector<16x256xf32>
    %cst_63 = arith.constant 0.000000e+00 : f32
    %95 = vector.broadcast %cst_63 : f32 to vector<16x256xf32>
    %96 = arith.maximumf %94, %95 : vector<16x256xf32>
    %97 = arith.truncf %96 : vector<16x256xf32> to vector<16x256xbf16>
    tpu.wait_dma2 semaphore(%arg7 : memref<!tpu.dma_semaphore, #tpu.memory_space<semaphore_mem>>) src(%arg4 : memref<3072x1024xbf16, #tpu.memory_space<any>>) dst(%arg6 : memref<3072x1024xbf16, #tpu.memory_space<vmem>>)
    %c0_64 = arith.constant 0 : index
    %c0_65 = arith.constant 0 : index
    %98 = vector.load %arg6[%c0_64, %c0_65] : memref<3072x1024xbf16, #tpu.memory_space<vmem>>, vector<128x512xbf16>
    %cst_66 = arith.constant dense<0.000000e+00> : vector<16x512xf32>
    %99 = tpu.matmul %65, %98, %cst_66 {dimension_numbers = #tpu.dot_dimension_numbers<[1], [0], [0], [1], [0, 0, 1, 1], [], []>} : vector<16x128xbf16>, vector<128x512xbf16>, vector<16x512xf32> -> vector<16x512xf32>
    %c48 = arith.constant 48 : index
    %c0_67 = arith.constant 0 : index
    %100 = vector.load %arg2[%c48, %c0_67] : memref<200x1024xf32, #tpu.memory_space<vmem>>, vector<16x512xf32>
    %101 = arith.addf %99, %100 : vector<16x512xf32>
    %cst_68 = arith.constant 0.000000e+00 : f32
    %102 = vector.broadcast %cst_68 : f32 to vector<16x512xf32>
    %103 = arith.maximumf %101, %102 : vector<16x512xf32>
    %104 = arith.truncf %103 : vector<16x512xf32> to vector<16x512xbf16>
    %c128_69 = arith.constant 128 : index
    %c0_70 = arith.constant 0 : index
    %105 = vector.load %arg6[%c128_69, %c0_70] : memref<3072x1024xbf16, #tpu.memory_space<vmem>>, vector<512x1024xbf16>
    %cst_71 = arith.constant dense<0.000000e+00> : vector<16x1024xf32>
    %106 = tpu.matmul %104, %105, %cst_71 {dimension_numbers = #tpu.dot_dimension_numbers<[1], [0], [0], [1], [0, 0, 1, 1], [], []>} : vector<16x512xbf16>, vector<512x1024xbf16>, vector<16x1024xf32> -> vector<16x1024xf32>
    %c120 = arith.constant 120 : index
    %c0_72 = arith.constant 0 : index
    %107 = vector.load %arg2[%c120, %c0_72] : memref<200x1024xf32, #tpu.memory_space<vmem>>, vector<1x1024xf32>
    %108 = vector.broadcast %107 : vector<1x1024xf32> to vector<16x1024xf32>
    %109 = arith.addf %106, %108 : vector<16x1024xf32>
    %cst_73 = arith.constant 0.000000e+00 : f32
    %110 = vector.broadcast %cst_73 : f32 to vector<16x1024xf32>
    %111 = arith.maximumf %109, %110 : vector<16x1024xf32>
    %112 = arith.truncf %111 : vector<16x1024xf32> to vector<16x1024xbf16>
    %c648 = arith.constant 648 : index
    %c0_74 = arith.constant 0 : index
    %113 = vector.load %arg3[%c648, %c0_74] : memref<2896x256xbf16, #tpu.memory_space<vmem>>, vector<1024x64xbf16>
    %cst_75 = arith.constant dense<0.000000e+00> : vector<16x64xf32>
    %114 = tpu.matmul %112, %113, %cst_75 {dimension_numbers = #tpu.dot_dimension_numbers<[1], [0], [0], [1], [0, 0, 1, 1], [], []>} : vector<16x1024xbf16>, vector<1024x64xbf16>, vector<16x64xf32> -> vector<16x64xf32>
    %c128_76 = arith.constant 128 : index
    %c0_77 = arith.constant 0 : index
    %115 = vector.load %arg2[%c128_76, %c0_77] : memref<200x1024xf32, #tpu.memory_space<vmem>>, vector<1x64xf32>
    %116 = vector.broadcast %115 : vector<1x64xf32> to vector<16x64xf32>
    %117 = arith.addf %114, %116 : vector<16x64xf32>
    %cst_78 = arith.constant dense<0xFF800000> : vector<64xf32>
    %118 = vector.multi_reduction <maximumf>, %117, %cst_78 [0] : vector<16x64xf32> to vector<64xf32>
    %119 = vector.shape_cast %118 : vector<64xf32> to vector<1x64xf32>
    %120 = arith.truncf %119 : vector<1x64xf32> to vector<1x64xbf16>
    %c640 = arith.constant 640 : index
    %c0_79 = arith.constant 0 : index
    %121 = vector.load %arg6[%c640, %c0_79] : memref<3072x1024xbf16, #tpu.memory_space<vmem>>, vector<64x1024xbf16>
    %cst_80 = arith.constant dense<0.000000e+00> : vector<1x1024xf32>
    %122 = tpu.matmul %120, %121, %cst_80 {dimension_numbers = #tpu.dot_dimension_numbers<[1], [0], [0], [1], [0, 0, 1, 1], [], []>} : vector<1x64xbf16>, vector<64x1024xbf16>, vector<1x1024xf32> -> vector<1x1024xf32>
    %c704 = arith.constant 704 : index
    %c0_81 = arith.constant 0 : index
    %123 = vector.load %arg6[%c704, %c0_81] : memref<3072x1024xbf16, #tpu.memory_space<vmem>>, vector<256x1024xbf16>
    %cst_82 = arith.constant dense<0.000000e+00> : vector<16x1024xf32>
    %124 = tpu.matmul %97, %123, %cst_82 {dimension_numbers = #tpu.dot_dimension_numbers<[1], [0], [0], [1], [0, 0, 1, 1], [], []>} : vector<16x256xbf16>, vector<256x1024xbf16>, vector<16x1024xf32> -> vector<16x1024xf32>
    %125 = arith.truncf %124 : vector<16x1024xf32> to vector<16x1024xbf16>
    %c160 = arith.constant 160 : index
    %c0_83 = arith.constant 0 : index
    %126 = vector.load %arg1[%c160, %c0_83] : memref<256x128xbf16, #tpu.memory_space<vmem>>, vector<32x16xbf16>
    %cst_84 = arith.constant dense<0.000000e+00> : vector<32x1024xf32>
    %127 = tpu.matmul %126, %125, %cst_84 {dimension_numbers = #tpu.dot_dimension_numbers<[1], [0], [0], [1], [0, 0, 1, 1], [], []>} : vector<32x16xbf16>, vector<16x1024xbf16>, vector<32x1024xf32> -> vector<32x1024xf32>
    %128 = vector.broadcast %122 : vector<1x1024xf32> to vector<32x1024xf32>
    %129 = arith.addf %128, %127 : vector<32x1024xf32>
    %c960 = arith.constant 960 : index
    %c0_85 = arith.constant 0 : index
    %130 = vector.load %arg6[%c960, %c0_85] : memref<3072x1024xbf16, #tpu.memory_space<vmem>>, vector<64x1024xbf16>
    %cst_86 = arith.constant dense<0.000000e+00> : vector<32x1024xf32>
    %131 = tpu.matmul %33, %130, %cst_86 {dimension_numbers = #tpu.dot_dimension_numbers<[1], [0], [0], [1], [0, 0, 1, 1], [], []>} : vector<32x64xbf16>, vector<64x1024xbf16>, vector<32x1024xf32> -> vector<32x1024xf32>
    %132 = arith.addf %129, %131 : vector<32x1024xf32>
    %c96_87 = arith.constant 96 : index
    %c0_88 = arith.constant 0 : index
    %133 = vector.load %arg1[%c96_87, %c0_88] : memref<256x128xbf16, #tpu.memory_space<vmem>>, vector<32x32xbf16>
    %134 = arith.truncf %132 : vector<32x1024xf32> to vector<32x1024xbf16>
    %cst_89 = arith.constant dense<0.000000e+00> : vector<32x1024xf32>
    %135 = tpu.matmul %133, %134, %cst_89 {dimension_numbers = #tpu.dot_dimension_numbers<[1], [0], [0], [1], [0, 0, 1, 1], [], []>} : vector<32x32xbf16>, vector<32x1024xbf16>, vector<32x1024xf32> -> vector<32x1024xf32>
    %c136_90 = arith.constant 136 : index
    %c0_91 = arith.constant 0 : index
    %136 = vector.load %arg2[%c136_90, %c0_91] : memref<200x1024xf32, #tpu.memory_space<vmem>>, vector<1x1024xf32>
    %137 = vector.broadcast %136 : vector<1x1024xf32> to vector<32x1024xf32>
    %138 = arith.addf %135, %137 : vector<32x1024xf32>
    %cst_92 = arith.constant 0.000000e+00 : f32
    %139 = vector.broadcast %cst_92 : f32 to vector<32x1024xf32>
    %140 = arith.maximumf %138, %139 : vector<32x1024xf32>
    %141 = arith.truncf %140 : vector<32x1024xf32> to vector<32x1024xbf16>
    %c1024 = arith.constant 1024 : index
    %c0_93 = arith.constant 0 : index
    %142 = vector.load %arg6[%c1024, %c0_93] : memref<3072x1024xbf16, #tpu.memory_space<vmem>>, vector<1024x1024xbf16>
    %cst_94 = arith.constant dense<0.000000e+00> : vector<32x1024xf32>
    %143 = tpu.matmul %141, %142, %cst_94 {dimension_numbers = #tpu.dot_dimension_numbers<[1], [0], [0], [1], [0, 0, 1, 1], [], []>} : vector<32x1024xbf16>, vector<1024x1024xbf16>, vector<32x1024xf32> -> vector<32x1024xf32>
    %144 = arith.truncf %143 : vector<32x1024xf32> to vector<32x1024xbf16>
    %c96_95 = arith.constant 96 : index
    %c0_96 = arith.constant 0 : index
    %145 = vector.load %arg1[%c96_95, %c0_96] : memref<256x128xbf16, #tpu.memory_space<vmem>>, vector<32x32xbf16>
    %cst_97 = arith.constant dense<0.000000e+00> : vector<32x1024xf32>
    %146 = tpu.matmul %145, %144, %cst_97 {dimension_numbers = #tpu.dot_dimension_numbers<[1], [0], [0], [1], [0, 0, 1, 1], [], []>} : vector<32x32xbf16>, vector<32x1024xbf16>, vector<32x1024xf32> -> vector<32x1024xf32>
    %c144_98 = arith.constant 144 : index
    %c0_99 = arith.constant 0 : index
    %147 = vector.load %arg2[%c144_98, %c0_99] : memref<200x1024xf32, #tpu.memory_space<vmem>>, vector<1x1024xf32>
    %148 = vector.broadcast %147 : vector<1x1024xf32> to vector<32x1024xf32>
    %149 = arith.addf %146, %148 : vector<32x1024xf32>
    %cst_100 = arith.constant 0.000000e+00 : f32
    %150 = vector.broadcast %cst_100 : f32 to vector<32x1024xf32>
    %151 = arith.maximumf %149, %150 : vector<32x1024xf32>
    %152 = arith.truncf %151 : vector<32x1024xf32> to vector<32x1024xbf16>
    %c2048 = arith.constant 2048 : index
    %c0_101 = arith.constant 0 : index
    %153 = vector.load %arg6[%c2048, %c0_101] : memref<3072x1024xbf16, #tpu.memory_space<vmem>>, vector<1024x512xbf16>
    %cst_102 = arith.constant dense<0.000000e+00> : vector<32x512xf32>
    %154 = tpu.matmul %152, %153, %cst_102 {dimension_numbers = #tpu.dot_dimension_numbers<[1], [0], [0], [1], [0, 0, 1, 1], [], []>} : vector<32x1024xbf16>, vector<1024x512xbf16>, vector<32x512xf32> -> vector<32x512xf32>
    %155 = arith.truncf %154 : vector<32x512xf32> to vector<32x512xbf16>
    %c96_103 = arith.constant 96 : index
    %c0_104 = arith.constant 0 : index
    %156 = vector.load %arg1[%c96_103, %c0_104] : memref<256x128xbf16, #tpu.memory_space<vmem>>, vector<32x32xbf16>
    %cst_105 = arith.constant dense<0.000000e+00> : vector<32x512xf32>
    %157 = tpu.matmul %156, %155, %cst_105 {dimension_numbers = #tpu.dot_dimension_numbers<[1], [0], [0], [1], [0, 0, 1, 1], [], []>} : vector<32x32xbf16>, vector<32x512xbf16>, vector<32x512xf32> -> vector<32x512xf32>
    %c152 = arith.constant 152 : index
    %c0_106 = arith.constant 0 : index
    %158 = vector.load %arg2[%c152, %c0_106] : memref<200x1024xf32, #tpu.memory_space<vmem>>, vector<1x512xf32>
    %159 = vector.broadcast %158 : vector<1x512xf32> to vector<32x512xf32>
    %160 = arith.addf %157, %159 : vector<32x512xf32>
    %cst_107 = arith.constant 0.000000e+00 : f32
    %161 = vector.broadcast %cst_107 : f32 to vector<32x512xf32>
    %162 = arith.maximumf %160, %161 : vector<32x512xf32>
    %163 = arith.truncf %162 : vector<32x512xf32> to vector<32x512xbf16>
    %c1672 = arith.constant 1672 : index
    %c0_108 = arith.constant 0 : index
    %164 = vector.load %arg3[%c1672, %c0_108] : memref<2896x256xbf16, #tpu.memory_space<vmem>>, vector<512x256xbf16>
    %cst_109 = arith.constant dense<0.000000e+00> : vector<32x256xf32>
    %165 = tpu.matmul %163, %164, %cst_109 {dimension_numbers = #tpu.dot_dimension_numbers<[1], [0], [0], [1], [0, 0, 1, 1], [], []>} : vector<32x512xbf16>, vector<512x256xbf16>, vector<32x256xf32> -> vector<32x256xf32>
    %166 = arith.truncf %165 : vector<32x256xf32> to vector<32x256xbf16>
    %c192 = arith.constant 192 : index
    %c0_110 = arith.constant 0 : index
    %167 = vector.load %arg1[%c192, %c0_110] : memref<256x128xbf16, #tpu.memory_space<vmem>>, vector<64x32xbf16>
    %cst_111 = arith.constant dense<0.000000e+00> : vector<64x256xf32>
    %168 = tpu.matmul %167, %166, %cst_111 {dimension_numbers = #tpu.dot_dimension_numbers<[1], [0], [0], [1], [0, 0, 1, 1], [], []>} : vector<64x32xbf16>, vector<32x256xbf16>, vector<64x256xf32> -> vector<64x256xf32>
    %c2184 = arith.constant 2184 : index
    %c0_112 = arith.constant 0 : index
    %169 = vector.load %arg3[%c2184, %c0_112] : memref<2896x256xbf16, #tpu.memory_space<vmem>>, vector<6x256xbf16>
    %cst_113 = arith.constant dense<0.000000e+00> : vector<64x256xf32>
    %170 = tpu.matmul %0, %169, %cst_113 {dimension_numbers = #tpu.dot_dimension_numbers<[1], [0], [0], [1], [0, 0, 1, 1], [], []>} : vector<64x6xbf16>, vector<6x256xbf16>, vector<64x256xf32> -> vector<64x256xf32>
    %171 = arith.addf %168, %170 : vector<64x256xf32>
    %c0_114 = arith.constant 0 : index
    %c0_115 = arith.constant 0 : index
    %172 = vector.load %arg1[%c0_114, %c0_115] : memref<256x128xbf16, #tpu.memory_space<vmem>>, vector<64x64xbf16>
    %173 = arith.truncf %171 : vector<64x256xf32> to vector<64x256xbf16>
    %cst_116 = arith.constant dense<0.000000e+00> : vector<64x256xf32>
    %174 = tpu.matmul %172, %173, %cst_116 {dimension_numbers = #tpu.dot_dimension_numbers<[1], [0], [0], [1], [0, 0, 1, 1], [], []>} : vector<64x64xbf16>, vector<64x256xbf16>, vector<64x256xf32> -> vector<64x256xf32>
    %c160_117 = arith.constant 160 : index
    %c0_118 = arith.constant 0 : index
    %175 = vector.load %arg2[%c160_117, %c0_118] : memref<200x1024xf32, #tpu.memory_space<vmem>>, vector<1x256xf32>
    %176 = vector.broadcast %175 : vector<1x256xf32> to vector<64x256xf32>
    %177 = arith.addf %174, %176 : vector<64x256xf32>
    %cst_119 = arith.constant 0.000000e+00 : f32
    %178 = vector.broadcast %cst_119 : f32 to vector<64x256xf32>
    %179 = arith.maximumf %177, %178 : vector<64x256xf32>
    %180 = arith.truncf %179 : vector<64x256xf32> to vector<64x256xbf16>
    %c2192 = arith.constant 2192 : index
    %c0_120 = arith.constant 0 : index
    %181 = vector.load %arg3[%c2192, %c0_120] : memref<2896x256xbf16, #tpu.memory_space<vmem>>, vector<256x256xbf16>
    %cst_121 = arith.constant dense<0.000000e+00> : vector<64x256xf32>
    %182 = tpu.matmul %180, %181, %cst_121 {dimension_numbers = #tpu.dot_dimension_numbers<[1], [0], [0], [1], [0, 0, 1, 1], [], []>} : vector<64x256xbf16>, vector<256x256xbf16>, vector<64x256xf32> -> vector<64x256xf32>
    %183 = arith.truncf %182 : vector<64x256xf32> to vector<64x256xbf16>
    %c0_122 = arith.constant 0 : index
    %c0_123 = arith.constant 0 : index
    %184 = vector.load %arg1[%c0_122, %c0_123] : memref<256x128xbf16, #tpu.memory_space<vmem>>, vector<64x64xbf16>
    %cst_124 = arith.constant dense<0.000000e+00> : vector<64x256xf32>
    %185 = tpu.matmul %184, %183, %cst_124 {dimension_numbers = #tpu.dot_dimension_numbers<[1], [0], [0], [1], [0, 0, 1, 1], [], []>} : vector<64x64xbf16>, vector<64x256xbf16>, vector<64x256xf32> -> vector<64x256xf32>
    %c168 = arith.constant 168 : index
    %c0_125 = arith.constant 0 : index
    %186 = vector.load %arg2[%c168, %c0_125] : memref<200x1024xf32, #tpu.memory_space<vmem>>, vector<1x256xf32>
    %187 = vector.broadcast %186 : vector<1x256xf32> to vector<64x256xf32>
    %188 = arith.addf %185, %187 : vector<64x256xf32>
    %cst_126 = arith.constant 0.000000e+00 : f32
    %189 = vector.broadcast %cst_126 : f32 to vector<64x256xf32>
    %190 = arith.maximumf %188, %189 : vector<64x256xf32>
    %191 = arith.truncf %190 : vector<64x256xf32> to vector<64x256xbf16>
    %c2448 = arith.constant 2448 : index
    %c0_127 = arith.constant 0 : index
    %192 = vector.load %arg3[%c2448, %c0_127] : memref<2896x256xbf16, #tpu.memory_space<vmem>>, vector<256x128xbf16>
    %cst_128 = arith.constant dense<0.000000e+00> : vector<64x128xf32>
    %193 = tpu.matmul %191, %192, %cst_128 {dimension_numbers = #tpu.dot_dimension_numbers<[1], [0], [0], [1], [0, 0, 1, 1], [], []>} : vector<64x256xbf16>, vector<256x128xbf16>, vector<64x128xf32> -> vector<64x128xf32>
    %194 = arith.truncf %193 : vector<64x128xf32> to vector<64x128xbf16>
    %c0_129 = arith.constant 0 : index
    %c0_130 = arith.constant 0 : index
    %195 = vector.load %arg1[%c0_129, %c0_130] : memref<256x128xbf16, #tpu.memory_space<vmem>>, vector<64x64xbf16>
    %cst_131 = arith.constant dense<0.000000e+00> : vector<64x128xf32>
    %196 = tpu.matmul %195, %194, %cst_131 {dimension_numbers = #tpu.dot_dimension_numbers<[1], [0], [0], [1], [0, 0, 1, 1], [], []>} : vector<64x64xbf16>, vector<64x128xbf16>, vector<64x128xf32> -> vector<64x128xf32>
    %c176 = arith.constant 176 : index
    %c0_132 = arith.constant 0 : index
    %197 = vector.load %arg2[%c176, %c0_132] : memref<200x1024xf32, #tpu.memory_space<vmem>>, vector<1x128xf32>
    %198 = vector.broadcast %197 : vector<1x128xf32> to vector<64x128xf32>
    %199 = arith.addf %196, %198 : vector<64x128xf32>
    %cst_133 = arith.constant 0.000000e+00 : f32
    %200 = vector.broadcast %cst_133 : f32 to vector<64x128xf32>
    %201 = arith.maximumf %199, %200 : vector<64x128xf32>
    %202 = arith.truncf %201 : vector<64x128xf32> to vector<64x128xbf16>
    %c2704 = arith.constant 2704 : index
    %c0_134 = arith.constant 0 : index
    %203 = vector.load %arg3[%c2704, %c0_134] : memref<2896x256xbf16, #tpu.memory_space<vmem>>, vector<128x64xbf16>
    %cst_135 = arith.constant dense<0.000000e+00> : vector<64x64xf32>
    %204 = tpu.matmul %202, %203, %cst_135 {dimension_numbers = #tpu.dot_dimension_numbers<[1], [0], [0], [1], [0, 0, 1, 1], [], []>} : vector<64x128xbf16>, vector<128x64xbf16>, vector<64x64xf32> -> vector<64x64xf32>
    %c184 = arith.constant 184 : index
    %c0_136 = arith.constant 0 : index
    %205 = vector.load %arg2[%c184, %c0_136] : memref<200x1024xf32, #tpu.memory_space<vmem>>, vector<1x64xf32>
    %206 = vector.broadcast %205 : vector<1x64xf32> to vector<64x64xf32>
    %207 = arith.addf %204, %206 : vector<64x64xf32>
    %cst_137 = arith.constant 0.000000e+00 : f32
    %208 = vector.broadcast %cst_137 : f32 to vector<64x64xf32>
    %209 = arith.maximumf %207, %208 : vector<64x64xf32>
    %210 = arith.truncf %209 : vector<64x64xf32> to vector<64x64xbf16>
    %c2832 = arith.constant 2832 : index
    %c0_138 = arith.constant 0 : index
    %211 = vector.load %arg3[%c2832, %c0_138] : memref<2896x256xbf16, #tpu.memory_space<vmem>>, vector<64x4xbf16>
    %cst_139 = arith.constant dense<0.000000e+00> : vector<64x4xf32>
    %212 = tpu.matmul %210, %211, %cst_139 {dimension_numbers = #tpu.dot_dimension_numbers<[1], [0], [0], [1], [0, 0, 1, 1], [], []>} : vector<64x64xbf16>, vector<64x4xbf16>, vector<64x4xf32> -> vector<64x4xf32>
    %c192_140 = arith.constant 192 : index
    %c0_141 = arith.constant 0 : index
    %213 = vector.load %arg2[%c192_140, %c0_141] : memref<200x1024xf32, #tpu.memory_space<vmem>>, vector<1x4xf32>
    %214 = vector.broadcast %213 : vector<1x4xf32> to vector<64x4xf32>
    %215 = arith.addf %212, %214 : vector<64x4xf32>
    %c0_142 = arith.constant 0 : index
    %c0_143 = arith.constant 0 : index
    %216 = vector.load %arg5[%c0_142, %c0_143] : memref<64x4xf32, #tpu.memory_space<vmem>>, vector<64x4xf32>
    tpu.vector_store %arg5[%c0_142, %c0_143], %215 {strides = array<i32>} : memref<64x4xf32, #tpu.memory_space<vmem>>, vector<64x4xf32>,
    return
  }
}

</mosaic_0001>

<bundles_post_ra>
// kernel: fwd.1
= control target key start
LH: loop header
LB: loop body
LE: loop exit
PB: predicated region body
PF: predicated region fallthrough
CT: control target
= control target key end

     0   :  { %10 = vsyncpa [#allocation5], 0  ;;  %s18789_s0 = inlined_call_operand.vmem [shape: bf16[64,6], index: 0, kind: input, shape index: {}]   ;;  %s18790_s1 = inlined_call_operand.hbm [shape: bf16[256,128], index: 1, kind: input, shape index: {}]   ;;  %s18791_s2 = inlined_call_operand.hbm [shape: f32[200,1024], index: 2, kind: input, shape index: {}]   ;;  %s18792_s3 = inlined_call_operand.hbm [shape: bf16[2896,256], index: 3, kind: input, shape index: {}]   ;;  %s18793_s4 = inlined_call_operand.hbm [shape: bf16[3072,1024], index: 4, kind: input, shape index: {}]   ;;  %s18794_s5 = inlined_call_operand.vmem [shape: f32[64,4], index: 5, kind: output, shape index: {}]  }
   0x1   :  { %11 = vsyncpa [#allocation7], 0  ;;  %s17618_s18 = smov [#allocation6]  }
   0x2   :  { %s31_s19 = sshll.u32 %s17618_s18, 4  ;;  %s32_s19 = int_to_ptr.vmem [resolvable:$true] %s31_s19 }
   0x3   :  { %s17540_s20 = scalar_lea.vmem %s32_s19, 25600  ;;  %p17545_p1 = scmp.lt.s32.totalorder %s32_s19, %s32_s19 }
   0x4   :  { %p17541_p0 = scmp.ne.s32.totalorder %s32_s19, %s17540_s20  ;;  %p17546_p2 = scmp.lt.s32.totalorder %s17540_s20, %s17540_s20 }
   0x6   :  { %p17547_p3 = por %p17546_p2, %p17545_p1 }
   0x8   :  { %p17548_p4 = pnand %p17547_p3, %p17541_p0 }
   0xa   :  { %17551 = shalt.err (!%p17548_p4)
}
   0xb   :  { %s17619_s21 = smov 1024   ;;  %s17620_s22 = smov 64  }
   0xc   :  { %37 = dma.hbm_to_vmem [thread:$0]  %s18791_s2, 25600, %s32_s19, [#allocation7], %s17619_s21, %s17619_s21, %s17620_s22  }
   0xd   :  { %s17621_s25 = smov [#allocation4]  }
   0xe   :  { %s19_s26 = sshll.u32 %s17621_s25, 4  ;;  %s20_s26 = int_to_ptr.vmem [resolvable:$true] %s19_s26 }
   0xf   :  { %s17560_s27 = scalar_lea.vmem %s20_s26, 2048  ;;  %p17565_p6 = scmp.lt.s32.totalorder %s20_s26, %s20_s26 }
  0x10   :  { %p17561_p5 = scmp.ne.s32.totalorder %s20_s26, %s17560_s27  ;;  %p17566_p7 = scmp.lt.s32.totalorder %s17560_s27, %s17560_s27 }
  0x12   :  { %p17567_p8 = por %p17566_p7, %p17565_p6 }
  0x14   :  { %p17568_p9 = pnand %p17567_p8, %p17561_p5 }
  0x16   :  { %17571 = shalt.err (!%p17568_p9)
}
  0x17   :  { %s17622_s28 = smov 4   ;;  %s17623_s6 = smov [#allocation8]  }
  0x18   :  { %25 = dma.hbm_to_vmem [thread:$0]  %s18790_s1, 2048, %s20_s26, [#allocation5], %s17620_s22, %s17620_s22, %s17622_s28  }
  0x19   :  { %s43_s7 = sshll.u32 %s17623_s6, 4  ;;  %s44_s7 = int_to_ptr.vmem [resolvable:$true] %s43_s7 }
  0x1a   :  { %s17580_s8 = scalar_lea.vmem %s44_s7, 46336  ;;  %p17585_p11 = scmp.lt.s32.totalorder %s44_s7, %s44_s7 }
  0x1b   :  { %p17581_p10 = scmp.ne.s32.totalorder %s44_s7, %s17580_s8  ;;  %p17586_p12 = scmp.lt.s32.totalorder %s17580_s8, %s17580_s8 }
  0x1d   :  { %p17587_p13 = por %p17586_p12, %p17585_p11 }
  0x1f   :  { %p17588_p0 = pnand %p17587_p13, %p17581_p10 }
  0x21   :  { %17591 = shalt.err (!%p17588_p0)
}
  0x22   :  { %s17624_s2 = smov 128   ;;  %s17625_s9 = smov 8  }
  0x23   :  { %49 = dma.hbm_to_vmem [thread:$0]  %s18792_s3, 46336, %s44_s7, [#allocation7], %s17624_s2, %s17624_s2, %s17625_s9  }
  0x24   :  { %17612 = dma.done.wait [#allocation5], 2048  }
  0x25   :  { %17613 = vsyncadd [#allocation5], 4294965248 }
  0x26   :  { %17614 = dma.done.wait [#allocation7], 71936  }
  0x27   :  { %17615 = vsyncadd [#allocation7], 4294895360  ;;  %vm113_vm0 = vcmask 1042432   ;;  %vm100_vm1 = vcmask 48128   ;;  %v79_v0 = vld [vmem:[#allocation8] sm:$0x7] }
  0x28   :  { %17195 = vmatprep.subr.msk.bf16.mxu0 %vm113_vm0, %v79_v0  ;;  %v115_v1 = vsel %vm113_vm0, %v79_v0, 0  ;;  %v17674_v2 = vld [vmem:[%s18789_s0] sm:$0xff]   ;;  %v17679_v3 = vld [vmem:[%s18789_s0 + $0x8] sm:$0xff]   ;;  %v17686_v4 = vld [vmem:[%s18789_s0 + $0x10] sm:$0xff]   ;;  %vm215_vm2 = vcmask 523264   ;;  %vm321_vm3 = vcmask 261120  }
  0x29   :  { %18817 = vst [vmem:[#allocation16_spill] sm:$0xff] %v17674_v2  ;;  %16950 = vmatpush3.bf16.msra.mxu0 %v115_v1  ;;  %18818 = vst [vmem:[#allocation17_spill] sm:$0xff] %v17679_v3  ;;  %16951 = vmatprep.mubr.msk.bf16.mxu0 %vm100_vm1, %v17674_v2  ;;  %v17695_v5 = vld [vmem:[%s18789_s0 + $0x18] sm:$0xff]   ;;  %v17212_v6 = vld [vmem:[#allocation4] sm:$0xff]   ;;  %vm17627_vm4 = vmmov 0   ;;  %vm1226_vm5 = vcmask 130048  }
  0x2a   :  { %18819 = vst [vmem:[#allocation18_spill] sm:$0xff] %v17686_v4  ;;  %18820 = vst [vmem:[#allocation19_spill] sm:$0xff] %v17695_v5  ;;  %16967 = vmatprep.mubr.msk.bf16.mxu1 %vm215_vm2, %v17212_v6  ;;  %v17700_v19 = vld [vmem:[#allocation4 + $0x8] sm:$0xff]   ;;  %v17702_v20 = vld [vmem:[#allocation4 + $0x10] sm:$0xff]   ;;  %s17629_s0 = smov [#allocation2]  }
  0x2b   :  { %v17708_v21 = vld [vmem:[#allocation4 + $0x18] sm:$0xff]   ;;  %v17217_v23 = vld [vmem:[#allocation8 + $0x8] ss:$8 sps:$4 sm:$0xff]   ;;  %v194_v26 = vld [vmem:[#allocation6 + $0x200] ss:$0 sm:$0xff]  ;;  %s67_s18 = sshll.u32 %s17629_s0, 4  ;;  %s68_s18 = int_to_ptr.vmem [resolvable:$true] %s67_s18 }
  0x2c   :  { %16952 = vmatmul.mubr.msk.bf16.vlgmr.msra.gmra.mxu0 %vm100_vm1, %v17679_v3  ;;  %v17216_v22 = vld [vmem:[#allocation8 + $0x18] ss:$8 sps:$4 sm:$0xff]   ;;  %s17600_s19 = scalar_lea.vmem %s68_s18, 196608  ;;  %p17605_p2 = scmp.lt.s32.totalorder %s68_s18, %s68_s18 }
  0x2d   :  { %16955 = vmatprep.mubr.msk.bf16.mxu0 %vm100_vm1, %v17686_v4  ;;  %16975 = vmatprep.subr.bf16.mxu0 %v17216_v22  ;;  %v17218_v1 = vld [vmem:[#allocation8 + $0x38] ss:$8 sps:$4 sm:$0xff]   ;;  %p17601_p1 = scmp.ne.s32.totalorder %s68_s18, %s17600_s19  ;;  %p17606_p3 = scmp.lt.s32.totalorder %s17600_s19, %s17600_s19 }
  0x2e   :  { %16976 = vmatpush3.bf16.msra.mxu0 %v17216_v22 }
  0x2f   :  { %16977 = vmatprep.subr.bf16.mxu0 %v17217_v23  ;;  %p17607_p4 = por %p17606_p3, %p17605_p2 }
  0x31   :  { %p17608_p5 = pnand %p17607_p4, %p17601_p1 }
  0x32   :  { %16978 = vmatpush3.bf16.msra.mxu0 %v17217_v23 }
  0x33   :  { %17003 = vmatprep.subr.bf16.mxu0 %v17218_v1 }
  0x34   :  { %16956 = vmatmul.mubr.msk.bf16.gmra.mxu0 %vm100_vm1, %v17695_v5 }
  0xec   :  { %v16953_v7 = vpop.f32.mrf.mxu0 }
  0xee   :  { %v151_v8 = vpop.f32.mrf.mxu0 }
  0xf0   :  { %v16954_v9 = vpop.f32.mrf.mxu0 }
  0xf1   :  { %v183_v17 = vpack.c.bf16 %v16954_v9, %v16953_v7  ;;  %v403_v9 = vld [vmem:[#allocation6 + $0x240] ss:$0 sm:$0xff] }
  0xf2   :  { %v154_v10 = vpop.f32.mrf.mxu0 }
  0xf3   :  { %v182_v18 = vpack.c.bf16 %v154_v10, %v151_v8 }
  0xf4   :  { %v16957_v11 = vpop.f32.mrf.mxu0 }
  0xf6   :  { %v167_v12 = vpop.f32.mrf.mxu0 }
  0xf8   :  { %v16958_v13 = vpop.f32.mrf.mxu0 }
  0xf9   :  { %v185_v14 = vpack.c.bf16 %v16958_v13, %v16957_v11 }
  0xfa   :  { %v170_v15 = vpop.f32.mrf.mxu0 }
  0xfb   :  { %v184_v16 = vpack.c.bf16 %v170_v15, %v167_v12  ;;  %16959 = vmatprep.subr.bf16.mxu1 %v185_v14 }
  0xfc   :  { %16960 = vmatpush3.bf16.msra.mxu1 %v185_v14 }
  0xfd   :  { %16961 = vmatprep.subr.bf16.mxu1 %v184_v16 }
 0x100   :  { %16962 = vmatpush3.bf16.msra.mxu1 %v184_v16 }
 0x101   :  { %16963 = vmatprep.subr.bf16.mxu1 %v183_v17 }
 0x104   :  { %16964 = vmatpush3.bf16.msra.mxu1 %v183_v17 }
 0x105   :  { %16965 = vmatprep.subr.bf16.mxu1 %v182_v18 }
 0x108   :  { %16966 = vmatpush3.bf16.msra.mxu1 %v182_v18 }
 0x10b   :  { %16968 = vmatmul.mubr.msk.bf16.vlgmr.msra.gmra.mxu1 %vm215_vm2, %v17700_v19 }
 0x10c   :  { %16971 = vmatprep.mubr.msk.bf16.mxu1 %vm215_vm2, %v17702_v20 }
 0x113   :  { %16972 = vmatmul.mubr.msk.bf16.gmra.mxu1 %vm215_vm2, %v17708_v21 }
 0x114   :  { %16995 = vmatprep.mubr.msk.bf16.mxu1 %vm215_vm2, %v17212_v6  ;;  %v17219_v6 = vld [vmem:[#allocation8 + $0x28] ss:$8 sps:$4 sm:$0xff]  }
 0x1cb   :  { %v16969_v24 = vpop.f32.mrf.mxu1 }
 0x1cc   :  { %v271_v30 = vadd.f32 %v16969_v24, %v194_v26 }
 0x1cd   :  { %v262_v25 = vpop.f32.mrf.mxu1 }
 0x1ce   :  { %v263_v28 = vadd.f32 %v262_v25, %v194_v26  ;;  %v295_v37 = vmax.f32 %v271_v30, 0.0 }
 0x1cf   :  { %v16970_v27 = vpop.f32.mrf.mxu1 }
 0x1d0   :  { %v274_v29 = vadd.f32 %v16970_v27, %v194_v26  ;;  %v293_v35 = vmax.f32 %v263_v28, 0.0 }
 0x1d1   :  { %v265_v31 = vpop.f32.mrf.mxu1 }
 0x1d2   :  { %v266_v32 = vadd.f32 %v265_v31, %v194_v26  ;;  %v296_v33 = vmax.f32 %v274_v29, 0.0 }
 0x1d3   :  { %v16973_v34 = vpop.f32.mrf.mxu1 }
 0x1d4   :  { %v294_v36 = vmax.f32 %v266_v32, 0.0  ;;  %v302_v40 = vpack.c.bf16 %v296_v33, %v295_v37  ;;  %v287_v44 = vadd.f32 %v16973_v34, %v194_v26  ;;  %v17222_v37 = vld [vmem:[#allocation8 + $0x78] ss:$8 sps:$4 sm:$0xff]  }
 0x1d5   :  { %v278_v38 = vpop.f32.mrf.mxu1 }
 0x1d6   :  { %v301_v39 = vpack.c.bf16 %v294_v36, %v293_v35  ;;  %v279_v42 = vadd.f32 %v278_v38, %v194_v26  ;;  %v299_v50 = vmax.f32 %v287_v44, 0.0  ;;  %v17220_v36 = vld [vmem:[#allocation4 + $0x20] sm:$0xff]  }
 0x1d7   :  { %v16974_v41 = vpop.f32.mrf.mxu1 }
 0x1d8   :  { %v290_v43 = vadd.f32 %v16974_v41, %v194_v26  ;;  %16979 = vmatprep.mubr.msk.bf16.mxu0 %vm321_vm3, %v301_v39  ;;  %v297_v48 = vmax.f32 %v279_v42, 0.0 }
 0x1d9   :  { %v281_v45 = vpop.f32.mrf.mxu1  ;;  %16980 = vmatmul.mubr.msk.bf16.vlgmr.msra.gmra.mxu0 %vm321_vm3, %v302_v40 }
 0x1da   :  { %v282_v46 = vadd.f32 %v281_v45, %v194_v26  ;;  %v300_v47 = vmax.f32 %v290_v43, 0.0  ;;  %17004 = vmatpush3.bf16.msra.mxu0 %v17218_v1 }
 0x1db   :  { %17005 = vmatprep.subr.bf16.mxu0 %v17219_v6 }
 0x1dc   :  { %v298_v49 = vmax.f32 %v282_v46, 0.0  ;;  %v304_v52 = vpack.c.bf16 %v300_v47, %v299_v50  ;;  %v17221_v50 = vld [vmem:[#allocation4 + $0x28] sm:$0xff]  }
 0x1de   :  { %v303_v51 = vpack.c.bf16 %v298_v49, %v297_v48  ;;  %17006 = vmatpush3.bf16.msra.mxu0 %v17219_v6 }
 0x1df   :  { %17027 = vmatprep.subr.bf16.mxu0 %v17222_v37 }
 0x1e0   :  { %16983 = vmatprep.mubr.msk.bf16.mxu0 %vm321_vm3, %v303_v51  ;;  %v17223_v51 = vld [vmem:[#allocation8 + $0x68] ss:$8 sps:$4 sm:$0xff]  }
 0x1e1   :  { %16984 = vmatmul.mubr.msk.bf16.gmra.mxu0 %vm321_vm3, %v304_v52  ;;  %v17224_v52 = vld [vmem:[#allocation8 + $0x58] ss:$8 sps:$4 sm:$0xff]  }
 0x299   :  { %v16981_v53 = vpop.f32.mrf.mxu0 }
 0x29b   :  { %v368_v54 = vpop.f32.mrf.mxu0 }
 0x29d   :  { %v16982_v55 = vpop.f32.mrf.mxu0 }
 0x29e   :  { %v400_v63 = vpack.c.bf16 %v16982_v55, %v16981_v53  ;;  %v17225_v53 = vld [vmem:[#allocation8 + $0x48] ss:$8 sps:$4 sm:$0xff]  }
 0x29f   :  { %v371_v56 = vpop.f32.mrf.mxu0 }
 0x2a0   :  { %v399_v0 = vpack.c.bf16 %v371_v56, %v368_v54  ;;  %v582_v56 = vld [vmem:[#allocation6 + $0x280] ss:$0 sm:$0xff] }
 0x2a1   :  { %v16985_v57 = vpop.f32.mrf.mxu0 }
 0x2a3   :  { %v384_v58 = vpop.f32.mrf.mxu0 }
 0x2a5   :  { %v16986_v59 = vpop.f32.mrf.mxu0 }
 0x2a6   :  { %v402_v60 = vpack.c.bf16 %v16986_v59, %v16985_v57 }
 0x2a7   :  { %v387_v61 = vpop.f32.mrf.mxu0 }
 0x2a8   :  { %v401_v62 = vpack.c.bf16 %v387_v61, %v384_v58  ;;  %16987 = vmatprep.subr.bf16.mxu1 %v402_v60 }
 0x2a9   :  { %16988 = vmatpush3.bf16.msra.mxu1 %v402_v60 }
 0x2aa   :  { %16989 = vmatprep.subr.bf16.mxu1 %v401_v62 }
 0x2ad   :  { %16990 = vmatpush3.bf16.msra.mxu1 %v401_v62 }
 0x2ae   :  { %16991 = vmatprep.subr.bf16.mxu1 %v400_v63 }
 0x2b1   :  { %16992 = vmatpush3.bf16.msra.mxu1 %v400_v63 }
 0x2b2   :  { %16993 = vmatprep.subr.bf16.mxu1 %v399_v0 }
 0x2b5   :  { %16994 = vmatpush3.bf16.msra.mxu1 %v399_v0 }
 0x2b8   :  { %16996 = vmatmul.mubr.msk.bf16.vlgmr.msra.gmra.mxu1 %vm215_vm2, %v17700_v19 }
 0x2b9   :  { %16999 = vmatprep.mubr.msk.bf16.mxu1 %vm215_vm2, %v17702_v20 }
 0x2c0   :  { %17000 = vmatmul.mubr.msk.bf16.gmra.mxu1 %vm215_vm2, %v17708_v21 }
 0x2c1   :  { %17023 = vmatprep.mubr.msk.bf16.mxu1 %vm215_vm2, %v17220_v36 }
 0x378   :  { %v16997_v7 = vpop.f32.mrf.mxu1 }
 0x379   :  { %v447_v13 = vadd.f32 %v16997_v7, %v403_v9 }
 0x37a   :  { %v438_v8 = vpop.f32.mrf.mxu1 }
 0x37b   :  { %v439_v11 = vadd.f32 %v438_v8, %v403_v9  ;;  %v471_v20 = vmax.f32 %v447_v13, 0.0 }
 0x37c   :  { %v16998_v10 = vpop.f32.mrf.mxu1 }
 0x37d   :  { %v450_v12 = vadd.f32 %v16998_v10, %v403_v9  ;;  %v469_v18 = vmax.f32 %v439_v11, 0.0  ;;  %v17228_v10 = vld [vmem:[#allocation8 + $0xb8] ss:$8 sps:$4 sm:$0xff]  }
 0x37e   :  { %v441_v14 = vpop.f32.mrf.mxu1 }
 0x37f   :  { %v442_v15 = vadd.f32 %v441_v14, %v403_v9  ;;  %v472_v16 = vmax.f32 %v450_v12, 0.0 }
 0x380   :  { %v17001_v17 = vpop.f32.mrf.mxu1 }
 0x381   :  { %v470_v19 = vmax.f32 %v442_v15, 0.0  ;;  %v478_v23 = vpack.c.bf16 %v472_v16, %v471_v20  ;;  %v463_v27 = vadd.f32 %v17001_v17, %v403_v9  ;;  %v17227_v17 = vld [vmem:[#allocation4 + $0x38] sm:$0xff]   ;;  %v17231_v20 = vld [vmem:[#allocation8 + $0x88] ss:$8 sps:$4 sm:$0xff]  }
 0x382   :  { %v454_v21 = vpop.f32.mrf.mxu1 }
 0x383   :  { %v477_v22 = vpack.c.bf16 %v470_v19, %v469_v18  ;;  %v455_v25 = vadd.f32 %v454_v21, %v403_v9  ;;  %v475_v33 = vmax.f32 %v463_v27, 0.0  ;;  %v17229_v18 = vld [vmem:[#allocation8 + $0xa8] ss:$8 sps:$4 sm:$0xff]   ;;  %v17230_v19 = vld [vmem:[#allocation8 + $0x98] ss:$8 sps:$4 sm:$0xff]  }
 0x384   :  { %v17002_v24 = vpop.f32.mrf.mxu1  ;;  %v748_v27 = vld [vmem:[#allocation6 + $0x40] sm:$0xff] }
 0x385   :  { %v466_v26 = vadd.f32 %v17002_v24, %v403_v9  ;;  %17007 = vmatprep.mubr.msk.bf16.mxu0 %vm321_vm3, %v477_v22  ;;  %v473_v31 = vmax.f32 %v455_v25, 0.0  ;;  %v750_v24 = vld [vmem:[#allocation6 + $0xc0] sm:$0xff] }
 0x386   :  { %v457_v28 = vpop.f32.mrf.mxu1  ;;  %17008 = vmatmul.mubr.msk.bf16.vlgmr.msra.gmra.mxu0 %vm321_vm3, %v478_v23  ;;  %v747_v23 = vld [vmem:[#allocation6] sm:$0xff] }
 0x387   :  { %v458_v29 = vadd.f32 %v457_v28, %v403_v9  ;;  %v476_v30 = vmax.f32 %v466_v26, 0.0  ;;  %17028 = vmatpush3.bf16.msra.mxu0 %v17222_v37  ;;  %v17226_v9 = vld [vmem:[#allocation4 + $0x30] sm:$0xff]   ;;  %v749_v25 = vld [vmem:[#allocation6 + $0x80] sm:$0xff] }
 0x388   :  { %17029 = vmatprep.subr.bf16.mxu0 %v17223_v51 }
 0x389   :  { %v474_v32 = vmax.f32 %v458_v29, 0.0  ;;  %v480_v35 = vpack.c.bf16 %v476_v30, %v475_v33 }
 0x38b   :  { %v479_v34 = vpack.c.bf16 %v474_v32, %v473_v31  ;;  %17030 = vmatpush3.bf16.msra.mxu0 %v17223_v51  ;;  %v911_v51 = vld [vmem:[#allocation6 + $0x2c0] ss:$0 sm:$0xff] }
 0x38c   :  { %17031 = vmatprep.subr.bf16.mxu0 %v17224_v52 }
 0x38d   :  { %17011 = vmatprep.mubr.msk.bf16.mxu0 %vm321_vm3, %v479_v34 }
 0x38e   :  { %17012 = vmatmul.mubr.msk.bf16.gmra.mxu0 %vm321_vm3, %v480_v35 }
 0x38f   :  { %17032 = vmatpush3.bf16.msra.mxu0 %v17224_v52 }
 0x390   :  { %17033 = vmatprep.subr.bf16.mxu0 %v17225_v53 }
 0x393   :  { %17034 = vmatpush3.bf16.msra.mxu0 %v17225_v53 }
 0x394   :  { %17047 = vmatprep.subr.bf16.mxu0 %v17228_v10 }
 0x446   :  { %v17009_v38 = vpop.f32.mrf.mxu0 }
 0x448   :  { %v543_v39 = vpop.f32.mrf.mxu0 }
 0x44a   :  { %v17010_v40 = vpop.f32.mrf.mxu0 }
 0x44b   :  { %v575_v48 = vpack.c.bf16 %v17010_v40, %v17009_v38 }
 0x44c   :  { %v546_v41 = vpop.f32.mrf.mxu0 }
 0x44d   :  { %v574_v49 = vpack.c.bf16 %v546_v41, %v543_v39 }
 0x44e   :  { %v17013_v42 = vpop.f32.mrf.mxu0 }
 0x450   :  { %v559_v43 = vpop.f32.mrf.mxu0 }
 0x452   :  { %v17014_v44 = vpop.f32.mrf.mxu0 }
 0x453   :  { %v577_v45 = vpack.c.bf16 %v17014_v44, %v17013_v42 }
 0x454   :  { %v562_v46 = vpop.f32.mrf.mxu0 }
 0x455   :  { %v576_v47 = vpack.c.bf16 %v562_v46, %v559_v43  ;;  %17015 = vmatprep.subr.bf16.mxu1 %v577_v45  ;;  %v17233_v46 = vld [vmem:[#allocation8 + $0xe8] ss:$8 sps:$4 sm:$0xff]  }
 0x456   :  { %17016 = vmatpush3.bf16.msra.mxu1 %v577_v45  ;;  %v17232_v45 = vld [vmem:[#allocation8 + $0xf8] ss:$8 sps:$4 sm:$0xff]  }
 0x457   :  { %17017 = vmatprep.subr.bf16.mxu1 %v576_v47 }
 0x45a   :  { %17018 = vmatpush3.bf16.msra.mxu1 %v576_v47  ;;  %v17234_v47 = vld [vmem:[#allocation8 + $0xd8] ss:$8 sps:$4 sm:$0xff]  }
 0x45b   :  { %17019 = vmatprep.subr.bf16.mxu1 %v575_v48 }
 0x45e   :  { %17020 = vmatpush3.bf16.msra.mxu1 %v575_v48  ;;  %v17235_v48 = vld [vmem:[#allocation8 + $0xc8] ss:$8 sps:$4 sm:$0xff]  }
 0x45f   :  { %17021 = vmatprep.subr.bf16.mxu1 %v574_v49 }
 0x462   :  { %17022 = vmatpush3.bf16.msra.mxu1 %v574_v49 }
 0x465   :  { %17024 = vmatmul.mubr.msk.bf16.vlgmr.msra.gmra.mxu1 %vm215_vm2, %v17221_v50 }
 0x466   :  { %17043 = vmatprep.mubr.msk.bf16.mxu1 %vm321_vm3, %v17226_v9 }
 0x525   :  { %v17025_v54 = vpop.f32.mrf.mxu1 }
 0x526   :  { %v642_v60 = vadd.f32 %v17025_v54, %v582_v56 }
 0x527   :  { %v633_v55 = vpop.f32.mrf.mxu1 }
 0x528   :  { %v634_v58 = vadd.f32 %v633_v55, %v582_v56  ;;  %v650_v6 = vmax.f32 %v642_v60, 0.0 }
 0x529   :  { %v17026_v57 = vpop.f32.mrf.mxu1 }
 0x52a   :  { %v645_v59 = vadd.f32 %v17026_v57, %v582_v56  ;;  %v648_v0 = vmax.f32 %v634_v58, 0.0 }
 0x52b   :  { %v636_v61 = vpop.f32.mrf.mxu1 }
 0x52c   :  { %v637_v62 = vadd.f32 %v636_v61, %v582_v56  ;;  %v651_v63 = vmax.f32 %v645_v59, 0.0 }
 0x52e   :  { %v649_v1 = vmax.f32 %v637_v62, 0.0  ;;  %v17731_v8 = vpack.c.bf16 %v651_v63, %v650_v6 }
 0x530   :  { %v17729_v7 = vpack.c.bf16 %v649_v1, %v648_v0  ;;  %v17626_v0 = vmov 0.0  }
 0x532   :  { %17035 = vmatprep.mubr.msk.bf16.mxu0 %vm215_vm2, %v17729_v7 }
 0x533   :  { %17036 = vmatmul.mubr.msk.bf16.vlgmr.msra.gmra.mxu0 %vm215_vm2, %v17731_v8 }
 0x534   :  { %17048 = vmatpush3.bf16.msra.mxu0 %v17228_v10 }
 0x535   :  { %17049 = vmatprep.subr.bf16.mxu0 %v17229_v18 }
 0x538   :  { %17050 = vmatpush3.bf16.msra.mxu0 %v17229_v18  ;;  %v17241_v18 = vld [vmem:[#allocation8 + $0x138] ss:$8 sps:$4 sm:$0xff]  }
 0x539   :  { %17051 = vmatprep.subr.bf16.mxu0 %v17230_v19 }
 0x53c   :  { %17052 = vmatpush3.bf16.msra.mxu0 %v17230_v19  ;;  %v17242_v19 = vld [vmem:[#allocation8 + $0x128] ss:$8 sps:$4 sm:$0xff]  }
 0x53d   :  { %17053 = vmatprep.subr.bf16.mxu0 %v17231_v20 }
 0x540   :  { %17054 = vmatpush3.bf16.msra.mxu0 %v17231_v20  ;;  %v17243_v20 = vld [vmem:[#allocation8 + $0x118] ss:$8 sps:$4 sm:$0xff]  }
 0x541   :  { %17079 = vmatprep.subr.bf16.mxu0 %v17626_v0 }
 0x5f3   :  { %v17037_v11 = vpop.f32.mrf.mxu0 }
 0x5f5   :  { %v726_v12 = vpop.f32.mrf.mxu0 }
 0x5f7   :  { %v17038_v13 = vpop.f32.mrf.mxu0 }
 0x5f8   :  { %v742_v14 = vpack.c.bf16 %v17038_v13, %v17037_v11  ;;  %v17236_v13 = vld [vmem:[#allocation4 + $0x40] sm:$0xff]  }
 0x5f9   :  { %v729_v15 = vpop.f32.mrf.mxu0 }
 0x5fa   :  { %v741_v16 = vpack.c.bf16 %v729_v15, %v726_v12  ;;  %17039 = vmatprep.subr.bf16.mxu1 %v742_v14  ;;  %v17238_v15 = vld [vmem:[#allocation8 + $0x168] ss:$8 sps:$4 sm:$0xff]  }
 0x5fb   :  { %17040 = vmatpush3.bf16.msra.mxu1 %v742_v14  ;;  %v17237_v14 = vld [vmem:[#allocation8 + $0x178] ss:$8 sps:$4 sm:$0xff]  }
 0x5fc   :  { %17041 = vmatprep.subr.bf16.mxu1 %v741_v16 }
 0x5ff   :  { %17042 = vmatpush3.bf16.msra.mxu1 %v741_v16  ;;  %v17239_v16 = vld [vmem:[#allocation8 + $0x158] ss:$8 sps:$4 sm:$0xff]  }
 0x602   :  { %17044 = vmatmul.mubr.msk.bf16.vlgmr.msra.gmra.mxu1 %vm321_vm3, %v17227_v17 }
 0x603   :  { %17063 = vmatprep.mubr.msk.bf16.mxu1 %vm321_vm3, %v17226_v9 }
 0x6c2   :  { %v17045_v21 = vpop.f32.mrf.mxu1 }
 0x6c3   :  { %v810_v30 = vadd.f32 %v17045_v21, %v749_v25  ;;  %v17244_v21 = vld [vmem:[#allocation8 + $0x108] ss:$8 sps:$4 sm:$0xff]  }
 0x6c4   :  { %v801_v22 = vpop.f32.mrf.mxu1 }
 0x6c5   :  { %v802_v28 = vadd.f32 %v801_v22, %v747_v23  ;;  %v818_v36 = vmax.f32 %v810_v30, 0.0  ;;  %v1058_v22 = vld [vmem:[#allocation6 + $0x300] ss:$0 sm:$0xff] }
 0x6c6   :  { %v17046_v26 = vpop.f32.mrf.mxu1 }
 0x6c7   :  { %v813_v29 = vadd.f32 %v17046_v26, %v750_v24  ;;  %v816_v34 = vmax.f32 %v802_v28, 0.0 }
 0x6c8   :  { %v804_v31 = vpop.f32.mrf.mxu1 }
 0x6c9   :  { %v805_v32 = vadd.f32 %v804_v31, %v748_v27  ;;  %v819_v33 = vmax.f32 %v813_v29, 0.0 }
 0x6cb   :  { %v817_v35 = vmax.f32 %v805_v32, 0.0  ;;  %v821_v38 = vpack.c.bf16 %v819_v33, %v818_v36 }
 0x6cd   :  { %v820_v37 = vpack.c.bf16 %v817_v35, %v816_v34 }
 0x6cf   :  { %17055 = vmatprep.mubr.msk.bf16.mxu0 %vm215_vm2, %v820_v37  ;;  %v17769_v37 = vld [vmem:[#allocation4 + $0x48] sm:$0xff]  }
 0x6d0   :  { %17056 = vmatmul.mubr.msk.bf16.vlgmr.msra.gmra.mxu0 %vm215_vm2, %v821_v38  ;;  %v17246_v38 = vld [vmem:[#allocation8 + $0x1f8] ss:$8 sps:$4 sm:$0xff]  }
 0x6d1   :  { %17083 = vmatprep.mubr.msk.bf16.mxu0 %vm17627_vm4, %v17626_v0 }
 0x790   :  { %v17057_v39 = vpop.f32.mrf.mxu0 }
 0x792   :  { %v894_v40 = vpop.f32.mrf.mxu0 }
 0x794   :  { %v17058_v41 = vpop.f32.mrf.mxu0 }
 0x795   :  { %v910_v42 = vpack.c.bf16 %v17058_v41, %v17057_v39  ;;  %v17247_v39 = vld [vmem:[#allocation8 + $0x1e8] ss:$8 sps:$4 sm:$0xff]  }
 0x796   :  { %v897_v43 = vpop.f32.mrf.mxu0  ;;  %v17249_v41 = vld [vmem:[#allocation8 + $0x1c8] ss:$8 sps:$4 sm:$0xff]  }
 0x797   :  { %v909_v44 = vpack.c.bf16 %v897_v43, %v894_v40  ;;  %17059 = vmatprep.subr.bf16.mxu1 %v910_v42  ;;  %v17248_v40 = vld [vmem:[#allocation8 + $0x1d8] ss:$8 sps:$4 sm:$0xff]   ;;  %v17251_v43 = vld [vmem:[#allocation8 + $0x1a8] ss:$8 sps:$4 sm:$0xff]  }
 0x798   :  { %17060 = vmatpush3.bf16.msra.mxu1 %v910_v42  ;;  %v17250_v42 = vld [vmem:[#allocation8 + $0x1b8] ss:$8 sps:$4 sm:$0xff]  }
 0x799   :  { %17061 = vmatprep.subr.bf16.mxu1 %v909_v44 }
 0x79c   :  { %17062 = vmatpush3.bf16.msra.mxu1 %v909_v44  ;;  %v17252_v44 = vld [vmem:[#allocation8 + $0x198] ss:$8 sps:$4 sm:$0xff]  }
 0x79d   :  { %17067 = vmatprep.subr.bf16.mxu1 %v17232_v45 }
 0x79f   :  { %17064 = vmatmul.mubr.msk.bf16.vlgmr.msra.gmra.mxu1 %vm321_vm3, %v17227_v17  ;;  %v17240_v17 = vld [vmem:[#allocation8 + $0x148] ss:$8 sps:$4 sm:$0xff]  }
 0x7a0   :  { %17068 = vmatpush3.bf16.msra.mxu1 %v17232_v45  ;;  %v17253_v45 = vld [vmem:[#allocation8 + $0x188] ss:$8 sps:$4 sm:$0xff]  }
 0x7a1   :  { %17069 = vmatprep.subr.bf16.mxu1 %v17233_v46 }
 0x7a4   :  { %17070 = vmatpush3.bf16.msra.mxu1 %v17233_v46  ;;  %v1219_v46 = vld [vmem:[#allocation6 + $0x100] sm:$0xff] }
 0x7a5   :  { %17071 = vmatprep.subr.bf16.mxu1 %v17234_v47 }
 0x7a8   :  { %17072 = vmatpush3.bf16.msra.mxu1 %v17234_v47 }
 0x7a9   :  { %17073 = vmatprep.subr.bf16.mxu1 %v17235_v48 }
 0x7ac   :  { %17074 = vmatpush3.bf16.msra.mxu1 %v17235_v48 }
 0x7ad   :  { %17107 = vmatprep.subr.bf16.mxu1 %v17626_v0 }
 0x85f   :  { %v17065_v49 = vpop.f32.mrf.mxu1 }
 0x860   :  { %v955_v55 = vadd.f32 %v17065_v49, %v911_v51  ;;  %v1220_v49 = vld [vmem:[#allocation6 + $0x140] sm:$0xff] }
 0x861   :  { %v946_v50 = vpop.f32.mrf.mxu1 }
 0x862   :  { %v947_v53 = vadd.f32 %v946_v50, %v911_v51  ;;  %v963_v61 = vmax.f32 %v955_v55, 0.0 }
 0x863   :  { %v17066_v52 = vpop.f32.mrf.mxu1 }
 0x864   :  { %v958_v54 = vadd.f32 %v17066_v52, %v911_v51  ;;  %v961_v59 = vmax.f32 %v947_v53, 0.0 }
 0x865   :  { %v949_v56 = vpop.f32.mrf.mxu1 }
 0x866   :  { %v950_v57 = vadd.f32 %v949_v56, %v911_v51  ;;  %v964_v58 = vmax.f32 %v958_v54, 0.0 }
 0x868   :  { %v962_v60 = vmax.f32 %v950_v57, 0.0  ;;  %v966_v63 = vpack.c.bf16 %v964_v58, %v963_v61 }
 0x86a   :  { %v965_v62 = vpack.c.bf16 %v962_v60, %v961_v59  ;;  %v17256_v60 = vld [vmem:[#allocation8 + $0x27c] ss:$8 sps:$4 sm:$0xff]  }
 0x86c   :  { %17075 = vmatprep.mubr.msk.bf16.mxu1 %vm215_vm2, %v965_v62 }
 0x86d   :  { %17076 = vmatmul.mubr.msk.bf16.vlgmr.msra.gmra.mxu1 %vm215_vm2, %v966_v63  ;;  %v17254_v63 = vld [vmem:[#allocation8 + $0x278] ss:$8 sps:$4 sm:$0xff]  }
 0x86e   :  { %17109 = vmatprep.mubr.msk.bf16.mxu1 %vm17627_vm4, %v17626_v0 }
 0x92d   :  { %v17077_v1 = vpop.f32.mrf.mxu1 }
 0x92f   :  { %v1039_v6 = vpop.f32.mrf.mxu1 }
 0x931   :  { %v17078_v9 = vpop.f32.mrf.mxu1 }
 0x932   :  { %v1055_v10 = vpack.c.bf16 %v17078_v9, %v17077_v1  ;;  %v17257_v1 = vld [vmem:[#allocation8 + $0x268] ss:$8 sps:$4 sm:$0xff]   ;;  %v17260_v9 = vld [vmem:[#allocation8 + $0x258] ss:$8 sps:$4 sm:$0xff]  }
 0x933   :  { %v1042_v11 = vpop.f32.mrf.mxu1 }
 0x934   :  { %17080 = vmatpush3.bf16.msra.mxu0 %v1055_v10  ;;  %v1054_v12 = vpack.c.bf16 %v1042_v11, %v1039_v6  ;;  %v17262_v6 = vld [vmem:[#allocation8 + $0x25c] ss:$8 sps:$4 sm:$0xff]   ;;  %v17265_v10 = vld [vmem:[#allocation8 + $0x24c] ss:$8 sps:$4 sm:$0xff]   ;;  %v17263_v11 = vld [vmem:[#allocation8 + $0x248] ss:$8 sps:$4 sm:$0xff]  }
 0x935   :  { %17081 = vmatprep.subr.bf16.mxu0 %v17626_v0 }
 0x938   :  { %17082 = vmatpush3.bf16.msra.mxu0 %v1054_v12  ;;  %v17268_v12 = vld [vmem:[#allocation8 + $0x23c] ss:$8 sps:$4 sm:$0xff]  }
 0x939   :  { %17087 = vmatprep.subr.bf16.mxu0 %v17626_v0 }
 0x93b   :  { %17084 = vmatmul.mubr.msk.bf16.vlgmr.msra.gmra.mxu0 %vm321_vm3, %v17236_v13  ;;  %v17266_v13 = vld [vmem:[#allocation8 + $0x238] ss:$8 sps:$4 sm:$0xff]  }
 0x93c   :  { %17088 = vmatpush3.bf16.msra.mxu0 %v17237_v14  ;;  %17103 = vmatprep.mubr.msk.bf16.mxu0 %vm17627_vm4, %v17626_v0  ;;  %v17271_v14 = vld [vmem:[#allocation8 + $0x22c] ss:$8 sps:$4 sm:$0xff]  }
 0x93d   :  { %17089 = vmatprep.subr.bf16.mxu0 %v17626_v0 }
 0x940   :  { %17090 = vmatpush3.bf16.msra.mxu0 %v17238_v15  ;;  %v17269_v15 = vld [vmem:[#allocation8 + $0x228] ss:$8 sps:$4 sm:$0xff]  }
 0x941   :  { %17091 = vmatprep.subr.bf16.mxu0 %v17626_v0 }
 0x944   :  { %17092 = vmatpush3.bf16.msra.mxu0 %v17239_v16  ;;  %v17274_v16 = vld [vmem:[#allocation8 + $0x21c] ss:$8 sps:$4 sm:$0xff]  }
 0x945   :  { %17093 = vmatprep.subr.bf16.mxu0 %v17626_v0 }
 0x948   :  { %17094 = vmatpush3.bf16.msra.mxu0 %v17240_v17  ;;  %v17272_v17 = vld [vmem:[#allocation8 + $0x218] ss:$8 sps:$4 sm:$0xff]  }
 0x949   :  { %17095 = vmatprep.subr.bf16.mxu0 %v17626_v0 }
 0x94c   :  { %17096 = vmatpush3.bf16.msra.mxu0 %v17241_v18  ;;  %v17277_v18 = vld [vmem:[#allocation8 + $0x20c] ss:$8 sps:$4 sm:$0xff]  }
 0x94d   :  { %17097 = vmatprep.subr.bf16.mxu0 %v17626_v0 }
 0x950   :  { %17098 = vmatpush3.bf16.msra.mxu0 %v17242_v19  ;;  %v17275_v19 = vld [vmem:[#allocation8 + $0x208] ss:$8 sps:$4 sm:$0xff]  }
 0x951   :  { %17099 = vmatprep.subr.bf16.mxu0 %v17626_v0 }
 0x954   :  { %17100 = vmatpush3.bf16.msra.mxu0 %v17243_v20  ;;  %v18795_v20 = vmov 0  }
 0x955   :  { %17101 = vmatprep.subr.bf16.mxu0 %v17626_v0 }
 0x958   :  { %17102 = vmatpush3.bf16.msra.mxu0 %v17244_v21  ;;  %v1380_v21 = vld [vmem:[#allocation6 + $0x340] ss:$0 sm:$0xff] }
 0x959   :  { %17133 = vmatprep.subr.bf16.mxu0 %v17626_v0 }
 0x9fb   :  { %v1101_v23 = vpop.f32.mrf.mxu0 }
 0x9fc   :  { %v1102_v25 = vadd.f32 %v1101_v23, %v1058_v22 }
 0x9fd   :  { %v17085_v24 = vpop.f32.mrf.mxu0 }
 0x9fe   :  { %v1108_v29 = vmax.f32 %v1102_v25, 0.0 }
 0x9ff   :  { %v1104_v26 = vpop.f32.mrf.mxu0 }
 0xa00   :  { %v1105_v27 = vadd.f32 %v1104_v26, %v1058_v22 }
 0xa01   :  { %v17086_v28 = vpop.f32.mrf.mxu0 }
 0xa02   :  { %v1109_v30 = vmax.f32 %v1105_v27, 0.0 }
 0xa04   :  { %v17764_v31 = vpack.c.bf16 %v1109_v30, %v1108_v29 }
 0xa06   :  { %17104 = vmatmul.mubr.bf16.vlgmr.msra.gmra.mxu0 %v17764_v31 }
 0xa07   :  { %17135 = vmatprep.mubr.msk.bf16.mxu0 %vm17627_vm4, %v17626_v0 }
 0xac6   :  { %v1209_v32 = vpop.f32.mrf.mxu0 }
 0xac8   :  { %v17105_v33 = vpop.f32.mrf.mxu0 }
 0xaca   :  { %v1212_v34 = vpop.f32.mrf.mxu0 }
 0xacb   :  { %v1216_v35 = vpack.c.bf16 %v1212_v34, %v1209_v32 }
 0xacc   :  { %v17106_v36 = vpop.f32.mrf.mxu0 }
 0xacd   :  { %17108 = vmatpush3.bf16.msra.mxu1 %v1216_v35 }
 0xace   :  { %17113 = vmatprep.subr.bf16.mxu1 %v17626_v0 }
 0xad0   :  { %17110 = vmatmul.mubr.msk.bf16.vlgmr.msra.gmra.mxu1 %vm1226_vm5, %v17769_v37 }
 0xad1   :  { %17114 = vmatpush3.bf16.msra.mxu1 %v17246_v38  ;;  %17129 = vmatprep.mubr.msk.bf16.mxu1 %vm17627_vm4, %v17626_v0 }
 0xad2   :  { %17115 = vmatprep.subr.bf16.mxu1 %v17626_v0 }
 0xad5   :  { %17116 = vmatpush3.bf16.msra.mxu1 %v17247_v39 }
 0xad6   :  { %17117 = vmatprep.subr.bf16.mxu1 %v17626_v0 }
 0xad9   :  { %17118 = vmatpush3.bf16.msra.mxu1 %v17248_v40 }
 0xada   :  { %17119 = vmatprep.subr.bf16.mxu1 %v17626_v0 }
 0xadd   :  { %17120 = vmatpush3.bf16.msra.mxu1 %v17249_v41 }
 0xade   :  { %17121 = vmatprep.subr.bf16.mxu1 %v17626_v0 }
 0xae1   :  { %17122 = vmatpush3.bf16.msra.mxu1 %v17250_v42 }
 0xae2   :  { %17123 = vmatprep.subr.bf16.mxu1 %v17626_v0 }
 0xae5   :  { %17124 = vmatpush3.bf16.msra.mxu1 %v17251_v43 }
 0xae6   :  { %17125 = vmatprep.subr.bf16.mxu1 %v17626_v0 }
 0xae9   :  { %17126 = vmatpush3.bf16.msra.mxu1 %v17252_v44 }
 0xaea   :  { %17127 = vmatprep.subr.bf16.mxu1 %v17626_v0  ;;  %v17259_v0 = vld [vmem:[#allocation8 + $0x26c] ss:$8 sps:$4 sm:$0xff]  }
 0xaed   :  { %17128 = vmatpush3.bf16.msra.mxu1 %v17253_v45 }
 0xb90   :  { %v1264_v47 = vpop.f32.mrf.mxu1 }
 0xb91   :  { %v1265_v50 = vadd.f32 %v1264_v47, %v1219_v46 }
 0xb92   :  { %v17111_v48 = vpop.f32.mrf.mxu1 }
 0xb93   :  { %v1271_v54 = vmax.f32 %v1265_v50, 0.0 }
 0xb94   :  { %v1267_v51 = vpop.f32.mrf.mxu1 }
 0xb95   :  { %v1268_v52 = vadd.f32 %v1267_v51, %v1220_v49 }
 0xb96   :  { %v17112_v53 = vpop.f32.mrf.mxu1 }
 0xb97   :  { %v1272_v55 = vmax.f32 %v1268_v52, 0.0 }
 0xb99   :  { %v1273_v56 = vpack.c.bf16 %v1272_v55, %v1271_v54 }
 0xb9b   :  { %17130 = vmatmul.mubr.bf16.vlgmr.msra.gmra.mxu1 %v1273_v56 }
 0xb9c   :  { %1611 = vmatprep.mubr.bf16.mxu1 %v18795_v20 }
 0xc5b   :  { %v1372_v57 = vpop.f32.mrf.mxu1 }
 0xc5d   :  { %v17131_v58 = vpop.f32.mrf.mxu1 }
 0xc5f   :  { %v1375_v59 = vpop.f32.mrf.mxu1 }
 0xc60   :  { %v1379_v61 = vpack.c.bf16 %v1375_v59, %v1372_v57 }
 0xc61   :  { %v17132_v62 = vpop.f32.mrf.mxu1 }
 0xc62   :  { %17134 = vmatpush3.bf16.msra.mxu0 %v1379_v61 }
 0xc63   :  { %1521 = vmatprep.subr.bf16.mxu0 %v17256_v60 }
 0xc65   :  { %17136 = vmatmul.mubr.msk.bf16.vlgmr.msra.gmra.mxu0 %vm1226_vm5, %v17769_v37 }
 0xc66   :  { %1522 = vmatpush1.bf16.msra.mxu0 %v17254_v63  ;;  %1553 = vmatprep.mubr.bf16.mxu0 %v18795_v20 }
 0xc67   :  { %1523 = vmatprep.subr.bf16.mxu0 %v17259_v0 }
 0xc6a   :  { %1524 = vmatpush1.bf16.msra.mxu0 %v17257_v1 }
 0xc6b   :  { %1525 = vmatprep.subr.bf16.mxu0 %v17262_v6 }
 0xc6e   :  { %1526 = vmatpush1.bf16.msra.mxu0 %v17260_v9 }
 0xc6f   :  { %1527 = vmatprep.subr.bf16.mxu0 %v17265_v10 }
 0xc72   :  { %1528 = vmatpush1.bf16.msra.mxu0 %v17263_v11 }
 0xc73   :  { %1529 = vmatprep.subr.bf16.mxu0 %v17268_v12 }
 0xc76   :  { %1530 = vmatpush1.bf16.msra.mxu0 %v17266_v13 }
 0xc77   :  { %1531 = vmatprep.subr.bf16.mxu0 %v17271_v14 }
 0xc7a   :  { %1532 = vmatpush1.bf16.msra.mxu0 %v17269_v15 }
 0xc7b   :  { %1533 = vmatprep.subr.bf16.mxu0 %v17274_v16 }
 0xc7e   :  { %1534 = vmatpush1.bf16.msra.mxu0 %v17272_v17 }
 0xc7f   :  { %1535 = vmatprep.subr.bf16.mxu0 %v17277_v18 }
 0xc82   :  { %1536 = vmatpush1.bf16.msra.mxu0 %v17275_v19 }
 0xd25   :  { %v1415_v22 = vpop.f32.mrf.mxu0 }
 0xd26   :  { %v1416_v24 = vadd.f32 %v1415_v22, %v1380_v21 }
 0xd27   :  { %v17137_v23 = vpop.f32.mrf.mxu0 }
 0xd28   :  { %v1422_v28 = vmax.f32 %v1416_v24, 0.0 }
 0xd29   :  { %v1418_v25 = vpop.f32.mrf.mxu0 }
 0xd2a   :  { %v1419_v26 = vadd.f32 %v1418_v25, %v1380_v21 }
 0xd2b   :  { %v17138_v27 = vpop.f32.mrf.mxu0 }
 0xd2c   :  { %v1423_v29 = vmax.f32 %v1419_v26, 0.0 }
 0xd2e   :  { %v1424_v30 = vpack.c.bf16 %v1423_v29, %v1422_v28 }
 0xd30   :  { %1554 = vmatmul.mubr.bf16.vlgmr.msra.gmra.mxu0 %v1424_v30 }
 0xdf0   :  { %v1555_v32 = vpop.f32.mrf.mxu0 }
 0xdf2   :  { %v1557_v33 = vpop.f32.mrf.mxu0 }
 0xdf4   :  { %v1559_v34 = vpop.f32.mrf.mxu0 }
 0xdf5   :  { %v1564_v38 = vpack.c.bf16 %v1559_v34, %v1555_v32 }
 0xdf6   :  { %v1561_v35 = vpop.f32.mrf.mxu0 }
 0xdf7   :  { %v1565_v36 = vpack.c.bf16 %v1561_v35, %v1557_v33 }
 0xdf9   :  { %1593 = vmatprep.subr.bf16.mxu1 %v1565_v36 }
 0xdfa   :  { %1594 = vmatpush1.bf16.msra.mxu1 %v1564_v38 }
 0xdfd   :  { %15186 = vmatmul.mubr.msk.bf16.vlgmr.msra.gmra.mxu1 %vm1226_vm5, %v17769_v37 }
 0xdfe   :  { %17611 = shalt.err (!%p17608_p5)  }
 0xdff   :  { %70 = dma.hbm_to_vmem [thread:$0]  %s18793_s4, 196608, %s68_s18, [#allocation3]  ;;  %v1569_v39 = vlaneseq  ;;  %v1567_v37 = vld [vmem:[#allocation6 + $0x380] ss:$8 sm:$0x3] }
 0xe01   :  { %v17792_v40 = vshrl.u32 %v1569_v39, 7 }
 0xe03   :  { %v17795_v41 = vsub.s32 0, %v17792_v40  ;;  %v17798_v42 = vsub.s32 1, %v17792_v40 }
 0xe05   :  { %18821 = vst [vmem:[#allocation20_spill] sm:$0xff] %v17795_v41  ;;  %18822 = vst [vmem:[#allocation21_spill] sm:$0xff] %v17798_v42  ;;  %v1572_v43 = vrot.slane %v1567_v37, %v17795_v41  ;;  %v1576_v45 = vrot.slane %v1567_v37, %v17798_v42 }
 0xebd   :  { %v1613_v44 = vpop.f32.mrf.mxu1 }
 0xebe   :  { %v1614_v47 = vadd.f32 %v1613_v44, %v1572_v43 }
 0xebf   :  { %v1615_v46 = vpop.f32.mrf.mxu1 }
 0xec0   :  { %v1616_v49 = vadd.f32 %v1615_v46, %v1576_v45  ;;  %v1622_v52 = vmax.f32 %v1614_v47, 0.0 }
 0xec1   :  { %v1617_v48 = vpop.f32.mrf.mxu1 }
 0xec2   :  { %v1618_v50 = vadd.f32 %v1617_v48, %v1572_v43  ;;  %v1623_v55 = vmax.f32 %v1616_v49, 0.0 }
 0xec3   :  { %v1619_v51 = vpop.f32.mrf.mxu1 }
 0xec4   :  { %v1624_v53 = vmax.f32 %v1618_v50, 0.0  ;;  %v1620_v54 = vadd.f32 %v1619_v51, %v1576_v45 }
 0xec6   :  { %v17802_v56 = vpack.c.bf16 %v1624_v53, %v1622_v52  ;;  %v1625_v57 = vmax.f32 %v1620_v54, 0.0 }
 0xec8   :  { %v17804_v58 = vpack.c.bf16 %v1625_v57, %v1623_v55 }
 0xec9   :  { %17616 = dma.done.wait [#allocation3], 196608 }
 0xeca   :  { %17617 = vsyncadd [#allocation3], 4294770688  ;;  %1864 = vmatprep.mubr.bf16.mxu1 %v18795_v20  ;;  %1907 = vmatprep.mubr.bf16.mxu0 %v18795_v20  ;;  %v1660_v59 = vld [vmem:[#allocation2 + $0x1c0] sm:$0xff]  ;;  %v1661_v61 = vld [vmem:[#allocation2 + $0x1c8] sm:$0xff]  ;;  %vm15068_vm6 = vcmask 31744  }
 0xecb   :  { %v1662_v60 = vld [vmem:[#allocation2 + $0x1e0] sm:$0xff]  ;;  %v1663_v63 = vld [vmem:[#allocation2 + $0x1e8] sm:$0xff] }
 0xecc   :  { %v15216_v62 = vcombine.high %v1660_v59, %v1662_v60  ;;  %v15215_v0 = vcombine.low %v1660_v59, %v1662_v60  ;;  %v1656_v1 = vld [vmem:[#allocation2 + $0x180] sm:$0xff]  ;;  %v15218_v9 = vcombine.high %v1661_v61, %v1663_v63  ;;  %v15217_v10 = vcombine.low %v1661_v61, %v1663_v63  ;;  %v1657_v12 = vld [vmem:[#allocation2 + $0x188] sm:$0xff] }
 0xecd   :  { %v1658_v6 = vld [vmem:[#allocation2 + $0x1a0] sm:$0xff]  ;;  %v1659_v13 = vld [vmem:[#allocation2 + $0x1a8] sm:$0xff] }
 0xece   :  { %v15212_v11 = vcombine.high %v1656_v1, %v1658_v6  ;;  %v1652_v14 = vld [vmem:[#allocation2 + $0x140] sm:$0xff]  ;;  %1832 = vmatprep.subr.bf16.mxu1 %v15216_v62  ;;  %v15214_v15 = vcombine.high %v1657_v12, %v1659_v13  ;;  %v1653_v17 = vld [vmem:[#allocation2 + $0x148] sm:$0xff]  ;;  %1875 = vmatprep.subr.bf16.mxu0 %v15218_v9  ;;  %v15211_v19 = vcombine.low %v1656_v1, %v1658_v6 }
 0xecf   :  { %v1654_v16 = vld [vmem:[#allocation2 + $0x160] sm:$0xff]  ;;  %v1655_v18 = vld [vmem:[#allocation2 + $0x168] sm:$0xff]  ;;  %1833 = vmatpush1.bf16.msra.mxu1 %v15215_v0  ;;  %1876 = vmatpush1.bf16.msra.mxu0 %v15217_v10  ;;  %v15213_v21 = vcombine.low %v1657_v12, %v1659_v13 }
 0xed0   :  { %1834 = vmatprep.subr.bf16.mxu1 %v15212_v11  ;;  %v15208_v22 = vcombine.high %v1652_v14, %v1654_v16  ;;  %1877 = vmatprep.subr.bf16.mxu0 %v15214_v15  ;;  %v15210_v23 = vcombine.high %v1653_v17, %v1655_v18  ;;  %v1648_v24 = vld [vmem:[#allocation2 + $0x100] sm:$0xff]  ;;  %v1649_v26 = vld [vmem:[#allocation2 + $0x108] sm:$0xff]  ;;  %v15207_v28 = vcombine.low %v1652_v14, %v1654_v16 }
 0xed1   :  { %v1650_v25 = vld [vmem:[#allocation2 + $0x120] sm:$0xff]  ;;  %v1651_v27 = vld [vmem:[#allocation2 + $0x128] sm:$0xff]  ;;  %v15209_v29 = vcombine.low %v1653_v17, %v1655_v18 }
 0xed2   :  { %v15204_v30 = vcombine.high %v1648_v24, %v1650_v25  ;;  %v15206_v32 = vcombine.high %v1649_v26, %v1651_v27  ;;  %v1644_v33 = vld [vmem:[#allocation2 + $0xc0] sm:$0xff]  ;;  %v1645_v35 = vld [vmem:[#allocation2 + $0xc8] sm:$0xff]  ;;  %v15203_v38 = vcombine.low %v1648_v24, %v1650_v25  ;;  %v15205_v39 = vcombine.low %v1649_v26, %v1651_v27 }
 0xed3   :  { %1835 = vmatpush1.bf16.msra.mxu1 %v15211_v19  ;;  %1878 = vmatpush1.bf16.msra.mxu0 %v15213_v21  ;;  %v1646_v34 = vld [vmem:[#allocation2 + $0xe0] sm:$0xff]  ;;  %v1647_v36 = vld [vmem:[#allocation2 + $0xe8] sm:$0xff] }
 0xed4   :  { %1836 = vmatprep.subr.bf16.mxu1 %v15208_v22  ;;  %1879 = vmatprep.subr.bf16.mxu0 %v15210_v23  ;;  %v15200_v37 = vcombine.high %v1644_v33, %v1646_v34  ;;  %v15202_v43 = vcombine.high %v1645_v35, %v1647_v36  ;;  %v1640_v44 = vld [vmem:[#allocation2 + $0x80] sm:$0xff]  ;;  %v1641_v46 = vld [vmem:[#allocation2 + $0x88] sm:$0xff]  ;;  %v15199_v48 = vcombine.low %v1644_v33, %v1646_v34 }
 0xed5   :  { %v1642_v45 = vld [vmem:[#allocation2 + $0xa0] sm:$0xff]  ;;  %v1643_v47 = vld [vmem:[#allocation2 + $0xa8] sm:$0xff]  ;;  %v15201_v49 = vcombine.low %v1645_v35, %v1647_v36 }
 0xed6   :  { %v15196_v50 = vcombine.high %v1640_v44, %v1642_v45  ;;  %v15198_v51 = vcombine.high %v1641_v46, %v1643_v47  ;;  %v1636_v52 = vld [vmem:[#allocation2 + $0x40] sm:$0xff]  ;;  %v1637_v54 = vld [vmem:[#allocation2 + $0x48] sm:$0xff]  ;;  %v15195_v57 = vcombine.low %v1640_v44, %v1642_v45  ;;  %v15197_v59 = vcombine.low %v1641_v46, %v1643_v47 }
 0xed7   :  { %1837 = vmatpush1.bf16.msra.mxu1 %v15207_v28  ;;  %1880 = vmatpush1.bf16.msra.mxu0 %v15209_v29  ;;  %v1638_v53 = vld [vmem:[#allocation2 + $0x60] sm:$0xff]  ;;  %v1639_v55 = vld [vmem:[#allocation2 + $0x68] sm:$0xff] }
 0xed8   :  { %1838 = vmatprep.subr.bf16.mxu1 %v15204_v30  ;;  %1881 = vmatprep.subr.bf16.mxu0 %v15206_v32  ;;  %v15192_v60 = vcombine.high %v1636_v52, %v1638_v53  ;;  %v15194_v61 = vcombine.high %v1637_v54, %v1639_v55  ;;  %v1632_v62 = vld [vmem:[#allocation2] sm:$0xff]  ;;  %v1633_v0 = vld [vmem:[#allocation2 + $0x8] sm:$0xff]  ;;  %v15191_v6 = vcombine.low %v1636_v52, %v1638_v53 }
 0xed9   :  { %v1634_v63 = vld [vmem:[#allocation2 + $0x20] sm:$0xff]  ;;  %v1635_v1 = vld [vmem:[#allocation2 + $0x28] sm:$0xff]  ;;  %v15193_v9 = vcombine.low %v1637_v54, %v1639_v55 }
 0xeda   :  { %v15188_v10 = vcombine.high %v1632_v62, %v1634_v63  ;;  %v15190_v11 = vcombine.high %v1633_v0, %v1635_v1  ;;  %v1986_v12 = vld [vmem:[#allocation2 + $0x3c0] sm:$0xff]  ;;  %v15187_v16 = vcombine.low %v1632_v62, %v1634_v63  ;;  %v15189_v19 = vcombine.low %v1633_v0, %v1635_v1 }
 0xedb   :  { %1839 = vmatpush1.bf16.msra.mxu1 %v15203_v38  ;;  %1882 = vmatpush1.bf16.msra.mxu0 %v15205_v39  ;;  %v1990_v13 = vld [vmem:[#allocation2 + $0x3e0] sm:$0xff] }
 0xedc   :  { %1840 = vmatprep.subr.bf16.mxu1 %v15200_v37  ;;  %1883 = vmatprep.subr.bf16.mxu0 %v15202_v43  ;;  %v2114_v14 = vld [vmem:[#allocation2 + $0x7c0] sm:$0xff]  ;;  %v15276_v21 = vcombine.high %v1986_v12, %v1990_v13  ;;  %v15275_v25 = vcombine.low %v1986_v12, %v1990_v13 }
 0xedd   :  { %v2118_v15 = vld [vmem:[#allocation2 + $0x7e0] sm:$0xff] }
 0xede   :  { %v1978_v17 = vld [vmem:[#allocation2 + $0x380] sm:$0xff]  ;;  %v15404_v24 = vcombine.high %v2114_v14, %v2118_v15  ;;  %v15403_v28 = vcombine.low %v2114_v14, %v2118_v15 }
 0xedf   :  { %1841 = vmatpush1.bf16.msra.mxu1 %v15199_v48  ;;  %1884 = vmatpush1.bf16.msra.mxu0 %v15201_v49  ;;  %v1982_v18 = vld [vmem:[#allocation2 + $0x3a0] sm:$0xff] }
 0xee0   :  { %1842 = vmatprep.subr.bf16.mxu1 %v15196_v50  ;;  %1885 = vmatprep.subr.bf16.mxu0 %v15198_v51  ;;  %v2106_v22 = vld [vmem:[#allocation2 + $0x780] sm:$0xff]  ;;  %v15268_v29 = vcombine.high %v1978_v17, %v1982_v18  ;;  %v15267_v34 = vcombine.low %v1978_v17, %v1982_v18 }
 0xee1   :  { %v2110_v23 = vld [vmem:[#allocation2 + $0x7a0] sm:$0xff] }
 0xee2   :  { %v1970_v26 = vld [vmem:[#allocation2 + $0x340] sm:$0xff]  ;;  %v15396_v33 = vcombine.high %v2106_v22, %v2110_v23  ;;  %v15395_v38 = vcombine.low %v2106_v22, %v2110_v23 }
 0xee3   :  { %1843 = vmatpush1.bf16.msra.mxu1 %v15195_v57  ;;  %1886 = vmatpush1.bf16.msra.mxu0 %v15197_v59  ;;  %v1974_v27 = vld [vmem:[#allocation2 + $0x360] sm:$0xff] }
 0xee4   :  { %1844 = vmatprep.subr.bf16.mxu1 %v15192_v60  ;;  %1887 = vmatprep.subr.bf16.mxu0 %v15194_v61  ;;  %v2098_v30 = vld [vmem:[#allocation2 + $0x740] sm:$0xff]  ;;  %v15260_v39 = vcombine.high %v1970_v26, %v1974_v27  ;;  %v15259_v45 = vcombine.low %v1970_v26, %v1974_v27 }
 0xee5   :  { %v2102_v32 = vld [vmem:[#allocation2 + $0x760] sm:$0xff] }
 0xee6   :  { %v1962_v35 = vld [vmem:[#allocation2 + $0x300] sm:$0xff]  ;;  %v15388_v44 = vcombine.high %v2098_v30, %v2102_v32  ;;  %v15387_v48 = vcombine.low %v2098_v30, %v2102_v32 }
 0xee7   :  { %1845 = vmatpush1.bf16.msra.mxu1 %v15191_v6  ;;  %1888 = vmatpush1.bf16.msra.mxu0 %v15193_v9  ;;  %v1966_v36 = vld [vmem:[#allocation2 + $0x320] sm:$0xff] }
 0xee8   :  { %1846 = vmatprep.subr.bf16.mxu1 %v15188_v10  ;;  %1889 = vmatprep.subr.bf16.mxu0 %v15190_v11  ;;  %v2090_v37 = vld [vmem:[#allocation2 + $0x700] sm:$0xff]  ;;  %v15251_v52 = vcombine.low %v1962_v35, %v1966_v36 }
 0xee9   :  { %v2094_v43 = vld [vmem:[#allocation2 + $0x720] sm:$0xff] }
 0xeea   :  { %v1954_v46 = vld [vmem:[#allocation2 + $0x2c0] sm:$0xff]  ;;  %v15380_v51 = vcombine.high %v2090_v37, %v2094_v43  ;;  %v15379_v55 = vcombine.low %v2090_v37, %v2094_v43 }
 0xeeb   :  { %1847 = vmatpush1.bf16.msra.mxu1 %v15187_v16  ;;  %1890 = vmatpush1.bf16.msra.mxu0 %v15189_v19  ;;  %v1958_v47 = vld [vmem:[#allocation2 + $0x2e0] sm:$0xff] }
 0xeec   :  { %3511 = vmatprep.subr.bf16.mxu1 %v15276_v21  ;;  %3554 = vmatprep.subr.bf16.mxu0 %v15404_v24  ;;  %v2082_v49 = vld [vmem:[#allocation2 + $0x6c0] sm:$0xff]  ;;  %v15244_v57 = vcombine.high %v1954_v46, %v1958_v47  ;;  %v15243_v62 = vcombine.low %v1954_v46, %v1958_v47 }
 0xeed   :  { %v2086_v50 = vld [vmem:[#allocation2 + $0x6e0] sm:$0xff] }
 0xeee   :  { %1865 = vmatmul.mubr.bf16.vlgmr.msra.gmra.mxu1 %v17764_v31  ;;  %1908 = vmatmul.mubr.bf16.vlgmr.msra.gmra.mxu0 %v17764_v31  ;;  %v15252_v31 = vcombine.high %v1962_v35, %v1966_v36  ;;  %v1946_v53 = vld [vmem:[#allocation2 + $0x280] sm:$0xff]  ;;  %v15372_v61 = vcombine.high %v2082_v49, %v2086_v50  ;;  %v15371_v1 = vcombine.low %v2082_v49, %v2086_v50 }
 0xeef   :  { %3512 = vmatpush1.bf16.msra.mxu1 %v15275_v25  ;;  %3555 = vmatpush1.bf16.msra.mxu0 %v15403_v28  ;;  %v1950_v54 = vld [vmem:[#allocation2 + $0x2a0] sm:$0xff] }
 0xef0   :  { %3513 = vmatprep.subr.bf16.mxu1 %v15268_v29  ;;  %3556 = vmatprep.subr.bf16.mxu0 %v15396_v33  ;;  %v2074_v59 = vld [vmem:[#allocation2 + $0x680] sm:$0xff]  ;;  %v15236_v6 = vcombine.high %v1946_v53, %v1950_v54  ;;  %v15235_v12 = vcombine.low %v1946_v53, %v1950_v54 }
 0xef1   :  { %v2078_v60 = vld [vmem:[#allocation2 + $0x6a0] sm:$0xff] }
 0xef2   :  { %v1938_v63 = vld [vmem:[#allocation2 + $0x240] sm:$0xff]  ;;  %v15364_v11 = vcombine.high %v2074_v59, %v2078_v60  ;;  %v15363_v15 = vcombine.low %v2074_v59, %v2078_v60 }
 0xef3   :  { %3514 = vmatpush1.bf16.msra.mxu1 %v15267_v34  ;;  %3557 = vmatpush1.bf16.msra.mxu0 %v15395_v38  ;;  %v1942_v0 = vld [vmem:[#allocation2 + $0x260] sm:$0xff] }
 0xef4   :  { %3515 = vmatprep.subr.bf16.mxu1 %v15260_v39  ;;  %3558 = vmatprep.subr.bf16.mxu0 %v15388_v44  ;;  %v2066_v9 = vld [vmem:[#allocation2 + $0x640] sm:$0xff]  ;;  %v15228_v16 = vcombine.high %v1938_v63, %v1942_v0  ;;  %v15227_v21 = vcombine.low %v1938_v63, %v1942_v0 }
 0xef5   :  { %v2070_v10 = vld [vmem:[#allocation2 + $0x660] sm:$0xff] }
 0xef6   :  { %v1930_v13 = vld [vmem:[#allocation2 + $0x200] sm:$0xff]  ;;  %v15356_v19 = vcombine.high %v2066_v9, %v2070_v10  ;;  %v15355_v24 = vcombine.low %v2066_v9, %v2070_v10 }
 0xef7   :  { %3516 = vmatpush1.bf16.msra.mxu1 %v15259_v45  ;;  %3559 = vmatpush1.bf16.msra.mxu0 %v15387_v48  ;;  %v1934_v14 = vld [vmem:[#allocation2 + $0x220] sm:$0xff] }
 0xef8   :  { %3517 = vmatprep.subr.bf16.mxu1 %v15252_v31  ;;  %3560 = vmatprep.subr.bf16.mxu0 %v15380_v51  ;;  %v2058_v17 = vld [vmem:[#allocation2 + $0x600] sm:$0xff]  ;;  %v15220_v25 = vcombine.high %v1930_v13, %v1934_v14  ;;  %v15219_v29 = vcombine.low %v1930_v13, %v1934_v14 }
 0xef9   :  { %v2062_v18 = vld [vmem:[#allocation2 + $0x620] sm:$0xff] }
 0xefa   :  { %v2050_v22 = vld [vmem:[#allocation2 + $0x5c0] sm:$0xff]  ;;  %v15348_v28 = vcombine.high %v2058_v17, %v2062_v18  ;;  %v15347_v33 = vcombine.low %v2058_v17, %v2062_v18 }
 0xefb   :  { %3518 = vmatpush1.bf16.msra.mxu1 %v15251_v52  ;;  %3561 = vmatpush1.bf16.msra.mxu0 %v15379_v55  ;;  %v2054_v23 = vld [vmem:[#allocation2 + $0x5e0] sm:$0xff] }
 0xefc   :  { %3519 = vmatprep.subr.bf16.mxu1 %v15244_v57  ;;  %3562 = vmatprep.subr.bf16.mxu0 %v15372_v61  ;;  %v2178_v26 = vld [vmem:[#allocation2 + $0x9c0] sm:$0xff]  ;;  %v15340_v34 = vcombine.high %v2050_v22, %v2054_v23  ;;  %v15339_v39 = vcombine.low %v2050_v22, %v2054_v23 }
 0xefd   :  { %v2182_v27 = vld [vmem:[#allocation2 + $0x9e0] sm:$0xff] }
 0xefe   :  { %v2042_v30 = vld [vmem:[#allocation2 + $0x580] sm:$0xff]  ;;  %v15468_v38 = vcombine.high %v2178_v26, %v2182_v27  ;;  %v15467_v44 = vcombine.low %v2178_v26, %v2182_v27 }
 0xeff   :  { %3520 = vmatpush1.bf16.msra.mxu1 %v15243_v62  ;;  %3563 = vmatpush1.bf16.msra.mxu0 %v15371_v1  ;;  %v2046_v32 = vld [vmem:[#allocation2 + $0x5a0] sm:$0xff] }
 0xf00   :  { %3521 = vmatprep.subr.bf16.mxu1 %v15236_v6  ;;  %3564 = vmatprep.subr.bf16.mxu0 %v15364_v11  ;;  %v2170_v35 = vld [vmem:[#allocation2 + $0x980] sm:$0xff]  ;;  %v15332_v45 = vcombine.high %v2042_v30, %v2046_v32  ;;  %v15331_v31 = vcombine.low %v2042_v30, %v2046_v32 }
 0xf01   :  { %v2174_v36 = vld [vmem:[#allocation2 + $0x9a0] sm:$0xff] }
 0xf02   :  { %v2034_v37 = vld [vmem:[#allocation2 + $0x540] sm:$0xff]  ;;  %v15460_v48 = vcombine.high %v2170_v35, %v2174_v36  ;;  %v15459_v51 = vcombine.low %v2170_v35, %v2174_v36 }
 0xf03   :  { %3522 = vmatpush1.bf16.msra.mxu1 %v15235_v12  ;;  %3565 = vmatpush1.bf16.msra.mxu0 %v15363_v15  ;;  %v2038_v43 = vld [vmem:[#allocation2 + $0x560] sm:$0xff] }
 0xf04   :  { %3523 = vmatprep.subr.bf16.mxu1 %v15228_v16  ;;  %3566 = vmatprep.subr.bf16.mxu0 %v15356_v19  ;;  %v2162_v46 = vld [vmem:[#allocation2 + $0x940] sm:$0xff]  ;;  %v15324_v52 = vcombine.high %v2034_v37, %v2038_v43  ;;  %v15323_v57 = vcombine.low %v2034_v37, %v2038_v43  ;;  %v1987_v43 = vld [vmem:[#allocation2 + $0x3c8] sm:$0xff] }
 0xf05   :  { %v2166_v47 = vld [vmem:[#allocation2 + $0x960] sm:$0xff] }
 0xf06   :  { %v2026_v49 = vld [vmem:[#allocation2 + $0x500] sm:$0xff]  ;;  %v15452_v55 = vcombine.high %v2162_v46, %v2166_v47  ;;  %v15451_v61 = vcombine.low %v2162_v46, %v2166_v47  ;;  %v2119_v47 = vld [vmem:[#allocation2 + $0x7e8] sm:$0xff] }
 0xf07   :  { %3524 = vmatpush1.bf16.msra.mxu1 %v15227_v21  ;;  %3567 = vmatpush1.bf16.msra.mxu0 %v15355_v24  ;;  %v2030_v50 = vld [vmem:[#allocation2 + $0x520] sm:$0xff] }
 0xf08   :  { %3525 = vmatprep.subr.bf16.mxu1 %v15220_v25  ;;  %3568 = vmatprep.subr.bf16.mxu0 %v15348_v28  ;;  %v2154_v53 = vld [vmem:[#allocation2 + $0x900] sm:$0xff]  ;;  %v15316_v62 = vcombine.high %v2026_v49, %v2030_v50  ;;  %v15315_v6 = vcombine.low %v2026_v49, %v2030_v50 }
 0xf09   :  { %v2158_v54 = vld [vmem:[#allocation2 + $0x920] sm:$0xff] }
 0xf0a   :  { %v2018_v59 = vld [vmem:[#allocation2 + $0x4c0] sm:$0xff]  ;;  %v15444_v1 = vcombine.high %v2154_v53, %v2158_v54  ;;  %v15443_v9 = vcombine.low %v2154_v53, %v2158_v54 }
 0xf0b   :  { %3526 = vmatpush1.bf16.msra.mxu1 %v15219_v29  ;;  %3569 = vmatpush1.bf16.msra.mxu0 %v15347_v33  ;;  %v2022_v60 = vld [vmem:[#allocation2 + $0x4e0] sm:$0xff] }
 0xf0c   :  { %3527 = vmatprep.subr.bf16.mxu1 %v15340_v34  ;;  %3570 = vmatprep.subr.bf16.mxu0 %v15468_v38  ;;  %v2146_v63 = vld [vmem:[#allocation2 + $0x8c0] sm:$0xff]  ;;  %v15308_v10 = vcombine.high %v2018_v59, %v2022_v60  ;;  %v15307_v12 = vcombine.low %v2018_v59, %v2022_v60  ;;  %v1670_v60 = vld [vmem:[#allocation6 + $0x1d0] sm:$0xff] }
 0xf0d   :  { %v2150_v0 = vld [vmem:[#allocation2 + $0x8e0] sm:$0xff] }
 0xf0e   :  { %v15436_v11 = vcombine.high %v2146_v63, %v2150_v0  ;;  %v15435_v13 = vcombine.low %v2146_v63, %v2150_v0  ;;  %v2010_v14 = vld [vmem:[#allocation2 + $0x480] sm:$0xff]  ;;  %v1669_v63 = vld [vmem:[#allocation6 + $0x1c8] sm:$0xff] }
 0xf0f   :  { %3528 = vmatpush2.bf16.msra.mxu1 %v15339_v39  ;;  %3571 = vmatpush2.bf16.msra.mxu0 %v15467_v44  ;;  %v2014_v15 = vld [vmem:[#allocation2 + $0x4a0] sm:$0xff]  ;;  %v1991_v44 = vld [vmem:[#allocation2 + $0x3e8] sm:$0xff] }
 0xf10   :  { %3529 = vmatprep.subr.bf16.mxu1 %v15332_v45  ;;  %3572 = vmatprep.subr.bf16.mxu0 %v15460_v48  ;;  %v2138_v16 = vld [vmem:[#allocation2 + $0x880] sm:$0xff]  ;;  %v15300_v17 = vcombine.high %v2010_v14, %v2014_v15  ;;  %v15299_v19 = vcombine.low %v2010_v14, %v2014_v15  ;;  %v2115_v45 = vld [vmem:[#allocation2 + $0x7c8] sm:$0xff]  ;;  %v15278_v46 = vcombine.high %v1987_v43, %v1991_v44 }
 0xf11   :  { %v2142_v18 = vld [vmem:[#allocation2 + $0x8a0] sm:$0xff]  ;;  %v15277_v48 = vcombine.low %v1987_v43, %v1991_v44  ;;  %v15406_v49 = vcombine.high %v2115_v45, %v2119_v47  ;;  %v2099_v43 = vld [vmem:[#allocation2 + $0x748] sm:$0xff] }
 0xf12   :  { %v15427_v21 = vcombine.low %v2138_v16, %v2142_v18  ;;  %v15428_v22 = vcombine.high %v2138_v16, %v2142_v18  ;;  %v2002_v23 = vld [vmem:[#allocation2 + $0x440] sm:$0xff]  ;;  %v2103_v44 = vld [vmem:[#allocation2 + $0x768] sm:$0xff] }
 0xf13   :  { %3530 = vmatpush2.bf16.msra.mxu1 %v15331_v31  ;;  %3573 = vmatpush2.bf16.msra.mxu0 %v15459_v51  ;;  %v2006_v24 = vld [vmem:[#allocation2 + $0x460] sm:$0xff]  ;;  %v15405_v31 = vcombine.low %v2115_v45, %v2119_v47 }
 0xf14   :  { %3531 = vmatprep.subr.bf16.mxu1 %v15324_v52  ;;  %3574 = vmatprep.subr.bf16.mxu0 %v15452_v55  ;;  %v2130_v25 = vld [vmem:[#allocation2 + $0x840] sm:$0xff]  ;;  %v15291_v26 = vcombine.low %v2002_v23, %v2006_v24  ;;  %v15292_v27 = vcombine.high %v2002_v23, %v2006_v24  ;;  %v1665_v52 = vld [vmem:[#allocation6 + $0x188] sm:$0xff] }
 0xf15   :  { %v2134_v28 = vld [vmem:[#allocation2 + $0x860] sm:$0xff] }
 0xf16   :  { %v15419_v29 = vcombine.low %v2130_v25, %v2134_v28  ;;  %v15420_v30 = vcombine.high %v2130_v25, %v2134_v28  ;;  %v1994_v32 = vld [vmem:[#allocation2 + $0x400] sm:$0xff] }
 0xf17   :  { %3532 = vmatpush2.bf16.msra.mxu1 %v15323_v57  ;;  %3575 = vmatpush2.bf16.msra.mxu0 %v15451_v61  ;;  %v1998_v33 = vld [vmem:[#allocation2 + $0x420] sm:$0xff]  ;;  %v1667_v57 = vld [vmem:[#allocation6 + $0x198] sm:$0xff]  ;;  %v1666_v61 = vld [vmem:[#allocation6 + $0x190] sm:$0xff] }
 0xf18   :  { %3533 = vmatprep.subr.bf16.mxu1 %v15316_v62  ;;  %3576 = vmatprep.subr.bf16.mxu0 %v15444_v1  ;;  %v2122_v34 = vld [vmem:[#allocation2 + $0x800] sm:$0xff]  ;;  %v15283_v36 = vcombine.low %v1994_v32, %v1998_v33  ;;  %v15284_v38 = vcombine.high %v1994_v32, %v1998_v33  ;;  %v2111_v32 = vld [vmem:[#allocation2 + $0x7a8] sm:$0xff] }
 0xf19   :  { %v2126_v35 = vld [vmem:[#allocation2 + $0x820] sm:$0xff] }
 0xf1a   :  { %v15411_v39 = vcombine.low %v2122_v34, %v2126_v35  ;;  %v15412_v37 = vcombine.high %v2122_v34, %v2126_v35  ;;  %v1668_v54 = vld [vmem:[#allocation6 + $0x1c0] sm:$0xff] }
 0xf1b   :  { %3534 = vmatpush2.bf16.msra.mxu1 %v15315_v6  ;;  %3577 = vmatpush2.bf16.msra.mxu0 %v15443_v9  ;;  %v1664_v55 = vld [vmem:[#allocation6 + $0x180] sm:$0xff]  ;;  %v1671_v9 = vld [vmem:[#allocation6 + $0x1d8] sm:$0xff] }
 0xf1c   :  { %3535 = vmatprep.subr.bf16.mxu1 %v15308_v10  ;;  %3578 = vmatprep.subr.bf16.mxu0 %v15436_v11 }
 0xf1f   :  { %3536 = vmatpush2.bf16.msra.mxu1 %v15307_v12  ;;  %3579 = vmatpush2.bf16.msra.mxu0 %v15435_v13 }
 0xf20   :  { %3537 = vmatprep.subr.bf16.mxu1 %v15300_v17  ;;  %3580 = vmatprep.subr.bf16.mxu0 %v15428_v22 }
 0xf23   :  { %3538 = vmatpush2.bf16.msra.mxu1 %v15299_v19  ;;  %3581 = vmatpush2.bf16.msra.mxu0 %v15427_v21 }
 0xf24   :  { %3539 = vmatprep.subr.bf16.mxu1 %v15292_v27  ;;  %3582 = vmatprep.subr.bf16.mxu0 %v15420_v30  ;;  %v1983_v27 = vld [vmem:[#allocation2 + $0x3a8] sm:$0xff] }
 0xf25   :  { %v2107_v30 = vld [vmem:[#allocation2 + $0x788] sm:$0xff] }
 0xf27   :  { %3540 = vmatpush2.bf16.msra.mxu1 %v15291_v26  ;;  %3583 = vmatpush2.bf16.msra.mxu0 %v15419_v29  ;;  %v1979_v26 = vld [vmem:[#allocation2 + $0x388] sm:$0xff] }
 0xf28   :  { %3541 = vmatprep.subr.bf16.mxu1 %v15284_v38  ;;  %3584 = vmatprep.subr.bf16.mxu0 %v15412_v37  ;;  %v1971_v38 = vld [vmem:[#allocation2 + $0x348] sm:$0xff]  ;;  %v15398_v37 = vcombine.high %v2107_v30, %v2111_v32  ;;  %v15269_v45 = vcombine.low %v1979_v26, %v1983_v27 }
 0xf2b   :  { %3542 = vmatpush2.bf16.msra.mxu1 %v15283_v36  ;;  %3585 = vmatpush2.bf16.msra.mxu0 %v15411_v39  ;;  %v15270_v36 = vcombine.high %v1979_v26, %v1983_v27  ;;  %v1975_v39 = vld [vmem:[#allocation2 + $0x368] sm:$0xff] }
 0xf2c   :  { %3597 = vmatprep.subr.bf16.mxu1 %v15278_v46  ;;  %3640 = vmatprep.subr.bf16.mxu0 %v15406_v49  ;;  %v15397_v46 = vcombine.low %v2107_v30, %v2111_v32  ;;  %v15262_v47 = vcombine.high %v1971_v38, %v1975_v39  ;;  %v15390_v49 = vcombine.high %v2099_v43, %v2103_v44  ;;  %v1935_v26 = vld [vmem:[#allocation2 + $0x228] sm:$0xff] }
 0xf2d   :  { %v2059_v27 = vld [vmem:[#allocation2 + $0x608] sm:$0xff] }
 0xfae   :  { %v1866_v50 = vpop.f32.mrf.mxu1  ;;  %v1909_v51 = vpop.f32.mrf.mxu0 }
 0xfaf   :  { %v1867_v10 = vadd.f32 %v1866_v50, %v1664_v55  ;;  %v1910_v14 = vadd.f32 %v1909_v51, %v1666_v61  ;;  %v1963_v50 = vld [vmem:[#allocation2 + $0x308] sm:$0xff] }
 0xfb0   :  { %v1868_v53 = vpop.f32.mrf.mxu1  ;;  %v1911_v59 = vpop.f32.mrf.mxu0  ;;  %v1967_v51 = vld [vmem:[#allocation2 + $0x328] sm:$0xff] }
 0xfb1   :  { %v1869_v0 = vadd.f32 %v1868_v53, %v1665_v52  ;;  %v1912_v11 = vadd.f32 %v1911_v59, %v1667_v57  ;;  %v1918_v23 = vmax.f32 %v1867_v10, 0.0  ;;  %v1920_v28 = vmax.f32 %v1910_v14, 0.0  ;;  %v2091_v52 = vld [vmem:[#allocation2 + $0x708] sm:$0xff] }
 0xfb2   :  { %v1870_v62 = vpop.f32.mrf.mxu1  ;;  %v1913_v6 = vpop.f32.mrf.mxu0  ;;  %v2095_v53 = vld [vmem:[#allocation2 + $0x728] sm:$0xff]  ;;  %v15254_v55 = vcombine.high %v1963_v50, %v1967_v51 }
 0xfb3   :  { %v1871_v1 = vadd.f32 %v1870_v62, %v1668_v54  ;;  %v1914_v12 = vadd.f32 %v1913_v6, %v1670_v60  ;;  %v1919_v19 = vmax.f32 %v1869_v0, 0.0  ;;  %v1921_v24 = vmax.f32 %v1912_v11, 0.0  ;;  %v1955_v57 = vld [vmem:[#allocation2 + $0x2c8] sm:$0xff] }
 0xfb4   :  { %v1872_v13 = vpop.f32.mrf.mxu1  ;;  %v1915_v16 = vpop.f32.mrf.mxu0  ;;  %v15261_v54 = vcombine.low %v1971_v38, %v1975_v39  ;;  %v1959_v59 = vld [vmem:[#allocation2 + $0x2e8] sm:$0xff]  ;;  %v15253_v62 = vcombine.low %v1963_v50, %v1967_v51 }
 0xfb5   :  { %v1873_v15 = vadd.f32 %v1872_v13, %v1669_v63  ;;  %v1922_v17 = vmax.f32 %v1871_v1, 0.0  ;;  %v1916_v18 = vadd.f32 %v1915_v16, %v1671_v9  ;;  %v1924_v21 = vmax.f32 %v1914_v12, 0.0  ;;  %v2083_v60 = vld [vmem:[#allocation2 + $0x6c8] sm:$0xff] }
 0xfb6   :  { %v2087_v61 = vld [vmem:[#allocation2 + $0x6e8] sm:$0xff]  ;;  %v15381_v63 = vcombine.low %v2091_v52, %v2095_v53  ;;  %v15246_v0 = vcombine.high %v1955_v57, %v1959_v59  ;;  %v15245_v12 = vcombine.low %v1955_v57, %v1959_v59 }
 0xfb7   :  { %v1923_v22 = vmax.f32 %v1873_v15, 0.0  ;;  %v1925_v25 = vmax.f32 %v1916_v18, 0.0  ;;  %v17812_v33 = vpack.c.bf16 %v1922_v17, %v1918_v23  ;;  %v17816_v35 = vpack.c.bf16 %v1924_v21, %v1920_v28  ;;  %v1947_v6 = vld [vmem:[#allocation2 + $0x288] sm:$0xff] }
 0xfb8   :  { %v15374_v1 = vcombine.high %v2083_v60, %v2087_v61  ;;  %v1951_v9 = vld [vmem:[#allocation2 + $0x2a8] sm:$0xff]  ;;  %v15373_v13 = vcombine.low %v2083_v60, %v2087_v61 }
 0xfb9   :  { %v17810_v29 = vpack.c.bf16 %v1923_v22, %v1919_v19  ;;  %v17814_v34 = vpack.c.bf16 %v1925_v25, %v1921_v24  ;;  %v2075_v10 = vld [vmem:[#allocation2 + $0x688] sm:$0xff]  ;;  %v15238_v14 = vcombine.high %v1947_v6, %v1951_v9  ;;  %v15237_v21 = vcombine.low %v1947_v6, %v1951_v9 }
 0xfba   :  { %v2079_v11 = vld [vmem:[#allocation2 + $0x6a8] sm:$0xff] }
 0xfbb   :  { %3543 = vmatprep.mubr.bf16.mxu1 %v17810_v29  ;;  %3586 = vmatprep.mubr.bf16.mxu0 %v17814_v34  ;;  %v15366_v15 = vcombine.high %v2075_v10, %v2079_v11  ;;  %v1939_v16 = vld [vmem:[#allocation2 + $0x248] sm:$0xff]  ;;  %v15365_v22 = vcombine.low %v2075_v10, %v2079_v11 }
 0xfbc   :  { %3544 = vmatmul.mubr.bf16.vlgmr.msra.gmra.mxu1 %v17812_v33  ;;  %3587 = vmatmul.mubr.bf16.vlgmr.msra.gmra.mxu0 %v17816_v35  ;;  %v1943_v17 = vld [vmem:[#allocation2 + $0x268] sm:$0xff] }
 0xfbd   :  { %3598 = vmatpush1.bf16.msra.mxu1 %v15277_v48  ;;  %3641 = vmatpush1.bf16.msra.mxu0 %v15405_v31  ;;  %v15389_v48 = vcombine.low %v2099_v43, %v2103_v44  ;;  %v15382_v31 = vcombine.high %v2091_v52, %v2095_v53  ;;  %v2067_v18 = vld [vmem:[#allocation2 + $0x648] sm:$0xff]  ;;  %v15230_v23 = vcombine.high %v1939_v16, %v1943_v17 }
 0xfbe   :  { %3629 = vmatprep.mubr.bf16.mxu1 %v17810_v29  ;;  %3672 = vmatprep.mubr.bf16.mxu0 %v17814_v34  ;;  %v2071_v19 = vld [vmem:[#allocation2 + $0x668] sm:$0xff]  ;;  %v15229_v30 = vcombine.low %v1939_v16, %v1943_v17 }
 0xfbf   :  { %3599 = vmatprep.subr.bf16.mxu1 %v15270_v36  ;;  %3642 = vmatprep.subr.bf16.mxu0 %v15398_v37  ;;  %v15358_v24 = vcombine.high %v2067_v18, %v2071_v19  ;;  %v1931_v25 = vld [vmem:[#allocation2 + $0x208] sm:$0xff]  ;;  %v15357_v32 = vcombine.low %v2067_v18, %v2071_v19 }
 0xfc0   :  { %v2063_v28 = vld [vmem:[#allocation2 + $0x628] sm:$0xff]  ;;  %v15222_v36 = vcombine.high %v1931_v25, %v1935_v26 }
 0xfc1   :  { %3600 = vmatpush1.bf16.msra.mxu1 %v15269_v45  ;;  %3643 = vmatpush1.bf16.msra.mxu0 %v15397_v46  ;;  %v15350_v38 = vcombine.high %v2059_v27, %v2063_v28  ;;  %v2051_v39 = vld [vmem:[#allocation2 + $0x5c8] sm:$0xff]  ;;  %v15221_v45 = vcombine.low %v1931_v25, %v1935_v26  ;;  %v15349_v46 = vcombine.low %v2059_v27, %v2063_v28 }
 0xfc2   :  { %3601 = vmatprep.subr.bf16.mxu1 %v15262_v47  ;;  %3644 = vmatprep.subr.bf16.mxu0 %v15390_v49  ;;  %v2055_v37 = vld [vmem:[#allocation2 + $0x5e8] sm:$0xff] }
 0xfc3   :  { %v2179_v43 = vld [vmem:[#allocation2 + $0x9c8] sm:$0xff]  ;;  %v15342_v47 = vcombine.high %v2051_v39, %v2055_v37 }
 0xfc4   :  { %v2183_v44 = vld [vmem:[#allocation2 + $0x9e8] sm:$0xff] }
 0xfc5   :  { %3602 = vmatpush1.bf16.msra.mxu1 %v15261_v54  ;;  %3645 = vmatpush1.bf16.msra.mxu0 %v15389_v48  ;;  %v15470_v49 = vcombine.high %v2179_v43, %v2183_v44  ;;  %v2043_v50 = vld [vmem:[#allocation2 + $0x588] sm:$0xff]  ;;  %v15341_v54 = vcombine.low %v2051_v39, %v2055_v37  ;;  %v15469_v48 = vcombine.low %v2179_v43, %v2183_v44 }
 0xfc6   :  { %3603 = vmatprep.subr.bf16.mxu1 %v15254_v55  ;;  %3646 = vmatprep.subr.bf16.mxu0 %v15382_v31  ;;  %v2047_v51 = vld [vmem:[#allocation2 + $0x5a8] sm:$0xff] }
 0xfc7   :  { %v2171_v52 = vld [vmem:[#allocation2 + $0x988] sm:$0xff]  ;;  %v15334_v55 = vcombine.high %v2043_v50, %v2047_v51 }
 0xfc8   :  { %v2175_v53 = vld [vmem:[#allocation2 + $0x9a8] sm:$0xff] }
 0xfc9   :  { %3604 = vmatpush1.bf16.msra.mxu1 %v15253_v62  ;;  %3647 = vmatpush1.bf16.msra.mxu0 %v15381_v63  ;;  %v15462_v31 = vcombine.high %v2171_v52, %v2175_v53  ;;  %v2035_v57 = vld [vmem:[#allocation2 + $0x548] sm:$0xff]  ;;  %v15333_v62 = vcombine.low %v2043_v50, %v2047_v51  ;;  %v15461_v63 = vcombine.low %v2171_v52, %v2175_v53 }
 0xfca   :  { %3605 = vmatprep.subr.bf16.mxu1 %v15246_v0  ;;  %3648 = vmatprep.subr.bf16.mxu0 %v15374_v1  ;;  %v2039_v59 = vld [vmem:[#allocation2 + $0x568] sm:$0xff] }
 0xfcb   :  { %v2163_v60 = vld [vmem:[#allocation2 + $0x948] sm:$0xff]  ;;  %v15326_v0 = vcombine.high %v2035_v57, %v2039_v59 }
 0xfcc   :  { %v2167_v61 = vld [vmem:[#allocation2 + $0x968] sm:$0xff] }
 0xfcd   :  { %3606 = vmatpush1.bf16.msra.mxu1 %v15245_v12  ;;  %3649 = vmatpush1.bf16.msra.mxu0 %v15373_v13  ;;  %v15454_v1 = vcombine.high %v2163_v60, %v2167_v61  ;;  %v2027_v6 = vld [vmem:[#allocation2 + $0x508] sm:$0xff]  ;;  %v15325_v12 = vcombine.low %v2035_v57, %v2039_v59  ;;  %v15453_v13 = vcombine.low %v2163_v60, %v2167_v61  ;;  %v1988_v57 = vld [vmem:[#allocation2 + $0x3d0] sm:$0xff] }
 0xfce   :  { %3607 = vmatprep.subr.bf16.mxu1 %v15238_v14  ;;  %3650 = vmatprep.subr.bf16.mxu0 %v15366_v15  ;;  %v2031_v9 = vld [vmem:[#allocation2 + $0x528] sm:$0xff]  ;;  %v1992_v59 = vld [vmem:[#allocation2 + $0x3f0] sm:$0xff] }
 0xfcf   :  { %v2155_v10 = vld [vmem:[#allocation2 + $0x908] sm:$0xff]  ;;  %v15318_v14 = vcombine.high %v2027_v6, %v2031_v9  ;;  %v2116_v60 = vld [vmem:[#allocation2 + $0x7d0] sm:$0xff] }
 0xfd0   :  { %v2159_v11 = vld [vmem:[#allocation2 + $0x928] sm:$0xff]  ;;  %v2120_v61 = vld [vmem:[#allocation2 + $0x7f0] sm:$0xff] }
 0xfd1   :  { %3608 = vmatpush1.bf16.msra.mxu1 %v15237_v21  ;;  %3651 = vmatpush1.bf16.msra.mxu0 %v15365_v22  ;;  %v15446_v15 = vcombine.high %v2155_v10, %v2159_v11  ;;  %v2019_v16 = vld [vmem:[#allocation2 + $0x4c8] sm:$0xff]  ;;  %v15317_v21 = vcombine.low %v2027_v6, %v2031_v9  ;;  %v15445_v22 = vcombine.low %v2155_v10, %v2159_v11  ;;  %v1980_v6 = vld [vmem:[#allocation2 + $0x390] sm:$0xff] }
 0xfd2   :  { %3609 = vmatprep.subr.bf16.mxu1 %v15230_v23  ;;  %3652 = vmatprep.subr.bf16.mxu0 %v15358_v24  ;;  %v2023_v17 = vld [vmem:[#allocation2 + $0x4e8] sm:$0xff]  ;;  %v1984_v9 = vld [vmem:[#allocation2 + $0x3b0] sm:$0xff]  ;;  %v15279_v10 = vcombine.low %v1988_v57, %v1992_v59 }
 0xfd3   :  { %v2147_v18 = vld [vmem:[#allocation2 + $0x8c8] sm:$0xff]  ;;  %v15310_v23 = vcombine.high %v2019_v16, %v2023_v17  ;;  %v2108_v11 = vld [vmem:[#allocation2 + $0x790] sm:$0xff] }
 0xfd4   :  { %v2151_v19 = vld [vmem:[#allocation2 + $0x8e8] sm:$0xff] }
 0xfd5   :  { %3610 = vmatpush1.bf16.msra.mxu1 %v15229_v30  ;;  %3653 = vmatpush1.bf16.msra.mxu0 %v15357_v32  ;;  %v15438_v24 = vcombine.high %v2147_v18, %v2151_v19  ;;  %v2011_v25 = vld [vmem:[#allocation2 + $0x488] sm:$0xff]  ;;  %v15309_v30 = vcombine.low %v2019_v16, %v2023_v17  ;;  %v15437_v32 = vcombine.low %v2147_v18, %v2151_v19  ;;  %v1976_v16 = vld [vmem:[#allocation2 + $0x370] sm:$0xff] }
 0xfd6   :  { %3611 = vmatprep.subr.bf16.mxu1 %v15222_v36  ;;  %3654 = vmatprep.subr.bf16.mxu0 %v15350_v38  ;;  %v2015_v26 = vld [vmem:[#allocation2 + $0x4a8] sm:$0xff]  ;;  %v2100_v18 = vld [vmem:[#allocation2 + $0x750] sm:$0xff] }
 0xfd7   :  { %v2139_v27 = vld [vmem:[#allocation2 + $0x888] sm:$0xff]  ;;  %v15302_v36 = vcombine.high %v2011_v25, %v2015_v26  ;;  %v2104_v19 = vld [vmem:[#allocation2 + $0x770] sm:$0xff] }
 0xfd8   :  { %v2143_v28 = vld [vmem:[#allocation2 + $0x8a8] sm:$0xff] }
 0xfd9   :  { %3612 = vmatpush1.bf16.msra.mxu1 %v15221_v45  ;;  %3655 = vmatpush1.bf16.msra.mxu0 %v15349_v46  ;;  %v15430_v38 = vcombine.high %v2139_v27, %v2143_v28  ;;  %v2003_v39 = vld [vmem:[#allocation2 + $0x448] sm:$0xff]  ;;  %v15301_v45 = vcombine.low %v2011_v25, %v2015_v26  ;;  %v15429_v46 = vcombine.low %v2139_v27, %v2143_v28  ;;  %v1964_v25 = vld [vmem:[#allocation2 + $0x310] sm:$0xff] }
 0xfda   :  { %3613 = vmatprep.subr.bf16.mxu1 %v15342_v47  ;;  %3656 = vmatprep.subr.bf16.mxu0 %v15470_v49  ;;  %v2007_v37 = vld [vmem:[#allocation2 + $0x468] sm:$0xff]  ;;  %v1968_v26 = vld [vmem:[#allocation2 + $0x330] sm:$0xff] }
 0xfdb   :  { %v2131_v43 = vld [vmem:[#allocation2 + $0x848] sm:$0xff]  ;;  %v15294_v47 = vcombine.high %v2003_v39, %v2007_v37  ;;  %v2092_v27 = vld [vmem:[#allocation2 + $0x710] sm:$0xff] }
 0xfdc   :  { %v2135_v44 = vld [vmem:[#allocation2 + $0x868] sm:$0xff]  ;;  %v2096_v28 = vld [vmem:[#allocation2 + $0x730] sm:$0xff] }
 0xfdd   :  { %3614 = vmatpush2.bf16.msra.mxu1 %v15341_v54  ;;  %3657 = vmatpush2.bf16.msra.mxu0 %v15469_v48  ;;  %v15422_v49 = vcombine.high %v2131_v43, %v2135_v44  ;;  %v1995_v50 = vld [vmem:[#allocation2 + $0x408] sm:$0xff]  ;;  %v15293_v54 = vcombine.low %v2003_v39, %v2007_v37  ;;  %v15421_v48 = vcombine.low %v2131_v43, %v2135_v44  ;;  %v1956_v39 = vld [vmem:[#allocation2 + $0x2d0] sm:$0xff] }
 0xfde   :  { %3615 = vmatprep.subr.bf16.mxu1 %v15334_v55  ;;  %3658 = vmatprep.subr.bf16.mxu0 %v15462_v31  ;;  %v1999_v51 = vld [vmem:[#allocation2 + $0x428] sm:$0xff]  ;;  %v1960_v37 = vld [vmem:[#allocation2 + $0x2f0] sm:$0xff] }
 0xfdf   :  { %v2123_v52 = vld [vmem:[#allocation2 + $0x808] sm:$0xff]  ;;  %v15286_v55 = vcombine.high %v1995_v50, %v1999_v51  ;;  %v2084_v43 = vld [vmem:[#allocation2 + $0x6d0] sm:$0xff] }
 0xfe0   :  { %v2127_v53 = vld [vmem:[#allocation2 + $0x828] sm:$0xff]  ;;  %v2088_v44 = vld [vmem:[#allocation2 + $0x6f0] sm:$0xff] }
 0xfe1   :  { %3616 = vmatpush2.bf16.msra.mxu1 %v15333_v62  ;;  %3659 = vmatpush2.bf16.msra.mxu0 %v15461_v63  ;;  %v15414_v31 = vcombine.high %v2123_v52, %v2127_v53  ;;  %v15285_v62 = vcombine.low %v1995_v50, %v1999_v51  ;;  %v15413_v63 = vcombine.low %v2123_v52, %v2127_v53  ;;  %v1948_v50 = vld [vmem:[#allocation2 + $0x290] sm:$0xff] }
 0xfe2   :  { %3617 = vmatprep.subr.bf16.mxu1 %v15326_v0  ;;  %3660 = vmatprep.subr.bf16.mxu0 %v15454_v1  ;;  %v15280_v0 = vcombine.high %v1988_v57, %v1992_v59  ;;  %v15408_v1 = vcombine.high %v2116_v60, %v2120_v61  ;;  %v1952_v51 = vld [vmem:[#allocation2 + $0x2b0] sm:$0xff] }
 0xfe3   :  { %v2076_v52 = vld [vmem:[#allocation2 + $0x690] sm:$0xff] }
 0xfe4   :  { %v2080_v53 = vld [vmem:[#allocation2 + $0x6b0] sm:$0xff] }
 0xfe5   :  { %3618 = vmatpush2.bf16.msra.mxu1 %v15325_v12  ;;  %3661 = vmatpush2.bf16.msra.mxu0 %v15453_v13  ;;  %v2112_v12 = vld [vmem:[#allocation2 + $0x7b0] sm:$0xff]  ;;  %v15407_v13 = vcombine.low %v2116_v60, %v2120_v61 }
 0xfe6   :  { %3619 = vmatprep.subr.bf16.mxu1 %v15318_v14  ;;  %3662 = vmatprep.subr.bf16.mxu0 %v15446_v15  ;;  %v15272_v14 = vcombine.high %v1980_v6, %v1984_v9  ;;  %v1972_v15 = vld [vmem:[#allocation2 + $0x350] sm:$0xff]  ;;  %v15400_v17 = vcombine.high %v2108_v11, %v2112_v12 }
 0xfe7   :  { %v1940_v57 = vld [vmem:[#allocation2 + $0x250] sm:$0xff] }
 0xfe8   :  { %v1944_v59 = vld [vmem:[#allocation2 + $0x270] sm:$0xff] }
 0xfe9   :  { %3620 = vmatpush2.bf16.msra.mxu1 %v15317_v21  ;;  %3663 = vmatpush2.bf16.msra.mxu0 %v15445_v22  ;;  %v15271_v21 = vcombine.low %v1980_v6, %v1984_v9  ;;  %v15399_v22 = vcombine.low %v2108_v11, %v2112_v12  ;;  %v2068_v60 = vld [vmem:[#allocation2 + $0x650] sm:$0xff]  ;;  %v15231_v12 = vcombine.low %v1940_v57, %v1944_v59 }
 0xfea   :  { %3621 = vmatprep.subr.bf16.mxu1 %v15310_v23  ;;  %3664 = vmatprep.subr.bf16.mxu0 %v15438_v24  ;;  %v15264_v23 = vcombine.high %v1972_v15, %v1976_v16  ;;  %v15392_v24 = vcombine.high %v2100_v18, %v2104_v19  ;;  %v2072_v61 = vld [vmem:[#allocation2 + $0x670] sm:$0xff] }
 0xfeb   :  { %v1932_v6 = vld [vmem:[#allocation2 + $0x210] sm:$0xff] }
 0xfec   :  { %v1936_v9 = vld [vmem:[#allocation2 + $0x230] sm:$0xff] }
 0xfed   :  { %3622 = vmatpush2.bf16.msra.mxu1 %v15309_v30  ;;  %3665 = vmatpush2.bf16.msra.mxu0 %v15437_v32  ;;  %v15263_v30 = vcombine.low %v1972_v15, %v1976_v16  ;;  %v15391_v32 = vcombine.low %v2100_v18, %v2104_v19  ;;  %v2064_v11 = vld [vmem:[#allocation2 + $0x630] sm:$0xff] }
 0xfee   :  { %3623 = vmatprep.subr.bf16.mxu1 %v15302_v36  ;;  %3666 = vmatprep.subr.bf16.mxu0 %v15430_v38  ;;  %v15256_v36 = vcombine.high %v1964_v25, %v1968_v26  ;;  %v15384_v38 = vcombine.high %v2092_v27, %v2096_v28  ;;  %v2052_v16 = vld [vmem:[#allocation2 + $0x5d0] sm:$0xff] }
 0xfef   :  { %v2180_v18 = vld [vmem:[#allocation2 + $0x9d0] sm:$0xff] }
 0xff0   :  { %v2184_v19 = vld [vmem:[#allocation2 + $0x9f0] sm:$0xff] }
 0xff1   :  { %3624 = vmatpush2.bf16.msra.mxu1 %v15301_v45  ;;  %3667 = vmatpush2.bf16.msra.mxu0 %v15429_v46  ;;  %v15255_v45 = vcombine.low %v1964_v25, %v1968_v26  ;;  %v15383_v46 = vcombine.low %v2092_v27, %v2096_v28  ;;  %v2044_v25 = vld [vmem:[#allocation2 + $0x590] sm:$0xff] }
 0xff2   :  { %3625 = vmatprep.subr.bf16.mxu1 %v15294_v47  ;;  %3668 = vmatprep.subr.bf16.mxu0 %v15422_v49  ;;  %v15248_v47 = vcombine.high %v1956_v39, %v1960_v37  ;;  %v15376_v49 = vcombine.high %v2084_v43, %v2088_v44  ;;  %v2048_v26 = vld [vmem:[#allocation2 + $0x5b0] sm:$0xff] }
 0xff3   :  { %v2172_v27 = vld [vmem:[#allocation2 + $0x990] sm:$0xff] }
 0xff4   :  { %v2176_v28 = vld [vmem:[#allocation2 + $0x9b0] sm:$0xff] }
 0xff5   :  { %3626 = vmatpush2.bf16.msra.mxu1 %v15293_v54  ;;  %3669 = vmatpush2.bf16.msra.mxu0 %v15421_v48  ;;  %v15247_v54 = vcombine.low %v1956_v39, %v1960_v37  ;;  %v15375_v48 = vcombine.low %v2084_v43, %v2088_v44  ;;  %v2036_v39 = vld [vmem:[#allocation2 + $0x550] sm:$0xff] }
 0xff6   :  { %3627 = vmatprep.subr.bf16.mxu1 %v15286_v55  ;;  %3670 = vmatprep.subr.bf16.mxu0 %v15414_v31  ;;  %v15240_v55 = vcombine.high %v1948_v50, %v1952_v51  ;;  %v15368_v31 = vcombine.high %v2076_v52, %v2080_v53  ;;  %v2040_v37 = vld [vmem:[#allocation2 + $0x570] sm:$0xff] }
 0xff7   :  { %v2164_v43 = vld [vmem:[#allocation2 + $0x950] sm:$0xff] }
 0xff8   :  { %v2168_v44 = vld [vmem:[#allocation2 + $0x970] sm:$0xff] }
 0xff9   :  { %3628 = vmatpush2.bf16.msra.mxu1 %v15285_v62  ;;  %3671 = vmatpush2.bf16.msra.mxu0 %v15413_v63  ;;  %v15239_v62 = vcombine.low %v1948_v50, %v1952_v51  ;;  %v15367_v63 = vcombine.low %v2076_v52, %v2080_v53  ;;  %v2028_v50 = vld [vmem:[#allocation2 + $0x510] sm:$0xff] }
 0xffa   :  { %3683 = vmatprep.subr.bf16.mxu1 %v15280_v0  ;;  %3726 = vmatprep.subr.bf16.mxu0 %v15408_v1  ;;  %v15232_v0 = vcombine.high %v1940_v57, %v1944_v59  ;;  %v15360_v1 = vcombine.high %v2068_v60, %v2072_v61  ;;  %v2032_v51 = vld [vmem:[#allocation2 + $0x530] sm:$0xff] }
 0xffb   :  { %v2156_v52 = vld [vmem:[#allocation2 + $0x910] sm:$0xff] }
 0xffc   :  { %3630 = vmatmul.mubr.bf16.vlgmr.msra.gmra.mxu1 %v17812_v33  ;;  %3673 = vmatmul.mubr.bf16.vlgmr.msra.gmra.mxu0 %v17816_v35  ;;  %v2160_v53 = vld [vmem:[#allocation2 + $0x930] sm:$0xff] }
 0xffd   :  { %3684 = vmatpush1.bf16.msra.mxu1 %v15279_v10  ;;  %3715 = vmatprep.mubr.bf16.mxu1 %v17810_v29  ;;  %v2060_v10 = vld [vmem:[#allocation2 + $0x610] sm:$0xff] }
 0xffe   :  { %3727 = vmatpush1.bf16.msra.mxu0 %v15407_v13  ;;  %3758 = vmatprep.mubr.bf16.mxu0 %v17814_v34  ;;  %v15359_v13 = vcombine.low %v2068_v60, %v2072_v61  ;;  %v15352_v15 = vcombine.high %v2060_v10, %v2064_v11  ;;  %v2020_v57 = vld [vmem:[#allocation2 + $0x4d0] sm:$0xff] }
 0xfff   :  { %3685 = vmatprep.subr.bf16.mxu1 %v15272_v14  ;;  %3728 = vmatprep.subr.bf16.mxu0 %v15400_v17  ;;  %v15224_v14 = vcombine.high %v1932_v6, %v1936_v9  ;;  %v2056_v17 = vld [vmem:[#allocation2 + $0x5f0] sm:$0xff] }
0x1000   :  { %v2024_v59 = vld [vmem:[#allocation2 + $0x4f0] sm:$0xff] }
0x1001   :  { %3686 = vmatpush1.bf16.msra.mxu1 %v15271_v21  ;;  %v15223_v21 = vcombine.low %v1932_v6, %v1936_v9  ;;  %v2148_v60 = vld [vmem:[#allocation2 + $0x8d0] sm:$0xff] }
0x1002   :  { %3729 = vmatpush1.bf16.msra.mxu0 %v15399_v22  ;;  %3687 = vmatprep.subr.bf16.mxu1 %v15264_v23  ;;  %v15351_v22 = vcombine.low %v2060_v10, %v2064_v11  ;;  %v15344_v23 = vcombine.high %v2052_v16, %v2056_v17  ;;  %v2152_v61 = vld [vmem:[#allocation2 + $0x8f0] sm:$0xff] }
0x1003   :  { %3730 = vmatprep.subr.bf16.mxu0 %v15392_v24  ;;  %v15472_v24 = vcombine.high %v2180_v18, %v2184_v19  ;;  %v2012_v6 = vld [vmem:[#allocation2 + $0x490] sm:$0xff] }
0x1004   :  { %v2016_v9 = vld [vmem:[#allocation2 + $0x4b0] sm:$0xff] }
0x1005   :  { %3688 = vmatpush1.bf16.msra.mxu1 %v15263_v30  ;;  %v15343_v30 = vcombine.low %v2052_v16, %v2056_v17  ;;  %v2140_v10 = vld [vmem:[#allocation2 + $0x890] sm:$0xff] }
0x1006   :  { %3731 = vmatpush1.bf16.msra.mxu0 %v15391_v32  ;;  %3689 = vmatprep.subr.bf16.mxu1 %v15256_v36  ;;  %v15471_v32 = vcombine.low %v2180_v18, %v2184_v19  ;;  %v15336_v36 = vcombine.high %v2044_v25, %v2048_v26  ;;  %v2144_v11 = vld [vmem:[#allocation2 + $0x8b0] sm:$0xff] }
0x1007   :  { %3732 = vmatprep.subr.bf16.mxu0 %v15384_v38  ;;  %v15464_v38 = vcombine.high %v2172_v27, %v2176_v28  ;;  %v2004_v16 = vld [vmem:[#allocation2 + $0x450] sm:$0xff] }
0x1008   :  { %v2008_v17 = vld [vmem:[#allocation2 + $0x470] sm:$0xff] }
0x1009   :  { %3690 = vmatpush1.bf16.msra.mxu1 %v15255_v45  ;;  %v15335_v45 = vcombine.low %v2044_v25, %v2048_v26  ;;  %v2132_v18 = vld [vmem:[#allocation2 + $0x850] sm:$0xff] }
0x100a   :  { %3733 = vmatpush1.bf16.msra.mxu0 %v15383_v46  ;;  %3691 = vmatprep.subr.bf16.mxu1 %v15248_v47  ;;  %v15463_v46 = vcombine.low %v2172_v27, %v2176_v28  ;;  %v15328_v47 = vcombine.high %v2036_v39, %v2040_v37  ;;  %v2136_v19 = vld [vmem:[#allocation2 + $0x870] sm:$0xff] }
0x100b   :  { %3734 = vmatprep.subr.bf16.mxu0 %v15376_v49  ;;  %v15456_v49 = vcombine.high %v2164_v43, %v2168_v44  ;;  %v1996_v25 = vld [vmem:[#allocation2 + $0x410] sm:$0xff] }
0x100c   :  { %v2000_v26 = vld [vmem:[#allocation2 + $0x430] sm:$0xff] }
0x100d   :  { %3692 = vmatpush1.bf16.msra.mxu1 %v15247_v54  ;;  %v15327_v54 = vcombine.low %v2036_v39, %v2040_v37  ;;  %v2124_v27 = vld [vmem:[#allocation2 + $0x810] sm:$0xff]  ;;  %v1989_v39 = vld [vmem:[#allocation2 + $0x3d8] sm:$0xff] }
0x100e   :  { %3735 = vmatpush1.bf16.msra.mxu0 %v15375_v48  ;;  %3693 = vmatprep.subr.bf16.mxu1 %v15240_v55  ;;  %v15455_v48 = vcombine.low %v2164_v43, %v2168_v44  ;;  %v15320_v55 = vcombine.high %v2028_v50, %v2032_v51  ;;  %v2128_v28 = vld [vmem:[#allocation2 + $0x830] sm:$0xff]  ;;  %v1993_v37 = vld [vmem:[#allocation2 + $0x3f8] sm:$0xff] }
0x100f   :  { %3736 = vmatprep.subr.bf16.mxu0 %v15368_v31  ;;  %v15448_v31 = vcombine.high %v2156_v52, %v2160_v53  ;;  %v2117_v43 = vld [vmem:[#allocation2 + $0x7d8] sm:$0xff] }
0x1010   :  { %v2121_v44 = vld [vmem:[#allocation2 + $0x7f8] sm:$0xff] }
0x1011   :  { %3694 = vmatpush1.bf16.msra.mxu1 %v15239_v62  ;;  %v15319_v62 = vcombine.low %v2028_v50, %v2032_v51  ;;  %v1981_v50 = vld [vmem:[#allocation2 + $0x398] sm:$0xff] }
0x1012   :  { %3737 = vmatpush1.bf16.msra.mxu0 %v15367_v63  ;;  %3695 = vmatprep.subr.bf16.mxu1 %v15232_v0  ;;  %v15447_v63 = vcombine.low %v2156_v52, %v2160_v53  ;;  %v15312_v0 = vcombine.high %v2020_v57, %v2024_v59  ;;  %v1985_v51 = vld [vmem:[#allocation2 + $0x3b8] sm:$0xff]  ;;  %v15281_v52 = vcombine.low %v1989_v39, %v1993_v37 }
0x1013   :  { %3738 = vmatprep.subr.bf16.mxu0 %v15360_v1  ;;  %v15440_v1 = vcombine.high %v2148_v60, %v2152_v61  ;;  %v2109_v53 = vld [vmem:[#allocation2 + $0x798] sm:$0xff] }
0x1015   :  { %3696 = vmatpush1.bf16.msra.mxu1 %v15231_v12  ;;  %v15311_v12 = vcombine.low %v2020_v57, %v2024_v59  ;;  %v1977_v57 = vld [vmem:[#allocation2 + $0x378] sm:$0xff] }
0x1016   :  { %3739 = vmatpush1.bf16.msra.mxu0 %v15359_v13  ;;  %3697 = vmatprep.subr.bf16.mxu1 %v15224_v14  ;;  %v15439_v13 = vcombine.low %v2148_v60, %v2152_v61  ;;  %v15304_v14 = vcombine.high %v2012_v6, %v2016_v9  ;;  %v2101_v60 = vld [vmem:[#allocation2 + $0x758] sm:$0xff] }
0x1017   :  { %3740 = vmatprep.subr.bf16.mxu0 %v15352_v15  ;;  %v15432_v15 = vcombine.high %v2140_v10, %v2144_v11  ;;  %v2105_v61 = vld [vmem:[#allocation2 + $0x778] sm:$0xff] }
0x1019   :  { %3698 = vmatpush1.bf16.msra.mxu1 %v15223_v21  ;;  %v15303_v21 = vcombine.low %v2012_v6, %v2016_v9  ;;  %v1965_v6 = vld [vmem:[#allocation2 + $0x318] sm:$0xff] }
0x101a   :  { %3741 = vmatpush1.bf16.msra.mxu0 %v15351_v22  ;;  %3699 = vmatprep.subr.bf16.mxu1 %v15344_v23  ;;  %v15431_v22 = vcombine.low %v2140_v10, %v2144_v11  ;;  %v15296_v23 = vcombine.high %v2004_v16, %v2008_v17  ;;  %v1969_v9 = vld [vmem:[#allocation2 + $0x338] sm:$0xff] }
0x101b   :  { %3742 = vmatprep.subr.bf16.mxu0 %v15472_v24  ;;  %v15424_v24 = vcombine.high %v2132_v18, %v2136_v19  ;;  %v2093_v10 = vld [vmem:[#allocation2 + $0x718] sm:$0xff] }
0x101c   :  { %v2097_v11 = vld [vmem:[#allocation2 + $0x738] sm:$0xff] }
0x101d   :  { %3700 = vmatpush2.bf16.msra.mxu1 %v15343_v30  ;;  %v15295_v30 = vcombine.low %v2004_v16, %v2008_v17  ;;  %v1961_v16 = vld [vmem:[#allocation2 + $0x2f8] sm:$0xff] }
0x101e   :  { %3743 = vmatpush2.bf16.msra.mxu0 %v15471_v32  ;;  %3701 = vmatprep.subr.bf16.mxu1 %v15336_v36  ;;  %v15423_v32 = vcombine.low %v2132_v18, %v2136_v19  ;;  %v15288_v36 = vcombine.high %v1996_v25, %v2000_v26  ;;  %v2085_v17 = vld [vmem:[#allocation2 + $0x6d8] sm:$0xff]  ;;  %v15385_v19 = vcombine.low %v2093_v10, %v2097_v11 }
0x101f   :  { %3744 = vmatprep.subr.bf16.mxu0 %v15464_v38  ;;  %v15416_v38 = vcombine.high %v2124_v27, %v2128_v28  ;;  %v2089_v18 = vld [vmem:[#allocation2 + $0x6f8] sm:$0xff] }
0x1021   :  { %3702 = vmatpush2.bf16.msra.mxu1 %v15335_v45  ;;  %v15287_v45 = vcombine.low %v1996_v25, %v2000_v26  ;;  %v2077_v25 = vld [vmem:[#allocation2 + $0x698] sm:$0xff] }
0x1022   :  { %3745 = vmatpush2.bf16.msra.mxu0 %v15463_v46  ;;  %3703 = vmatprep.subr.bf16.mxu1 %v15328_v47  ;;  %v15415_v46 = vcombine.low %v2124_v27, %v2128_v28  ;;  %v15282_v47 = vcombine.high %v1989_v39, %v1993_v37  ;;  %v2081_v26 = vld [vmem:[#allocation2 + $0x6b8] sm:$0xff]  ;;  %v15377_v28 = vcombine.low %v2085_v17, %v2089_v18 }
0x1023   :  { %3746 = vmatprep.subr.bf16.mxu0 %v15456_v49  ;;  %v15410_v49 = vcombine.high %v2117_v43, %v2121_v44  ;;  %v2069_v39 = vld [vmem:[#allocation2 + $0x658] sm:$0xff] }
0x1024   :  { %v2073_v37 = vld [vmem:[#allocation2 + $0x678] sm:$0xff] }
0x1025   :  { %3704 = vmatpush2.bf16.msra.mxu1 %v15327_v54  ;;  %v2113_v54 = vld [vmem:[#allocation2 + $0x7b8] sm:$0xff] }
0x1026   :  { %3747 = vmatpush2.bf16.msra.mxu0 %v15455_v48  ;;  %3705 = vmatprep.subr.bf16.mxu1 %v15320_v55  ;;  %v15409_v48 = vcombine.low %v2117_v43, %v2121_v44  ;;  %v15274_v55 = vcombine.high %v1981_v50, %v1985_v51  ;;  %v15402_v59 = vcombine.high %v2109_v53, %v2113_v54 }
0x1027   :  { %3748 = vmatprep.subr.bf16.mxu0 %v15448_v31  ;;  %v1973_v31 = vld [vmem:[#allocation2 + $0x358] sm:$0xff]  ;;  %v15369_v44 = vcombine.low %v2077_v25, %v2081_v26 }
0x1029   :  { %3706 = vmatpush2.bf16.msra.mxu1 %v15319_v62  ;;  %v15273_v62 = vcombine.low %v1981_v50, %v1985_v51  ;;  %v2061_v50 = vld [vmem:[#allocation2 + $0x618] sm:$0xff] }
0x102a   :  { %3749 = vmatpush2.bf16.msra.mxu0 %v15447_v63  ;;  %3707 = vmatprep.subr.bf16.mxu1 %v15312_v0  ;;  %v15401_v63 = vcombine.low %v2109_v53, %v2113_v54  ;;  %v15266_v0 = vcombine.high %v1973_v31, %v1977_v57  ;;  %v2065_v51 = vld [vmem:[#allocation2 + $0x638] sm:$0xff]  ;;  %v15361_v53 = vcombine.low %v2069_v39, %v2073_v37 }
0x102b   :  { %3750 = vmatprep.subr.bf16.mxu0 %v15440_v1  ;;  %v15394_v1 = vcombine.high %v2101_v60, %v2105_v61 }
0x102d   :  { %3708 = vmatpush2.bf16.msra.mxu1 %v15311_v12  ;;  %v15265_v12 = vcombine.low %v1973_v31, %v1977_v57  ;;  %v2057_v31 = vld [vmem:[#allocation2 + $0x5f8] sm:$0xff] }
0x102e   :  { %3751 = vmatpush2.bf16.msra.mxu0 %v15439_v13  ;;  %3709 = vmatprep.subr.bf16.mxu1 %v15304_v14  ;;  %v15393_v13 = vcombine.low %v2101_v60, %v2105_v61  ;;  %v15258_v14 = vcombine.high %v1965_v6, %v1969_v9  ;;  %v2181_v57 = vld [vmem:[#allocation2 + $0x9d8] sm:$0xff]  ;;  %v15353_v61 = vcombine.low %v2061_v50, %v2065_v51 }
0x102f   :  { %3752 = vmatprep.subr.bf16.mxu0 %v15432_v15  ;;  %v1957_v15 = vld [vmem:[#allocation2 + $0x2d8] sm:$0xff] }
0x1030   :  { %v15249_v27 = vcombine.low %v1957_v15, %v1961_v16 }
0x1031   :  { %3710 = vmatpush2.bf16.msra.mxu1 %v15303_v21  ;;  %v15250_v21 = vcombine.high %v1957_v15, %v1961_v16  ;;  %v2165_v15 = vld [vmem:[#allocation2 + $0x958] sm:$0xff] }
0x1032   :  { %3753 = vmatpush2.bf16.msra.mxu0 %v15431_v22  ;;  %3711 = vmatprep.subr.bf16.mxu1 %v15296_v23  ;;  %v15378_v22 = vcombine.high %v2085_v17, %v2089_v18  ;;  %v1949_v23 = vld [vmem:[#allocation2 + $0x298] sm:$0xff] }
0x1033   :  { %3754 = vmatprep.subr.bf16.mxu0 %v15424_v24  ;;  %v1953_v24 = vld [vmem:[#allocation2 + $0x2b8] sm:$0xff] }
0x1034   :  { %v15241_v43 = vcombine.low %v1949_v23, %v1953_v24  ;;  %v2169_v16 = vld [vmem:[#allocation2 + $0x978] sm:$0xff] }
0x1035   :  { %3712 = vmatpush2.bf16.msra.mxu1 %v15295_v30  ;;  %v15242_v30 = vcombine.high %v1949_v23, %v1953_v24  ;;  %v2157_v23 = vld [vmem:[#allocation2 + $0x918] sm:$0xff] }
0x1036   :  { %3755 = vmatpush2.bf16.msra.mxu0 %v15423_v32  ;;  %3713 = vmatprep.subr.bf16.mxu1 %v15288_v36  ;;  %v15370_v32 = vcombine.high %v2077_v25, %v2081_v26  ;;  %v1941_v36 = vld [vmem:[#allocation2 + $0x258] sm:$0xff]  ;;  %v15457_v26 = vcombine.low %v2165_v15, %v2169_v16 }
0x1037   :  { %3756 = vmatprep.subr.bf16.mxu0 %v15416_v38  ;;  %v1945_v38 = vld [vmem:[#allocation2 + $0x278] sm:$0xff] }
0x1038   :  { %v2161_v24 = vld [vmem:[#allocation2 + $0x938] sm:$0xff] }
0x1039   :  { %3714 = vmatpush2.bf16.msra.mxu1 %v15287_v45  ;;  %v15234_v45 = vcombine.high %v1941_v36, %v1945_v38 }
0x103a   :  { %3757 = vmatpush2.bf16.msra.mxu0 %v15415_v46  ;;  %3769 = vmatprep.subr.bf16.mxu1 %v15282_v47  ;;  %v15362_v46 = vcombine.high %v2069_v39, %v2073_v37  ;;  %v1933_v47 = vld [vmem:[#allocation2 + $0x218] sm:$0xff]  ;;  %v15449_v37 = vcombine.low %v2157_v23, %v2161_v24 }
0x103b   :  { %3812 = vmatprep.subr.bf16.mxu0 %v15410_v49  ;;  %v1937_v49 = vld [vmem:[#allocation2 + $0x238] sm:$0xff] }
0x103c   :  { %3716 = vmatmul.mubr.bf16.vlgmr.msra.gmra.mxu1 %v17812_v33  ;;  %v15226_v54 = vcombine.high %v1933_v47, %v1937_v49  ;;  %v15225_v60 = vcombine.low %v1933_v47, %v1937_v49  ;;  %v2141_v47 = vld [vmem:[#allocation2 + $0x898] sm:$0xff] }
0x103d   :  { %3759 = vmatmul.mubr.bf16.vlgmr.msra.gmra.mxu0 %v17816_v35  ;;  %3770 = vmatpush1.bf16.msra.mxu1 %v15281_v52  ;;  %v15233_v52 = vcombine.low %v1941_v36, %v1945_v38  ;;  %v2149_v36 = vld [vmem:[#allocation2 + $0x8d8] sm:$0xff] }
0x103e   :  { %3801 = vmatprep.mubr.bf16.mxu1 %v17810_v29  ;;  %3813 = vmatpush1.bf16.msra.mxu0 %v15409_v48  ;;  %v15386_v29 = vcombine.high %v2093_v10, %v2097_v11  ;;  %v15354_v48 = vcombine.high %v2061_v50, %v2065_v51  ;;  %v2153_v38 = vld [vmem:[#allocation2 + $0x8f8] sm:$0xff] }
0x103f   :  { %3844 = vmatprep.mubr.bf16.mxu0 %v17814_v34  ;;  %3771 = vmatprep.subr.bf16.mxu1 %v15274_v55  ;;  %v15257_v34 = vcombine.low %v1965_v6, %v1969_v9  ;;  %v2053_v55 = vld [vmem:[#allocation2 + $0x5d8] sm:$0xff]  ;;  %v15441_v51 = vcombine.low %v2149_v36, %v2153_v38 }
0x1040   :  { %3814 = vmatprep.subr.bf16.mxu0 %v15402_v59  ;;  %v2185_v59 = vld [vmem:[#allocation2 + $0x9f8] sm:$0xff]  ;;  %v15345_v10 = vcombine.low %v2053_v55, %v2057_v31 }
0x1041   :  { %3772 = vmatpush1.bf16.msra.mxu1 %v15273_v62  ;;  %v15346_v62 = vcombine.high %v2053_v55, %v2057_v31  ;;  %v2173_v6 = vld [vmem:[#allocation2 + $0x998] sm:$0xff]  ;;  %v15473_v11 = vcombine.low %v2181_v57, %v2185_v59 }
0x1042   :  { %3815 = vmatpush1.bf16.msra.mxu0 %v15401_v63  ;;  %3773 = vmatprep.subr.bf16.mxu1 %v15266_v0  ;;  %v15474_v63 = vcombine.high %v2181_v57, %v2185_v59  ;;  %v2045_v0 = vld [vmem:[#allocation2 + $0x598] sm:$0xff] }
0x1043   :  { %3816 = vmatprep.subr.bf16.mxu0 %v15394_v1  ;;  %v2049_v1 = vld [vmem:[#allocation2 + $0x5b8] sm:$0xff] }
0x1044   :  { %v2177_v9 = vld [vmem:[#allocation2 + $0x9b8] sm:$0xff]  ;;  %v15337_v17 = vcombine.low %v2045_v0, %v2049_v1 }
0x1045   :  { %3774 = vmatpush1.bf16.msra.mxu1 %v15265_v12  ;;  %v15338_v12 = vcombine.high %v2045_v0, %v2049_v1  ;;  %v15465_v18 = vcombine.low %v2173_v6, %v2177_v9  ;;  %v2145_v49 = vld [vmem:[#allocation2 + $0x8b8] sm:$0xff] }
0x1046   :  { %3817 = vmatpush1.bf16.msra.mxu0 %v15393_v13  ;;  %3775 = vmatprep.subr.bf16.mxu1 %v15258_v14  ;;  %v15466_v13 = vcombine.high %v2173_v6, %v2177_v9  ;;  %v2037_v14 = vld [vmem:[#allocation2 + $0x558] sm:$0xff]  ;;  %v15433_v59 = vcombine.low %v2141_v47, %v2145_v49 }
0x1047   :  { %3818 = vmatprep.subr.bf16.mxu0 %v15386_v29  ;;  %v2041_v29 = vld [vmem:[#allocation2 + $0x578] sm:$0xff] }
0x1048   :  { %v15329_v25 = vcombine.low %v2037_v14, %v2041_v29  ;;  %v2133_v55 = vld [vmem:[#allocation2 + $0x858] sm:$0xff] }
0x1049   :  { %3776 = vmatpush1.bf16.msra.mxu1 %v15257_v34  ;;  %v15330_v34 = vcombine.high %v2037_v14, %v2041_v29  ;;  %v2137_v31 = vld [vmem:[#allocation2 + $0x878] sm:$0xff] }
0x104a   :  { %3819 = vmatpush1.bf16.msra.mxu0 %v15385_v19  ;;  %3777 = vmatprep.subr.bf16.mxu1 %v15250_v21  ;;  %v15458_v19 = vcombine.high %v2165_v15, %v2169_v16  ;;  %v2029_v21 = vld [vmem:[#allocation2 + $0x518] sm:$0xff]  ;;  %v15425_v9 = vcombine.low %v2133_v55, %v2137_v31 }
0x104b   :  { %3820 = vmatprep.subr.bf16.mxu0 %v15378_v22  ;;  %v2033_v22 = vld [vmem:[#allocation2 + $0x538] sm:$0xff] }
0x104c   :  { %v15321_v39 = vcombine.low %v2029_v21, %v2033_v22  ;;  %v2125_v0 = vld [vmem:[#allocation2 + $0x818] sm:$0xff] }
0x104d   :  { %3778 = vmatpush1.bf16.msra.mxu1 %v15249_v27  ;;  %v15322_v27 = vcombine.high %v2029_v21, %v2033_v22  ;;  %v2129_v1 = vld [vmem:[#allocation2 + $0x838] sm:$0xff]  ;;  %v17296_v22 = vld [vmem:[#allocation8 + $0x468] ss:$8 sps:$4 sm:$0xff]  }
0x104e   :  { %3821 = vmatpush1.bf16.msra.mxu0 %v15377_v28  ;;  %3779 = vmatprep.subr.bf16.mxu1 %v15242_v30  ;;  %v15450_v28 = vcombine.high %v2157_v23, %v2161_v24  ;;  %v2021_v30 = vld [vmem:[#allocation2 + $0x4d8] sm:$0xff]  ;;  %v15417_v14 = vcombine.low %v2125_v0, %v2129_v1 }
0x104f   :  { %3822 = vmatprep.subr.bf16.mxu0 %v15370_v32  ;;  %v2025_v32 = vld [vmem:[#allocation2 + $0x4f8] sm:$0xff] }
0x1050   :  { %v15313_v50 = vcombine.low %v2021_v30, %v2025_v32  ;;  %v17278_v29 = vld [vmem:[#allocation8 + $0x378] ss:$8 sps:$4 sm:$0xff]  }
0x1051   :  { %3780 = vmatpush1.bf16.msra.mxu1 %v15241_v43  ;;  %v15314_v43 = vcombine.high %v2021_v30, %v2025_v32  ;;  %v2188_v15 = vld [vmem:[#allocation6 + $0x3c0] ss:$8 sm:$0xf0] }
0x1052   :  { %3823 = vmatpush1.bf16.msra.mxu0 %v15369_v44  ;;  %3781 = vmatprep.subr.bf16.mxu1 %v15234_v45  ;;  %v15442_v44 = vcombine.high %v2149_v36, %v2153_v38  ;;  %v2013_v45 = vld [vmem:[#allocation2 + $0x498] sm:$0xff] }
0x1053   :  { %3824 = vmatprep.subr.bf16.mxu0 %v15362_v46  ;;  %v2017_v46 = vld [vmem:[#allocation2 + $0x4b8] sm:$0xff] }
0x1054   :  { %v15305_v57 = vcombine.low %v2013_v45, %v2017_v46  ;;  %v17294_v16 = vld [vmem:[#allocation8 + $0x478] ss:$8 sps:$4 sm:$0xff]  }
0x1055   :  { %3782 = vmatpush1.bf16.msra.mxu1 %v15233_v52  ;;  %v15306_v52 = vcombine.high %v2013_v45, %v2017_v46  ;;  %v17298_v36 = vld [vmem:[#allocation8 + $0x458] ss:$8 sps:$4 sm:$0xff]   ;;  %v17300_v46 = vld [vmem:[#allocation8 + $0x448] ss:$8 sps:$4 sm:$0xff]  }
0x1056   :  { %3825 = vmatpush1.bf16.msra.mxu0 %v15361_v53  ;;  %3783 = vmatprep.subr.bf16.mxu1 %v15226_v54  ;;  %v15434_v53 = vcombine.high %v2141_v47, %v2145_v49  ;;  %v2005_v54 = vld [vmem:[#allocation2 + $0x458] sm:$0xff] }
0x1057   :  { %3826 = vmatprep.subr.bf16.mxu0 %v15354_v48  ;;  %v2009_v48 = vld [vmem:[#allocation2 + $0x478] sm:$0xff] }
0x1058   :  { %v15297_v6 = vcombine.low %v2005_v54, %v2009_v48 }
0x1059   :  { %3784 = vmatpush1.bf16.msra.mxu1 %v15225_v60  ;;  %v15298_v60 = vcombine.high %v2005_v54, %v2009_v48  ;;  %v17302_v48 = vld [vmem:[#allocation8 + $0x438] ss:$8 sps:$4 sm:$0xff]  }
0x105a   :  { %3827 = vmatpush1.bf16.msra.mxu0 %v15353_v61  ;;  %3785 = vmatprep.subr.bf16.mxu1 %v15346_v62  ;;  %v15426_v61 = vcombine.high %v2133_v55, %v2137_v31  ;;  %v1997_v62 = vld [vmem:[#allocation2 + $0x418] sm:$0xff] }
0x105b   :  { %3828 = vmatprep.subr.bf16.mxu0 %v15474_v63  ;;  %v2001_v63 = vld [vmem:[#allocation2 + $0x438] sm:$0xff] }
0x105c   :  { %v17287_v31 = vld [vmem:[#allocation8 + $0x2b8] ss:$8 sps:$4 sm:$0xff]  }
0x105d   :  { %3786 = vmatpush2.bf16.msra.mxu1 %v15345_v10  ;;  %v15290_v10 = vcombine.high %v1997_v62, %v2001_v63 }
0x105e   :  { %3829 = vmatpush2.bf16.msra.mxu0 %v15473_v11  ;;  %3787 = vmatprep.subr.bf16.mxu1 %v15338_v12  ;;  %v15418_v11 = vcombine.high %v2125_v0, %v2129_v1  ;;  %v15289_v12 = vcombine.low %v1997_v62, %v2001_v63  ;;  %v17289_v62 = vld [vmem:[#allocation8 + $0x2a8] ss:$8 sps:$4 sm:$0xff]   ;;  %v17290_v0 = vld [vmem:[#allocation8 + $0x318] ss:$8 sps:$4 sm:$0xff]  }
0x105f   :  { %3830 = vmatprep.subr.bf16.mxu0 %v15466_v13  ;;  %v2187_v13 = vld [vmem:[#allocation6 + $0x3c0] ss:$8 sm:$0xf] }
0x1060   :  { %v17305_v1 = vld [vmem:[#allocation8 + $0x3a8] ss:$8 sps:$4 sm:$0xff]  }
0x1061   :  { %3788 = vmatpush2.bf16.msra.mxu1 %v15337_v17  ;;  %v17832_v17 = vor.u32 %v2188_v15, %v2187_v13  ;;  %v17307_v13 = vld [vmem:[#allocation8 + $0x398] ss:$8 sps:$4 sm:$0xff]   ;;  %v17293_v15 = vld [vmem:[#allocation8 + $0x288] ss:$8 sps:$4 sm:$0xff]  }
0x1062   :  { %3831 = vmatpush2.bf16.msra.mxu0 %v15465_v18  ;;  %3789 = vmatprep.subr.bf16.mxu1 %v15330_v34  ;;  %v17279_v18 = vld [vmem:[#allocation8 + $0x2f8] ss:$8 sps:$4 sm:$0xff]   ;;  %v17280_v34 = vld [vmem:[#allocation8 + $0x368] ss:$8 sps:$4 sm:$0xff]  }
0x1063   :  { %3832 = vmatprep.subr.bf16.mxu0 %v15458_v19  ;;  %v17295_v19 = vld [vmem:[#allocation8 + $0x3f8] ss:$8 sps:$4 sm:$0xff]   ;;  %v2198_v21 = vrot.slane %v17832_v17, %v17798_v42 }
0x1065   :  { %3790 = vmatpush2.bf16.msra.mxu1 %v15329_v25  ;;  %v17281_v25 = vld [vmem:[#allocation8 + $0x2e8] ss:$8 sps:$4 sm:$0xff]  }
0x1066   :  { %3833 = vmatpush2.bf16.msra.mxu0 %v15457_v26  ;;  %3791 = vmatprep.subr.bf16.mxu1 %v15322_v27  ;;  %v17282_v27 = vld [vmem:[#allocation8 + $0x358] ss:$8 sps:$4 sm:$0xff]  }
0x1067   :  { %3834 = vmatprep.subr.bf16.mxu0 %v15450_v28  ;;  %v17297_v28 = vld [vmem:[#allocation8 + $0x3e8] ss:$8 sps:$4 sm:$0xff]  }
0x1069   :  { %3792 = vmatpush2.bf16.msra.mxu1 %v15321_v39 }
0x106a   :  { %3835 = vmatpush2.bf16.msra.mxu0 %v15449_v37  ;;  %3793 = vmatprep.subr.bf16.mxu1 %v15314_v43  ;;  %v17299_v43 = vld [vmem:[#allocation8 + $0x3d8] ss:$8 sps:$4 sm:$0xff]  }
0x106b   :  { %3836 = vmatprep.subr.bf16.mxu0 %v15442_v44 }
0x106d   :  { %3794 = vmatpush2.bf16.msra.mxu1 %v15313_v50  ;;  %v17285_v50 = vld [vmem:[#allocation8 + $0x2c8] ss:$8 sps:$4 sm:$0xff]  }
0x106e   :  { %3837 = vmatpush2.bf16.msra.mxu0 %v15441_v51  ;;  %3795 = vmatprep.subr.bf16.mxu1 %v15306_v52  ;;  %v17286_v51 = vld [vmem:[#allocation8 + $0x338] ss:$8 sps:$4 sm:$0xff]   ;;  %v17301_v52 = vld [vmem:[#allocation8 + $0x3c8] ss:$8 sps:$4 sm:$0xff]  }
0x106f   :  { %3838 = vmatprep.subr.bf16.mxu0 %v15434_v53 }
0x1071   :  { %3796 = vmatpush2.bf16.msra.mxu1 %v15305_v57  ;;  %v17288_v57 = vld [vmem:[#allocation8 + $0x328] ss:$8 sps:$4 sm:$0xff]  }
0x1072   :  { %3839 = vmatpush2.bf16.msra.mxu0 %v15433_v59  ;;  %3797 = vmatprep.subr.bf16.mxu1 %v15298_v60  ;;  %v17303_v59 = vld [vmem:[#allocation8 + $0x3b8] ss:$8 sps:$4 sm:$0xff]   ;;  %v17304_v60 = vld [vmem:[#allocation8 + $0x428] ss:$8 sps:$4 sm:$0xff]  }
0x1073   :  { %3840 = vmatprep.subr.bf16.mxu0 %v15426_v61  ;;  %v2194_v61 = vrot.slane %v17832_v17, %v17795_v41 }
0x1075   :  { %3798 = vmatpush2.bf16.msra.mxu1 %v15297_v6  ;;  %v17306_v6 = vld [vmem:[#allocation8 + $0x418] ss:$8 sps:$4 sm:$0xff]  }
0x1076   :  { %3841 = vmatpush2.bf16.msra.mxu0 %v15425_v9  ;;  %3799 = vmatprep.subr.bf16.mxu1 %v15290_v10  ;;  %v17291_v10 = vld [vmem:[#allocation8 + $0x298] ss:$8 sps:$4 sm:$0xff]  }
0x1077   :  { %3842 = vmatprep.subr.bf16.mxu0 %v15418_v11 }
0x1079   :  { %3800 = vmatpush2.bf16.msra.mxu1 %v15289_v12  ;;  %v17292_v12 = vld [vmem:[#allocation8 + $0x308] ss:$8 sps:$4 sm:$0xff]  }
0x107a   :  { %3843 = vmatpush2.bf16.msra.mxu0 %v15417_v14  ;;  %16793 = vmatprep.subr.bf16.mxu1 %v17278_v29  ;;  %v17308_v14 = vld [vmem:[#allocation8 + $0x408] ss:$8 sps:$4 sm:$0xff]  }
0x107b   :  { %16815 = vmatprep.subr.bf16.mxu0 %v17294_v16 }
0x107c   :  { %3802 = vmatmul.mubr.bf16.vlgmr.msra.gmra.mxu1 %v17812_v33  ;;  %v3545_v23 = vpop.f32.mrf.mxu1  ;;  %v17838_v24 = vpop.f32.mrf.mxu0  ;;  %v17283_v33 = vld [vmem:[#allocation8 + $0x2d8] ss:$8 sps:$4 sm:$0xff]  }
0x107d   :  { %3845 = vmatmul.mubr.bf16.vlgmr.msra.gmra.mxu0 %v17816_v35  ;;  %16794 = vmatpush3.bf16.msra.mxu1 %v17279_v18  ;;  %v17284_v35 = vld [vmem:[#allocation8 + $0x348] ss:$8 sps:$4 sm:$0xff]   ;;  %v3546_v9 = vadd.f32 %v3545_v23, %v2194_v61 }
0x107e   :  { %v3547_v26 = vpop.f32.mrf.mxu1  ;;  %16795 = vmatprep.subr.bf16.mxu1 %v17280_v34  ;;  %16816 = vmatpush3.bf16.msra.mxu0 %v17295_v19  ;;  %v3590_v32 = vpop.f32.mrf.mxu0  ;;  %v17309_v18 = vld [vmem:[#allocation8 + $0x388] ss:$8 sps:$4 sm:$0xff]   ;;  %v17310_v34 = vld [vmem:[#allocation8 + $0x578] ss:$8 sps:$4 sm:$0xff]  }
0x107f   :  { %v3548_v30 = vadd.f32 %v3547_v26, %v2198_v21  ;;  %16817 = vmatprep.subr.bf16.mxu0 %v17296_v22  ;;  %v3589_v29 = vadd.f32 %v17838_v24, %v3546_v9  ;;  %v17326_v19 = vld [vmem:[#allocation8 + $0x678] ss:$8 sps:$4 sm:$0xff]   ;;  %v17313_v24 = vld [vmem:[#allocation8 + $0x4e8] ss:$8 sps:$4 sm:$0xff]  }
0x1080   :  { %v3549_v38 = vpop.f32.mrf.mxu1  ;;  %v3592_v39 = vpop.f32.mrf.mxu0  ;;  %v17311_v22 = vld [vmem:[#allocation8 + $0x4f8] ss:$8 sps:$4 sm:$0xff]  }
0x1081   :  { %16796 = vmatpush3.bf16.msra.mxu1 %v17281_v25  ;;  %v3591_v44 = vadd.f32 %v3590_v32, %v3548_v30  ;;  %v3550_v63 = vadd.f32 %v3549_v38, %v2194_v61  ;;  %v17312_v25 = vld [vmem:[#allocation8 + $0x568] ss:$8 sps:$4 sm:$0xff]   ;;  %v17314_v26 = vld [vmem:[#allocation8 + $0x558] ss:$8 sps:$4 sm:$0xff]  }
0x1082   :  { %v3551_v37 = vpop.f32.mrf.mxu1  ;;  %16797 = vmatprep.subr.bf16.mxu1 %v17282_v27  ;;  %16818 = vmatpush3.bf16.msra.mxu0 %v17297_v28  ;;  %v3594_v47 = vpop.f32.mrf.mxu0  ;;  %v17315_v27 = vld [vmem:[#allocation8 + $0x4d8] ss:$8 sps:$4 sm:$0xff]   ;;  %v17316_v28 = vld [vmem:[#allocation8 + $0x548] ss:$8 sps:$4 sm:$0xff]  }
0x1083   :  { %v3552_v45 = vadd.f32 %v3551_v37, %v2198_v21  ;;  %16819 = vmatprep.subr.bf16.mxu0 %v17298_v36  ;;  %v3856_v53 = vmax.f32 %v3591_v44, 0.0  ;;  %v3593_v11 = vadd.f32 %v3592_v39, %v3550_v63  ;;  %v3855_v21 = vmax.f32 %v3589_v29, 0.0  ;;  %v17317_v30 = vld [vmem:[#allocation8 + $0x4c8] ss:$8 sps:$4 sm:$0xff]   ;;  %v17318_v32 = vld [vmem:[#allocation8 + $0x538] ss:$8 sps:$4 sm:$0xff]  }
0x1084   :  { %v17319_v36 = vld [vmem:[#allocation8 + $0x4b8] ss:$8 sps:$4 sm:$0xff]   ;;  %v17320_v38 = vld [vmem:[#allocation8 + $0x528] ss:$8 sps:$4 sm:$0xff]   ;;  %v17844_v44 = vsub.s32 3, %v17792_v40 }
0x1085   :  { %v3595_v49 = vadd.f32 %v3594_v47, %v3552_v45  ;;  %16798 = vmatpush3.bf16.msra.mxu1 %v17283_v33  ;;  %v3863_v16 = vmax.f32 %v3593_v11, 0.0  ;;  %v17321_v39 = vld [vmem:[#allocation8 + $0x4a8] ss:$8 sps:$4 sm:$0xff]   ;;  %v17322_v33 = vld [vmem:[#allocation8 + $0x518] ss:$8 sps:$4 sm:$0xff]   ;;  %v17847_v45 = vsub.s32 2, %v17792_v40 }
0x1086   :  { %16799 = vmatprep.subr.bf16.mxu1 %v17284_v35  ;;  %16820 = vmatpush3.bf16.msra.mxu0 %v17299_v43  ;;  %v17323_v37 = vld [vmem:[#allocation8 + $0x498] ss:$8 sps:$4 sm:$0xff]   ;;  %v17324_v35 = vld [vmem:[#allocation8 + $0x508] ss:$8 sps:$4 sm:$0xff]   ;;  %18823 = vst [vmem:[#allocation22_spill] sm:$0xff] %v17844_v44 }
0x1087   :  { %v3864_v54 = vmax.f32 %v3595_v49, 0.0  ;;  %16821 = vmatprep.subr.bf16.mxu0 %v17300_v46  ;;  %v3871_v23 = vpack.c.bf16 %v3863_v16, %v3855_v21  ;;  %v17325_v43 = vld [vmem:[#allocation8 + $0x488] ss:$8 sps:$4 sm:$0xff]   ;;  %18824 = vst [vmem:[#allocation23_spill] sm:$0xff] %v17847_v45  ;;  %v2206_v46 = vrot.slane %v17832_v17, %v17844_v44  ;;  %v2202_v47 = vrot.slane %v17832_v17, %v17847_v45  ;;  %v17331_v16 = vld [vmem:[#allocation8 + $0x5d8] ss:$8 sps:$4 sm:$0xff]  }
0x1088   :  { %v17329_v29 = vld [vmem:[#allocation8 + $0x5e8] ss:$8 sps:$4 sm:$0xff]   ;;  %v17335_v21 = vld [vmem:[#allocation8 + $0x5b8] ss:$8 sps:$4 sm:$0xff]  }
0x1089   :  { %16800 = vmatpush3.bf16.msra.mxu1 %v17285_v50  ;;  %v3872_v55 = vpack.c.bf16 %v3864_v54, %v3856_v53 }
0x108a   :  { %16801 = vmatprep.subr.bf16.mxu1 %v17286_v51  ;;  %16822 = vmatpush3.bf16.msra.mxu0 %v17301_v52 }
0x108b   :  { %4424 = vmatprep.mubr.bf16.mxu1 %v3872_v55  ;;  %16823 = vmatprep.subr.bf16.mxu0 %v17302_v48 }
0x108d   :  { %16802 = vmatpush3.bf16.msra.mxu1 %v17287_v31 }
0x108e   :  { %16803 = vmatprep.subr.bf16.mxu1 %v17288_v57  ;;  %16824 = vmatpush3.bf16.msra.mxu0 %v17303_v59 }
0x108f   :  { %16825 = vmatprep.subr.bf16.mxu0 %v17304_v60 }
0x1091   :  { %16804 = vmatpush3.bf16.msra.mxu1 %v17289_v62 }
0x1092   :  { %16805 = vmatprep.subr.bf16.mxu1 %v17290_v0  ;;  %16826 = vmatpush3.bf16.msra.mxu0 %v17305_v1 }
0x1093   :  { %16827 = vmatprep.subr.bf16.mxu0 %v17306_v6 }
0x1095   :  { %16806 = vmatpush3.bf16.msra.mxu1 %v17291_v10 }
0x1096   :  { %16807 = vmatprep.subr.bf16.mxu1 %v17292_v12  ;;  %16828 = vmatpush3.bf16.msra.mxu0 %v17307_v13  ;;  %v17327_v12 = vld [vmem:[#allocation8 + $0x5f8] ss:$8 sps:$4 sm:$0xff]  }
0x1097   :  { %16829 = vmatprep.subr.bf16.mxu0 %v17308_v14  ;;  %v17328_v14 = vld [vmem:[#allocation8 + $0x668] ss:$8 sps:$4 sm:$0xff]  }
0x1099   :  { %16808 = vmatpush3.bf16.msra.mxu1 %v17293_v15  ;;  %v17330_v15 = vld [vmem:[#allocation8 + $0x658] ss:$8 sps:$4 sm:$0xff]  }
0x109a   :  { %16830 = vmatpush3.bf16.msra.mxu0 %v17309_v18  ;;  %16837 = vmatprep.subr.bf16.mxu1 %v17310_v34  ;;  %v17332_v18 = vld [vmem:[#allocation8 + $0x648] ss:$8 sps:$4 sm:$0xff]  }
0x109b   :  { %16859 = vmatprep.subr.bf16.mxu0 %v17326_v19  ;;  %v17333_v34 = vld [vmem:[#allocation8 + $0x5c8] ss:$8 sps:$4 sm:$0xff]   ;;  %v17334_v19 = vld [vmem:[#allocation8 + $0x638] ss:$8 sps:$4 sm:$0xff]  }
0x109c   :  { %4425 = vmatmul.mubr.bf16.vlgmr.msra.gmra.mxu1 %v3871_v23  ;;  %v17337_v23 = vld [vmem:[#allocation8 + $0x5a8] ss:$8 sps:$4 sm:$0xff]  }
0x109d   :  { %16838 = vmatpush3.bf16.msra.mxu1 %v17311_v22  ;;  %v17336_v22 = vld [vmem:[#allocation8 + $0x628] ss:$8 sps:$4 sm:$0xff]  }
0x109e   :  { %16839 = vmatprep.subr.bf16.mxu1 %v17312_v25  ;;  %v17338_v25 = vld [vmem:[#allocation8 + $0x618] ss:$8 sps:$4 sm:$0xff]  }
0x10a1   :  { %16840 = vmatpush3.bf16.msra.mxu1 %v17313_v24  ;;  %v17339_v24 = vld [vmem:[#allocation8 + $0x598] ss:$8 sps:$4 sm:$0xff]  }
0x10a2   :  { %16841 = vmatprep.subr.bf16.mxu1 %v17314_v26  ;;  %v17340_v26 = vld [vmem:[#allocation8 + $0x608] ss:$8 sps:$4 sm:$0xff]  }
0x10a5   :  { %16842 = vmatpush3.bf16.msra.mxu1 %v17315_v27  ;;  %v17341_v27 = vld [vmem:[#allocation8 + $0x588] ss:$8 sps:$4 sm:$0xff]  }
0x10a6   :  { %16843 = vmatprep.subr.bf16.mxu1 %v17316_v28  ;;  %v17854_v28 = vsub.s32 5, %v17792_v40 }
0x10a8   :  { %18825 = vst [vmem:[#allocation24_spill] sm:$0xff] %v17854_v28 }
0x10a9   :  { %16844 = vmatpush3.bf16.msra.mxu1 %v17317_v30  ;;  %v17857_v30 = vsub.s32 4, %v17792_v40 }
0x10aa   :  { %16845 = vmatprep.subr.bf16.mxu1 %v17318_v32  ;;  %v2214_v32 = vrot.slane %v17832_v17, %v17854_v28 }
0x10ab   :  { %18826 = vst [vmem:[#allocation25_spill] sm:$0xff] %v17857_v30 }
0x10ad   :  { %16846 = vmatpush3.bf16.msra.mxu1 %v17319_v36  ;;  %v2210_v36 = vrot.slane %v17832_v17, %v17857_v30 }
0x10ae   :  { %16847 = vmatprep.subr.bf16.mxu1 %v17320_v38 }
0x10b1   :  { %16848 = vmatpush3.bf16.msra.mxu1 %v17321_v39 }
0x10b2   :  { %16849 = vmatprep.subr.bf16.mxu1 %v17322_v33 }
0x10b5   :  { %16850 = vmatpush3.bf16.msra.mxu1 %v17323_v37 }
0x10b6   :  { %16851 = vmatprep.subr.bf16.mxu1 %v17324_v35 }
0x10b9   :  { %16852 = vmatpush3.bf16.msra.mxu1 %v17325_v43 }
0x10bc   :  { %v3631_v49 = vpop.f32.mrf.mxu1  ;;  %v3674_v50 = vpop.f32.mrf.mxu0 }
0x10bd   :  { %v3632_v54 = vadd.f32 %v3631_v49, %v2202_v47 }
0x10be   :  { %v3633_v51 = vpop.f32.mrf.mxu1  ;;  %v3676_v53 = vpop.f32.mrf.mxu0 }
0x10bf   :  { %v3634_v52 = vadd.f32 %v3633_v51, %v2206_v46  ;;  %v3675_v62 = vadd.f32 %v3674_v50, %v3632_v54 }
0x10c0   :  { %v3635_v48 = vpop.f32.mrf.mxu1  ;;  %v3678_v31 = vpop.f32.mrf.mxu0 }
0x10c1   :  { %v3636_v55 = vadd.f32 %v3635_v48, %v2202_v47  ;;  %v3677_v59 = vadd.f32 %v3676_v53, %v3634_v52  ;;  %v3857_v10 = vmax.f32 %v3675_v62, 0.0 }
0x10c2   :  { %v3637_v57 = vpop.f32.mrf.mxu1  ;;  %v3680_v63 = vpop.f32.mrf.mxu0 }
0x10c3   :  { %v3679_v60 = vadd.f32 %v3678_v31, %v3636_v55  ;;  %v3638_v61 = vadd.f32 %v3637_v57, %v2206_v46  ;;  %v3858_v6 = vmax.f32 %v3677_v59, 0.0 }
0x10c5   :  { %v3681_v0 = vadd.f32 %v3680_v63, %v3638_v61  ;;  %v3865_v1 = vmax.f32 %v3679_v60, 0.0  ;;  %v17865_v63 = vsub.s32 7, %v17792_v40 }
0x10c7   :  { %v3866_v9 = vmax.f32 %v3681_v0, 0.0  ;;  %v3873_v13 = vpack.c.bf16 %v3865_v1, %v3857_v10  ;;  %18827 = vst [vmem:[#allocation26_spill] sm:$0xff] %v17865_v63  ;;  %v17868_v0 = vsub.s32 6, %v17792_v40  ;;  %v2222_v1 = vrot.slane %v17832_v17, %v17865_v63 }
0x10c9   :  { %v3874_v11 = vpack.c.bf16 %v3866_v9, %v3858_v6  ;;  %18828 = vst [vmem:[#allocation27_spill] sm:$0xff] %v17868_v0  ;;  %v2218_v6 = vrot.slane %v17832_v17, %v17868_v0 }
0x10cb   :  { %4465 = vmatprep.mubr.bf16.mxu0 %v3874_v11 }
0x10cc   :  { %4466 = vmatmul.mubr.bf16.vlgmr.msra.gmra.mxu0 %v3873_v13 }
0x10cd   :  { %16860 = vmatpush3.bf16.msra.mxu0 %v17327_v12 }
0x10ce   :  { %16861 = vmatprep.subr.bf16.mxu0 %v17328_v14 }
0x10d1   :  { %16862 = vmatpush3.bf16.msra.mxu0 %v17329_v29 }
0x10d2   :  { %16863 = vmatprep.subr.bf16.mxu0 %v17330_v15 }
0x10d5   :  { %16864 = vmatpush3.bf16.msra.mxu0 %v17331_v16 }
0x10d6   :  { %16865 = vmatprep.subr.bf16.mxu0 %v17332_v18 }
0x10d9   :  { %16866 = vmatpush3.bf16.msra.mxu0 %v17333_v34 }
0x10da   :  { %16867 = vmatprep.subr.bf16.mxu0 %v17334_v19 }
0x10dd   :  { %16868 = vmatpush3.bf16.msra.mxu0 %v17335_v21 }
0x10de   :  { %16869 = vmatprep.subr.bf16.mxu0 %v17336_v22 }
0x10e1   :  { %16870 = vmatpush3.bf16.msra.mxu0 %v17337_v23 }
0x10e2   :  { %16871 = vmatprep.subr.bf16.mxu0 %v17338_v25 }
0x10e5   :  { %16872 = vmatpush3.bf16.msra.mxu0 %v17339_v24 }
0x10e6   :  { %16873 = vmatprep.subr.bf16.mxu0 %v17340_v26 }
0x10e9   :  { %16874 = vmatpush3.bf16.msra.mxu0 %v17341_v27 }
0x10fc   :  { %v3717_v38 = vpop.f32.mrf.mxu1 }
0x10fd   :  { %v3760_v39 = vpop.f32.mrf.mxu0  ;;  %v3718_v43 = vadd.f32 %v3717_v38, %v2210_v36  ;;  %v4594_v38 = vld [vmem:[#allocation2 + $0xae0] sm:$0xff] }
0x10fe   :  { %v3719_v33 = vpop.f32.mrf.mxu1 }
0x10ff   :  { %v3720_v37 = vadd.f32 %v3719_v33, %v2214_v32  ;;  %v3762_v35 = vpop.f32.mrf.mxu0  ;;  %v3761_v54 = vadd.f32 %v3760_v39, %v3718_v43  ;;  %v4592_v39 = vld [vmem:[#allocation2 + $0xad0] sm:$0xff] }
0x1100   :  { %v3721_v46 = vpop.f32.mrf.mxu1 }
0x1101   :  { %v3722_v47 = vadd.f32 %v3721_v46, %v2210_v36  ;;  %v3764_v49 = vpop.f32.mrf.mxu0  ;;  %v3763_v51 = vadd.f32 %v3762_v35, %v3720_v37  ;;  %v3859_v60 = vmax.f32 %v3761_v54, 0.0  ;;  %v4590_v36 = vld [vmem:[#allocation2 + $0xac0] sm:$0xff]  ;;  %v4596_v37 = vld [vmem:[#allocation2 + $0xaf0] sm:$0xff] }
0x1102   :  { %v3723_v50 = vpop.f32.mrf.mxu1  ;;  %v15564_v33 = vcombine.high %v4590_v36, %v4594_v38  ;;  %v15563_v35 = vcombine.low %v4590_v36, %v4594_v38  ;;  %v15567_v43 = vcombine.low %v4592_v39, %v4596_v37  ;;  %v15568_v46 = vcombine.high %v4592_v39, %v4596_v37  ;;  %v4007_v37 = vld [vmem:[#allocation6 + $0x400] ss:$0 sm:$0xff] }
0x1103   :  { %v3765_v52 = vadd.f32 %v3764_v49, %v3722_v47  ;;  %v3724_v53 = vadd.f32 %v3723_v50, %v2214_v32  ;;  %v3766_v48 = vpop.f32.mrf.mxu0  ;;  %v3860_v57 = vmax.f32 %v3763_v51, 0.0  ;;  %v4582_v47 = vld [vmem:[#allocation2 + $0xa80] sm:$0xff]  ;;  %v4584_v50 = vld [vmem:[#allocation2 + $0xa90] sm:$0xff] }
0x1104   :  { %4769 = vmatprep.subr.bf16.mxu1 %v15564_v33  ;;  %4851 = vmatprep.subr.bf16.mxu0 %v15568_v46  ;;  %v4586_v49 = vld [vmem:[#allocation2 + $0xaa0] sm:$0xff] }
0x1105   :  { %v3767_v55 = vadd.f32 %v3766_v48, %v3724_v53  ;;  %v3867_v31 = vmax.f32 %v3765_v52, 0.0  ;;  %v15556_v51 = vcombine.high %v4582_v47, %v4586_v49  ;;  %v4588_v52 = vld [vmem:[#allocation2 + $0xab0] sm:$0xff]  ;;  %v15555_v53 = vcombine.low %v4582_v47, %v4586_v49 }
0x1106   :  { %v15559_v54 = vcombine.low %v4584_v50, %v4588_v52  ;;  %v15560_v48 = vcombine.high %v4584_v50, %v4588_v52 }
0x1107   :  { %v3868_v59 = vmax.f32 %v3767_v55, 0.0  ;;  %v3875_v62 = vpack.c.bf16 %v3867_v31, %v3859_v60  ;;  %v4574_v55 = vld [vmem:[#allocation2 + $0xa40] sm:$0xff]  ;;  %v4580_v60 = vld [vmem:[#allocation2 + $0xa70] sm:$0xff] }
0x1108   :  { %v4578_v31 = vld [vmem:[#allocation2 + $0xa60] sm:$0xff] }
0x1109   :  { %v3876_v61 = vpack.c.bf16 %v3868_v59, %v3860_v57  ;;  %v4576_v57 = vld [vmem:[#allocation2 + $0xa50] sm:$0xff]  ;;  %v15548_v59 = vcombine.high %v4574_v55, %v4578_v31 }
0x110b   :  { %4506 = vmatprep.mubr.bf16.mxu1 %v3876_v61  ;;  %v15547_v61 = vcombine.low %v4574_v55, %v4578_v31 }
0x110c   :  { %4507 = vmatmul.mubr.bf16.vlgmr.msra.gmra.mxu1 %v3875_v62  ;;  %v15551_v62 = vcombine.low %v4576_v57, %v4580_v60 }
0x110d   :  { %4793 = vmatprep.mubr.bf16.mxu1 %v18795_v20  ;;  %4770 = vmatpush1.bf16.msra.mxu1 %v15563_v35 }
0x110e   :  { %4771 = vmatprep.subr.bf16.mxu1 %v15556_v51 }
0x1111   :  { %4772 = vmatpush1.bf16.msra.mxu1 %v15555_v53 }
0x1112   :  { %4773 = vmatprep.subr.bf16.mxu1 %v15548_v59 }
0x1115   :  { %4774 = vmatpush1.bf16.msra.mxu1 %v15547_v61 }
0x113c   :  { %v3803_v9 = vpop.f32.mrf.mxu1 }
0x113d   :  { %v3846_v10 = vpop.f32.mrf.mxu0  ;;  %v3804_v14 = vadd.f32 %v3803_v9, %v2218_v6  ;;  %v4570_v9 = vld [vmem:[#allocation2 + $0xa20] sm:$0xff] }
0x113e   :  { %v3805_v11 = vpop.f32.mrf.mxu1 }
0x113f   :  { %v3806_v12 = vadd.f32 %v3805_v11, %v2222_v1  ;;  %v3848_v13 = vpop.f32.mrf.mxu0  ;;  %v3847_v21 = vadd.f32 %v3846_v10, %v3804_v14  ;;  %v4568_v10 = vld [vmem:[#allocation2 + $0xa10] sm:$0xff]  ;;  %v17877_v14 = vld [vmem:[#allocation2 + $0xae8] sm:$0xff] }
0x1140   :  { %v3807_v29 = vpop.f32.mrf.mxu1 }
0x1141   :  { %v3808_v15 = vadd.f32 %v3807_v29, %v2218_v6  ;;  %v3850_v16 = vpop.f32.mrf.mxu0  ;;  %v3849_v34 = vadd.f32 %v3848_v13, %v3806_v12  ;;  %v3861_v17 = vmax.f32 %v3847_v21, 0.0  ;;  %v4566_v6 = vld [vmem:[#allocation2 + $0xa00] sm:$0xff]  ;;  %v4572_v12 = vld [vmem:[#allocation2 + $0xa30] sm:$0xff]  ;;  %v17875_v13 = vld [vmem:[#allocation2 + $0xac8] sm:$0xff] }
0x1142   :  { %v3809_v18 = vpop.f32.mrf.mxu1  ;;  %v15540_v11 = vcombine.high %v4566_v6, %v4570_v9  ;;  %v15539_v29 = vcombine.low %v4566_v6, %v4570_v9 }
0x1143   :  { %v3851_v19 = vadd.f32 %v3850_v16, %v3808_v15  ;;  %v3810_v40 = vadd.f32 %v3809_v18, %v2222_v1  ;;  %v3852_v22 = vpop.f32.mrf.mxu0  ;;  %v3862_v24 = vmax.f32 %v3849_v34, 0.0  ;;  %v15552_v1 = vcombine.high %v4576_v57, %v4580_v60  ;;  %v17881_v18 = vld [vmem:[#allocation2 + $0xcc0] sm:$0xff] }
0x1144   :  { %v15544_v15 = vcombine.high %v4568_v10, %v4572_v12  ;;  %v15565_v16 = vcombine.low %v17875_v13, %v17877_v14  ;;  %v17883_v34 = vld [vmem:[#allocation2 + $0xce0] sm:$0xff]  ;;  %4775 = vmatprep.subr.bf16.mxu1 %v15540_v11 }
0x1145   :  { %v3853_v23 = vadd.f32 %v3852_v22, %v3810_v40  ;;  %v3869_v25 = vmax.f32 %v3851_v19, 0.0  ;;  %v15543_v19 = vcombine.low %v4568_v10, %v4572_v12  ;;  %v15566_v40 = vcombine.high %v17875_v13, %v17877_v14  ;;  %4776 = vmatpush1.bf16.msra.mxu1 %v15539_v29 }
0x1146   :  { %v15631_v21 = vcombine.low %v17881_v18, %v17883_v34  ;;  %v15632_v22 = vcombine.high %v17881_v18, %v17883_v34 }
0x1147   :  { %v3870_v26 = vmax.f32 %v3853_v23, 0.0  ;;  %v3877_v32 = vpack.c.bf16 %v3869_v25, %v3861_v17  ;;  %4810 = vmatprep.subr.bf16.mxu1 %v15566_v40  ;;  %v4583_v40 = vld [vmem:[#allocation2 + $0xa88] sm:$0xff] }
0x1149   :  { %v3878_v27 = vpack.c.bf16 %v3870_v26, %v3862_v24 }
0x114b   :  { %4547 = vmatprep.mubr.bf16.mxu0 %v3878_v27 }
0x114c   :  { %4548 = vmatmul.mubr.bf16.vlgmr.msra.gmra.mxu0 %v3877_v32 }
0x114d   :  { %4875 = vmatprep.mubr.bf16.mxu0 %v18795_v20  ;;  %4852 = vmatpush1.bf16.msra.mxu0 %v15567_v43 }
0x114e   :  { %4853 = vmatprep.subr.bf16.mxu0 %v15560_v48 }
0x1151   :  { %4854 = vmatpush1.bf16.msra.mxu0 %v15559_v54 }
0x1152   :  { %4855 = vmatprep.subr.bf16.mxu0 %v15552_v1 }
0x1155   :  { %4856 = vmatpush1.bf16.msra.mxu0 %v15551_v62 }
0x1156   :  { %4857 = vmatprep.subr.bf16.mxu0 %v15544_v15 }
0x1159   :  { %4858 = vmatpush1.bf16.msra.mxu0 %v15543_v19 }
0x115a   :  { %5693 = vmatprep.subr.bf16.mxu0 %v15632_v22  ;;  %v4587_v22 = vld [vmem:[#allocation2 + $0xaa8] sm:$0xff] }
0x115c   :  { %v16809_v23 = vpop.f32.mrf.mxu1 }
0x115e   :  { %v16810_v25 = vpop.f32.mrf.mxu1 }
0x115f   :  { %v16811_v33 = vadd.f32 %v16810_v25, %v16809_v23  ;;  %v4973_v23 = vld [vmem:[#allocation2 + $0xc80] sm:$0xff] }
0x1160   :  { %v16812_v24 = vpop.f32.mrf.mxu1  ;;  %v4977_v25 = vld [vmem:[#allocation2 + $0xca0] sm:$0xff] }
0x1161   :  { %v4427_v50 = vadd.f32 %v16811_v33, %v4007_v37  ;;  %v15557_v33 = vcombine.low %v4583_v40, %v4587_v22 }
0x1162   :  { %v16813_v26 = vpop.f32.mrf.mxu1 }
0x1163   :  { %v16814_v43 = vadd.f32 %v16813_v26, %v16812_v24 }
0x1165   :  { %v4430_v54 = vadd.f32 %v16814_v43, %v4007_v37  ;;  %v15623_v37 = vcombine.low %v4973_v23, %v4977_v25 }
0x118c   :  { %v16831_v17 = vpop.f32.mrf.mxu0 }
0x118e   :  { %v16832_v32 = vpop.f32.mrf.mxu0 }
0x118f   :  { %v16833_v46 = vadd.f32 %v16832_v32, %v16831_v17  ;;  %v15558_v17 = vcombine.high %v4583_v40, %v4587_v22  ;;  %v4575_v32 = vld [vmem:[#allocation2 + $0xa48] sm:$0xff]  ;;  %v4569_v22 = vld [vmem:[#allocation2 + $0xa18] sm:$0xff] }
0x1190   :  { %v16834_v38 = vpop.f32.mrf.mxu0 }
0x1191   :  { %v4468_v48 = vadd.f32 %v16833_v46, %v4427_v50  ;;  %v4567_v46 = vld [vmem:[#allocation2 + $0xa08] sm:$0xff]  ;;  %v4961_v50 = vld [vmem:[#allocation2 + $0xc20] sm:$0xff] }
0x1192   :  { %v16835_v35 = vpop.f32.mrf.mxu0 }
0x1193   :  { %v16836_v51 = vadd.f32 %v16835_v35, %v16834_v38  ;;  %v4965_v38 = vld [vmem:[#allocation2 + $0xc40] sm:$0xff] }
0x1195   :  { %v4471_v59 = vadd.f32 %v16836_v51, %v4430_v54  ;;  %v4953_v54 = vld [vmem:[#allocation2 + $0xbe0] sm:$0xff] }
0x11cc   :  { %v16853_v27 = vpop.f32.mrf.mxu1 }
0x11ce   :  { %v16854_v36 = vpop.f32.mrf.mxu1 }
0x11cf   :  { %v16855_v52 = vadd.f32 %v16854_v36, %v16853_v27  ;;  %v15624_v27 = vcombine.high %v4973_v23, %v4977_v25  ;;  %v4579_v36 = vld [vmem:[#allocation2 + $0xa68] sm:$0xff]  ;;  %v4573_v23 = vld [vmem:[#allocation2 + $0xa38] sm:$0xff]  ;;  %v4925_v25 = vld [vmem:[#allocation2 + $0xb00] sm:$0xff] }
0x11d0   :  { %v16856_v39 = vpop.f32.mrf.mxu1  ;;  %v15550_v35 = vcombine.high %v4575_v32, %v4579_v36  ;;  %v15549_v51 = vcombine.low %v4575_v32, %v4579_v36  ;;  %v15546_v32 = vcombine.high %v4569_v22, %v4573_v23 }
0x11d1   :  { %v4509_v60 = vadd.f32 %v16855_v52, %v4468_v48  ;;  %v4597_v52 = vld [vmem:[#allocation2 + $0xaf8] sm:$0xff] }
0x11d2   :  { %v16857_v47 = vpop.f32.mrf.mxu1 }
0x11d3   :  { %v16858_v55 = vadd.f32 %v16857_v47, %v16856_v39  ;;  %v4969_v39 = vld [vmem:[#allocation2 + $0xc60] sm:$0xff]  ;;  %v4571_v47 = vld [vmem:[#allocation2 + $0xa28] sm:$0xff] }
0x11d4   :  { %v15616_v43 = vcombine.high %v4965_v38, %v4969_v39  ;;  %v15615_v13 = vcombine.low %v4965_v38, %v4969_v39  ;;  %v15542_v14 = vcombine.high %v4567_v46, %v4571_v47  ;;  %v15541_v48 = vcombine.low %v4567_v46, %v4571_v47  ;;  %v5045_v38 = vld [vmem:[#allocation2 + $0xec0] sm:$0xff] }
0x11d5   :  { %v4512_v62 = vadd.f32 %v16858_v55, %v4471_v59  ;;  %v4585_v59 = vld [vmem:[#allocation2 + $0xa98] sm:$0xff]  ;;  %v5049_v39 = vld [vmem:[#allocation2 + $0xee0] sm:$0xff] }
0x11d6   :  { %v15696_v46 = vcombine.high %v5045_v38, %v5049_v39 }
0x120c   :  { %v16875_v49 = vpop.f32.mrf.mxu0 }
0x120e   :  { %v16876_v53 = vpop.f32.mrf.mxu0 }
0x120f   :  { %v16877_v31 = vadd.f32 %v16876_v53, %v16875_v49  ;;  %v4957_v49 = vld [vmem:[#allocation2 + $0xc00] sm:$0xff] }
0x1210   :  { %v16878_v57 = vpop.f32.mrf.mxu0  ;;  %v4949_v53 = vld [vmem:[#allocation2 + $0xbc0] sm:$0xff]  ;;  %v15607_v55 = vcombine.low %v4957_v49, %v4961_v50 }
0x1211   :  { %v4550_v1 = vadd.f32 %v16877_v31, %v4509_v60  ;;  %v4589_v60 = vld [vmem:[#allocation2 + $0xab8] sm:$0xff] }
0x1212   :  { %v16879_v61 = vpop.f32.mrf.mxu0 }
0x1213   :  { %v16880_v6 = vadd.f32 %v16879_v61, %v16878_v57  ;;  %v4556_v10 = vsel %vm215_vm2, %v4550_v1, -inf  ;;  %v15600_v57 = vcombine.high %v4949_v53, %v4953_v54  ;;  %v4941_v61 = vld [vmem:[#allocation2 + $0xb80] sm:$0xff] }
0x1215   :  { %v4553_v9 = vadd.f32 %v16880_v6, %v4512_v62  ;;  %v4945_v62 = vld [vmem:[#allocation2 + $0xba0] sm:$0xff]  ;;  %v15599_v6 = vcombine.low %v4949_v53, %v4953_v54 }
0x1216   :  { %v5029_v53 = vld [vmem:[#allocation2 + $0xe40] sm:$0xff] }
0x1217   :  { %v4557_v11 = vsel %vm215_vm2, %v4553_v9, -inf  ;;  %v15562_v9 = vcombine.high %v4585_v59, %v4589_v60  ;;  %v5033_v54 = vld [vmem:[#allocation2 + $0xe60] sm:$0xff] }
0x1218   :  { %v4558_v12 = vmax.f32 %v4556_v10, %v4557_v11  ;;  %v15592_v10 = vcombine.high %v4941_v61, %v4945_v62  ;;  %v4577_v11 = vld [vmem:[#allocation2 + $0xa58] sm:$0xff] }
0x121a   :  { %v4559_v29 = vrot.slane %v4558_v12, 4 }
0x121c   :  { %v4560_v15 = vmax.f32 %v4558_v12, %v4559_v29  ;;  %v4581_v12 = vld [vmem:[#allocation2 + $0xa78] sm:$0xff]  ;;  %v4933_v29 = vld [vmem:[#allocation2 + $0xb40] sm:$0xff] }
0x121e   :  { %v4561_v18 = vrot.slane %v4560_v15, 2 }
0x1220   :  { %v4562_v34 = vmax.f32 %v4560_v15, %v4561_v18  ;;  %v4937_v15 = vld [vmem:[#allocation2 + $0xb60] sm:$0xff]  ;;  %v15561_v18 = vcombine.low %v4585_v59, %v4589_v60  ;;  %v15680_v59 = vcombine.high %v5029_v53, %v5033_v54 }
0x1221   :  { %v15584_v40 = vcombine.high %v4933_v29, %v4937_v15 }
0x1222   :  { %v4563_v19 = vrot.slane %v4562_v34, 1 }
0x1224   :  { %v4564_v24 = vmax.f32 %v4562_v34, %v4563_v19  ;;  %v15591_v34 = vcombine.low %v4941_v61, %v4945_v62  ;;  %v15554_v19 = vcombine.high %v4577_v11, %v4581_v12  ;;  %v5021_v61 = vld [vmem:[#allocation2 + $0xe00] sm:$0xff] }
0x1225   :  { %v5025_v62 = vld [vmem:[#allocation2 + $0xe20] sm:$0xff] }
0x1226   :  { %v17893_v26 = vpack.c.bf16 %v4564_v24, %v4564_v24  ;;  %v4929_v24 = vld [vmem:[#allocation2 + $0xb20] sm:$0xff] }
0x1227   :  { %v15576_v36 = vcombine.high %v4925_v25, %v4929_v24 }
0x1228   :  { %15571 = vmatmul.mubr.msk.bf16.vlgmr.msra.gmra.mxu1 %vm215_vm2, %v17893_v26  ;;  %15573 = vmatmul.mubr.msk.bf16.vlgmr.msra.gmra.mxu0 %vm215_vm2, %v17893_v26 }
0x1229   :  { %4811 = vmatpush1.bf16.msra.mxu1 %v15565_v16  ;;  %5694 = vmatpush1.bf16.msra.mxu0 %v15631_v21  ;;  %v15608_v16 = vcombine.high %v4957_v49, %v4961_v50  ;;  %v4593_v21 = vld [vmem:[#allocation2 + $0xad8] sm:$0xff]  ;;  %v5037_v49 = vld [vmem:[#allocation2 + $0xe80] sm:$0xff] }
0x122a   :  { %4812 = vmatprep.subr.bf16.mxu1 %v15558_v17  ;;  %5695 = vmatprep.subr.bf16.mxu0 %v15624_v27  ;;  %v15570_v31 = vcombine.high %v4593_v21, %v4597_v52  ;;  %v15569_v1 = vcombine.low %v4593_v21, %v4597_v52  ;;  %v15553_v17 = vcombine.low %v4577_v11, %v4581_v12  ;;  %v5041_v50 = vld [vmem:[#allocation2 + $0xea0] sm:$0xff] }
0x122b   :  { %4834 = vmatprep.mubr.bf16.mxu1 %v18795_v20  ;;  %5725 = vmatprep.mubr.bf16.mxu0 %v17804_v58  ;;  %v15583_v27 = vcombine.low %v4933_v29, %v4937_v15  ;;  %v15688_v21 = vcombine.high %v5037_v49, %v5041_v50  ;;  %v5013_v12 = vld [vmem:[#allocation2 + $0xdc0] sm:$0xff]  ;;  %v4950_v15 = vld [vmem:[#allocation2 + $0xbc8] sm:$0xff] }
0x122c   :  { %v5017_v29 = vld [vmem:[#allocation2 + $0xde0] sm:$0xff] }
0x122d   :  { %4813 = vmatpush1.bf16.msra.mxu1 %v15557_v33  ;;  %5696 = vmatpush1.bf16.msra.mxu0 %v15623_v37  ;;  %v4982_v33 = vld [vmem:[#allocation2 + $0xcc8] sm:$0xff] }
0x122e   :  { %4814 = vmatprep.subr.bf16.mxu1 %v15550_v35  ;;  %5697 = vmatprep.subr.bf16.mxu0 %v15616_v43  ;;  %v4986_v37 = vld [vmem:[#allocation2 + $0xce8] sm:$0xff]  ;;  %v15545_v35 = vcombine.low %v4569_v22, %v4573_v23  ;;  %v15575_v43 = vcombine.low %v4925_v25, %v4929_v24  ;;  %v5005_v23 = vld [vmem:[#allocation2 + $0xd80] sm:$0xff] }
0x122f   :  { %v15634_v47 = vcombine.high %v4982_v33, %v4986_v37  ;;  %v5009_v25 = vld [vmem:[#allocation2 + $0xda0] sm:$0xff]  ;;  %v4942_v24 = vld [vmem:[#allocation2 + $0xb88] sm:$0xff] }
0x1231   :  { %4815 = vmatpush1.bf16.msra.mxu1 %v15549_v51  ;;  %5698 = vmatpush1.bf16.msra.mxu0 %v15615_v13  ;;  %v4974_v51 = vld [vmem:[#allocation2 + $0xc88] sm:$0xff] }
0x1232   :  { %4816 = vmatprep.subr.bf16.mxu1 %v15542_v14  ;;  %5699 = vmatprep.subr.bf16.mxu0 %v15608_v16  ;;  %v4978_v13 = vld [vmem:[#allocation2 + $0xca8] sm:$0xff]  ;;  %v15695_v14 = vcombine.low %v5045_v38, %v5049_v39  ;;  %v15633_v16 = vcombine.low %v4982_v33, %v4986_v37  ;;  %v4997_v39 = vld [vmem:[#allocation2 + $0xd40] sm:$0xff] }
0x1233   :  { %v15626_v52 = vcombine.high %v4974_v51, %v4978_v13  ;;  %v5001_v33 = vld [vmem:[#allocation2 + $0xd60] sm:$0xff]  ;;  %v4934_v37 = vld [vmem:[#allocation2 + $0xb48] sm:$0xff] }
0x1235   :  { %4817 = vmatpush1.bf16.msra.mxu1 %v15541_v48  ;;  %5700 = vmatpush1.bf16.msra.mxu0 %v15607_v55  ;;  %v4966_v48 = vld [vmem:[#allocation2 + $0xc48] sm:$0xff] }
0x1236   :  { %4892 = vmatprep.subr.bf16.mxu1 %v15570_v31  ;;  %5701 = vmatprep.subr.bf16.mxu0 %v15600_v57  ;;  %v4970_v55 = vld [vmem:[#allocation2 + $0xc68] sm:$0xff]  ;;  %v15687_v31 = vcombine.low %v5037_v49, %v5041_v50  ;;  %v15625_v57 = vcombine.low %v4974_v51, %v4978_v13  ;;  %v4989_v50 = vld [vmem:[#allocation2 + $0xd00] sm:$0xff] }
0x1237   :  { %v15618_v60 = vcombine.high %v4966_v48, %v4970_v55  ;;  %v4993_v51 = vld [vmem:[#allocation2 + $0xd20] sm:$0xff]  ;;  %v4926_v13 = vld [vmem:[#allocation2 + $0xb08] sm:$0xff] }
0x1238   :  { %15572 = vmatmul.mubr.msk.bf16.vlgmr.msra.gmra.mxu1 %vm215_vm2, %v17893_v26 }
0x1239   :  { %4893 = vmatpush1.bf16.msra.mxu1 %v15569_v1  ;;  %5702 = vmatpush1.bf16.msra.mxu0 %v15599_v6  ;;  %v4958_v1 = vld [vmem:[#allocation2 + $0xc08] sm:$0xff] }
0x123a   :  { %4894 = vmatprep.subr.bf16.mxu1 %v15562_v9  ;;  %5703 = vmatprep.subr.bf16.mxu0 %v15592_v10  ;;  %v4962_v6 = vld [vmem:[#allocation2 + $0xc28] sm:$0xff]  ;;  %v15679_v9 = vcombine.low %v5029_v53, %v5033_v54  ;;  %v15617_v10 = vcombine.low %v4966_v48, %v4970_v55  ;;  %v4983_v55 = vld [vmem:[#allocation2 + $0xcd0] sm:$0xff] }
0x123b   :  { %4916 = vmatprep.mubr.bf16.mxu1 %v18795_v20  ;;  %v15610_v11 = vcombine.high %v4958_v1, %v4962_v6  ;;  %v5046_v54 = vld [vmem:[#allocation2 + $0xec8] sm:$0xff] }
0x123c   :  { %v5050_v48 = vld [vmem:[#allocation2 + $0xee8] sm:$0xff] }
0x123d   :  { %4895 = vmatpush1.bf16.msra.mxu1 %v15561_v18  ;;  %5704 = vmatpush1.bf16.msra.mxu0 %v15591_v34  ;;  %v4954_v18 = vld [vmem:[#allocation2 + $0xbe8] sm:$0xff]  ;;  %v15671_v34 = vcombine.low %v5021_v61, %v5025_v62 }
0x123e   :  { %4896 = vmatprep.subr.bf16.mxu1 %v15554_v19  ;;  %5705 = vmatprep.subr.bf16.mxu0 %v15584_v40  ;;  %v15609_v19 = vcombine.low %v4958_v1, %v4962_v6  ;;  %v15664_v40 = vcombine.high %v5013_v12, %v5017_v29  ;;  %v15602_v22 = vcombine.high %v4950_v15, %v4954_v18  ;;  %v5042_v1 = vld [vmem:[#allocation2 + $0xea8] sm:$0xff]  ;;  %v4975_v6 = vld [vmem:[#allocation2 + $0xc90] sm:$0xff] }
0x1241   :  { %4897 = vmatpush1.bf16.msra.mxu1 %v15553_v17  ;;  %5706 = vmatpush1.bf16.msra.mxu0 %v15583_v27  ;;  %v4946_v17 = vld [vmem:[#allocation2 + $0xba8] sm:$0xff]  ;;  %v15663_v27 = vcombine.low %v5013_v12, %v5017_v29 }
0x1242   :  { %4898 = vmatprep.subr.bf16.mxu1 %v15546_v32  ;;  %5707 = vmatprep.subr.bf16.mxu0 %v15576_v36  ;;  %v15601_v32 = vcombine.low %v4950_v15, %v4954_v18  ;;  %v15656_v36 = vcombine.high %v5005_v23, %v5009_v25  ;;  %v15594_v38 = vcombine.high %v4942_v24, %v4946_v17  ;;  %v5030_v29 = vld [vmem:[#allocation2 + $0xe48] sm:$0xff]  ;;  %v4967_v18 = vld [vmem:[#allocation2 + $0xc50] sm:$0xff] }
0x1243   :  { %v5034_v15 = vld [vmem:[#allocation2 + $0xe68] sm:$0xff] }
0x1245   :  { %4899 = vmatpush1.bf16.msra.mxu1 %v15545_v35  ;;  %5708 = vmatpush1.bf16.msra.mxu0 %v15575_v43  ;;  %v4938_v35 = vld [vmem:[#allocation2 + $0xb68] sm:$0xff]  ;;  %v15655_v43 = vcombine.low %v5005_v23, %v5009_v25 }
0x1246   :  { %5709 = vmatprep.subr.bf16.mxu0 %v15696_v46  ;;  %5736 = vmatprep.subr.bf16.mxu1 %v15634_v47  ;;  %v15593_v46 = vcombine.low %v4942_v24, %v4946_v17  ;;  %v15648_v47 = vcombine.high %v4997_v39, %v5001_v33  ;;  %v15586_v49 = vcombine.high %v4934_v37, %v4938_v35  ;;  %v5022_v25 = vld [vmem:[#allocation2 + $0xe08] sm:$0xff]  ;;  %v4959_v17 = vld [vmem:[#allocation2 + $0xc10] sm:$0xff] }
0x1247   :  { %v5026_v24 = vld [vmem:[#allocation2 + $0xe28] sm:$0xff] }
0x1248   :  { %15574 = vmatmul.mubr.msk.bf16.vlgmr.msra.gmra.mxu1 %vm215_vm2, %v17893_v26  ;;  %v15672_v26 = vcombine.high %v5021_v61, %v5025_v62  ;;  %v5038_v62 = vld [vmem:[#allocation2 + $0xe88] sm:$0xff] }
0x1249   :  { %5710 = vmatpush2.bf16.msra.mxu0 %v15695_v14  ;;  %5737 = vmatpush1.bf16.msra.mxu1 %v15633_v16  ;;  %v4930_v14 = vld [vmem:[#allocation2 + $0xb28] sm:$0xff]  ;;  %v15647_v16 = vcombine.low %v4997_v39, %v5001_v33 }
0x124a   :  { %5711 = vmatprep.subr.bf16.mxu0 %v15688_v21  ;;  %5738 = vmatprep.subr.bf16.mxu1 %v15626_v52  ;;  %v15585_v21 = vcombine.low %v4934_v37, %v4938_v35  ;;  %v15640_v52 = vcombine.high %v4989_v50, %v4993_v51  ;;  %v15578_v53 = vcombine.high %v4926_v13, %v4930_v14  ;;  %v5014_v33 = vld [vmem:[#allocation2 + $0xdc8] sm:$0xff]  ;;  %v4951_v35 = vld [vmem:[#allocation2 + $0xbd0] sm:$0xff] }
0x124b   :  { %5768 = vmatprep.mubr.bf16.mxu1 %v17804_v58  ;;  %v5018_v37 = vld [vmem:[#allocation2 + $0xde8] sm:$0xff] }
0x124d   :  { %5712 = vmatpush2.bf16.msra.mxu0 %v15687_v31  ;;  %5739 = vmatpush1.bf16.msra.mxu1 %v15625_v57  ;;  %v4987_v31 = vld [vmem:[#allocation2 + $0xcf0] sm:$0xff]  ;;  %v15639_v57 = vcombine.low %v4989_v50, %v4993_v51  ;;  %v5006_v51 = vld [vmem:[#allocation2 + $0xd88] sm:$0xff] }
0x124e   :  { %5713 = vmatprep.subr.bf16.mxu0 %v15680_v59  ;;  %5740 = vmatprep.subr.bf16.mxu1 %v15618_v60  ;;  %v15577_v59 = vcombine.low %v4926_v13, %v4930_v14  ;;  %v15698_v60 = vcombine.high %v5046_v54, %v5050_v48  ;;  %v15636_v61 = vcombine.high %v4983_v55, %v4987_v31  ;;  %v5010_v13 = vld [vmem:[#allocation2 + $0xda8] sm:$0xff]  ;;  %v4943_v14 = vld [vmem:[#allocation2 + $0xb90] sm:$0xff] }
0x1251   :  { %5714 = vmatpush2.bf16.msra.mxu0 %v15679_v9  ;;  %5741 = vmatpush1.bf16.msra.mxu1 %v15617_v10  ;;  %v4979_v9 = vld [vmem:[#allocation2 + $0xcb0] sm:$0xff]  ;;  %v15697_v10 = vcombine.low %v5046_v54, %v5050_v48  ;;  %v4998_v48 = vld [vmem:[#allocation2 + $0xd48] sm:$0xff] }
0x1252   :  { %5715 = vmatprep.subr.bf16.mxu0 %v15672_v26  ;;  %5742 = vmatprep.subr.bf16.mxu1 %v15610_v11  ;;  %v15635_v26 = vcombine.low %v4983_v55, %v4987_v31  ;;  %v15690_v11 = vcombine.high %v5038_v62, %v5042_v1  ;;  %v15628_v12 = vcombine.high %v4975_v6, %v4979_v9  ;;  %v5002_v55 = vld [vmem:[#allocation2 + $0xd68] sm:$0xff]  ;;  %v4935_v31 = vld [vmem:[#allocation2 + $0xb50] sm:$0xff] }
0x1255   :  { %5716 = vmatpush2.bf16.msra.mxu0 %v15671_v34  ;;  %5743 = vmatpush1.bf16.msra.mxu1 %v15609_v19  ;;  %v4971_v34 = vld [vmem:[#allocation2 + $0xc70] sm:$0xff]  ;;  %v15689_v19 = vcombine.low %v5038_v62, %v5042_v1  ;;  %v4990_v1 = vld [vmem:[#allocation2 + $0xd08] sm:$0xff] }
0x1256   :  { %5717 = vmatprep.subr.bf16.mxu0 %v15664_v40  ;;  %5744 = vmatprep.subr.bf16.mxu1 %v15602_v22  ;;  %v15627_v40 = vcombine.low %v4975_v6, %v4979_v9  ;;  %v15682_v22 = vcombine.high %v5030_v29, %v5034_v15  ;;  %v15620_v23 = vcombine.high %v4967_v18, %v4971_v34  ;;  %v4994_v6 = vld [vmem:[#allocation2 + $0xd28] sm:$0xff]  ;;  %v4927_v9 = vld [vmem:[#allocation2 + $0xb10] sm:$0xff] }
0x1259   :  { %5718 = vmatpush2.bf16.msra.mxu0 %v15663_v27  ;;  %5745 = vmatpush1.bf16.msra.mxu1 %v15601_v32  ;;  %v4963_v27 = vld [vmem:[#allocation2 + $0xc30] sm:$0xff]  ;;  %v15681_v32 = vcombine.low %v5030_v29, %v5034_v15 }
0x125a   :  { %5719 = vmatprep.subr.bf16.mxu0 %v15656_v36  ;;  %5746 = vmatprep.subr.bf16.mxu1 %v15594_v38  ;;  %v15619_v36 = vcombine.low %v4967_v18, %v4971_v34  ;;  %v15674_v38 = vcombine.high %v5022_v25, %v5026_v24  ;;  %v15612_v39 = vcombine.high %v4959_v17, %v4963_v27  ;;  %v5047_v15 = vld [vmem:[#allocation2 + $0xed0] sm:$0xff]  ;;  %v4984_v34 = vld [vmem:[#allocation2 + $0xcd8] sm:$0xff] }
0x125b   :  { %v5051_v18 = vld [vmem:[#allocation2 + $0xef0] sm:$0xff] }
0x125d   :  { %5720 = vmatpush2.bf16.msra.mxu0 %v15655_v43  ;;  %5747 = vmatpush1.bf16.msra.mxu1 %v15593_v46  ;;  %v4955_v43 = vld [vmem:[#allocation2 + $0xbf0] sm:$0xff]  ;;  %v15673_v46 = vcombine.low %v5022_v25, %v5026_v24 }
0x125e   :  { %5721 = vmatprep.subr.bf16.mxu0 %v15648_v47  ;;  %5748 = vmatprep.subr.bf16.mxu1 %v15586_v49  ;;  %v15611_v47 = vcombine.low %v4959_v17, %v4963_v27  ;;  %v15666_v49 = vcombine.high %v5014_v33, %v5018_v37  ;;  %v15604_v50 = vcombine.high %v4951_v35, %v4955_v43  ;;  %v5039_v24 = vld [vmem:[#allocation2 + $0xe90] sm:$0xff]  ;;  %v4976_v27 = vld [vmem:[#allocation2 + $0xc98] sm:$0xff] }
0x125f   :  { %v5043_v17 = vld [vmem:[#allocation2 + $0xeb0] sm:$0xff] }
0x1261   :  { %5722 = vmatpush2.bf16.msra.mxu0 %v15647_v16  ;;  %5749 = vmatpush1.bf16.msra.mxu1 %v15585_v21  ;;  %v4947_v16 = vld [vmem:[#allocation2 + $0xbb0] sm:$0xff]  ;;  %v15665_v21 = vcombine.low %v5014_v33, %v5018_v37 }
0x1262   :  { %5723 = vmatprep.subr.bf16.mxu0 %v15640_v52  ;;  %5750 = vmatprep.subr.bf16.mxu1 %v15578_v53  ;;  %v15603_v52 = vcombine.low %v4951_v35, %v4955_v43  ;;  %v15658_v53 = vcombine.high %v5006_v51, %v5010_v13  ;;  %v15596_v54 = vcombine.high %v4943_v14, %v4947_v16  ;;  %v5031_v37 = vld [vmem:[#allocation2 + $0xe50] sm:$0xff]  ;;  %v4968_v43 = vld [vmem:[#allocation2 + $0xc58] sm:$0xff] }
0x1263   :  { %v5035_v35 = vld [vmem:[#allocation2 + $0xe70] sm:$0xff] }
0x1265   :  { %5724 = vmatpush2.bf16.msra.mxu0 %v15639_v57  ;;  %5751 = vmatpush1.bf16.msra.mxu1 %v15577_v59  ;;  %v4939_v57 = vld [vmem:[#allocation2 + $0xb70] sm:$0xff]  ;;  %v15657_v59 = vcombine.low %v5006_v51, %v5010_v13 }
0x1266   :  { %5752 = vmatprep.subr.bf16.mxu1 %v15698_v60  ;;  %5779 = vmatprep.subr.bf16.mxu0 %v15636_v61  ;;  %v15595_v60 = vcombine.low %v4943_v14, %v4947_v16  ;;  %v15650_v61 = vcombine.high %v4998_v48, %v5002_v55  ;;  %v15588_v62 = vcombine.high %v4935_v31, %v4939_v57  ;;  %v5023_v13 = vld [vmem:[#allocation2 + $0xe10] sm:$0xff]  ;;  %v4960_v16 = vld [vmem:[#allocation2 + $0xc18] sm:$0xff] }
0x1267   :  { %v5027_v14 = vld [vmem:[#allocation2 + $0xe30] sm:$0xff] }
0x1268   :  { %5726 = vmatmul.mubr.bf16.vlgmr.msra.gmra.mxu0 %v17802_v56 }
0x1269   :  { %5753 = vmatpush2.bf16.msra.mxu1 %v15697_v10  ;;  %5780 = vmatpush1.bf16.msra.mxu0 %v15635_v26  ;;  %v4931_v10 = vld [vmem:[#allocation2 + $0xb30] sm:$0xff]  ;;  %v15649_v26 = vcombine.low %v4998_v48, %v5002_v55 }
0x126a   :  { %5754 = vmatprep.subr.bf16.mxu1 %v15690_v11  ;;  %5781 = vmatprep.subr.bf16.mxu0 %v15628_v12  ;;  %v15587_v11 = vcombine.low %v4935_v31, %v4939_v57  ;;  %v15642_v12 = vcombine.high %v4990_v1, %v4994_v6  ;;  %v15580_v29 = vcombine.high %v4927_v9, %v4931_v10  ;;  %v5015_v55 = vld [vmem:[#allocation2 + $0xdd0] sm:$0xff]  ;;  %v4952_v57 = vld [vmem:[#allocation2 + $0xbd8] sm:$0xff] }
0x126b   :  { %5811 = vmatprep.mubr.bf16.mxu0 %v17804_v58  ;;  %v5019_v31 = vld [vmem:[#allocation2 + $0xdf0] sm:$0xff] }
0x126d   :  { %5755 = vmatpush2.bf16.msra.mxu1 %v15689_v19  ;;  %5782 = vmatpush1.bf16.msra.mxu0 %v15627_v40  ;;  %v4988_v19 = vld [vmem:[#allocation2 + $0xcf8] sm:$0xff]  ;;  %v15641_v40 = vcombine.low %v4990_v1, %v4994_v6  ;;  %v5007_v1 = vld [vmem:[#allocation2 + $0xd90] sm:$0xff] }
0x126e   :  { %5756 = vmatprep.subr.bf16.mxu1 %v15682_v22  ;;  %5783 = vmatprep.subr.bf16.mxu0 %v15620_v23  ;;  %v15579_v22 = vcombine.low %v4927_v9, %v4931_v10  ;;  %v15700_v23 = vcombine.high %v5047_v15, %v5051_v18  ;;  %v15638_v25 = vcombine.high %v4984_v34, %v4988_v19  ;;  %v5011_v6 = vld [vmem:[#allocation2 + $0xdb0] sm:$0xff]  ;;  %v4944_v9 = vld [vmem:[#allocation2 + $0xb98] sm:$0xff] }
0x126f   :  { %v4948_v10 = vld [vmem:[#allocation2 + $0xbb8] sm:$0xff] }
0x1271   :  { %5757 = vmatpush2.bf16.msra.mxu1 %v15681_v32  ;;  %5784 = vmatpush1.bf16.msra.mxu0 %v15619_v36  ;;  %v4980_v32 = vld [vmem:[#allocation2 + $0xcb8] sm:$0xff]  ;;  %v15699_v36 = vcombine.low %v5047_v15, %v5051_v18  ;;  %v4999_v15 = vld [vmem:[#allocation2 + $0xd50] sm:$0xff] }
0x1272   :  { %5758 = vmatprep.subr.bf16.mxu1 %v15674_v38  ;;  %5785 = vmatprep.subr.bf16.mxu0 %v15612_v39  ;;  %v15637_v38 = vcombine.low %v4984_v34, %v4988_v19  ;;  %v15692_v39 = vcombine.high %v5039_v24, %v5043_v17  ;;  %v15630_v33 = vcombine.high %v4976_v27, %v4980_v32  ;;  %v5003_v18 = vld [vmem:[#allocation2 + $0xd70] sm:$0xff]  ;;  %v4936_v34 = vld [vmem:[#allocation2 + $0xb58] sm:$0xff] }
0x1273   :  { %v4940_v19 = vld [vmem:[#allocation2 + $0xb78] sm:$0xff] }
0x1275   :  { %5759 = vmatpush2.bf16.msra.mxu1 %v15673_v46  ;;  %5786 = vmatpush1.bf16.msra.mxu0 %v15611_v47  ;;  %v4972_v46 = vld [vmem:[#allocation2 + $0xc78] sm:$0xff]  ;;  %v15691_v47 = vcombine.low %v5039_v24, %v5043_v17  ;;  %v4991_v24 = vld [vmem:[#allocation2 + $0xd10] sm:$0xff] }
0x1276   :  { %5760 = vmatprep.subr.bf16.mxu1 %v15666_v49  ;;  %5787 = vmatprep.subr.bf16.mxu0 %v15604_v50  ;;  %v15629_v49 = vcombine.low %v4976_v27, %v4980_v32  ;;  %v15684_v50 = vcombine.high %v5031_v37, %v5035_v35  ;;  %v15622_v51 = vcombine.high %v4968_v43, %v4972_v46  ;;  %v4995_v17 = vld [vmem:[#allocation2 + $0xd30] sm:$0xff]  ;;  %v4928_v27 = vld [vmem:[#allocation2 + $0xb18] sm:$0xff] }
0x1277   :  { %v4932_v32 = vld [vmem:[#allocation2 + $0xb38] sm:$0xff] }
0x1279   :  { %5761 = vmatpush2.bf16.msra.mxu1 %v15665_v21  ;;  %5788 = vmatpush1.bf16.msra.mxu0 %v15603_v52  ;;  %v4964_v21 = vld [vmem:[#allocation2 + $0xc38] sm:$0xff]  ;;  %v15683_v52 = vcombine.low %v5031_v37, %v5035_v35 }
0x127a   :  { %5762 = vmatprep.subr.bf16.mxu1 %v15658_v53  ;;  %5789 = vmatprep.subr.bf16.mxu0 %v15596_v54  ;;  %v15621_v53 = vcombine.low %v4968_v43, %v4972_v46  ;;  %v15676_v54 = vcombine.high %v5023_v13, %v5027_v14  ;;  %v15614_v48 = vcombine.high %v4960_v16, %v4964_v21  ;;  %v5048_v37 = vld [vmem:[#allocation2 + $0xed8] sm:$0xff] }
0x127b   :  { %v5052_v35 = vld [vmem:[#allocation2 + $0xef8] sm:$0xff]  ;;  %v15643_v43 = vcombine.low %v4991_v24, %v4995_v17  ;;  %v15581_v46 = vcombine.low %v4928_v27, %v4932_v32 }
0x127d   :  { %5763 = vmatpush2.bf16.msra.mxu1 %v15657_v59  ;;  %5790 = vmatpush1.bf16.msra.mxu0 %v15595_v60  ;;  %v4956_v59 = vld [vmem:[#allocation2 + $0xbf8] sm:$0xff]  ;;  %v15675_v60 = vcombine.low %v5023_v13, %v5027_v14 }
0x127e   :  { %5764 = vmatprep.subr.bf16.mxu1 %v15650_v61  ;;  %5791 = vmatprep.subr.bf16.mxu0 %v15588_v62  ;;  %v15613_v61 = vcombine.low %v4960_v16, %v4964_v21  ;;  %v15668_v62 = vcombine.high %v5015_v55, %v5019_v31  ;;  %v5032_v14 = vld [vmem:[#allocation2 + $0xe58] sm:$0xff] }
0x127f   :  { %v5036_v16 = vld [vmem:[#allocation2 + $0xe78] sm:$0xff] }
0x1281   :  { %5765 = vmatpush2.bf16.msra.mxu1 %v15649_v26  ;;  %5792 = vmatpush1.bf16.msra.mxu0 %v15587_v11  ;;  %v15667_v26 = vcombine.low %v5015_v55, %v5019_v31  ;;  %v15605_v11 = vcombine.low %v4952_v57, %v4956_v59  ;;  %v5016_v31 = vld [vmem:[#allocation2 + $0xdd8] sm:$0xff] }
0x1282   :  { %5766 = vmatprep.subr.bf16.mxu1 %v15642_v12  ;;  %5793 = vmatprep.subr.bf16.mxu0 %v15580_v29  ;;  %v15660_v12 = vcombine.high %v5007_v1, %v5011_v6  ;;  %v15598_v29 = vcombine.high %v4944_v9, %v4948_v10 }
0x1285   :  { %5767 = vmatpush2.bf16.msra.mxu1 %v15641_v40  ;;  %5794 = vmatpush1.bf16.msra.mxu0 %v15579_v22  ;;  %v15659_v40 = vcombine.low %v5007_v1, %v5011_v6  ;;  %v15597_v22 = vcombine.low %v4944_v9, %v4948_v10  ;;  %v5000_v6 = vld [vmem:[#allocation2 + $0xd58] sm:$0xff] }
0x1286   :  { %5795 = vmatprep.subr.bf16.mxu0 %v15700_v23  ;;  %5822 = vmatprep.subr.bf16.mxu1 %v15638_v25  ;;  %v15652_v23 = vcombine.high %v4999_v15, %v5003_v18  ;;  %v15590_v25 = vcombine.high %v4936_v34, %v4940_v19  ;;  %v5004_v9 = vld [vmem:[#allocation2 + $0xd78] sm:$0xff] }
0x1288   :  { %5769 = vmatmul.mubr.bf16.vlgmr.msra.gmra.mxu1 %v17802_v56 }
0x1289   :  { %5796 = vmatpush2.bf16.msra.mxu0 %v15699_v36  ;;  %5823 = vmatpush1.bf16.msra.mxu1 %v15637_v38  ;;  %v15651_v36 = vcombine.low %v4999_v15, %v5003_v18  ;;  %v15589_v38 = vcombine.low %v4936_v34, %v4940_v19 }
0x128a   :  { %5797 = vmatprep.subr.bf16.mxu0 %v15692_v39  ;;  %5824 = vmatprep.subr.bf16.mxu1 %v15630_v33  ;;  %v15644_v39 = vcombine.high %v4991_v24, %v4995_v17  ;;  %v15582_v33 = vcombine.high %v4928_v27, %v4932_v32 }
0x128b   :  { %5854 = vmatprep.mubr.bf16.mxu1 %v17804_v58  ;;  %v15606_v58 = vcombine.high %v4952_v57, %v4956_v59  ;;  %v5020_v57 = vld [vmem:[#allocation2 + $0xdf8] sm:$0xff] }
0x128d   :  { %5798 = vmatpush2.bf16.msra.mxu0 %v15691_v47  ;;  %5825 = vmatpush1.bf16.msra.mxu1 %v15629_v49  ;;  %v15702_v47 = vcombine.high %v5048_v37, %v5052_v35  ;;  %v5040_v49 = vld [vmem:[#allocation2 + $0xe98] sm:$0xff] }
0x128e   :  { %5799 = vmatprep.subr.bf16.mxu0 %v15684_v50  ;;  %5826 = vmatprep.subr.bf16.mxu1 %v15622_v51  ;;  %v5044_v50 = vld [vmem:[#allocation2 + $0xeb8] sm:$0xff]  ;;  %v15701_v51 = vcombine.low %v5048_v37, %v5052_v35 }
0x128f   :  { %v15694_v13 = vcombine.high %v5040_v49, %v5044_v50  ;;  %v15693_v21 = vcombine.low %v5040_v49, %v5044_v50 }
0x1291   :  { %5800 = vmatpush2.bf16.msra.mxu0 %v15683_v52  ;;  %5827 = vmatpush1.bf16.msra.mxu1 %v15621_v53  ;;  %v15686_v52 = vcombine.high %v5032_v14, %v5036_v16  ;;  %v5024_v53 = vld [vmem:[#allocation2 + $0xe18] sm:$0xff] }
0x1292   :  { %5801 = vmatprep.subr.bf16.mxu0 %v15676_v54  ;;  %5828 = vmatprep.subr.bf16.mxu1 %v15614_v48  ;;  %v5028_v54 = vld [vmem:[#allocation2 + $0xe38] sm:$0xff]  ;;  %v15685_v48 = vcombine.low %v5032_v14, %v5036_v16 }
0x1293   :  { %v15678_v55 = vcombine.high %v5024_v53, %v5028_v54  ;;  %v15677_v59 = vcombine.low %v5024_v53, %v5028_v54 }
0x1295   :  { %5802 = vmatpush2.bf16.msra.mxu0 %v15675_v60  ;;  %5829 = vmatpush1.bf16.msra.mxu1 %v15613_v61  ;;  %v15670_v60 = vcombine.high %v5016_v31, %v5020_v57  ;;  %v5008_v61 = vld [vmem:[#allocation2 + $0xd98] sm:$0xff] }
0x1296   :  { %5803 = vmatprep.subr.bf16.mxu0 %v15668_v62  ;;  %5830 = vmatprep.subr.bf16.mxu1 %v15606_v58  ;;  %v5012_v62 = vld [vmem:[#allocation2 + $0xdb8] sm:$0xff]  ;;  %v15669_v58 = vcombine.low %v5016_v31, %v5020_v57  ;;  %v6193_v57 = vld [vmem:[#allocation2 + $0xfc0] sm:$0xff] }
0x1297   :  { %v15662_v1 = vcombine.high %v5008_v61, %v5012_v62  ;;  %v15661_v10 = vcombine.low %v5008_v61, %v5012_v62 }
0x1299   :  { %5804 = vmatpush2.bf16.msra.mxu0 %v15667_v26  ;;  %5831 = vmatpush1.bf16.msra.mxu1 %v15605_v11  ;;  %v15654_v26 = vcombine.high %v5000_v6, %v5004_v9  ;;  %v4992_v11 = vld [vmem:[#allocation2 + $0xd18] sm:$0xff] }
0x129a   :  { %5805 = vmatprep.subr.bf16.mxu0 %v15660_v12  ;;  %5832 = vmatprep.subr.bf16.mxu1 %v15598_v29  ;;  %v4996_v12 = vld [vmem:[#allocation2 + $0xd38] sm:$0xff]  ;;  %v15653_v29 = vcombine.low %v5000_v6, %v5004_v9  ;;  %v6189_v6 = vld [vmem:[#allocation2 + $0xfa0] sm:$0xff] }
0x129b   :  { %v15646_v15 = vcombine.high %v4992_v11, %v4996_v12  ;;  %v15645_v18 = vcombine.low %v4992_v11, %v4996_v12  ;;  %v6181_v11 = vld [vmem:[#allocation2 + $0xf60] sm:$0xff] }
0x129d   :  { %5806 = vmatpush2.bf16.msra.mxu0 %v15659_v40  ;;  %5833 = vmatpush1.bf16.msra.mxu1 %v15597_v22 }
0x129e   :  { %5807 = vmatprep.subr.bf16.mxu0 %v15652_v23  ;;  %5834 = vmatprep.subr.bf16.mxu1 %v15590_v25 }
0x12a1   :  { %5808 = vmatpush2.bf16.msra.mxu0 %v15651_v36  ;;  %5835 = vmatpush1.bf16.msra.mxu1 %v15589_v38 }
0x12a2   :  { %5809 = vmatprep.subr.bf16.mxu0 %v15644_v39  ;;  %5836 = vmatprep.subr.bf16.mxu1 %v15582_v33 }
0x12a5   :  { %5810 = vmatpush2.bf16.msra.mxu0 %v15643_v43  ;;  %5837 = vmatpush1.bf16.msra.mxu1 %v15581_v46 }
0x12a6   :  { %5838 = vmatprep.subr.bf16.mxu1 %v15702_v47 }
0x12a8   :  { %5812 = vmatmul.mubr.bf16.vlgmr.msra.gmra.mxu0 %v17802_v56 }
0x12a9   :  { %5839 = vmatpush2.bf16.msra.mxu1 %v15701_v51  ;;  %5925 = vmatprep.mubr.bf16.mxu0 %v18795_v20  ;;  %v17934_v51 = vld [vmem:[#allocation4 + $0x50] sm:$0xff]  }
0x12aa   :  { %5840 = vmatprep.subr.bf16.mxu1 %v15694_v13  ;;  %v17939_v13 = vld [vmem:[#allocation4 + $0x58] sm:$0xff]  }
0x12ad   :  { %5841 = vmatpush2.bf16.msra.mxu1 %v15693_v21 }
0x12ae   :  { %5842 = vmatprep.subr.bf16.mxu1 %v15686_v52 }
0x12b1   :  { %5843 = vmatpush2.bf16.msra.mxu1 %v15685_v48 }
0x12b2   :  { %5844 = vmatprep.subr.bf16.mxu1 %v15678_v55 }
0x12b5   :  { %5845 = vmatpush2.bf16.msra.mxu1 %v15677_v59  ;;  %v6197_v59 = vld [vmem:[#allocation2 + $0xfe0] sm:$0xff] }
0x12b6   :  { %5846 = vmatprep.subr.bf16.mxu1 %v15670_v60  ;;  %v15737_v9 = vcombine.low %v6193_v57, %v6197_v59 }
0x12b9   :  { %5847 = vmatpush2.bf16.msra.mxu1 %v15669_v58  ;;  %v15738_v58 = vcombine.high %v6193_v57, %v6197_v59 }
0x12ba   :  { %5848 = vmatprep.subr.bf16.mxu1 %v15662_v1  ;;  %v6185_v1 = vld [vmem:[#allocation2 + $0xf80] sm:$0xff] }
0x12bb   :  { %v15729_v12 = vcombine.low %v6185_v1, %v6189_v6 }
0x12bd   :  { %5849 = vmatpush2.bf16.msra.mxu1 %v15661_v10  ;;  %v15730_v10 = vcombine.high %v6185_v1, %v6189_v6  ;;  %v6190_v1 = vld [vmem:[#allocation2 + $0xfa8] sm:$0xff] }
0x12be   :  { %5850 = vmatprep.subr.bf16.mxu1 %v15654_v26  ;;  %v6177_v26 = vld [vmem:[#allocation2 + $0xf40] sm:$0xff] }
0x12c1   :  { %5851 = vmatpush2.bf16.msra.mxu1 %v15653_v29  ;;  %v15722_v29 = vcombine.high %v6177_v26, %v6181_v11 }
0x12c2   :  { %5852 = vmatprep.subr.bf16.mxu1 %v15646_v15  ;;  %v6169_v15 = vld [vmem:[#allocation2 + $0xf00] sm:$0xff] }
0x12c5   :  { %5853 = vmatpush2.bf16.msra.mxu1 %v15645_v18  ;;  %v6173_v18 = vld [vmem:[#allocation2 + $0xf20] sm:$0xff] }
0x12c8   :  { %5855 = vmatmul.mubr.bf16.vlgmr.msra.gmra.mxu1 %v17802_v56 }
0x12c9   :  { %5978 = vmatprep.mubr.bf16.mxu1 %v18795_v20 }
0x12e8   :  { %v17918_v34 = vpop.f32.mrf.mxu1  ;;  %v17920_v19 = vpop.f32.mrf.mxu0 }
0x12ea   :  { %v17922_v40 = vpop.f32.mrf.mxu1  ;;  %v17924_v22 = vpop.f32.mrf.mxu0 }
0x12ec   :  { %v4799_v23 = vpop.f32.mrf.mxu1  ;;  %v4881_v25 = vpop.f32.mrf.mxu0 }
0x12ed   :  { %v15721_v23 = vcombine.low %v6177_v26, %v6181_v11  ;;  %v15714_v25 = vcombine.high %v6169_v15, %v6173_v18  ;;  %v6182_v26 = vld [vmem:[#allocation2 + $0xf68] sm:$0xff] }
0x12ee   :  { %v4800_v24 = vpop.f32.mrf.mxu1  ;;  %v4882_v17 = vpop.f32.mrf.mxu0 }
0x12ef   :  { %v6195_v24 = vld [vmem:[#allocation2 + $0xfd0] sm:$0xff] }
0x12f0   :  { %v6199_v17 = vld [vmem:[#allocation2 + $0xff0] sm:$0xff] }
0x12f8   :  { %v17926_v27 = vpop.f32.mrf.mxu1 }
0x12fa   :  { %v17928_v32 = vpop.f32.mrf.mxu1 }
0x12fc   :  { %v4840_v36 = vpop.f32.mrf.mxu1 }
0x12fd   :  { %v15713_v36 = vcombine.low %v6169_v15, %v6173_v18  ;;  %v6174_v15 = vld [vmem:[#allocation2 + $0xf28] sm:$0xff] }
0x12fe   :  { %v4841_v56 = vpop.f32.mrf.mxu1 }
0x12ff   :  { %v15742_v56 = vcombine.high %v6195_v24, %v6199_v17 }
0x1308   :  { %v17930_v38 = vpop.f32.mrf.mxu1 }
0x130a   :  { %v17932_v39 = vpop.f32.mrf.mxu1 }
0x130c   :  { %v4922_v33 = vpop.f32.mrf.mxu1 }
0x130d   :  { %v6187_v33 = vld [vmem:[#allocation2 + $0xf90] sm:$0xff] }
0x130e   :  { %v4923_v37 = vpop.f32.mrf.mxu1 }
0x130f   :  { %v6191_v37 = vld [vmem:[#allocation2 + $0xfb0] sm:$0xff] }
0x1328   :  { %v5727_v35 = vpop.f32.mrf.mxu0 }
0x132a   :  { %v5729_v43 = vpop.f32.mrf.mxu0 }
0x132c   :  { %v5731_v46 = vpop.f32.mrf.mxu0 }
0x132d   :  { %v5865_v47 = vpack.c.bf16 %v5731_v46, %v5727_v35  ;;  %v15741_v35 = vcombine.low %v6195_v24, %v6199_v17  ;;  %v6179_v46 = vld [vmem:[#allocation2 + $0xf50] sm:$0xff]  ;;  %v6200_v24 = vld [vmem:[#allocation2 + $0xff8] sm:$0xff] }
0x132e   :  { %v5733_v49 = vpop.f32.mrf.mxu0 }
0x132f   :  { %v5866_v50 = vpack.c.bf16 %v5733_v49, %v5729_v43  ;;  %v15734_v43 = vcombine.high %v6187_v33, %v6191_v37  ;;  %v15733_v49 = vcombine.low %v6187_v33, %v6191_v37 }
0x1331   :  { %5907 = vmatprep.subr.bf16.mxu0 %v5866_v50 }
0x1332   :  { %5908 = vmatpush1.bf16.msra.mxu0 %v5865_v47  ;;  %v6183_v47 = vld [vmem:[#allocation2 + $0xf70] sm:$0xff] }
0x1333   :  { %v15726_v50 = vcombine.high %v6179_v46, %v6183_v47 }
0x1335   :  { %15705 = vmatmul.mubr.msk.bf16.vlgmr.msra.gmra.mxu0 %vm1226_vm5, %v17934_v51 }
0x1336   :  { %5935 = vmatprep.mubr.bf16.mxu0 %v18795_v20 }
0x133d   :  { %15706 = vmatmul.mubr.msk.bf16.gmra.mxu0 %vm1226_vm5, %v17939_v13 }
0x133e   :  { %6031 = vmatprep.mubr.bf16.mxu0 %v18795_v20 }
0x1348   :  { %v5770_v14 = vpop.f32.mrf.mxu1 }
0x134a   :  { %v5772_v16 = vpop.f32.mrf.mxu1 }
0x134c   :  { %v5774_v21 = vpop.f32.mrf.mxu1 }
0x134d   :  { %v5867_v54 = vpack.c.bf16 %v5774_v21, %v5770_v14  ;;  %v6175_v21 = vld [vmem:[#allocation2 + $0xf30] sm:$0xff] }
0x134e   :  { %v5776_v52 = vpop.f32.mrf.mxu1 }
0x134f   :  { %v5868_v53 = vpack.c.bf16 %v5776_v52, %v5772_v16  ;;  %v6171_v16 = vld [vmem:[#allocation2 + $0xf10] sm:$0xff] }
0x1350   :  { %v15717_v59 = vcombine.low %v6171_v16, %v6175_v21 }
0x1351   :  { %5960 = vmatprep.subr.bf16.mxu1 %v5868_v53  ;;  %v15725_v53 = vcombine.low %v6179_v46, %v6183_v47  ;;  %v6172_v47 = vld [vmem:[#allocation2 + $0xf18] sm:$0xff] }
0x1352   :  { %5961 = vmatpush1.bf16.msra.mxu1 %v5867_v54  ;;  %v15718_v54 = vcombine.high %v6171_v16, %v6175_v21 }
0x1355   :  { %15707 = vmatmul.mubr.msk.bf16.vlgmr.msra.gmra.mxu1 %vm1226_vm5, %v17934_v51 }
0x1356   :  { %5988 = vmatprep.mubr.bf16.mxu1 %v18795_v20 }
0x135d   :  { %15708 = vmatmul.mubr.msk.bf16.gmra.mxu1 %vm1226_vm5, %v17939_v13 }
0x135e   :  { %6084 = vmatprep.mubr.bf16.mxu1 %v18795_v20 }
0x1368   :  { %v5813_v48 = vpop.f32.mrf.mxu0 }
0x136a   :  { %v5815_v55 = vpop.f32.mrf.mxu0 }
0x136c   :  { %v5817_v31 = vpop.f32.mrf.mxu0 }
0x136d   :  { %v5869_v60 = vpack.c.bf16 %v5817_v31, %v5813_v48  ;;  %v6198_v31 = vld [vmem:[#allocation2 + $0xfe8] sm:$0xff] }
0x136e   :  { %v5819_v61 = vpop.f32.mrf.mxu0 }
0x136f   :  { %v5870_v62 = vpack.c.bf16 %v5819_v61, %v5815_v55  ;;  %v6194_v55 = vld [vmem:[#allocation2 + $0xfc8] sm:$0xff] }
0x1370   :  { %v15740_v61 = vcombine.high %v6194_v55, %v6198_v31  ;;  %v15739_v6 = vcombine.low %v6194_v55, %v6198_v31 }
0x1371   :  { %6013 = vmatprep.subr.bf16.mxu0 %v5870_v62 }
0x1372   :  { %6014 = vmatpush1.bf16.msra.mxu0 %v5869_v60 }
0x1373   :  { %6369 = vmatprep.subr.bf16.mxu0 %v15738_v58  ;;  %v6186_v58 = vld [vmem:[#allocation2 + $0xf88] sm:$0xff] }
0x1374   :  { %v15731_v11 = vcombine.low %v6186_v58, %v6190_v1 }
0x1375   :  { %15709 = vmatmul.mubr.msk.bf16.vlgmr.msra.gmra.mxu0 %vm1226_vm5, %v17934_v51 }
0x1376   :  { %6370 = vmatpush1.bf16.msra.mxu0 %v15737_v9  ;;  %6041 = vmatprep.mubr.bf16.mxu0 %v18795_v20  ;;  %v15732_v9 = vcombine.high %v6186_v58, %v6190_v1 }
0x1377   :  { %6371 = vmatprep.subr.bf16.mxu0 %v15730_v10  ;;  %v6178_v10 = vld [vmem:[#allocation2 + $0xf48] sm:$0xff] }
0x1378   :  { %v15723_v18 = vcombine.low %v6178_v10, %v6182_v26 }
0x137a   :  { %6372 = vmatpush1.bf16.msra.mxu0 %v15729_v12  ;;  %v15724_v12 = vcombine.high %v6178_v10, %v6182_v26 }
0x137b   :  { %6373 = vmatprep.subr.bf16.mxu0 %v15722_v29  ;;  %v6170_v29 = vld [vmem:[#allocation2 + $0xf08] sm:$0xff] }
0x137d   :  { %15710 = vmatmul.mubr.msk.bf16.gmra.mxu0 %vm1226_vm5, %v17939_v13 }
0x137e   :  { %6374 = vmatpush1.bf16.msra.mxu0 %v15721_v23  ;;  %6393 = vmatprep.mubr.bf16.mxu0 %v18795_v20  ;;  %v15716_v23 = vcombine.high %v6170_v29, %v6174_v15 }
0x137f   :  { %6375 = vmatprep.subr.bf16.mxu0 %v15714_v25  ;;  %v6196_v25 = vld [vmem:[#allocation2 + $0xfd8] sm:$0xff] }
0x1380   :  { %v15744_v17 = vcombine.high %v6196_v25, %v6200_v24  ;;  %v15743_v33 = vcombine.low %v6196_v25, %v6200_v24  ;;  %v6108_v24 = vrot.slane %v17918_v34, %v17795_v41 }
0x1382   :  { %6376 = vmatpush1.bf16.msra.mxu0 %v15713_v36  ;;  %v6188_v36 = vld [vmem:[#allocation2 + $0xf98] sm:$0xff] }
0x1383   :  { %6475 = vmatprep.subr.bf16.mxu0 %v15742_v56  ;;  %v6192_v56 = vld [vmem:[#allocation2 + $0xfb8] sm:$0xff] }
0x1384   :  { %v15736_v37 = vcombine.high %v6188_v36, %v6192_v56 }
0x1385   :  { %15745 = vmatmul.mubr.msk.bf16.vlgmr.msra.gmra.mxu0 %vm215_vm2, %v17729_v7 }
0x1386   :  { %6476 = vmatpush1.bf16.msra.mxu0 %v15741_v35  ;;  %6403 = vmatprep.mubr.bf16.mxu0 %v18795_v20  ;;  %v6180_v35 = vld [vmem:[#allocation2 + $0xf58] sm:$0xff] }
0x1387   :  { %6477 = vmatprep.subr.bf16.mxu0 %v15734_v43  ;;  %v6184_v43 = vld [vmem:[#allocation2 + $0xf78] sm:$0xff] }
0x1388   :  { %v5856_v14 = vpop.f32.mrf.mxu1  ;;  %v15728_v46 = vcombine.high %v6180_v35, %v6184_v43 }
0x138a   :  { %v5858_v52 = vpop.f32.mrf.mxu1  ;;  %6478 = vmatpush1.bf16.msra.mxu0 %v15733_v49  ;;  %v6176_v49 = vld [vmem:[#allocation2 + $0xf38] sm:$0xff] }
0x138b   :  { %6479 = vmatprep.subr.bf16.mxu0 %v15726_v50  ;;  %v15727_v50 = vcombine.low %v6180_v35, %v6184_v43  ;;  %v15719_v16 = vcombine.low %v6172_v47, %v6176_v49 }
0x138c   :  { %v5860_v48 = vpop.f32.mrf.mxu1 }
0x138d   :  { %15746 = vmatmul.mubr.msk.bf16.gmra.mxu0 %vm215_vm2, %v17731_v8  ;;  %v5871_v62 = vpack.c.bf16 %v5860_v48, %v5856_v14  ;;  %v15720_v14 = vcombine.high %v6172_v47, %v6176_v49 }
0x138e   :  { %v5862_v57 = vpop.f32.mrf.mxu1  ;;  %6480 = vmatpush1.bf16.msra.mxu0 %v15725_v53  ;;  %6499 = vmatprep.mubr.bf16.mxu0 %v18795_v20 }
0x138f   :  { %v5872_v60 = vpack.c.bf16 %v5862_v57, %v5858_v52  ;;  %6481 = vmatprep.subr.bf16.mxu0 %v15718_v54 }
0x1391   :  { %6066 = vmatprep.subr.bf16.mxu1 %v5872_v60 }
0x1392   :  { %6067 = vmatpush1.bf16.msra.mxu1 %v5871_v62  ;;  %6482 = vmatpush1.bf16.msra.mxu0 %v15717_v59 }
0x1393   :  { %6422 = vmatprep.subr.bf16.mxu1 %v15740_v61 }
0x1395   :  { %15711 = vmatmul.mubr.msk.bf16.vlgmr.msra.gmra.mxu1 %vm1226_vm5, %v17934_v51  ;;  %15749 = vmatmul.mubr.msk.bf16.vlgmr.msra.gmra.mxu0 %vm215_vm2, %v17729_v7  ;;  %v15715_v51 = vcombine.low %v6170_v29, %v6174_v15 }
0x1396   :  { %6423 = vmatpush1.bf16.msra.mxu1 %v15739_v6  ;;  %6094 = vmatprep.mubr.bf16.mxu1 %v18795_v20 }
0x1397   :  { %6424 = vmatprep.subr.bf16.mxu1 %v15732_v9  ;;  %6509 = vmatprep.mubr.bf16.mxu0 %v18795_v20 }
0x139a   :  { %6425 = vmatpush1.bf16.msra.mxu1 %v15731_v11 }
0x139b   :  { %6426 = vmatprep.subr.bf16.mxu1 %v15724_v12 }
0x139d   :  { %15712 = vmatmul.mubr.msk.bf16.gmra.mxu1 %vm1226_vm5, %v17939_v13  ;;  %15750 = vmatmul.mubr.msk.bf16.gmra.mxu0 %vm215_vm2, %v17731_v8  ;;  %v15735_v13 = vcombine.low %v6188_v36, %v6192_v56  ;;  %v6112_v36 = vrot.slane %v17922_v40, %v17795_v41 }
0x139e   :  { %6427 = vmatpush1.bf16.msra.mxu1 %v15723_v18  ;;  %6446 = vmatprep.mubr.bf16.mxu1 %v18795_v20 }
0x139f   :  { %6428 = vmatprep.subr.bf16.mxu1 %v15716_v23  ;;  %6718 = vmatprep.mubr.bf16.mxu0 %v18795_v20 }
0x13a2   :  { %6429 = vmatpush1.bf16.msra.mxu1 %v15715_v51 }
0x13a3   :  { %6528 = vmatprep.subr.bf16.mxu1 %v15744_v17 }
0x13a5   :  { %15747 = vmatmul.mubr.msk.bf16.vlgmr.msra.gmra.mxu1 %vm215_vm2, %v17729_v7 }
0x13a6   :  { %6529 = vmatpush1.bf16.msra.mxu1 %v15743_v33  ;;  %6456 = vmatprep.mubr.bf16.mxu1 %v18795_v20 }
0x13a7   :  { %6530 = vmatprep.subr.bf16.mxu1 %v15736_v37 }
0x13aa   :  { %6531 = vmatpush1.bf16.msra.mxu1 %v15735_v13 }
0x13ab   :  { %6532 = vmatprep.subr.bf16.mxu1 %v15728_v46 }
0x13ad   :  { %15748 = vmatmul.mubr.msk.bf16.gmra.mxu1 %vm215_vm2, %v17731_v8 }
0x13ae   :  { %6533 = vmatpush1.bf16.msra.mxu1 %v15727_v50  ;;  %6552 = vmatprep.mubr.bf16.mxu1 %v18795_v20 }
0x13af   :  { %6534 = vmatprep.subr.bf16.mxu1 %v15720_v14 }
0x13b2   :  { %6535 = vmatpush1.bf16.msra.mxu1 %v15719_v16 }
0x13b5   :  { %15751 = vmatmul.mubr.msk.bf16.vlgmr.msra.gmra.mxu1 %vm215_vm2, %v17729_v7 }
0x13b6   :  { %6562 = vmatprep.mubr.bf16.mxu1 %v18795_v20 }
0x13bd   :  { %15752 = vmatmul.mubr.msk.bf16.gmra.mxu1 %vm215_vm2, %v17731_v8 }
0x13be   :  { %6771 = vmatprep.mubr.bf16.mxu1 %v18795_v20 }
0x13f5   :  { %v5927_v21 = vpop.f32.mrf.mxu0 }
0x13f6   :  { %v6137_v2 = vadd.f32 %v6108_v24, %v5927_v21 }
0x13f7   :  { %v5929_v52 = vpop.f32.mrf.mxu0 }
0x13f8   :  { %v6138_v50 = vadd.f32 %v6112_v36, %v5929_v52 }
0x13f9   :  { %v5931_v53 = vpop.f32.mrf.mxu0 }
0x13fa   :  { %v6145_v20 = vadd.f32 %v6108_v24, %v5931_v53 }
0x13fb   :  { %v5933_v54 = vpop.f32.mrf.mxu0 }
0x13fc   :  { %v6146_v37 = vadd.f32 %v6112_v36, %v5933_v54 }
0x13fd   :  { %v5937_v48 = vpop.f32.mrf.mxu0 }
0x13fe   :  { %v6153_v13 = vadd.f32 %v6108_v24, %v5937_v48 }
0x13ff   :  { %v5939_v55 = vpop.f32.mrf.mxu0 }
0x1400   :  { %v6154_v35 = vadd.f32 %v6112_v36, %v5939_v55 }
0x1401   :  { %v5941_v31 = vpop.f32.mrf.mxu0 }
0x1402   :  { %v6161_v56 = vadd.f32 %v6108_v24, %v5941_v31 }
0x1403   :  { %v5943_v57 = vpop.f32.mrf.mxu0 }
0x1404   :  { %v6162_v43 = vadd.f32 %v6112_v36, %v5943_v57 }
0x1415   :  { %v17988_v60 = vpop.f32.mrf.mxu1 }
0x1417   :  { %v17994_v62 = vpop.f32.mrf.mxu1 }
0x1419   :  { %v18000_v1 = vpop.f32.mrf.mxu1 }
0x141b   :  { %v18004_v10 = vpop.f32.mrf.mxu1 }
0x141d   :  { %v18006_v12 = vpop.f32.mrf.mxu1 }
0x141f   :  { %v18008_v18 = vpop.f32.mrf.mxu1 }
0x1421   :  { %v18012_v51 = vpop.f32.mrf.mxu1 }
0x1423   :  { %v18016_v46 = vpop.f32.mrf.mxu1 }
0x1435   :  { %v17986_v59 = vpop.f32.mrf.mxu0 }
0x1437   :  { %v17990_v7 = vpop.f32.mrf.mxu0 }
0x1439   :  { %v17992_v61 = vpop.f32.mrf.mxu0 }
0x143b   :  { %v17996_v8 = vpop.f32.mrf.mxu0 }
0x143d   :  { %v17998_v58 = vpop.f32.mrf.mxu0 }
0x143f   :  { %v18002_v6 = vpop.f32.mrf.mxu0 }
0x1441   :  { %v6047_v9 = vpop.f32.mrf.mxu0 }
0x1443   :  { %v6049_v26 = vpop.f32.mrf.mxu0 }
0x1445   :  { %v6395_v11 = vpop.f32.mrf.mxu0 }
0x1447   :  { %v6397_v29 = vpop.f32.mrf.mxu0 }
0x1448   :  { %v6574_v40 = vadd.f32 %v6397_v29, %v6138_v50  ;;  %v18026_v29 = vld [vmem:[#allocation4 + $0x30] sm:$0xff]  }
0x1449   :  { %v6399_v15 = vpop.f32.mrf.mxu0 }
0x144a   :  { %v6581_v54 = vadd.f32 %v6399_v15, %v6145_v20  ;;  %v6124_v20 = vrot.slane %v17920_v19, %v17795_v41 }
0x144b   :  { %v6401_v23 = vpop.f32.mrf.mxu0 }
0x144c   :  { %v6582_v14 = vadd.f32 %v6401_v23, %v6146_v37 }
0x144d   :  { %v6405_v25 = vpop.f32.mrf.mxu0 }
0x144e   :  { %v6589_v5 = vadd.f32 %v6405_v25, %v6153_v13  ;;  %v6610_v0 = vpack.c.bf16 %v6582_v14, %v6574_v40 }
0x144f   :  { %v6407_v17 = vpop.f32.mrf.mxu0 }
0x1450   :  { %v6590_v16 = vadd.f32 %v6407_v17, %v6154_v35 }
0x1451   :  { %v6409_v33 = vpop.f32.mrf.mxu0 }
0x1452   :  { %v6597_v47 = vadd.f32 %v6409_v33, %v6161_v56  ;;  %v6573_v56 = vadd.f32 %v6395_v11, %v6137_v2  ;;  %v6128_v11 = vrot.slane %v17924_v22, %v17795_v41  ;;  %v18829_v33 = vmov 0  }
0x1453   :  { %v6411_v49 = vpop.f32.mrf.mxu0 }
0x1454   :  { %v6598_v34 = vadd.f32 %v6411_v49, %v6162_v43  ;;  %v6617_v55 = vpack.c.bf16 %v6597_v47, %v6589_v5  ;;  %v6609_v53 = vpack.c.bf16 %v6581_v54, %v6573_v56  ;;  %v6150_v37 = vadd.f32 %v6128_v11, %v17996_v8  ;;  %v7002_v56 = vld [vmem:[#allocation2 + $0x11c0] sm:$0xff] }
0x1455   :  { %v18018_v4 = vpop.f32.mrf.mxu1  ;;  %v6501_v3 = vpop.f32.mrf.mxu0  ;;  %v6158_v35 = vadd.f32 %v6128_v11, %v18002_v6  ;;  %v6166_v19 = vadd.f32 %v6128_v11, %v6049_v26  ;;  %v6157_v43 = vadd.f32 %v6124_v20, %v17998_v58  ;;  %v6142_v49 = vadd.f32 %v6128_v11, %v17990_v7 }
0x1456   :  { %v6618_v31 = vpack.c.bf16 %v6598_v34, %v6590_v16  ;;  %v18047_v16 = vld [vmem:[#allocation4 + $0x38] sm:$0xff]   ;;  %v6149_v34 = vadd.f32 %v6124_v20, %v17992_v61  ;;  %v6141_v58 = vadd.f32 %v6124_v20, %v17986_v59  ;;  %v6994_v59 = vld [vmem:[#allocation2 + $0x1180] sm:$0xff] }
0x1457   :  { %v18020_v57 = vpop.f32.mrf.mxu1  ;;  %v6503_v48 = vpop.f32.mrf.mxu0 }
0x1458   :  { %6698 = vmatprep.subr.bf16.mxu0 %v6618_v31  ;;  %v6578_v6 = vadd.f32 %v6503_v48, %v6142_v49 }
0x1459   :  { %v18022_v52 = vpop.f32.mrf.mxu1  ;;  %v6505_v23 = vpop.f32.mrf.mxu0  ;;  %6699 = vmatpush1.bf16.msra.mxu0 %v6617_v55 }
0x145a   :  { %6700 = vmatprep.subr.bf16.mxu0 %v6610_v0  ;;  %v6165_v0 = vadd.f32 %v6124_v20, %v6047_v9  ;;  %v6585_v31 = vadd.f32 %v6505_v23, %v6149_v34  ;;  %v6998_v23 = vld [vmem:[#allocation2 + $0x11a0] sm:$0xff] }
0x145b   :  { %v18024_v25 = vpop.f32.mrf.mxu1  ;;  %v6507_v17 = vpop.f32.mrf.mxu0 }
0x145c   :  { %v6586_v50 = vadd.f32 %v6507_v17, %v6150_v37  ;;  %v6577_v17 = vadd.f32 %v6501_v3, %v6141_v58  ;;  %v6986_v3 = vld [vmem:[#allocation2 + $0x1140] sm:$0xff] }
0x145d   :  { %v18028_v21 = vpop.f32.mrf.mxu1  ;;  %v6511_v5 = vpop.f32.mrf.mxu0  ;;  %6701 = vmatpush1.bf16.msra.mxu0 %v6609_v53  ;;  %v7006_v53 = vld [vmem:[#allocation2 + $0x11e0] sm:$0xff] }
0x145e   :  { %v6593_v40 = vadd.f32 %v6511_v5, %v6157_v43  ;;  %v6614_v7 = vpack.c.bf16 %v6586_v50, %v6578_v6  ;;  %v15820_v61 = vcombine.high %v7002_v56, %v7006_v53  ;;  %v6613_v48 = vpack.c.bf16 %v6585_v31, %v6577_v17  ;;  %v6982_v6 = vld [vmem:[#allocation2 + $0x1120] sm:$0xff] }
0x145f   :  { %v18032_v15 = vpop.f32.mrf.mxu1  ;;  %v6513_v2 = vpop.f32.mrf.mxu0  ;;  %v15819_v11 = vcombine.low %v7002_v56, %v7006_v53 }
0x1460   :  { %15755 = vmatmul.mubr.msk.bf16.vlgmr.msra.gmra.mxu0 %vm321_vm3, %v18026_v29  ;;  %v6594_v9 = vadd.f32 %v6513_v2, %v6158_v35  ;;  %v6990_v35 = vld [vmem:[#allocation2 + $0x1160] sm:$0xff] }
0x1461   :  { %v18038_v24 = vpop.f32.mrf.mxu1  ;;  %v6515_v36 = vpop.f32.mrf.mxu0  ;;  %6728 = vmatprep.mubr.bf16.mxu0 %v18829_v33 }
0x1462   :  { %v6601_v13 = vadd.f32 %v6515_v36, %v6165_v0  ;;  %v15812_v0 = vcombine.high %v6994_v59, %v6998_v23  ;;  %v6116_v36 = vrot.slane %v17926_v27, %v17795_v41 }
0x1463   :  { %v18044_v47 = vpop.f32.mrf.mxu1  ;;  %v6517_v22 = vpop.f32.mrf.mxu0 }
0x1464   :  { %v6602_v14 = vadd.f32 %v6517_v22, %v6166_v19  ;;  %v6621_v54 = vpack.c.bf16 %v6601_v13, %v6593_v40  ;;  %v6120_v19 = vrot.slane %v17928_v32, %v17795_v41  ;;  %v6163_v43 = vadd.f32 %v6116_v36, %v18012_v51  ;;  %v6978_v40 = vld [vmem:[#allocation2 + $0x1100] sm:$0xff] }
0x1465   :  { %v18050_v8 = vpop.f32.mrf.mxu1  ;;  %v15811_v22 = vcombine.low %v6994_v59, %v6998_v23  ;;  %v6155_v32 = vadd.f32 %v6116_v36, %v18006_v12  ;;  %v15796_v12 = vcombine.high %v6978_v40, %v6982_v6 }
0x1466   :  { %v6622_v26 = vpack.c.bf16 %v6602_v14, %v6594_v9  ;;  %v6148_v49 = vadd.f32 %v6120_v19, %v18004_v10  ;;  %v6156_v27 = vadd.f32 %v6120_v19, %v18008_v18  ;;  %v6164_v50 = vadd.f32 %v6120_v19, %v18016_v46 }
0x1467   :  { %v6450_v55 = vpop.f32.mrf.mxu1  ;;  %v15804_v9 = vcombine.high %v6986_v3, %v6990_v35  ;;  %v6140_v51 = vadd.f32 %v6120_v19, %v17994_v62  ;;  %v15803_v18 = vcombine.low %v6986_v3, %v6990_v35  ;;  %v6970_v62 = vld [vmem:[#allocation2 + $0x10c0] sm:$0xff] }
0x1468   :  { %6804 = vmatprep.subr.bf16.mxu0 %v6622_v26  ;;  %15756 = vmatmul.mubr.msk.bf16.gmra.mxu0 %vm321_vm3, %v18047_v16  ;;  %v6954_v19 = vld [vmem:[#allocation2 + $0x1040] sm:$0xff] }
0x1469   :  { %v6452_v2 = vpop.f32.mrf.mxu1  ;;  %6805 = vmatpush1.bf16.msra.mxu0 %v6621_v54  ;;  %6824 = vmatprep.mubr.bf16.mxu0 %v18829_v33  ;;  %v6147_v54 = vadd.f32 %v6116_v36, %v18000_v1  ;;  %v6576_v46 = vadd.f32 %v6450_v55, %v6140_v51  ;;  %v15795_v55 = vcombine.low %v6978_v40, %v6982_v6 }
0x146a   :  { %6806 = vmatprep.subr.bf16.mxu0 %v6614_v7  ;;  %v6139_v7 = vadd.f32 %v6116_v36, %v17988_v60 }
0x146b   :  { %v6454_v5 = vpop.f32.mrf.mxu1  ;;  %v6583_v17 = vadd.f32 %v6452_v2, %v6147_v54 }
0x146c   :  { %v6584_v26 = vadd.f32 %v6454_v5, %v6148_v49  ;;  %v6974_v5 = vld [vmem:[#allocation2 + $0x10e0] sm:$0xff]  ;;  %v6575_v1 = vadd.f32 %v18050_v8, %v6139_v7  ;;  %v6132_v8 = vrot.slane %v17930_v38, %v17795_v41 }
0x146d   :  { %v6458_v20 = vpop.f32.mrf.mxu1  ;;  %6807 = vmatpush1.bf16.msra.mxu0 %v6613_v48  ;;  %v7066_v7 = vld [vmem:[#allocation2 + $0x13c0] sm:$0xff] }
0x146e   :  { %10018 = vmatprep.subr.bf16.mxu0 %v15820_v61  ;;  %v6591_v10 = vadd.f32 %v6458_v20, %v6155_v32  ;;  %v6612_v59 = vpack.c.bf16 %v6584_v26, %v6576_v46  ;;  %v15788_v20 = vcombine.high %v6970_v62, %v6974_v5  ;;  %v6611_v60 = vpack.c.bf16 %v6583_v17, %v6575_v1  ;;  %v6946_v26 = vld [vmem:[#allocation2 + $0x1000] sm:$0xff] }
0x146f   :  { %v6460_v37 = vpop.f32.mrf.mxu1  ;;  %v7058_v1 = vld [vmem:[#allocation2 + $0x1380] sm:$0xff] }
0x1470   :  { %15759 = vmatmul.mubr.msk.bf16.vlgmr.msra.gmra.mxu0 %vm321_vm3, %v18026_v29  ;;  %v6592_v58 = vadd.f32 %v6460_v37, %v6156_v27  ;;  %v15787_v37 = vcombine.low %v6970_v62, %v6974_v5  ;;  %v7122_v5 = vld [vmem:[#allocation2 + $0x1580] sm:$0xff] }
0x1471   :  { %v6462_v13 = vpop.f32.mrf.mxu1  ;;  %6834 = vmatprep.mubr.bf16.mxu0 %v18829_v33  ;;  %10019 = vmatpush1.bf16.msra.mxu0 %v15819_v11  ;;  %v6962_v11 = vld [vmem:[#allocation2 + $0x1080] sm:$0xff] }
0x1472   :  { %10020 = vmatprep.subr.bf16.mxu0 %v15812_v0  ;;  %v6599_v14 = vadd.f32 %v6462_v13, %v6163_v43  ;;  %v6966_v0 = vld [vmem:[#allocation2 + $0x10a0] sm:$0xff]  ;;  %v6136_v13 = vrot.slane %v17932_v39, %v17795_v41  ;;  %v6159_v39 = vadd.f32 %v6132_v8, %v18028_v21 }
0x1473   :  { %v6464_v34 = vpop.f32.mrf.mxu1  ;;  %v15780_v3 = vcombine.high %v6962_v11, %v6966_v0  ;;  %v6958_v43 = vld [vmem:[#allocation2 + $0x1060] sm:$0xff]  ;;  %v15779_v27 = vcombine.low %v6962_v11, %v6966_v0 }
0x1474   :  { %v6600_v31 = vadd.f32 %v6464_v34, %v6164_v50  ;;  %v6619_v61 = vpack.c.bf16 %v6599_v14, %v6591_v10  ;;  %v6152_v50 = vadd.f32 %v6136_v13, %v18024_v25  ;;  %v6160_v38 = vadd.f32 %v6136_v13, %v18032_v15  ;;  %v7118_v11 = vld [vmem:[#allocation2 + $0x1560] sm:$0xff] }
0x1475   :  { %v18070_v56 = vpop.f32.mrf.mxu1  ;;  %10021 = vmatpush1.bf16.msra.mxu0 %v15811_v22  ;;  %v6167_v22 = vadd.f32 %v6132_v8, %v18038_v24  ;;  %v15772_v32 = vcombine.high %v6954_v19, %v6958_v43  ;;  %v6144_v40 = vadd.f32 %v6136_v13, %v18020_v57  ;;  %v6143_v10 = vadd.f32 %v6132_v8, %v18018_v4  ;;  %v7134_v57 = vld [vmem:[#allocation2 + $0x15e0] sm:$0xff] }
0x1476   :  { %v6620_v53 = vpack.c.bf16 %v6600_v31, %v6592_v58  ;;  %10022 = vmatprep.subr.bf16.mxu0 %v15804_v9  ;;  %v6168_v9 = vadd.f32 %v6136_v13, %v18044_v47  ;;  %v6950_v58 = vld [vmem:[#allocation2 + $0x1020] sm:$0xff]  ;;  %v6151_v31 = vadd.f32 %v6132_v8, %v18022_v52  ;;  %v15771_v47 = vcombine.low %v6954_v19, %v6958_v43 }
0x1477   :  { %v6556_v48 = vpop.f32.mrf.mxu1  ;;  %v15764_v46 = vcombine.high %v6946_v26, %v6950_v58  ;;  %v7070_v52 = vld [vmem:[#allocation2 + $0x13e0] sm:$0xff]  ;;  %v6579_v17 = vadd.f32 %v18070_v56, %v6143_v10  ;;  %v15763_v4 = vcombine.low %v6946_v26, %v6950_v58 }
0x1478   :  { %6751 = vmatprep.subr.bf16.mxu1 %v6620_v53  ;;  %15760 = vmatmul.mubr.msk.bf16.gmra.mxu0 %vm321_vm3, %v18047_v16  ;;  %v6580_v15 = vadd.f32 %v6556_v48, %v6144_v40  ;;  %v7130_v53 = vld [vmem:[#allocation2 + $0x15c0] sm:$0xff]  ;;  %v15884_v62 = vcombine.high %v7066_v7, %v7070_v52 }
0x1479   :  { %v6558_v23 = vpop.f32.mrf.mxu1  ;;  %6752 = vmatpush1.bf16.msra.mxu1 %v6619_v61  ;;  %10023 = vmatpush1.bf16.msra.mxu0 %v15803_v18  ;;  %v15948_v61 = vcombine.high %v7130_v53, %v7134_v57  ;;  %v7050_v0 = vld [vmem:[#allocation2 + $0x1340] sm:$0xff] }
0x147a   :  { %6753 = vmatprep.subr.bf16.mxu1 %v6612_v59  ;;  %10024 = vmatprep.subr.bf16.mxu0 %v15796_v12  ;;  %v6587_v21 = vadd.f32 %v6558_v23, %v6151_v31  ;;  %v7126_v59 = vld [vmem:[#allocation2 + $0x15a0] sm:$0xff] }
0x147b   :  { %v6560_v2 = vpop.f32.mrf.mxu1  ;;  %v7062_v23 = vld [vmem:[#allocation2 + $0x13a0] sm:$0xff]  ;;  %v15940_v56 = vcombine.high %v7122_v5, %v7126_v59 }
0x147c   :  { %v6588_v24 = vadd.f32 %v6560_v2, %v6152_v50  ;;  %v6615_v48 = vpack.c.bf16 %v6587_v21, %v6579_v17  ;;  %v7114_v2 = vld [vmem:[#allocation2 + $0x1540] sm:$0xff] }
0x147d   :  { %v6564_v36 = vpop.f32.mrf.mxu1  ;;  %6754 = vmatpush1.bf16.msra.mxu1 %v6611_v60  ;;  %10025 = vmatpush1.bf16.msra.mxu0 %v15795_v55  ;;  %v15947_v55 = vcombine.low %v7130_v53, %v7134_v57  ;;  %v15876_v60 = vcombine.high %v7058_v1, %v7062_v23  ;;  %v15932_v8 = vcombine.high %v7114_v2, %v7118_v11  ;;  %v7106_v19 = vld [vmem:[#allocation2 + $0x1500] sm:$0xff] }
0x147e   :  { %10026 = vmatprep.subr.bf16.mxu0 %v15788_v20  ;;  %v6595_v25 = vadd.f32 %v6564_v36, %v6159_v39  ;;  %v6616_v12 = vpack.c.bf16 %v6588_v24, %v6580_v15  ;;  %v15883_v20 = vcombine.low %v7066_v7, %v7070_v52  ;;  %v7054_v36 = vld [vmem:[#allocation2 + $0x1360] sm:$0xff] }
0x147f   :  { %v6566_v35 = vpop.f32.mrf.mxu1  ;;  %v7110_v43 = vld [vmem:[#allocation2 + $0x1520] sm:$0xff] }
0x1480   :  { %15757 = vmatmul.mubr.msk.bf16.vlgmr.msra.gmra.mxu1 %vm321_vm3, %v18026_v29  ;;  %v6596_v6 = vadd.f32 %v6566_v35, %v6160_v38  ;;  %v15868_v35 = vcombine.high %v7050_v0, %v7054_v36  ;;  %v7042_v13 = vld [vmem:[#allocation2 + $0x1300] sm:$0xff] }
0x1481   :  { %v6568_v49 = vpop.f32.mrf.mxu1  ;;  %6781 = vmatprep.mubr.bf16.mxu1 %v18829_v33  ;;  %10027 = vmatpush1.bf16.msra.mxu0 %v15787_v37  ;;  %v15939_v37 = vcombine.low %v7122_v5, %v7126_v59  ;;  %v7098_v38 = vld [vmem:[#allocation2 + $0x14c0] sm:$0xff] }
0x1482   :  { %10028 = vmatprep.subr.bf16.mxu0 %v15780_v3  ;;  %v6603_v14 = vadd.f32 %v6568_v49, %v6167_v22  ;;  %v15875_v3 = vcombine.low %v7058_v1, %v7062_v23  ;;  %v7046_v22 = vld [vmem:[#allocation2 + $0x1320] sm:$0xff]  ;;  %v15931_v49 = vcombine.low %v7114_v2, %v7118_v11 }
0x1483   :  { %v6570_v34 = vpop.f32.mrf.mxu1  ;;  %v15860_v50 = vcombine.high %v7042_v13, %v7046_v22  ;;  %v7038_v39 = vld [vmem:[#allocation2 + $0x12e0] sm:$0xff] }
0x1484   :  { %v6604_v51 = vadd.f32 %v6570_v34, %v6168_v9  ;;  %v6623_v18 = vpack.c.bf16 %v6603_v14, %v6595_v25  ;;  %v7102_v9 = vld [vmem:[#allocation2 + $0x14e0] sm:$0xff]  ;;  %v15923_v14 = vcombine.low %v7106_v19, %v7110_v43  ;;  %v15859_v34 = vcombine.low %v7042_v13, %v7046_v22 }
0x1485   :  { %10029 = vmatpush1.bf16.msra.mxu0 %v15779_v27  ;;  %v15924_v27 = vcombine.high %v7106_v19, %v7110_v43  ;;  %v15916_v40 = vcombine.high %v7098_v38, %v7102_v9  ;;  %v7026_v26 = vld [vmem:[#allocation2 + $0x1280] sm:$0xff] }
0x1486   :  { %v6624_v54 = vpack.c.bf16 %v6604_v51, %v6596_v6  ;;  %10030 = vmatprep.subr.bf16.mxu0 %v15772_v32  ;;  %v7034_v32 = vld [vmem:[#allocation2 + $0x12c0] sm:$0xff]  ;;  %v15915_v6 = vcombine.low %v7098_v38, %v7102_v9 }
0x1487   :  { %v15852_v24 = vcombine.high %v7034_v32, %v7038_v39  ;;  %v15851_v51 = vcombine.low %v7034_v32, %v7038_v39  ;;  %v7030_v58 = vld [vmem:[#allocation2 + $0x12a0] sm:$0xff] }
0x1488   :  { %6857 = vmatprep.subr.bf16.mxu1 %v6624_v54  ;;  %15758 = vmatmul.mubr.msk.bf16.gmra.mxu1 %vm321_vm3, %v18047_v16  ;;  %v7090_v31 = vld [vmem:[#allocation2 + $0x1480] sm:$0xff] }
0x1489   :  { %6858 = vmatpush1.bf16.msra.mxu1 %v6623_v18  ;;  %6877 = vmatprep.mubr.bf16.mxu1 %v18829_v33  ;;  %v7094_v25 = vld [vmem:[#allocation2 + $0x14a0] sm:$0xff] }
0x148a   :  { %6859 = vmatprep.subr.bf16.mxu1 %v6616_v12  ;;  %10031 = vmatpush1.bf16.msra.mxu0 %v15771_v47  ;;  %v15907_v15 = vcombine.low %v7090_v31, %v7094_v25  ;;  %v15908_v54 = vcombine.high %v7090_v31, %v7094_v25  ;;  %v15843_v47 = vcombine.low %v7026_v26, %v7030_v58  ;;  %v7018_v10 = vld [vmem:[#allocation2 + $0x1240] sm:$0xff] }
0x148b   :  { %10032 = vmatprep.subr.bf16.mxu0 %v15764_v46  ;;  %v7022_v21 = vld [vmem:[#allocation2 + $0x1260] sm:$0xff] }
0x148c   :  { %v7082_v18 = vld [vmem:[#allocation2 + $0x1440] sm:$0xff]  ;;  %v15836_v46 = vcombine.high %v7018_v10, %v7022_v21  ;;  %v15835_v7 = vcombine.low %v7018_v10, %v7022_v21 }
0x148d   :  { %6860 = vmatpush1.bf16.msra.mxu1 %v6615_v48  ;;  %v7086_v53 = vld [vmem:[#allocation2 + $0x1460] sm:$0xff] }
0x148e   :  { %10033 = vmatpush1.bf16.msra.mxu0 %v15763_v4  ;;  %10071 = vmatprep.subr.bf16.mxu1 %v15948_v61  ;;  %v15899_v57 = vcombine.low %v7082_v18, %v7086_v53  ;;  %v15900_v12 = vcombine.high %v7082_v18, %v7086_v53  ;;  %v7010_v52 = vld [vmem:[#allocation2 + $0x1200] sm:$0xff] }
0x148f   :  { %10034 = vmatprep.subr.bf16.mxu0 %v15884_v62  ;;  %v7014_v17 = vld [vmem:[#allocation2 + $0x1220] sm:$0xff] }
0x1490   :  { %15761 = vmatmul.mubr.msk.bf16.vlgmr.msra.gmra.mxu1 %vm321_vm3, %v18026_v29  ;;  %v15867_v29 = vcombine.low %v7050_v0, %v7054_v36  ;;  %v7074_v4 = vld [vmem:[#allocation2 + $0x1400] sm:$0xff]  ;;  %v15828_v61 = vcombine.high %v7010_v52, %v7014_v17  ;;  %v15827_v59 = vcombine.low %v7010_v52, %v7014_v17 }
0x1491   :  { %6887 = vmatprep.mubr.bf16.mxu1 %v18829_v33  ;;  %10072 = vmatpush1.bf16.msra.mxu1 %v15947_v55  ;;  %v7078_v48 = vld [vmem:[#allocation2 + $0x1420] sm:$0xff] }
0x1492   :  { %10035 = vmatpush2.bf16.msra.mxu0 %v15883_v20  ;;  %10073 = vmatprep.subr.bf16.mxu1 %v15940_v56  ;;  %v15891_v62 = vcombine.low %v7074_v4, %v7078_v48  ;;  %v15892_v5 = vcombine.high %v7074_v4, %v7078_v48  ;;  %v7194_v1 = vld [vmem:[#allocation2 + $0x17c0] sm:$0xff] }
0x1493   :  { %10036 = vmatprep.subr.bf16.mxu0 %v15876_v60  ;;  %v7198_v23 = vld [vmem:[#allocation2 + $0x17e0] sm:$0xff] }
0x1494   :  { %v18100_v55 = vld [vmem:[#allocation2 + $0x19c0] sm:$0xff]  ;;  %v16012_v20 = vcombine.high %v7194_v1, %v7198_v23  ;;  %v16011_v60 = vcombine.low %v7194_v1, %v7198_v23 }
0x1495   :  { %10074 = vmatpush1.bf16.msra.mxu1 %v15939_v37  ;;  %v18102_v56 = vld [vmem:[#allocation2 + $0x19e0] sm:$0xff] }
0x1496   :  { %10037 = vmatpush2.bf16.msra.mxu0 %v15875_v3  ;;  %10075 = vmatprep.subr.bf16.mxu1 %v15932_v8  ;;  %v16075_v2 = vcombine.low %v18100_v55, %v18102_v56  ;;  %v16076_v11 = vcombine.high %v18100_v55, %v18102_v56  ;;  %v7186_v0 = vld [vmem:[#allocation2 + $0x1780] sm:$0xff] }
0x1497   :  { %10038 = vmatprep.subr.bf16.mxu0 %v15868_v35  ;;  %v7190_v36 = vld [vmem:[#allocation2 + $0x17a0] sm:$0xff] }
0x1498   :  { %15762 = vmatmul.mubr.msk.bf16.gmra.mxu1 %vm321_vm3, %v18047_v16  ;;  %v15844_v16 = vcombine.high %v7026_v26, %v7030_v58  ;;  %v16004_v37 = vcombine.high %v7186_v0, %v7190_v36  ;;  %v16003_v3 = vcombine.low %v7186_v0, %v7190_v36  ;;  %v7178_v8 = vld [vmem:[#allocation2 + $0x1740] sm:$0xff] }
0x1499   :  { %10076 = vmatpush1.bf16.msra.mxu1 %v15931_v49  ;;  %v7182_v35 = vld [vmem:[#allocation2 + $0x1760] sm:$0xff] }
0x149a   :  { %10039 = vmatpush2.bf16.msra.mxu0 %v15867_v29  ;;  %10077 = vmatprep.subr.bf16.mxu1 %v15924_v27  ;;  %v15996_v19 = vcombine.high %v7178_v8, %v7182_v35  ;;  %v15995_v43 = vcombine.low %v7178_v8, %v7182_v35  ;;  %v7170_v13 = vld [vmem:[#allocation2 + $0x1700] sm:$0xff] }
0x149b   :  { %10040 = vmatprep.subr.bf16.mxu0 %v15860_v50  ;;  %v7174_v22 = vld [vmem:[#allocation2 + $0x1720] sm:$0xff] }
0x149c   :  { %v15988_v49 = vcombine.high %v7170_v13, %v7174_v22  ;;  %v15987_v29 = vcombine.low %v7170_v13, %v7174_v22  ;;  %v7162_v27 = vld [vmem:[#allocation2 + $0x16c0] sm:$0xff] }
0x149d   :  { %10078 = vmatpush1.bf16.msra.mxu1 %v15923_v14  ;;  %v7166_v50 = vld [vmem:[#allocation2 + $0x16e0] sm:$0xff] }
0x149e   :  { %10041 = vmatpush2.bf16.msra.mxu0 %v15859_v34  ;;  %10079 = vmatprep.subr.bf16.mxu1 %v15916_v40  ;;  %v15980_v38 = vcombine.high %v7162_v27, %v7166_v50  ;;  %v15979_v9 = vcombine.low %v7162_v27, %v7166_v50  ;;  %v7154_v32 = vld [vmem:[#allocation2 + $0x1680] sm:$0xff] }
0x149f   :  { %10042 = vmatprep.subr.bf16.mxu0 %v15852_v24  ;;  %v7158_v39 = vld [vmem:[#allocation2 + $0x16a0] sm:$0xff] }
0x14a0   :  { %v15972_v14 = vcombine.high %v7154_v32, %v7158_v39  ;;  %v15971_v34 = vcombine.low %v7154_v32, %v7158_v39  ;;  %v7146_v40 = vld [vmem:[#allocation2 + $0x1640] sm:$0xff] }
0x14a1   :  { %10080 = vmatpush1.bf16.msra.mxu1 %v15915_v6  ;;  %v7150_v24 = vld [vmem:[#allocation2 + $0x1660] sm:$0xff] }
0x14a2   :  { %10043 = vmatpush2.bf16.msra.mxu0 %v15851_v51  ;;  %10081 = vmatprep.subr.bf16.mxu1 %v15908_v54  ;;  %v15964_v6 = vcombine.high %v7146_v40, %v7150_v24  ;;  %v15963_v51 = vcombine.low %v7146_v40, %v7150_v24  ;;  %v7138_v26 = vld [vmem:[#allocation2 + $0x1600] sm:$0xff] }
0x14a3   :  { %10044 = vmatprep.subr.bf16.mxu0 %v15844_v16  ;;  %v7142_v58 = vld [vmem:[#allocation2 + $0x1620] sm:$0xff] }
0x14a4   :  { %v15956_v31 = vcombine.high %v7138_v26, %v7142_v58  ;;  %v15955_v16 = vcombine.low %v7138_v26, %v7142_v58  ;;  %v18108_v25 = vld [vmem:[#allocation2 + $0x1dc0] sm:$0xff] }
0x14a5   :  { %10082 = vmatpush1.bf16.msra.mxu1 %v15907_v15  ;;  %v18110_v15 = vld [vmem:[#allocation2 + $0x1de0] sm:$0xff] }
0x14a6   :  { %10045 = vmatpush2.bf16.msra.mxu0 %v15843_v47  ;;  %10083 = vmatprep.subr.bf16.mxu1 %v15900_v12  ;;  %v16203_v54 = vcombine.low %v18108_v25, %v18110_v15  ;;  %v16204_v47 = vcombine.high %v18108_v25, %v18110_v15  ;;  %v6626_v10 = vld [vmem:[#allocation6 + $0x440] ss:$8 sm:$0xf] }
0x14a7   :  { %10046 = vmatprep.subr.bf16.mxu0 %v15836_v46  ;;  %v6627_v21 = vld [vmem:[#allocation6 + $0x440] ss:$8 sm:$0xf0] }
0x14a8   :  { %v18116_v18 = vor.u32 %v6627_v21, %v6626_v10  ;;  %v7226_v58 = vld [vmem:[#allocation2 + $0x18c0] sm:$0xff] }
0x14a9   :  { %10084 = vmatpush1.bf16.msra.mxu1 %v15899_v57 }
0x14aa   :  { %10047 = vmatpush2.bf16.msra.mxu0 %v15835_v7  ;;  %10085 = vmatprep.subr.bf16.mxu1 %v15892_v5  ;;  %v6633_v46 = vrot.slane %v18116_v18, %v17795_v41  ;;  %v6637_v53 = vrot.slane %v18116_v18, %v17798_v42 }
0x14ab   :  { %10048 = vmatprep.subr.bf16.mxu0 %v15828_v61 }
0x14ad   :  { %10086 = vmatpush1.bf16.msra.mxu1 %v15891_v62 }
0x14ae   :  { %10049 = vmatpush2.bf16.msra.mxu0 %v15827_v59  ;;  %10087 = vmatprep.subr.bf16.mxu1 %v16012_v20  ;;  %v7250_v20 = vld [vmem:[#allocation2 + $0x1980] sm:$0xff] }
0x14af   :  { %10124 = vmatprep.subr.bf16.mxu0 %v16076_v11 }
0x14b1   :  { %10088 = vmatpush2.bf16.msra.mxu1 %v16011_v60  ;;  %v7254_v60 = vld [vmem:[#allocation2 + $0x19a0] sm:$0xff] }
0x14b2   :  { %10089 = vmatprep.subr.bf16.mxu1 %v16004_v37  ;;  %v16068_v8 = vcombine.high %v7250_v20, %v7254_v60  ;;  %v16067_v22 = vcombine.low %v7250_v20, %v7254_v60  ;;  %v6641_v20 = vrot.slane %v18116_v18, %v17847_v45 }
0x14b5   :  { %10090 = vmatpush2.bf16.msra.mxu1 %v16003_v3 }
0x14b6   :  { %10091 = vmatprep.subr.bf16.mxu1 %v15996_v19  ;;  %v7242_v19 = vld [vmem:[#allocation2 + $0x1940] sm:$0xff] }
0x14b9   :  { %10092 = vmatpush2.bf16.msra.mxu1 %v15995_v43  ;;  %v7246_v43 = vld [vmem:[#allocation2 + $0x1960] sm:$0xff] }
0x14ba   :  { %10093 = vmatprep.subr.bf16.mxu1 %v15988_v49  ;;  %v16060_v32 = vcombine.high %v7242_v19, %v7246_v43  ;;  %v16059_v55 = vcombine.low %v7242_v19, %v7246_v43  ;;  %v7322_v19 = vld [vmem:[#allocation2 + $0x1bc0] sm:$0xff] }
0x14bb   :  { %v7326_v43 = vld [vmem:[#allocation2 + $0x1be0] sm:$0xff] }
0x14bd   :  { %10094 = vmatpush2.bf16.msra.mxu1 %v15987_v29 }
0x14be   :  { %10095 = vmatprep.subr.bf16.mxu1 %v15980_v38 }
0x14c1   :  { %10096 = vmatpush2.bf16.msra.mxu1 %v15979_v9  ;;  %v18133_v9 = vrot.slane %v18116_v18, %v17854_v28 }
0x14c2   :  { %10097 = vmatprep.subr.bf16.mxu1 %v15972_v14  ;;  %v7234_v14 = vld [vmem:[#allocation2 + $0x1900] sm:$0xff] }
0x14c5   :  { %10098 = vmatpush2.bf16.msra.mxu1 %v15971_v34  ;;  %v7238_v34 = vld [vmem:[#allocation2 + $0x1920] sm:$0xff] }
0x14c6   :  { %10099 = vmatprep.subr.bf16.mxu1 %v15964_v6 }
0x14c9   :  { %10100 = vmatpush2.bf16.msra.mxu1 %v15963_v51  ;;  %v16052_v51 = vcombine.high %v7234_v14, %v7238_v34 }
0x14ca   :  { %10101 = vmatprep.subr.bf16.mxu1 %v15956_v31  ;;  %v7230_v31 = vld [vmem:[#allocation2 + $0x18e0] sm:$0xff] }
0x14cd   :  { %10102 = vmatpush2.bf16.msra.mxu1 %v15955_v16 }
0x14ce   :  { %10177 = vmatprep.subr.bf16.mxu1 %v16204_v47  ;;  %v16051_v47 = vcombine.low %v7234_v14, %v7238_v34 }
0x1520   :  { %v6720_v57 = vpop.f32.mrf.mxu0 }
0x1521   :  { %v6721_v12 = vadd.f32 %v6720_v57, %v6633_v46  ;;  %v7222_v57 = vld [vmem:[#allocation2 + $0x18a0] sm:$0xff] }
0x1522   :  { %v6722_v7 = vpop.f32.mrf.mxu0 }
0x1523   :  { %v6723_v52 = vadd.f32 %v6722_v7, %v6637_v53  ;;  %v6898_v61 = vmax.f32 %v6721_v12, 0.0  ;;  %v16043_v7 = vcombine.low %v7226_v58, %v7230_v31 }
0x1524   :  { %v6724_v17 = vpop.f32.mrf.mxu0 }
0x1525   :  { %v6725_v4 = vadd.f32 %v6724_v17, %v6633_v46  ;;  %v6899_v62 = vmax.f32 %v6723_v52, 0.0 }
0x1526   :  { %v6726_v48 = vpop.f32.mrf.mxu0 }
0x1527   :  { %v6906_v5 = vmax.f32 %v6725_v4, 0.0  ;;  %v6727_v59 = vadd.f32 %v6726_v48, %v6637_v53  ;;  %v7210_v4 = vld [vmem:[#allocation2 + $0x1840] sm:$0xff] }
0x1528   :  { %v6730_v1 = vpop.f32.mrf.mxu0 }
0x1529   :  { %v6907_v23 = vmax.f32 %v6727_v59, 0.0  ;;  %v18122_v11 = vpack.c.bf16 %v6906_v5, %v6898_v61  ;;  %v6731_v0 = vadd.f32 %v6730_v1, %v6633_v46  ;;  %v7214_v61 = vld [vmem:[#allocation2 + $0x1860] sm:$0xff]  ;;  %v6645_v59 = vrot.slane %v18116_v18, %v17844_v44 }
0x152a   :  { %v6732_v36 = vpop.f32.mrf.mxu0  ;;  %v16028_v5 = vcombine.high %v7210_v4, %v7214_v61  ;;  %v7202_v1 = vld [vmem:[#allocation2 + $0x1800] sm:$0xff] }
0x152b   :  { %v18124_v37 = vpack.c.bf16 %v6907_v23, %v6899_v62  ;;  %v6733_v3 = vadd.f32 %v6732_v36, %v6637_v53  ;;  %v6914_v49 = vmax.f32 %v6731_v0, 0.0  ;;  %v7206_v23 = vld [vmem:[#allocation2 + $0x1820] sm:$0xff]  ;;  %v16027_v0 = vcombine.low %v7210_v4, %v7214_v61 }
0x152c   :  { %v6734_v35 = vpop.f32.mrf.mxu0 }
0x152d   :  { %10050 = vmatprep.mubr.bf16.mxu0 %v18124_v37  ;;  %v6735_v13 = vadd.f32 %v6734_v35, %v6633_v46  ;;  %v6915_v27 = vmax.f32 %v6733_v3, 0.0  ;;  %v16044_v46 = vcombine.high %v7226_v58, %v7230_v31  ;;  %v16020_v3 = vcombine.high %v7202_v1, %v7206_v23 }
0x152e   :  { %10051 = vmatmul.mubr.bf16.vlgmr.msra.gmra.mxu0 %v18122_v11  ;;  %v6736_v29 = vpop.f32.mrf.mxu0 }
0x152f   :  { %10125 = vmatpush1.bf16.msra.mxu0 %v16075_v2  ;;  %v6922_v50 = vmax.f32 %v6735_v13, 0.0  ;;  %v6737_v38 = vadd.f32 %v6736_v29, %v6637_v53  ;;  %v7218_v53 = vld [vmem:[#allocation2 + $0x1880] sm:$0xff]  ;;  %v16019_v29 = vcombine.low %v7202_v1, %v7206_v23 }
0x1530   :  { %10126 = vmatprep.subr.bf16.mxu0 %v16068_v8  ;;  %v18135_v39 = vpop.f32.mrf.mxu0  ;;  %v16036_v17 = vcombine.high %v7218_v53, %v7222_v57  ;;  %v16035_v48 = vcombine.low %v7218_v53, %v7222_v57  ;;  %v7306_v53 = vld [vmem:[#allocation2 + $0x1b40] sm:$0xff] }
0x1531   :  { %v6923_v40 = vmax.f32 %v6737_v38, 0.0  ;;  %v18137_v24 = vpack.c.bf16 %v6922_v50, %v6914_v49  ;;  %v16140_v50 = vcombine.high %v7322_v19, %v7326_v43  ;;  %v7314_v38 = vld [vmem:[#allocation2 + $0x1b80] sm:$0xff] }
0x1532   :  { %v6828_v6 = vpop.f32.mrf.mxu0 }
0x1533   :  { %10127 = vmatpush1.bf16.msra.mxu0 %v16067_v22  ;;  %v18139_v56 = vpack.c.bf16 %v6923_v40, %v6915_v27  ;;  %v6829_v2 = vadd.f32 %v6828_v6, %v18133_v9  ;;  %v7318_v40 = vld [vmem:[#allocation2 + $0x1ba0] sm:$0xff] }
0x1534   :  { %10128 = vmatprep.subr.bf16.mxu0 %v16060_v32  ;;  %v18142_v26 = vpop.f32.mrf.mxu0  ;;  %v7378_v6 = vld [vmem:[#allocation2 + $0x1d80] sm:$0xff]  ;;  %v16131_v61 = vcombine.low %v7314_v38, %v7318_v40 }
0x1535   :  { %10060 = vmatprep.mubr.bf16.mxu0 %v18139_v56  ;;  %v6903_v10 = vmax.f32 %v6829_v2, 0.0 }
0x1536   :  { %v6832_v16 = vpop.f32.mrf.mxu0  ;;  %10061 = vmatmul.mubr.bf16.gmra.mxu0 %v18137_v24 }
0x1537   :  { %10129 = vmatpush1.bf16.msra.mxu0 %v16059_v55  ;;  %v6833_v21 = vadd.f32 %v6832_v16, %v18133_v9  ;;  %v7382_v55 = vld [vmem:[#allocation2 + $0x1da0] sm:$0xff]  ;;  %v16139_v16 = vcombine.low %v7322_v19, %v7326_v43 }
0x1538   :  { %10130 = vmatprep.subr.bf16.mxu0 %v16052_v51  ;;  %v7362_v19 = vld [vmem:[#allocation2 + $0x1d00] sm:$0xff] }
0x1539   :  { %v6911_v12 = vmax.f32 %v6833_v21, 0.0  ;;  %v16132_v21 = vcombine.high %v7314_v38, %v7318_v40  ;;  %v7366_v43 = vld [vmem:[#allocation2 + $0x1d20] sm:$0xff]  ;;  %v18177_v40 = vpop.f32.mrf.mxu0 }
0x153b   :  { %10131 = vmatpush1.bf16.msra.mxu0 %v16051_v47  ;;  %v18147_v52 = vpack.c.bf16 %v6911_v12, %v6903_v10  ;;  %v7310_v12 = vld [vmem:[#allocation2 + $0x1b60] sm:$0xff] }
0x153c   :  { %10132 = vmatprep.subr.bf16.mxu0 %v16044_v46  ;;  %v16196_v46 = vcombine.high %v7378_v6, %v7382_v55  ;;  %v16123_v25 = vcombine.low %v7306_v53, %v7310_v12 }
0x153d   :  { %10156 = vmatprep.mubr.bf16.mxu0 %v18147_v52 }
0x153f   :  { %10133 = vmatpush1.bf16.msra.mxu0 %v16043_v7  ;;  %v7370_v7 = vld [vmem:[#allocation2 + $0x1d40] sm:$0xff] }
0x1540   :  { %v6773_v62 = vpop.f32.mrf.mxu1  ;;  %10134 = vmatprep.subr.bf16.mxu0 %v16036_v17  ;;  %v7374_v17 = vld [vmem:[#allocation2 + $0x1d60] sm:$0xff] }
0x1541   :  { %v6774_v13 = vadd.f32 %v6773_v62, %v6641_v20 }
0x1542   :  { %v6775_v60 = vpop.f32.mrf.mxu1 }
0x1543   :  { %10135 = vmatpush1.bf16.msra.mxu0 %v16035_v48  ;;  %v6776_v8 = vadd.f32 %v6775_v60, %v6645_v59  ;;  %v6900_v2 = vmax.f32 %v6774_v13, 0.0  ;;  %v16195_v48 = vcombine.low %v7378_v6, %v7382_v55 }
0x1544   :  { %v6777_v36 = vpop.f32.mrf.mxu1  ;;  %10136 = vmatprep.subr.bf16.mxu0 %v16028_v5 }
0x1545   :  { %v6778_v35 = vadd.f32 %v6777_v36, %v6641_v20  ;;  %v6901_v14 = vmax.f32 %v6776_v8, 0.0  ;;  %v16188_v36 = vcombine.high %v7370_v7, %v7374_v17 }
0x1546   :  { %v6779_v22 = vpop.f32.mrf.mxu1 }
0x1547   :  { %v6780_v49 = vadd.f32 %v6779_v22, %v6645_v59  ;;  %10137 = vmatpush1.bf16.msra.mxu0 %v16027_v0  ;;  %v6908_v27 = vmax.f32 %v6778_v35, 0.0  ;;  %v18165_v0 = vrot.slane %v18116_v18, %v17865_v63  ;;  %v7302_v35 = vld [vmem:[#allocation2 + $0x1b20] sm:$0xff] }
0x1548   :  { %10138 = vmatprep.subr.bf16.mxu0 %v16020_v3  ;;  %v6783_v32 = vpop.f32.mrf.mxu1  ;;  %v7298_v3 = vld [vmem:[#allocation2 + $0x1b00] sm:$0xff] }
0x1549   :  { %v6909_v34 = vmax.f32 %v6780_v49, 0.0  ;;  %v6784_v51 = vadd.f32 %v6783_v32, %v6641_v20  ;;  %v18156_v10 = vpack.c.bf16 %v6908_v27, %v6900_v2  ;;  %v16180_v27 = vcombine.high %v7362_v19, %v7366_v43  ;;  %v7294_v32 = vld [vmem:[#allocation2 + $0x1ae0] sm:$0xff] }
0x154a   :  { %v6785_v58 = vpop.f32.mrf.mxu1  ;;  %v16115_v55 = vcombine.low %v7298_v3, %v7302_v35  ;;  %v16179_v2 = vcombine.low %v7362_v19, %v7366_v43 }
0x154b   :  { %v18154_v31 = vpack.c.bf16 %v6909_v34, %v6901_v14  ;;  %10139 = vmatpush1.bf16.msra.mxu0 %v16019_v29  ;;  %v6786_v47 = vadd.f32 %v6785_v58, %v6645_v59  ;;  %v6916_v62 = vmax.f32 %v6784_v51, 0.0  ;;  %v16116_v29 = vcombine.high %v7298_v3, %v7302_v35  ;;  %v7354_v14 = vld [vmem:[#allocation2 + $0x1cc0] sm:$0xff] }
0x154c   :  { %10140 = vmatprep.subr.bf16.mxu0 %v16140_v50  ;;  %v6787_v57 = vpop.f32.mrf.mxu1  ;;  %v7290_v50 = vld [vmem:[#allocation2 + $0x1ac0] sm:$0xff] }
0x154d   :  { %10103 = vmatprep.mubr.bf16.mxu1 %v18154_v31  ;;  %v6788_v4 = vadd.f32 %v6787_v57, %v6641_v20  ;;  %v6917_v1 = vmax.f32 %v6786_v47, 0.0  ;;  %v16124_v20 = vcombine.high %v7306_v53, %v7310_v12  ;;  %v7358_v34 = vld [vmem:[#allocation2 + $0x1ce0] sm:$0xff] }
0x154e   :  { %10104 = vmatmul.mubr.bf16.vlgmr.msra.gmra.mxu1 %v18156_v10  ;;  %v6789_v5 = vpop.f32.mrf.mxu1  ;;  %v16172_v47 = vcombine.high %v7354_v14, %v7358_v34  ;;  %v7346_v53 = vld [vmem:[#allocation2 + $0x1c80] sm:$0xff] }
0x154f   :  { %10141 = vmatpush2.bf16.msra.mxu0 %v16139_v16  ;;  %10178 = vmatpush1.bf16.msra.mxu1 %v16203_v54  ;;  %v6924_v23 = vmax.f32 %v6788_v4, 0.0  ;;  %v6790_v60 = vadd.f32 %v6789_v5, %v6645_v59  ;;  %v16187_v59 = vcombine.low %v7370_v7, %v7374_v17  ;;  %v16108_v16 = vcombine.high %v7290_v50, %v7294_v32  ;;  %v7350_v57 = vld [vmem:[#allocation2 + $0x1ca0] sm:$0xff]  ;;  %v6838_v7 = vpop.f32.mrf.mxu0 }
0x1550   :  { %10142 = vmatprep.subr.bf16.mxu0 %v16132_v21  ;;  %10179 = vmatprep.subr.bf16.mxu1 %v16196_v46  ;;  %v18167_v8 = vpop.f32.mrf.mxu1  ;;  %v7282_v21 = vld [vmem:[#allocation2 + $0x1a80] sm:$0xff]  ;;  %v16107_v17 = vcombine.low %v7290_v50, %v7294_v32  ;;  %v16171_v4 = vcombine.low %v7354_v14, %v7358_v34  ;;  %v16163_v35 = vcombine.low %v7346_v53, %v7350_v57 }
0x1551   :  { %v6925_v13 = vmax.f32 %v6790_v60, 0.0  ;;  %v18169_v15 = vpack.c.bf16 %v6924_v23, %v6916_v62  ;;  %v7286_v46 = vld [vmem:[#allocation2 + $0x1aa0] sm:$0xff]  ;;  %v16164_v62 = vcombine.high %v7346_v53, %v7350_v57 }
0x1552   :  { %v6881_v54 = vpop.f32.mrf.mxu1  ;;  %v7274_v5 = vld [vmem:[#allocation2 + $0x1a40] sm:$0xff]  ;;  %v16099_v3 = vcombine.low %v7282_v21, %v7286_v46 }
0x1553   :  { %10143 = vmatpush2.bf16.msra.mxu0 %v16131_v61  ;;  %10180 = vmatpush1.bf16.msra.mxu1 %v16195_v48  ;;  %v18171_v22 = vpack.c.bf16 %v6925_v13, %v6917_v1  ;;  %v6882_v49 = vadd.f32 %v6881_v54, %v18165_v0  ;;  %v16100_v48 = vcombine.high %v7282_v21, %v7286_v46  ;;  %v7278_v1 = vld [vmem:[#allocation2 + $0x1a60] sm:$0xff] }
0x1554   :  { %10144 = vmatprep.subr.bf16.mxu0 %v16124_v20  ;;  %10181 = vmatprep.subr.bf16.mxu1 %v16188_v36  ;;  %v18174_v38 = vpop.f32.mrf.mxu1  ;;  %v7338_v23 = vld [vmem:[#allocation2 + $0x1c40] sm:$0xff]  ;;  %v6649_v20 = vrot.slane %v18116_v18, %v17857_v30  ;;  %v6840_v36 = vpop.f32.mrf.mxu0  ;;  %v16092_v19 = vcombine.high %v7274_v5, %v7278_v1  ;;  %v16091_v50 = vcombine.low %v7274_v5, %v7278_v1 }
0x1555   :  { %10113 = vmatprep.mubr.bf16.mxu1 %v18171_v22  ;;  %v6905_v51 = vmax.f32 %v6882_v49, 0.0  ;;  %v7342_v60 = vld [vmem:[#allocation2 + $0x1c60] sm:$0xff] }
0x1556   :  { %10114 = vmatmul.mubr.bf16.gmra.mxu1 %v18169_v15  ;;  %v6885_v6 = vpop.f32.mrf.mxu1  ;;  %v16156_v43 = vcombine.high %v7338_v23, %v7342_v60  ;;  %v7266_v13 = vld [vmem:[#allocation2 + $0x1a00] sm:$0xff]  ;;  %v6827_v49 = vadd.f32 %v18135_v39, %v6649_v20  ;;  %v16155_v32 = vcombine.low %v7338_v23, %v7342_v60  ;;  %v6841_v5 = vadd.f32 %v6840_v36, %v6649_v20 }
0x1557   :  { %10145 = vmatpush2.bf16.msra.mxu0 %v16123_v25  ;;  %10182 = vmatpush1.bf16.msra.mxu1 %v16187_v59  ;;  %v6886_v58 = vadd.f32 %v6885_v6, %v18165_v0  ;;  %v7270_v25 = vld [vmem:[#allocation2 + $0x1a20] sm:$0xff] }
0x1558   :  { %10146 = vmatprep.subr.bf16.mxu0 %v16116_v29  ;;  %10183 = vmatprep.subr.bf16.mxu1 %v16180_v27  ;;  %v7330_v54 = vld [vmem:[#allocation2 + $0x1c00] sm:$0xff]  ;;  %v6831_v29 = vadd.f32 %v18142_v26, %v6649_v20  ;;  %v6842_v27 = vpop.f32.mrf.mxu0  ;;  %v16084_v14 = vcombine.high %v7266_v13, %v7270_v25  ;;  %v6902_v39 = vmax.f32 %v6827_v49, 0.0  ;;  %v16083_v26 = vcombine.low %v7266_v13, %v7270_v25  ;;  %v6987_v13 = vld [vmem:[#allocation2 + $0x1148] sm:$0xff] }
0x1559   :  { %v6913_v12 = vmax.f32 %v6886_v58, 0.0  ;;  %v7334_v59 = vld [vmem:[#allocation2 + $0x1c20] sm:$0xff]  ;;  %v7003_v58 = vld [vmem:[#allocation2 + $0x11c8] sm:$0xff] }
0x155a   :  { %v16148_v34 = vcombine.high %v7330_v54, %v7334_v59  ;;  %v7450_v6 = vld [vmem:[#allocation2 + $0x1fc0] sm:$0xff]  ;;  %v16147_v21 = vcombine.low %v7330_v54, %v7334_v59  ;;  %v6991_v25 = vld [vmem:[#allocation2 + $0x1168] sm:$0xff]  ;;  %v6926_v59 = vmax.f32 %v6841_v5, 0.0 }
0x155b   :  { %10147 = vmatpush2.bf16.msra.mxu0 %v16115_v55  ;;  %10184 = vmatpush1.bf16.msra.mxu1 %v16179_v2  ;;  %v18181_v61 = vpack.c.bf16 %v6913_v12, %v6905_v51  ;;  %v6839_v55 = vadd.f32 %v6838_v7, %v18133_v9  ;;  %v6843_v2 = vadd.f32 %v6842_v27, %v18133_v9  ;;  %v7454_v51 = vld [vmem:[#allocation2 + $0x1fe0] sm:$0xff]  ;;  %v6995_v7 = vld [vmem:[#allocation2 + $0x1188] sm:$0xff] }
0x155c   :  { %10148 = vmatprep.subr.bf16.mxu0 %v16108_v16  ;;  %10185 = vmatprep.subr.bf16.mxu1 %v16172_v47  ;;  %v7007_v16 = vld [vmem:[#allocation2 + $0x11e8] sm:$0xff]  ;;  %v6910_v47 = vmax.f32 %v6831_v29, 0.0  ;;  %v16268_v46 = vcombine.high %v7450_v6, %v7454_v51  ;;  %v7442_v57 = vld [vmem:[#allocation2 + $0x1f80] sm:$0xff]  ;;  %v16267_v1 = vcombine.low %v7450_v6, %v7454_v51  ;;  %v15806_v49 = vcombine.high %v6987_v13, %v6991_v25 }
0x155d   :  { %10209 = vmatprep.mubr.bf16.mxu1 %v18181_v61  ;;  %v15822_v53 = vcombine.high %v7003_v58, %v7007_v16  ;;  %v6919_v12 = vmax.f32 %v6839_v55, 0.0  ;;  %v15821_v23 = vcombine.low %v7003_v58, %v7007_v16  ;;  %v7426_v29 = vld [vmem:[#allocation2 + $0x1f00] sm:$0xff]  ;;  %v15805_v6 = vcombine.low %v6987_v13, %v6991_v25  ;;  %v6971_v16 = vld [vmem:[#allocation2 + $0x10c8] sm:$0xff] }
0x155e   :  { %v18190_v9 = vpack.c.bf16 %v6910_v47, %v6902_v39  ;;  %v7430_v27 = vld [vmem:[#allocation2 + $0x1f20] sm:$0xff]  ;;  %v6975_v39 = vld [vmem:[#allocation2 + $0x10e8] sm:$0xff]  ;;  %v18200_v47 = vpop.f32.mrf.mxu1 }
0x155f   :  { %10149 = vmatpush2.bf16.msra.mxu0 %v16107_v17  ;;  %10186 = vmatpush1.bf16.msra.mxu1 %v16171_v4  ;;  %v6927_v17 = vmax.f32 %v6843_v2, 0.0  ;;  %v7446_v4 = vld [vmem:[#allocation2 + $0x1fa0] sm:$0xff]  ;;  %v16244_v55 = vcombine.high %v7426_v29, %v7430_v27 }
0x1560   :  { %10150 = vmatprep.subr.bf16.mxu0 %v16100_v48  ;;  %10187 = vmatprep.subr.bf16.mxu1 %v16164_v62  ;;  %v6999_v48 = vld [vmem:[#allocation2 + $0x11a8] sm:$0xff]  ;;  %v6837_v62 = vadd.f32 %v18177_v40, %v6649_v20  ;;  %v16260_v60 = vcombine.high %v7442_v57, %v7446_v4  ;;  %v16259_v40 = vcombine.low %v7442_v57, %v7446_v4  ;;  %v7418_v2 = vld [vmem:[#allocation2 + $0x1ec0] sm:$0xff] }
0x1561   :  { %v15813_v20 = vcombine.low %v6995_v7, %v6999_v48  ;;  %v7422_v58 = vld [vmem:[#allocation2 + $0x1ee0] sm:$0xff]  ;;  %v6967_v4 = vld [vmem:[#allocation2 + $0x10a8] sm:$0xff] }
0x1562   :  { %v6918_v54 = vmax.f32 %v6837_v62, 0.0  ;;  %v7410_v57 = vld [vmem:[#allocation2 + $0x1e80] sm:$0xff]  ;;  %v15789_v62 = vcombine.low %v6971_v16, %v6975_v39 }
0x1563   :  { %10151 = vmatpush2.bf16.msra.mxu0 %v16099_v3  ;;  %10188 = vmatpush1.bf16.msra.mxu1 %v16163_v35  ;;  %v15814_v3 = vcombine.high %v6995_v7, %v6999_v48  ;;  %v7434_v35 = vld [vmem:[#allocation2 + $0x1f40] sm:$0xff]  ;;  %v6891_v7 = vpop.f32.mrf.mxu1  ;;  %v16235_v48 = vcombine.low %v7418_v2, %v7422_v58 }
0x1564   :  { %10152 = vmatprep.subr.bf16.mxu0 %v16092_v19  ;;  %10189 = vmatprep.subr.bf16.mxu1 %v16156_v43  ;;  %v18193_v19 = vpack.c.bf16 %v6927_v17, %v6919_v12  ;;  %v7438_v43 = vld [vmem:[#allocation2 + $0x1f60] sm:$0xff]  ;;  %v6963_v17 = vld [vmem:[#allocation2 + $0x1088] sm:$0xff] }
0x1565   :  { %v16252_v36 = vcombine.high %v7434_v35, %v7438_v43  ;;  %v7414_v12 = vld [vmem:[#allocation2 + $0x1ea0] sm:$0xff]  ;;  %v15781_v25 = vcombine.low %v6963_v17, %v6967_v4 }
0x1566   :  { %v16228_v5 = vcombine.high %v7410_v57, %v7414_v12  ;;  %v16227_v13 = vcombine.low %v7410_v57, %v7414_v12 }
0x1567   :  { %10153 = vmatpush2.bf16.msra.mxu0 %v16091_v50  ;;  %10190 = vmatpush1.bf16.msra.mxu1 %v16155_v32  ;;  %v18197_v50 = vpack.c.bf16 %v6926_v59, %v6918_v54  ;;  %v6979_v32 = vld [vmem:[#allocation2 + $0x1108] sm:$0xff] }
0x1568   :  { %10154 = vmatprep.subr.bf16.mxu0 %v16084_v14  ;;  %10191 = vmatprep.subr.bf16.mxu1 %v16148_v34  ;;  %v6983_v14 = vld [vmem:[#allocation2 + $0x1128] sm:$0xff]  ;;  %v16251_v34 = vcombine.low %v7434_v35, %v7438_v43  ;;  %v6893_v43 = vpop.f32.mrf.mxu1 }
0x1569   :  { %v15798_v51 = vcombine.high %v6979_v32, %v6983_v14  ;;  %v6959_v35 = vld [vmem:[#allocation2 + $0x1068] sm:$0xff] }
0x156a   :  { %v18830_v54 = vld [vmem:[#allocation27_spill] sm:$0xff] }
0x156b   :  { %10155 = vmatpush2.bf16.msra.mxu0 %v16083_v26  ;;  %10192 = vmatpush1.bf16.msra.mxu1 %v16147_v21  ;;  %v16243_v26 = vcombine.low %v7426_v29, %v7430_v27  ;;  %v15797_v21 = vcombine.low %v6979_v32, %v6983_v14  ;;  %v6657_v59 = vrot.slane %v18116_v18, %v18830_v54  ;;  %v6947_v29 = vld [vmem:[#allocation2 + $0x1008] sm:$0xff]  ;;  %v6895_v32 = vpop.f32.mrf.mxu1 }
0x156c   :  { %10193 = vmatprep.subr.bf16.mxu1 %v16268_v46  ;;  %10230 = vmatprep.subr.bf16.mxu0 %v15822_v53  ;;  %v16236_v46 = vcombine.high %v7418_v2, %v7422_v58  ;;  %v15790_v53 = vcombine.high %v6971_v16, %v6975_v39  ;;  %v6951_v27 = vld [vmem:[#allocation2 + $0x1028] sm:$0xff]  ;;  %v6892_v58 = vadd.f32 %v6891_v7, %v18165_v0 }
0x156d   :  { %v6884_v2 = vadd.f32 %v18174_v38, %v6657_v59  ;;  %v15766_v18 = vcombine.high %v6947_v29, %v6951_v27  ;;  %v6896_v16 = vadd.f32 %v6895_v32, %v18165_v0  ;;  %v7071_v39 = vld [vmem:[#allocation2 + $0x13e8] sm:$0xff]  ;;  %v6890_v0 = vadd.f32 %v18200_v47, %v6657_v59 }
0x156e   :  { %10157 = vmatmul.mubr.bf16.vlgmr.msra.gmra.mxu0 %v18190_v9  ;;  %v7123_v7 = vld [vmem:[#allocation2 + $0x1588] sm:$0xff] }
0x156f   :  { %10194 = vmatpush2.bf16.msra.mxu1 %v16267_v1  ;;  %10231 = vmatpush1.bf16.msra.mxu0 %v15821_v23  ;;  %v15782_v1 = vcombine.high %v6963_v17, %v6967_v4  ;;  %v7402_v23 = vld [vmem:[#allocation2 + $0x1e40] sm:$0xff]  ;;  %v6912_v12 = vmax.f32 %v6884_v2, 0.0  ;;  %v7059_v17 = vld [vmem:[#allocation2 + $0x1388] sm:$0xff]  ;;  %v6921_v4 = vmax.f32 %v6892_v58, 0.0 }
0x1570   :  { %10195 = vmatprep.subr.bf16.mxu1 %v16260_v60  ;;  %10232 = vmatprep.subr.bf16.mxu0 %v15814_v3  ;;  %v7406_v60 = vld [vmem:[#allocation2 + $0x1e60] sm:$0xff]  ;;  %v6955_v3 = vld [vmem:[#allocation2 + $0x1048] sm:$0xff] }
0x1571   :  { %10166 = vmatprep.mubr.bf16.mxu0 %v18193_v19  ;;  %v16219_v14 = vcombine.low %v7402_v23, %v7406_v60  ;;  %v7111_v2 = vld [vmem:[#allocation2 + $0x1528] sm:$0xff] }
0x1573   :  { %10196 = vmatpush2.bf16.msra.mxu1 %v16259_v40  ;;  %10233 = vmatpush1.bf16.msra.mxu0 %v15813_v20  ;;  %v16220_v40 = vcombine.high %v7402_v23, %v7406_v60  ;;  %v15774_v20 = vcombine.high %v6955_v3, %v6959_v35 }
0x1574   :  { %10197 = vmatprep.subr.bf16.mxu1 %v16252_v36  ;;  %10234 = vmatprep.subr.bf16.mxu0 %v15806_v49  ;;  %v7394_v36 = vld [vmem:[#allocation2 + $0x1e00] sm:$0xff] }
0x1575   :  { %v7398_v49 = vld [vmem:[#allocation2 + $0x1e20] sm:$0xff] }
0x1576   :  { %10167 = vmatmul.mubr.bf16.gmra.mxu0 %v18197_v50 }
0x1577   :  { %10198 = vmatpush2.bf16.msra.mxu1 %v16251_v34  ;;  %10235 = vmatpush1.bf16.msra.mxu0 %v15805_v6  ;;  %v15773_v34 = vcombine.low %v6955_v3, %v6959_v35  ;;  %v16212_v6 = vcombine.high %v7394_v36, %v7398_v49 }
0x1578   :  { %10262 = vmatprep.mubr.bf16.mxu0 %v18124_v37  ;;  %10199 = vmatprep.subr.bf16.mxu1 %v16244_v55  ;;  %v6880_v55 = vadd.f32 %v18167_v8, %v6657_v59 }
0x1579   :  { %10236 = vmatprep.subr.bf16.mxu0 %v15798_v51  ;;  %v7067_v51 = vld [vmem:[#allocation2 + $0x13c8] sm:$0xff] }
0x157a   :  { %v6904_v57 = vmax.f32 %v6880_v55, 0.0  ;;  %v15886_v8 = vcombine.high %v7067_v51, %v7071_v39  ;;  %v15885_v23 = vcombine.low %v7067_v51, %v7071_v39  ;;  %v7107_v55 = vld [vmem:[#allocation2 + $0x1508] sm:$0xff] }
0x157b   :  { %10200 = vmatpush2.bf16.msra.mxu1 %v16243_v26  ;;  %10237 = vmatpush1.bf16.msra.mxu0 %v15797_v21  ;;  %v7131_v26 = vld [vmem:[#allocation2 + $0x15c8] sm:$0xff]  ;;  %v15926_v39 = vcombine.high %v7107_v55, %v7111_v2 }
0x157c   :  { %10201 = vmatprep.subr.bf16.mxu1 %v16236_v46  ;;  %10238 = vmatprep.subr.bf16.mxu0 %v15790_v53  ;;  %v7135_v21 = vld [vmem:[#allocation2 + $0x15e8] sm:$0xff]  ;;  %v16211_v46 = vcombine.low %v7394_v36, %v7398_v49  ;;  %v15765_v53 = vcombine.low %v6947_v29, %v6951_v27  ;;  %v18210_v3 = vpack.c.bf16 %v6912_v12, %v6904_v57  ;;  %v6920_v29 = vmax.f32 %v6890_v0, 0.0 }
0x157d   :  { %v15950_v38 = vcombine.high %v7131_v26, %v7135_v21  ;;  %v15949_v60 = vcombine.low %v7131_v26, %v7135_v21  ;;  %v7115_v36 = vld [vmem:[#allocation2 + $0x1548] sm:$0xff]  ;;  %v15925_v57 = vcombine.low %v7107_v55, %v7111_v2 }
0x157e   :  { %18831 = vst [vmem:[#allocation28_spill] sm:$0xff] %v18210_v3  ;;  %v7119_v49 = vld [vmem:[#allocation2 + $0x1568] sm:$0xff] }
0x157f   :  { %10202 = vmatpush2.bf16.msra.mxu1 %v16235_v48  ;;  %10239 = vmatpush1.bf16.msra.mxu0 %v15789_v62  ;;  %v6929_v48 = vmax.f32 %v6896_v16, 0.0  ;;  %v7063_v62 = vld [vmem:[#allocation2 + $0x13a8] sm:$0xff]  ;;  %v15934_v32 = vcombine.high %v7115_v36, %v7119_v49  ;;  %v15933_v51 = vcombine.low %v7115_v36, %v7119_v49 }
0x1580   :  { %10203 = vmatprep.subr.bf16.mxu1 %v16228_v5  ;;  %10240 = vmatprep.subr.bf16.mxu0 %v15782_v1  ;;  %v7127_v5 = vld [vmem:[#allocation2 + $0x15a8] sm:$0xff]  ;;  %v6894_v1 = vadd.f32 %v6893_v43, %v6657_v59  ;;  %v15878_v35 = vcombine.high %v7059_v17, %v7063_v62  ;;  %v15877_v47 = vcombine.low %v7059_v17, %v7063_v62 }
0x1581   :  { %v15941_v43 = vcombine.low %v7123_v7, %v7127_v5  ;;  %v7035_v16 = vld [vmem:[#allocation2 + $0x12c8] sm:$0xff] }
0x1582   :  { %v6928_v27 = vmax.f32 %v6894_v1, 0.0  ;;  %v7039_v26 = vld [vmem:[#allocation2 + $0x12e8] sm:$0xff] }
0x1583   :  { %10204 = vmatpush2.bf16.msra.mxu1 %v16227_v13  ;;  %10241 = vmatpush1.bf16.msra.mxu0 %v15781_v25  ;;  %v15942_v13 = vcombine.high %v7123_v7, %v7127_v5  ;;  %v7051_v25 = vld [vmem:[#allocation2 + $0x1348] sm:$0xff]  ;;  %v15854_v12 = vcombine.high %v7035_v16, %v7039_v26  ;;  %v15853_v62 = vcombine.low %v7035_v16, %v7039_v26 }
0x1584   :  { %10205 = vmatprep.subr.bf16.mxu1 %v16220_v40  ;;  %10242 = vmatprep.subr.bf16.mxu0 %v15774_v20  ;;  %v18212_v40 = vpack.c.bf16 %v6929_v48, %v6921_v4  ;;  %v7055_v20 = vld [vmem:[#allocation2 + $0x1368] sm:$0xff] }
0x1585   :  { %v15870_v59 = vcombine.high %v7051_v25, %v7055_v20  ;;  %v7099_v21 = vld [vmem:[#allocation2 + $0x14c8] sm:$0xff] }
0x1586   :  { %18832 = vst [vmem:[#allocation29_spill] sm:$0xff] %v18212_v40  ;;  %v7031_v17 = vld [vmem:[#allocation2 + $0x12a8] sm:$0xff] }
0x1587   :  { %10206 = vmatpush2.bf16.msra.mxu1 %v16219_v14  ;;  %10243 = vmatpush1.bf16.msra.mxu0 %v15773_v34  ;;  %v7043_v14 = vld [vmem:[#allocation2 + $0x1308] sm:$0xff] }
0x1588   :  { %10207 = vmatprep.subr.bf16.mxu1 %v16212_v6  ;;  %10244 = vmatprep.subr.bf16.mxu0 %v15766_v18  ;;  %v7047_v34 = vld [vmem:[#allocation2 + $0x1328] sm:$0xff]  ;;  %v18216_v6 = vpack.c.bf16 %v6928_v27, %v6920_v29  ;;  %v15869_v18 = vcombine.low %v7051_v25, %v7055_v20 }
0x1589   :  { %v15862_v58 = vcombine.high %v7043_v14, %v7047_v34  ;;  %v7091_v4 = vld [vmem:[#allocation2 + $0x1488] sm:$0xff] }
0x158a   :  { %18833 = vst [vmem:[#allocation30_spill] sm:$0xff] %v18216_v6  ;;  %v7095_v48 = vld [vmem:[#allocation2 + $0x14a8] sm:$0xff] }
0x158b   :  { %10208 = vmatpush2.bf16.msra.mxu1 %v16211_v46  ;;  %10245 = vmatpush1.bf16.msra.mxu0 %v15765_v53  ;;  %v7103_v46 = vld [vmem:[#allocation2 + $0x14e8] sm:$0xff]  ;;  %v15861_v53 = vcombine.low %v7043_v14, %v7047_v34  ;;  %v15910_v0 = vcombine.high %v7091_v4, %v7095_v48  ;;  %v15909_v25 = vcombine.low %v7091_v4, %v7095_v48 }
0x158c   :  { %10246 = vmatprep.subr.bf16.mxu0 %v15886_v8  ;;  %10283 = vmatprep.subr.bf16.mxu1 %v15950_v38  ;;  %v15918_v8 = vcombine.high %v7099_v21, %v7103_v46  ;;  %v7027_v38 = vld [vmem:[#allocation2 + $0x1288] sm:$0xff]  ;;  %v15917_v7 = vcombine.low %v7099_v21, %v7103_v46 }
0x158d   :  { %v15846_v5 = vcombine.high %v7027_v38, %v7031_v17  ;;  %v7019_v1 = vld [vmem:[#allocation2 + $0x1248] sm:$0xff] }
0x158e   :  { %10210 = vmatmul.mubr.bf16.vlgmr.msra.gmra.mxu1 %v18210_v3  ;;  %v7011_v49 = vld [vmem:[#allocation2 + $0x1208] sm:$0xff] }
0x158f   :  { %10247 = vmatpush2.bf16.msra.mxu0 %v15885_v23  ;;  %10284 = vmatpush1.bf16.msra.mxu1 %v15949_v60  ;;  %v7023_v23 = vld [vmem:[#allocation2 + $0x1268] sm:$0xff] }
0x1590   :  { %10248 = vmatprep.subr.bf16.mxu0 %v15878_v35  ;;  %10285 = vmatprep.subr.bf16.mxu1 %v15942_v13  ;;  %v7083_v60 = vld [vmem:[#allocation2 + $0x1448] sm:$0xff]  ;;  %v15845_v13 = vcombine.low %v7027_v38, %v7031_v17  ;;  %v15838_v20 = vcombine.high %v7019_v1, %v7023_v23 }
0x1591   :  { %10219 = vmatprep.mubr.bf16.mxu1 %v18212_v40  ;;  %v7087_v35 = vld [vmem:[#allocation2 + $0x1468] sm:$0xff] }
0x1592   :  { %v15902_v36 = vcombine.high %v7083_v60, %v7087_v35  ;;  %v7015_v29 = vld [vmem:[#allocation2 + $0x1228] sm:$0xff] }
0x1593   :  { %10249 = vmatpush2.bf16.msra.mxu0 %v15877_v47  ;;  %10286 = vmatpush1.bf16.msra.mxu1 %v15941_v43  ;;  %v7075_v27 = vld [vmem:[#allocation2 + $0x1408] sm:$0xff]  ;;  %v15837_v43 = vcombine.low %v7019_v1, %v7023_v23 }
0x1594   :  { %10250 = vmatprep.subr.bf16.mxu0 %v15870_v59  ;;  %10287 = vmatprep.subr.bf16.mxu1 %v15934_v32  ;;  %v7079_v47 = vld [vmem:[#allocation2 + $0x1428] sm:$0xff]  ;;  %v15901_v59 = vcombine.low %v7083_v60, %v7087_v35  ;;  %v15830_v32 = vcombine.high %v7011_v49, %v7015_v29 }
0x1595   :  { %v15894_v14 = vcombine.high %v7075_v27, %v7079_v47  ;;  %v7195_v34 = vld [vmem:[#allocation2 + $0x17c8] sm:$0xff] }
0x1596   :  { %10220 = vmatmul.mubr.bf16.gmra.mxu1 %v18216_v6  ;;  %v7199_v55 = vld [vmem:[#allocation2 + $0x17e8] sm:$0xff] }
0x1597   :  { %10251 = vmatpush2.bf16.msra.mxu0 %v15869_v18  ;;  %10288 = vmatpush1.bf16.msra.mxu1 %v15933_v51  ;;  %v7259_v2 = vld [vmem:[#allocation2 + $0x19c8] sm:$0xff]  ;;  %v15829_v51 = vcombine.low %v7011_v49, %v7015_v29  ;;  %v16014_v16 = vcombine.high %v7195_v34, %v7199_v55 }
0x1598   :  { %10315 = vmatprep.mubr.bf16.mxu1 %v18154_v31  ;;  %10252 = vmatprep.subr.bf16.mxu0 %v15862_v58  ;;  %v7263_v18 = vld [vmem:[#allocation2 + $0x19e8] sm:$0xff]  ;;  %v15893_v58 = vcombine.low %v7075_v27, %v7079_v47 }
0x1599   :  { %10289 = vmatprep.subr.bf16.mxu1 %v15926_v39  ;;  %v16078_v39 = vcombine.high %v7259_v2, %v7263_v18  ;;  %v7187_v26 = vld [vmem:[#allocation2 + $0x1788] sm:$0xff] }
0x159a   :  { %v7191_v21 = vld [vmem:[#allocation2 + $0x17a8] sm:$0xff] }
0x159b   :  { %10253 = vmatpush2.bf16.msra.mxu0 %v15861_v53  ;;  %10290 = vmatpush1.bf16.msra.mxu1 %v15925_v57  ;;  %v7251_v46 = vld [vmem:[#allocation2 + $0x1988] sm:$0xff]  ;;  %v16013_v57 = vcombine.low %v7195_v34, %v7199_v55 }
0x159c   :  { %10254 = vmatprep.subr.bf16.mxu0 %v15854_v12  ;;  %10291 = vmatprep.subr.bf16.mxu1 %v15918_v8  ;;  %v7255_v53 = vld [vmem:[#allocation2 + $0x19a8] sm:$0xff]  ;;  %v16077_v12 = vcombine.low %v7259_v2, %v7263_v18  ;;  %v16006_v8 = vcombine.high %v7187_v26, %v7191_v21 }
0x159d   :  { %v16070_v38 = vcombine.high %v7251_v46, %v7255_v53  ;;  %v7179_v17 = vld [vmem:[#allocation2 + $0x1748] sm:$0xff] }
0x159e   :  { %v7183_v4 = vld [vmem:[#allocation2 + $0x1768] sm:$0xff] }
0x159f   :  { %10255 = vmatpush2.bf16.msra.mxu0 %v15853_v62  ;;  %10292 = vmatpush1.bf16.msra.mxu1 %v15917_v7  ;;  %v7243_v48 = vld [vmem:[#allocation2 + $0x1948] sm:$0xff]  ;;  %v16005_v7 = vcombine.low %v7187_v26, %v7191_v21 }
0x15a0   :  { %10256 = vmatprep.subr.bf16.mxu0 %v15846_v5  ;;  %10293 = vmatprep.subr.bf16.mxu1 %v15910_v0  ;;  %v7247_v62 = vld [vmem:[#allocation2 + $0x1968] sm:$0xff]  ;;  %v16069_v5 = vcombine.low %v7251_v46, %v7255_v53  ;;  %v15998_v0 = vcombine.high %v7179_v17, %v7183_v4 }
0x15a1   :  { %v16062_v1 = vcombine.high %v7243_v48, %v7247_v62  ;;  %v7171_v23 = vld [vmem:[#allocation2 + $0x1708] sm:$0xff] }
0x15a2   :  { %v7175_v60 = vld [vmem:[#allocation2 + $0x1728] sm:$0xff] }
0x15a3   :  { %10257 = vmatpush2.bf16.msra.mxu0 %v15845_v13  ;;  %10294 = vmatpush1.bf16.msra.mxu1 %v15909_v25  ;;  %v7235_v35 = vld [vmem:[#allocation2 + $0x1908] sm:$0xff]  ;;  %v15997_v25 = vcombine.low %v7179_v17, %v7183_v4 }
0x15a4   :  { %10258 = vmatprep.subr.bf16.mxu0 %v15838_v20  ;;  %10295 = vmatprep.subr.bf16.mxu1 %v15902_v36  ;;  %v7239_v13 = vld [vmem:[#allocation2 + $0x1928] sm:$0xff]  ;;  %v16061_v20 = vcombine.low %v7243_v48, %v7247_v62  ;;  %v15990_v36 = vcombine.high %v7171_v23, %v7175_v60 }
0x15a5   :  { %v16054_v49 = vcombine.high %v7235_v35, %v7239_v13  ;;  %v7163_v29 = vld [vmem:[#allocation2 + $0x16c8] sm:$0xff] }
0x15a6   :  { %v7167_v27 = vld [vmem:[#allocation2 + $0x16e8] sm:$0xff] }
0x15a7   :  { %10259 = vmatpush2.bf16.msra.mxu0 %v15837_v43  ;;  %10296 = vmatpush1.bf16.msra.mxu1 %v15901_v59  ;;  %v7227_v47 = vld [vmem:[#allocation2 + $0x18c8] sm:$0xff]  ;;  %v15989_v59 = vcombine.low %v7171_v23, %v7175_v60 }
0x15a8   :  { %10260 = vmatprep.subr.bf16.mxu0 %v15830_v32  ;;  %10297 = vmatprep.subr.bf16.mxu1 %v15894_v14  ;;  %v7231_v43 = vld [vmem:[#allocation2 + $0x18e8] sm:$0xff]  ;;  %v16053_v32 = vcombine.low %v7235_v35, %v7239_v13  ;;  %v15982_v14 = vcombine.high %v7163_v29, %v7167_v27 }
0x15a9   :  { %v16046_v34 = vcombine.high %v7227_v47, %v7231_v43  ;;  %v7155_v55 = vld [vmem:[#allocation2 + $0x1688] sm:$0xff] }
0x15aa   :  { %v7159_v2 = vld [vmem:[#allocation2 + $0x16a8] sm:$0xff] }
0x15ab   :  { %10261 = vmatpush2.bf16.msra.mxu0 %v15829_v51  ;;  %10298 = vmatpush1.bf16.msra.mxu1 %v15893_v58  ;;  %v7219_v18 = vld [vmem:[#allocation2 + $0x1888] sm:$0xff]  ;;  %v15981_v58 = vcombine.low %v7163_v29, %v7167_v27 }
0x15ac   :  { %10299 = vmatprep.subr.bf16.mxu1 %v16014_v16  ;;  %10336 = vmatprep.subr.bf16.mxu0 %v16078_v39  ;;  %v7223_v51 = vld [vmem:[#allocation2 + $0x18a8] sm:$0xff]  ;;  %v16045_v16 = vcombine.low %v7227_v47, %v7231_v43  ;;  %v15974_v39 = vcombine.high %v7155_v55, %v7159_v2 }
0x15ad   :  { %v16038_v26 = vcombine.high %v7219_v18, %v7223_v51  ;;  %v7147_v21 = vld [vmem:[#allocation2 + $0x1648] sm:$0xff] }
0x15ae   :  { %10263 = vmatmul.mubr.bf16.vlgmr.msra.gmra.mxu0 %v18122_v11  ;;  %v7151_v46 = vld [vmem:[#allocation2 + $0x1668] sm:$0xff] }
0x15af   :  { %10272 = vmatprep.mubr.bf16.mxu0 %v18139_v56  ;;  %10300 = vmatpush2.bf16.msra.mxu1 %v16013_v57  ;;  %v7211_v53 = vld [vmem:[#allocation2 + $0x1848] sm:$0xff] }
0x15b0   :  { %10337 = vmatpush1.bf16.msra.mxu0 %v16077_v12  ;;  %10301 = vmatprep.subr.bf16.mxu1 %v16006_v8  ;;  %v7215_v57 = vld [vmem:[#allocation2 + $0x1868] sm:$0xff]  ;;  %v15973_v12 = vcombine.low %v7155_v55, %v7159_v2  ;;  %v16037_v8 = vcombine.low %v7219_v18, %v7223_v51 }
0x15b1   :  { %10338 = vmatprep.subr.bf16.mxu0 %v16070_v38  ;;  %v15966_v38 = vcombine.high %v7147_v21, %v7151_v46  ;;  %v16030_v17 = vcombine.high %v7211_v53, %v7215_v57  ;;  %v7139_v4 = vld [vmem:[#allocation2 + $0x1608] sm:$0xff] }
0x15b2   :  { %v7143_v48 = vld [vmem:[#allocation2 + $0x1628] sm:$0xff] }
0x15b3   :  { %10302 = vmatpush2.bf16.msra.mxu1 %v16005_v7  ;;  %v7203_v62 = vld [vmem:[#allocation2 + $0x1808] sm:$0xff] }
0x15b4   :  { %10339 = vmatpush1.bf16.msra.mxu0 %v16069_v5  ;;  %10303 = vmatprep.subr.bf16.mxu1 %v15998_v0  ;;  %v7207_v7 = vld [vmem:[#allocation2 + $0x1828] sm:$0xff]  ;;  %v15965_v5 = vcombine.low %v7147_v21, %v7151_v46  ;;  %v16029_v0 = vcombine.low %v7211_v53, %v7215_v57 }
0x15b5   :  { %10340 = vmatprep.subr.bf16.mxu0 %v16062_v1  ;;  %v15958_v1 = vcombine.high %v7139_v4, %v7143_v48  ;;  %v16022_v23 = vcombine.high %v7203_v62, %v7207_v7  ;;  %v7387_v60 = vld [vmem:[#allocation2 + $0x1dc8] sm:$0xff] }
0x15b6   :  { %10273 = vmatmul.mubr.bf16.gmra.mxu0 %v18137_v24  ;;  %v7391_v35 = vld [vmem:[#allocation2 + $0x1de8] sm:$0xff] }
0x15b7   :  { %10304 = vmatpush2.bf16.msra.mxu1 %v15997_v25  ;;  %10368 = vmatprep.mubr.bf16.mxu0 %v18147_v52  ;;  %v7323_v13 = vld [vmem:[#allocation2 + $0x1bc8] sm:$0xff] }
0x15b8   :  { %10341 = vmatpush1.bf16.msra.mxu0 %v16061_v20  ;;  %10305 = vmatprep.subr.bf16.mxu1 %v15990_v36  ;;  %v7327_v25 = vld [vmem:[#allocation2 + $0x1be8] sm:$0xff]  ;;  %v15957_v20 = vcombine.low %v7139_v4, %v7143_v48  ;;  %v16021_v36 = vcombine.low %v7203_v62, %v7207_v7 }
0x15b9   :  { %10342 = vmatprep.subr.bf16.mxu0 %v16054_v49  ;;  %v16206_v49 = vcombine.high %v7387_v60, %v7391_v35  ;;  %v16142_v29 = vcombine.high %v7323_v13, %v7327_v25  ;;  %v7379_v27 = vld [vmem:[#allocation2 + $0x1d88] sm:$0xff] }
0x15ba   :  { %v7383_v47 = vld [vmem:[#allocation2 + $0x1da8] sm:$0xff] }
0x15bb   :  { %10306 = vmatpush2.bf16.msra.mxu1 %v15989_v59  ;;  %v7315_v43 = vld [vmem:[#allocation2 + $0x1b88] sm:$0xff] }
0x15bc   :  { %10343 = vmatpush1.bf16.msra.mxu0 %v16053_v32  ;;  %10307 = vmatprep.subr.bf16.mxu1 %v15982_v14  ;;  %v7319_v59 = vld [vmem:[#allocation2 + $0x1ba8] sm:$0xff]  ;;  %v16205_v32 = vcombine.low %v7387_v60, %v7391_v35  ;;  %v16141_v14 = vcombine.low %v7323_v13, %v7327_v25 }
0x15bd   :  { %10344 = vmatprep.subr.bf16.mxu0 %v16046_v34  ;;  %v16198_v34 = vcombine.high %v7379_v27, %v7383_v47  ;;  %v16134_v55 = vcombine.high %v7315_v43, %v7319_v59  ;;  %v7371_v2 = vld [vmem:[#allocation2 + $0x1d48] sm:$0xff] }
0x15be   :  { %v7375_v18 = vld [vmem:[#allocation2 + $0x1d68] sm:$0xff] }
0x15bf   :  { %10308 = vmatpush2.bf16.msra.mxu1 %v15981_v58  ;;  %v7307_v51 = vld [vmem:[#allocation2 + $0x1b48] sm:$0xff] }
0x15c0   :  { %10345 = vmatpush1.bf16.msra.mxu0 %v16045_v16  ;;  %10309 = vmatprep.subr.bf16.mxu1 %v15974_v39  ;;  %v7311_v58 = vld [vmem:[#allocation2 + $0x1b68] sm:$0xff]  ;;  %v16197_v16 = vcombine.low %v7379_v27, %v7383_v47  ;;  %v16133_v39 = vcombine.low %v7315_v43, %v7319_v59 }
0x15c1   :  { %10346 = vmatprep.subr.bf16.mxu0 %v16038_v26  ;;  %v16190_v26 = vcombine.high %v7371_v2, %v7375_v18  ;;  %v16126_v21 = vcombine.high %v7307_v51, %v7311_v58  ;;  %v7363_v46 = vld [vmem:[#allocation2 + $0x1d08] sm:$0xff] }
0x15c2   :  { %v7367_v53 = vld [vmem:[#allocation2 + $0x1d28] sm:$0xff] }
0x15c3   :  { %10310 = vmatpush2.bf16.msra.mxu1 %v15973_v12  ;;  %v7299_v57 = vld [vmem:[#allocation2 + $0x1b08] sm:$0xff] }
0x15c4   :  { %10347 = vmatpush1.bf16.msra.mxu0 %v16037_v8  ;;  %10311 = vmatprep.subr.bf16.mxu1 %v15966_v38  ;;  %v7303_v12 = vld [vmem:[#allocation2 + $0x1b28] sm:$0xff]  ;;  %v16189_v8 = vcombine.low %v7371_v2, %v7375_v18  ;;  %v16125_v38 = vcombine.low %v7307_v51, %v7311_v58 }
0x15c5   :  { %10348 = vmatprep.subr.bf16.mxu0 %v16030_v17  ;;  %v16182_v17 = vcombine.high %v7363_v46, %v7367_v53  ;;  %v16118_v4 = vcombine.high %v7299_v57, %v7303_v12  ;;  %v7355_v48 = vld [vmem:[#allocation2 + $0x1cc8] sm:$0xff] }
0x15c6   :  { %v7359_v62 = vld [vmem:[#allocation2 + $0x1ce8] sm:$0xff] }
0x15c7   :  { %10312 = vmatpush2.bf16.msra.mxu1 %v15965_v5  ;;  %v7291_v7 = vld [vmem:[#allocation2 + $0x1ac8] sm:$0xff] }
0x15c8   :  { %10349 = vmatpush1.bf16.msra.mxu0 %v16029_v0  ;;  %10313 = vmatprep.subr.bf16.mxu1 %v15958_v1  ;;  %v7295_v5 = vld [vmem:[#allocation2 + $0x1ae8] sm:$0xff]  ;;  %v16181_v0 = vcombine.low %v7363_v46, %v7367_v53  ;;  %v16117_v1 = vcombine.low %v7299_v57, %v7303_v12  ;;  %v7004_v12 = vld [vmem:[#allocation2 + $0x11d0] sm:$0xff] }
0x15c9   :  { %10350 = vmatprep.subr.bf16.mxu0 %v16022_v23  ;;  %v16174_v23 = vcombine.high %v7355_v48, %v7359_v62  ;;  %v16110_v60 = vcombine.high %v7291_v7, %v7295_v5  ;;  %v7347_v35 = vld [vmem:[#allocation2 + $0x1c88] sm:$0xff] }
0x15ca   :  { %v7351_v13 = vld [vmem:[#allocation2 + $0x1ca8] sm:$0xff] }
0x15cb   :  { %10314 = vmatpush2.bf16.msra.mxu1 %v15957_v20  ;;  %v7283_v25 = vld [vmem:[#allocation2 + $0x1a88] sm:$0xff] }
0x15cc   :  { %10351 = vmatpush1.bf16.msra.mxu0 %v16021_v36  ;;  %10389 = vmatprep.subr.bf16.mxu1 %v16206_v49  ;;  %v7287_v20 = vld [vmem:[#allocation2 + $0x1aa8] sm:$0xff]  ;;  %v16173_v36 = vcombine.low %v7355_v48, %v7359_v62  ;;  %v16109_v49 = vcombine.low %v7291_v7, %v7295_v5  ;;  %v6996_v5 = vld [vmem:[#allocation2 + $0x1190] sm:$0xff] }
0x15cd   :  { %10352 = vmatprep.subr.bf16.mxu0 %v16142_v29  ;;  %v16166_v29 = vcombine.high %v7347_v35, %v7351_v13  ;;  %v16102_v27 = vcombine.high %v7283_v25, %v7287_v20  ;;  %v7339_v47 = vld [vmem:[#allocation2 + $0x1c48] sm:$0xff] }
0x15ce   :  { %10316 = vmatmul.mubr.bf16.vlgmr.msra.gmra.mxu1 %v18156_v10  ;;  %v7343_v43 = vld [vmem:[#allocation2 + $0x1c68] sm:$0xff] }
0x15cf   :  { %10325 = vmatprep.mubr.bf16.mxu1 %v18171_v22  ;;  %10390 = vmatpush1.bf16.msra.mxu1 %v16205_v32  ;;  %v7275_v59 = vld [vmem:[#allocation2 + $0x1a48] sm:$0xff] }
0x15d0   :  { %10353 = vmatpush2.bf16.msra.mxu0 %v16141_v14  ;;  %10391 = vmatprep.subr.bf16.mxu1 %v16198_v34  ;;  %v7279_v32 = vld [vmem:[#allocation2 + $0x1a68] sm:$0xff]  ;;  %v16165_v14 = vcombine.low %v7347_v35, %v7351_v13  ;;  %v16101_v34 = vcombine.low %v7283_v25, %v7287_v20  ;;  %v6988_v20 = vld [vmem:[#allocation2 + $0x1150] sm:$0xff] }
0x15d1   :  { %10354 = vmatprep.subr.bf16.mxu0 %v16134_v55  ;;  %v16158_v55 = vcombine.high %v7339_v47, %v7343_v43  ;;  %v16094_v2 = vcombine.high %v7275_v59, %v7279_v32  ;;  %v7331_v18 = vld [vmem:[#allocation2 + $0x1c08] sm:$0xff] }
0x15d2   :  { %v7335_v51 = vld [vmem:[#allocation2 + $0x1c28] sm:$0xff] }
0x15d3   :  { %10392 = vmatpush1.bf16.msra.mxu1 %v16197_v16  ;;  %v7267_v58 = vld [vmem:[#allocation2 + $0x1a08] sm:$0xff] }
0x15d4   :  { %10355 = vmatpush2.bf16.msra.mxu0 %v16133_v39  ;;  %10393 = vmatprep.subr.bf16.mxu1 %v16190_v26  ;;  %v7271_v16 = vld [vmem:[#allocation2 + $0x1a28] sm:$0xff]  ;;  %v16157_v39 = vcombine.low %v7339_v47, %v7343_v43  ;;  %v16093_v26 = vcombine.low %v7275_v59, %v7279_v32  ;;  %v6980_v32 = vld [vmem:[#allocation2 + $0x1110] sm:$0xff] }
0x15d5   :  { %10356 = vmatprep.subr.bf16.mxu0 %v16126_v21  ;;  %v16150_v21 = vcombine.high %v7331_v18, %v7335_v51  ;;  %v16086_v46 = vcombine.high %v7267_v58, %v7271_v16  ;;  %v7451_v53 = vld [vmem:[#allocation2 + $0x1fc8] sm:$0xff] }
0x15d6   :  { %10326 = vmatmul.mubr.bf16.gmra.mxu1 %v18169_v15  ;;  %v7455_v57 = vld [vmem:[#allocation2 + $0x1fe8] sm:$0xff] }
0x15d7   :  { %10394 = vmatpush1.bf16.msra.mxu1 %v16189_v8  ;;  %10421 = vmatprep.mubr.bf16.mxu1 %v18181_v61  ;;  %v7008_v8 = vld [vmem:[#allocation2 + $0x11f0] sm:$0xff]  ;;  %v7443_v62 = vld [vmem:[#allocation2 + $0x1f88] sm:$0xff] }
0x15d8   :  { %10357 = vmatpush2.bf16.msra.mxu0 %v16125_v38  ;;  %10395 = vmatprep.subr.bf16.mxu1 %v16182_v17  ;;  %v16149_v38 = vcombine.low %v7331_v18, %v7335_v51  ;;  %v16085_v17 = vcombine.low %v7267_v58, %v7271_v16  ;;  %v15824_v48 = vcombine.high %v7004_v12, %v7008_v8  ;;  %v7447_v7 = vld [vmem:[#allocation2 + $0x1fa8] sm:$0xff]  ;;  %v6972_v16 = vld [vmem:[#allocation2 + $0x10d0] sm:$0xff] }
0x15d9   :  { %10358 = vmatprep.subr.bf16.mxu0 %v16118_v4  ;;  %v16270_v4 = vcombine.high %v7451_v53, %v7455_v57  ;;  %v7435_v13 = vld [vmem:[#allocation2 + $0x1f48] sm:$0xff] }
0x15da   :  { %v7439_v25 = vld [vmem:[#allocation2 + $0x1f68] sm:$0xff] }
0x15db   :  { %10396 = vmatpush1.bf16.msra.mxu1 %v16181_v0  ;;  %v7000_v0 = vld [vmem:[#allocation2 + $0x11b0] sm:$0xff]  ;;  %v7427_v43 = vld [vmem:[#allocation2 + $0x1f08] sm:$0xff] }
0x15dc   :  { %10359 = vmatpush2.bf16.msra.mxu0 %v16117_v1  ;;  %10397 = vmatprep.subr.bf16.mxu1 %v16174_v23  ;;  %v16269_v1 = vcombine.low %v7451_v53, %v7455_v57  ;;  %v15823_v23 = vcombine.low %v7004_v12, %v7008_v8  ;;  %v15816_v35 = vcombine.high %v6996_v5, %v7000_v0  ;;  %v7431_v59 = vld [vmem:[#allocation2 + $0x1f28] sm:$0xff]  ;;  %v6964_v8 = vld [vmem:[#allocation2 + $0x1090] sm:$0xff] }
0x15dd   :  { %10360 = vmatprep.subr.bf16.mxu0 %v16110_v60  ;;  %v16262_v60 = vcombine.high %v7443_v62, %v7447_v7  ;;  %v7419_v51 = vld [vmem:[#allocation2 + $0x1ec8] sm:$0xff] }
0x15de   :  { %v7423_v58 = vld [vmem:[#allocation2 + $0x1ee8] sm:$0xff] }
0x15df   :  { %10398 = vmatpush1.bf16.msra.mxu1 %v16173_v36  ;;  %v6992_v36 = vld [vmem:[#allocation2 + $0x1170] sm:$0xff]  ;;  %v7411_v57 = vld [vmem:[#allocation2 + $0x1e88] sm:$0xff] }
0x15e0   :  { %10361 = vmatpush2.bf16.msra.mxu0 %v16109_v49  ;;  %10399 = vmatprep.subr.bf16.mxu1 %v16166_v29  ;;  %v16261_v49 = vcombine.low %v7443_v62, %v7447_v7  ;;  %v15815_v29 = vcombine.low %v6996_v5, %v7000_v0  ;;  %v15808_v47 = vcombine.high %v6988_v20, %v6992_v36  ;;  %v7415_v12 = vld [vmem:[#allocation2 + $0x1ea8] sm:$0xff]  ;;  %v6956_v0 = vld [vmem:[#allocation2 + $0x1050] sm:$0xff] }
0x15e1   :  { %10362 = vmatprep.subr.bf16.mxu0 %v16102_v27  ;;  %v16254_v27 = vcombine.high %v7435_v13, %v7439_v25  ;;  %v7403_v7 = vld [vmem:[#allocation2 + $0x1e48] sm:$0xff] }
0x15e2   :  { %v7407_v5 = vld [vmem:[#allocation2 + $0x1e68] sm:$0xff] }
0x15e3   :  { %10400 = vmatpush1.bf16.msra.mxu1 %v16165_v14  ;;  %v6984_v14 = vld [vmem:[#allocation2 + $0x1130] sm:$0xff] }
0x15e4   :  { %10363 = vmatpush2.bf16.msra.mxu0 %v16101_v34  ;;  %10401 = vmatprep.subr.bf16.mxu1 %v16158_v55  ;;  %v16253_v34 = vcombine.low %v7435_v13, %v7439_v25  ;;  %v15807_v55 = vcombine.low %v6988_v20, %v6992_v36  ;;  %v15800_v18 = vcombine.high %v6980_v32, %v6984_v14  ;;  %v7395_v25 = vld [vmem:[#allocation2 + $0x1e08] sm:$0xff]  ;;  %v6948_v36 = vld [vmem:[#allocation2 + $0x1010] sm:$0xff] }
0x15e5   :  { %10364 = vmatprep.subr.bf16.mxu0 %v16094_v2  ;;  %v16246_v2 = vcombine.high %v7427_v43, %v7431_v59  ;;  %v7399_v20 = vld [vmem:[#allocation2 + $0x1e28] sm:$0xff] }
0x15e7   :  { %10402 = vmatpush1.bf16.msra.mxu1 %v16157_v39  ;;  %v6976_v39 = vld [vmem:[#allocation2 + $0x10f0] sm:$0xff] }
0x15e8   :  { %10365 = vmatpush2.bf16.msra.mxu0 %v16093_v26  ;;  %10403 = vmatprep.subr.bf16.mxu1 %v16150_v21  ;;  %v16245_v26 = vcombine.low %v7427_v43, %v7431_v59  ;;  %v15799_v21 = vcombine.low %v6980_v32, %v6984_v14  ;;  %v15792_v53 = vcombine.high %v6972_v16, %v6976_v39  ;;  %v7132_v59 = vld [vmem:[#allocation2 + $0x15d0] sm:$0xff] }
0x15e9   :  { %10366 = vmatprep.subr.bf16.mxu0 %v16086_v46  ;;  %v16238_v46 = vcombine.high %v7419_v51, %v7423_v58  ;;  %v7136_v32 = vld [vmem:[#allocation2 + $0x15f0] sm:$0xff] }
0x15ea   :  { %v7068_v14 = vld [vmem:[#allocation2 + $0x13d0] sm:$0xff] }
0x15eb   :  { %10404 = vmatpush1.bf16.msra.mxu1 %v16149_v38  ;;  %v6968_v38 = vld [vmem:[#allocation2 + $0x10b0] sm:$0xff] }
0x15ec   :  { %10367 = vmatpush2.bf16.msra.mxu0 %v16085_v17  ;;  %10405 = vmatprep.subr.bf16.mxu1 %v16270_v4  ;;  %v16237_v17 = vcombine.low %v7419_v51, %v7423_v58  ;;  %v15791_v4 = vcombine.low %v6972_v16, %v6976_v39  ;;  %v15784_v62 = vcombine.high %v6964_v8, %v6968_v38  ;;  %v7124_v58 = vld [vmem:[#allocation2 + $0x1590] sm:$0xff] }
0x15ed   :  { %10442 = vmatprep.subr.bf16.mxu0 %v15824_v48  ;;  %v16230_v48 = vcombine.high %v7411_v57, %v7415_v12  ;;  %v7128_v16 = vld [vmem:[#allocation2 + $0x15b0] sm:$0xff] }
0x15ee   :  { %v7060_v39 = vld [vmem:[#allocation2 + $0x1390] sm:$0xff] }
0x15ef   :  { %10369 = vmatmul.mubr.bf16.vlgmr.msra.gmra.mxu0 %v18190_v9  ;;  %10406 = vmatpush2.bf16.msra.mxu1 %v16269_v1  ;;  %v6960_v1 = vld [vmem:[#allocation2 + $0x1070] sm:$0xff] }
0x15f0   :  { %10378 = vmatprep.mubr.bf16.mxu0 %v18193_v19  ;;  %10443 = vmatpush1.bf16.msra.mxu0 %v15823_v23  ;;  %v16229_v23 = vcombine.low %v7411_v57, %v7415_v12  ;;  %v15776_v13 = vcombine.high %v6956_v0, %v6960_v1  ;;  %v7116_v12 = vld [vmem:[#allocation2 + $0x1550] sm:$0xff] }
0x15f1   :  { %10407 = vmatprep.subr.bf16.mxu1 %v16262_v60  ;;  %10444 = vmatprep.subr.bf16.mxu0 %v15816_v35  ;;  %v15783_v60 = vcombine.low %v6964_v8, %v6968_v38  ;;  %v16222_v35 = vcombine.high %v7403_v7, %v7407_v5  ;;  %v7120_v8 = vld [vmem:[#allocation2 + $0x1570] sm:$0xff] }
0x15f2   :  { %v7052_v38 = vld [vmem:[#allocation2 + $0x1350] sm:$0xff] }
0x15f3   :  { %10408 = vmatpush2.bf16.msra.mxu1 %v16261_v49  ;;  %v6952_v49 = vld [vmem:[#allocation2 + $0x1030] sm:$0xff] }
0x15f4   :  { %10445 = vmatpush1.bf16.msra.mxu0 %v15815_v29  ;;  %10409 = vmatprep.subr.bf16.mxu1 %v16254_v27  ;;  %v16221_v29 = vcombine.low %v7403_v7, %v7407_v5  ;;  %v15775_v27 = vcombine.low %v6956_v0, %v6960_v1  ;;  %v15768_v43 = vcombine.high %v6948_v36, %v6952_v49  ;;  %v7108_v5 = vld [vmem:[#allocation2 + $0x1510] sm:$0xff] }
0x15f5   :  { %10446 = vmatprep.subr.bf16.mxu0 %v15808_v47  ;;  %v16214_v47 = vcombine.high %v7395_v25, %v7399_v20  ;;  %v7112_v0 = vld [vmem:[#allocation2 + $0x1530] sm:$0xff] }
0x15f6   :  { %v7044_v1 = vld [vmem:[#allocation2 + $0x1310] sm:$0xff] }
0x15f7   :  { %10379 = vmatmul.mubr.bf16.gmra.mxu0 %v18197_v50  ;;  %10410 = vmatpush2.bf16.msra.mxu1 %v16253_v34  ;;  %v7072_v34 = vld [vmem:[#allocation2 + $0x13f0] sm:$0xff] }
0x15f8   :  { %10447 = vmatpush1.bf16.msra.mxu0 %v15807_v55  ;;  %10474 = vmatprep.mubr.bf16.mxu0 %v18124_v37  ;;  %v16213_v55 = vcombine.low %v7395_v25, %v7399_v20  ;;  %v15888_v51 = vcombine.high %v7068_v14, %v7072_v34  ;;  %v7100_v20 = vld [vmem:[#allocation2 + $0x14d0] sm:$0xff] }
0x15f9   :  { %10411 = vmatprep.subr.bf16.mxu1 %v16246_v2  ;;  %10448 = vmatprep.subr.bf16.mxu0 %v15800_v18  ;;  %v15767_v2 = vcombine.low %v6948_v36, %v6952_v49  ;;  %v15952_v18 = vcombine.high %v7132_v59, %v7136_v32  ;;  %v7104_v36 = vld [vmem:[#allocation2 + $0x14f0] sm:$0xff] }
0x15fa   :  { %v7036_v49 = vld [vmem:[#allocation2 + $0x12d0] sm:$0xff] }
0x15fb   :  { %10412 = vmatpush2.bf16.msra.mxu1 %v16245_v26  ;;  %v7064_v26 = vld [vmem:[#allocation2 + $0x13b0] sm:$0xff] }
0x15fc   :  { %10449 = vmatpush1.bf16.msra.mxu0 %v15799_v21  ;;  %10413 = vmatprep.subr.bf16.mxu1 %v16238_v46  ;;  %v15951_v21 = vcombine.low %v7132_v59, %v7136_v32  ;;  %v15887_v46 = vcombine.low %v7068_v14, %v7072_v34  ;;  %v15880_v57 = vcombine.high %v7060_v39, %v7064_v26  ;;  %v7092_v32 = vld [vmem:[#allocation2 + $0x1490] sm:$0xff] }
0x15fd   :  { %10450 = vmatprep.subr.bf16.mxu0 %v15792_v53  ;;  %v15944_v53 = vcombine.high %v7124_v58, %v7128_v16  ;;  %v7096_v14 = vld [vmem:[#allocation2 + $0x14b0] sm:$0xff] }
0x15fe   :  { %v7028_v34 = vld [vmem:[#allocation2 + $0x1290] sm:$0xff] }
0x15ff   :  { %10414 = vmatpush2.bf16.msra.mxu1 %v16237_v17  ;;  %v7056_v17 = vld [vmem:[#allocation2 + $0x1370] sm:$0xff] }
0x1600   :  { %10451 = vmatpush1.bf16.msra.mxu0 %v15791_v4  ;;  %10415 = vmatprep.subr.bf16.mxu1 %v16230_v48  ;;  %v15943_v4 = vcombine.low %v7124_v58, %v7128_v16  ;;  %v15879_v48 = vcombine.low %v7060_v39, %v7064_v26  ;;  %v15872_v7 = vcombine.high %v7052_v38, %v7056_v17  ;;  %v7084_v16 = vld [vmem:[#allocation2 + $0x1450] sm:$0xff] }
0x1601   :  { %10452 = vmatprep.subr.bf16.mxu0 %v15784_v62  ;;  %v15936_v62 = vcombine.high %v7116_v12, %v7120_v8  ;;  %v7088_v39 = vld [vmem:[#allocation2 + $0x1470] sm:$0xff] }
0x1602   :  { %v7020_v26 = vld [vmem:[#allocation2 + $0x1250] sm:$0xff] }
0x1603   :  { %10416 = vmatpush2.bf16.msra.mxu1 %v16229_v23  ;;  %v7048_v23 = vld [vmem:[#allocation2 + $0x1330] sm:$0xff] }
0x1604   :  { %10453 = vmatpush1.bf16.msra.mxu0 %v15783_v60  ;;  %10417 = vmatprep.subr.bf16.mxu1 %v16222_v35  ;;  %v15935_v60 = vcombine.low %v7116_v12, %v7120_v8  ;;  %v15871_v35 = vcombine.low %v7052_v38, %v7056_v17  ;;  %v15864_v25 = vcombine.high %v7044_v1, %v7048_v23  ;;  %v7076_v8 = vld [vmem:[#allocation2 + $0x1410] sm:$0xff] }
0x1605   :  { %10454 = vmatprep.subr.bf16.mxu0 %v15776_v13  ;;  %v15928_v13 = vcombine.high %v7108_v5, %v7112_v0  ;;  %v7080_v38 = vld [vmem:[#allocation2 + $0x1430] sm:$0xff] }
0x1606   :  { %v7012_v17 = vld [vmem:[#allocation2 + $0x1210] sm:$0xff] }
0x1607   :  { %10418 = vmatpush2.bf16.msra.mxu1 %v16221_v29  ;;  %v7040_v29 = vld [vmem:[#allocation2 + $0x12f0] sm:$0xff] }
0x1608   :  { %10455 = vmatpush1.bf16.msra.mxu0 %v15775_v27  ;;  %10419 = vmatprep.subr.bf16.mxu1 %v16214_v47  ;;  %v15927_v27 = vcombine.low %v7108_v5, %v7112_v0  ;;  %v15863_v47 = vcombine.low %v7044_v1, %v7048_v23  ;;  %v15856_v59 = vcombine.high %v7036_v49, %v7040_v29  ;;  %v7196_v0 = vld [vmem:[#allocation2 + $0x17d0] sm:$0xff] }
0x1609   :  { %10456 = vmatprep.subr.bf16.mxu0 %v15768_v43  ;;  %v15920_v43 = vcombine.high %v7100_v20, %v7104_v36  ;;  %v7200_v1 = vld [vmem:[#allocation2 + $0x17f0] sm:$0xff] }
0x160a   :  { %v7260_v23 = vld [vmem:[#allocation2 + $0x19d0] sm:$0xff] }
0x160b   :  { %10420 = vmatpush2.bf16.msra.mxu1 %v16213_v55  ;;  %v7032_v55 = vld [vmem:[#allocation2 + $0x12b0] sm:$0xff] }
0x160c   :  { %10457 = vmatpush1.bf16.msra.mxu0 %v15767_v2  ;;  %10495 = vmatprep.subr.bf16.mxu1 %v15952_v18  ;;  %v15919_v2 = vcombine.low %v7100_v20, %v7104_v36  ;;  %v15855_v18 = vcombine.low %v7036_v49, %v7040_v29  ;;  %v15848_v58 = vcombine.high %v7028_v34, %v7032_v55  ;;  %v7188_v36 = vld [vmem:[#allocation2 + $0x1790] sm:$0xff] }
0x160d   :  { %10458 = vmatprep.subr.bf16.mxu0 %v15888_v51  ;;  %v15912_v51 = vcombine.high %v7092_v32, %v7096_v14  ;;  %v7192_v49 = vld [vmem:[#allocation2 + $0x17b0] sm:$0xff] }
0x160e   :  { %10422 = vmatmul.mubr.bf16.vlgmr.msra.gmra.mxu1 %v18210_v3  ;;  %v7252_v29 = vld [vmem:[#allocation2 + $0x1990] sm:$0xff] }
0x160f   :  { %10431 = vmatprep.mubr.bf16.mxu1 %v18212_v40  ;;  %10496 = vmatpush1.bf16.msra.mxu1 %v15951_v21  ;;  %v7024_v21 = vld [vmem:[#allocation2 + $0x1270] sm:$0xff] }
0x1610   :  { %10459 = vmatpush2.bf16.msra.mxu0 %v15887_v46  ;;  %10497 = vmatprep.subr.bf16.mxu1 %v15944_v53  ;;  %v15911_v46 = vcombine.low %v7092_v32, %v7096_v14  ;;  %v15847_v53 = vcombine.low %v7028_v34, %v7032_v55  ;;  %v15840_v12 = vcombine.high %v7020_v26, %v7024_v21  ;;  %v7180_v14 = vld [vmem:[#allocation2 + $0x1750] sm:$0xff] }
0x1611   :  { %10460 = vmatprep.subr.bf16.mxu0 %v15880_v57  ;;  %v15904_v57 = vcombine.high %v7084_v16, %v7088_v39  ;;  %v7184_v34 = vld [vmem:[#allocation2 + $0x1770] sm:$0xff] }
0x1612   :  { %v7244_v55 = vld [vmem:[#allocation2 + $0x1950] sm:$0xff] }
0x1613   :  { %10498 = vmatpush1.bf16.msra.mxu1 %v15943_v4  ;;  %v7016_v4 = vld [vmem:[#allocation2 + $0x1230] sm:$0xff] }
0x1614   :  { %10461 = vmatpush2.bf16.msra.mxu0 %v15879_v48  ;;  %10499 = vmatprep.subr.bf16.mxu1 %v15936_v62  ;;  %v15903_v48 = vcombine.low %v7084_v16, %v7088_v39  ;;  %v15839_v62 = vcombine.low %v7020_v26, %v7024_v21  ;;  %v15832_v5 = vcombine.high %v7012_v17, %v7016_v4  ;;  %v7172_v39 = vld [vmem:[#allocation2 + $0x1710] sm:$0xff] }
0x1615   :  { %10462 = vmatprep.subr.bf16.mxu0 %v15872_v7  ;;  %v15896_v7 = vcombine.high %v7076_v8, %v7080_v38  ;;  %v7176_v26 = vld [vmem:[#allocation2 + $0x1730] sm:$0xff] }
0x1616   :  { %10432 = vmatmul.mubr.bf16.gmra.mxu1 %v18216_v6  ;;  %v7236_v21 = vld [vmem:[#allocation2 + $0x1910] sm:$0xff] }
0x1617   :  { %10500 = vmatpush1.bf16.msra.mxu1 %v15935_v60  ;;  %10527 = vmatprep.mubr.bf16.mxu1 %v18154_v31  ;;  %v7264_v60 = vld [vmem:[#allocation2 + $0x19f0] sm:$0xff] }
0x1618   :  { %10463 = vmatpush2.bf16.msra.mxu0 %v15871_v35  ;;  %10501 = vmatprep.subr.bf16.mxu1 %v15928_v13  ;;  %v15895_v35 = vcombine.low %v7076_v8, %v7080_v38  ;;  %v15831_v13 = vcombine.low %v7012_v17, %v7016_v4  ;;  %v16080_v20 = vcombine.high %v7260_v23, %v7264_v60  ;;  %v7164_v38 = vld [vmem:[#allocation2 + $0x16d0] sm:$0xff] }
0x1619   :  { %10464 = vmatprep.subr.bf16.mxu0 %v15864_v25  ;;  %v16016_v25 = vcombine.high %v7196_v0, %v7200_v1  ;;  %v7168_v17 = vld [vmem:[#allocation2 + $0x16f0] sm:$0xff] }
0x161a   :  { %v7228_v4 = vld [vmem:[#allocation2 + $0x18d0] sm:$0xff] }
0x161b   :  { %10502 = vmatpush1.bf16.msra.mxu1 %v15927_v27  ;;  %v7256_v27 = vld [vmem:[#allocation2 + $0x19b0] sm:$0xff] }
0x161c   :  { %10465 = vmatpush2.bf16.msra.mxu0 %v15863_v47  ;;  %10503 = vmatprep.subr.bf16.mxu1 %v15920_v43  ;;  %v16015_v47 = vcombine.low %v7196_v0, %v7200_v1  ;;  %v16079_v43 = vcombine.low %v7260_v23, %v7264_v60  ;;  %v16072_v32 = vcombine.high %v7252_v29, %v7256_v27  ;;  %v7156_v1 = vld [vmem:[#allocation2 + $0x1690] sm:$0xff] }
0x161d   :  { %10466 = vmatprep.subr.bf16.mxu0 %v15856_v59  ;;  %v16008_v59 = vcombine.high %v7188_v36, %v7192_v49  ;;  %v7160_v23 = vld [vmem:[#allocation2 + $0x16b0] sm:$0xff] }
0x161e   :  { %v7220_v60 = vld [vmem:[#allocation2 + $0x1890] sm:$0xff] }
0x161f   :  { %10504 = vmatpush1.bf16.msra.mxu1 %v15919_v2  ;;  %v7248_v2 = vld [vmem:[#allocation2 + $0x1970] sm:$0xff] }
0x1620   :  { %10467 = vmatpush2.bf16.msra.mxu0 %v15855_v18  ;;  %10505 = vmatprep.subr.bf16.mxu1 %v15912_v51  ;;  %v16007_v18 = vcombine.low %v7188_v36, %v7192_v49  ;;  %v16071_v51 = vcombine.low %v7252_v29, %v7256_v27  ;;  %v16064_v16 = vcombine.high %v7244_v55, %v7248_v2  ;;  %v7148_v49 = vld [vmem:[#allocation2 + $0x1650] sm:$0xff] }
0x1621   :  { %10468 = vmatprep.subr.bf16.mxu0 %v15848_v58  ;;  %v16000_v58 = vcombine.high %v7180_v14, %v7184_v34  ;;  %v7152_v29 = vld [vmem:[#allocation2 + $0x1670] sm:$0xff] }
0x1622   :  { %v7212_v27 = vld [vmem:[#allocation2 + $0x1850] sm:$0xff] }
0x1623   :  { %10506 = vmatpush1.bf16.msra.mxu1 %v15911_v46  ;;  %v7240_v46 = vld [vmem:[#allocation2 + $0x1930] sm:$0xff] }
0x1624   :  { %10469 = vmatpush2.bf16.msra.mxu0 %v15847_v53  ;;  %10507 = vmatprep.subr.bf16.mxu1 %v15904_v57  ;;  %v15999_v53 = vcombine.low %v7180_v14, %v7184_v34  ;;  %v16063_v57 = vcombine.low %v7244_v55, %v7248_v2  ;;  %v16056_v8 = vcombine.high %v7236_v21, %v7240_v46  ;;  %v7140_v34 = vld [vmem:[#allocation2 + $0x1610] sm:$0xff] }
0x1625   :  { %10470 = vmatprep.subr.bf16.mxu0 %v15840_v12  ;;  %v15992_v12 = vcombine.high %v7172_v39, %v7176_v26  ;;  %v7144_v55 = vld [vmem:[#allocation2 + $0x1630] sm:$0xff] }
0x1626   :  { %v7204_v2 = vld [vmem:[#allocation2 + $0x1810] sm:$0xff] }
0x1627   :  { %10508 = vmatpush1.bf16.msra.mxu1 %v15903_v48  ;;  %v7232_v48 = vld [vmem:[#allocation2 + $0x18f0] sm:$0xff] }
0x1628   :  { %10471 = vmatpush2.bf16.msra.mxu0 %v15839_v62  ;;  %10509 = vmatprep.subr.bf16.mxu1 %v15896_v7  ;;  %v15991_v62 = vcombine.low %v7172_v39, %v7176_v26  ;;  %v16055_v7 = vcombine.low %v7236_v21, %v7240_v46  ;;  %v16048_v0 = vcombine.high %v7228_v4, %v7232_v48  ;;  %v7388_v26 = vld [vmem:[#allocation2 + $0x1dd0] sm:$0xff] }
0x1629   :  { %10472 = vmatprep.subr.bf16.mxu0 %v15832_v5  ;;  %v15984_v5 = vcombine.high %v7164_v38, %v7168_v17  ;;  %v7392_v21 = vld [vmem:[#allocation2 + $0x1df0] sm:$0xff] }
0x162a   :  { %v7324_v46 = vld [vmem:[#allocation2 + $0x1bd0] sm:$0xff] }
0x162b   :  { %10510 = vmatpush1.bf16.msra.mxu1 %v15895_v35  ;;  %v7224_v35 = vld [vmem:[#allocation2 + $0x18b0] sm:$0xff] }
0x162c   :  { %10473 = vmatpush2.bf16.msra.mxu0 %v15831_v13  ;;  %10511 = vmatprep.subr.bf16.mxu1 %v16016_v25  ;;  %v15983_v13 = vcombine.low %v7164_v38, %v7168_v17  ;;  %v16047_v25 = vcombine.low %v7228_v4, %v7232_v48  ;;  %v16040_v36 = vcombine.high %v7220_v60, %v7224_v35  ;;  %v7380_v17 = vld [vmem:[#allocation2 + $0x1d90] sm:$0xff] }
0x162d   :  { %10548 = vmatprep.subr.bf16.mxu0 %v16080_v20  ;;  %v15976_v20 = vcombine.high %v7156_v1, %v7160_v23  ;;  %v7384_v4 = vld [vmem:[#allocation2 + $0x1db0] sm:$0xff] }
0x162e   :  { %v7316_v48 = vld [vmem:[#allocation2 + $0x1b90] sm:$0xff] }
0x162f   :  { %10475 = vmatmul.mubr.bf16.vlgmr.msra.gmra.mxu0 %v18122_v11  ;;  %10512 = vmatpush2.bf16.msra.mxu1 %v16015_v47  ;;  %v7216_v47 = vld [vmem:[#allocation2 + $0x1870] sm:$0xff] }
0x1630   :  { %10484 = vmatprep.mubr.bf16.mxu0 %v18139_v56  ;;  %10549 = vmatpush1.bf16.msra.mxu0 %v16079_v43  ;;  %v15975_v43 = vcombine.low %v7156_v1, %v7160_v23  ;;  %v16032_v14 = vcombine.high %v7212_v27, %v7216_v47  ;;  %v7372_v23 = vld [vmem:[#allocation2 + $0x1d50] sm:$0xff] }
0x1631   :  { %10513 = vmatprep.subr.bf16.mxu1 %v16008_v59  ;;  %10550 = vmatprep.subr.bf16.mxu0 %v16072_v32  ;;  %v16039_v59 = vcombine.low %v7220_v60, %v7224_v35  ;;  %v15968_v32 = vcombine.high %v7148_v49, %v7152_v29  ;;  %v7376_v60 = vld [vmem:[#allocation2 + $0x1d70] sm:$0xff] }
0x1632   :  { %v7308_v35 = vld [vmem:[#allocation2 + $0x1b50] sm:$0xff] }
0x1633   :  { %10514 = vmatpush2.bf16.msra.mxu1 %v16007_v18  ;;  %v7208_v18 = vld [vmem:[#allocation2 + $0x1830] sm:$0xff] }
0x1634   :  { %10551 = vmatpush1.bf16.msra.mxu0 %v16071_v51  ;;  %10515 = vmatprep.subr.bf16.mxu1 %v16000_v58  ;;  %v15967_v51 = vcombine.low %v7148_v49, %v7152_v29  ;;  %v16031_v58 = vcombine.low %v7212_v27, %v7216_v47  ;;  %v16024_v39 = vcombine.high %v7204_v2, %v7208_v18  ;;  %v7364_v29 = vld [vmem:[#allocation2 + $0x1d10] sm:$0xff] }
0x1635   :  { %10552 = vmatprep.subr.bf16.mxu0 %v16064_v16  ;;  %v15960_v16 = vcombine.high %v7140_v34, %v7144_v55  ;;  %v7368_v27 = vld [vmem:[#allocation2 + $0x1d30] sm:$0xff] }
0x1636   :  { %v7300_v47 = vld [vmem:[#allocation2 + $0x1b10] sm:$0xff] }
0x1637   :  { %10485 = vmatmul.mubr.bf16.gmra.mxu0 %v18137_v24  ;;  %10516 = vmatpush2.bf16.msra.mxu1 %v15999_v53  ;;  %v7328_v53 = vld [vmem:[#allocation2 + $0x1bf0] sm:$0xff] }
0x1638   :  { %10553 = vmatpush1.bf16.msra.mxu0 %v16063_v57  ;;  %10580 = vmatprep.mubr.bf16.mxu0 %v18147_v52  ;;  %v15959_v57 = vcombine.low %v7140_v34, %v7144_v55  ;;  %v16144_v38 = vcombine.high %v7324_v46, %v7328_v53  ;;  %v7356_v55 = vld [vmem:[#allocation2 + $0x1cd0] sm:$0xff] }
0x1639   :  { %10517 = vmatprep.subr.bf16.mxu1 %v15992_v12  ;;  %10554 = vmatprep.subr.bf16.mxu0 %v16056_v8  ;;  %v16023_v12 = vcombine.low %v7204_v2, %v7208_v18  ;;  %v16208_v8 = vcombine.high %v7388_v26, %v7392_v21  ;;  %v7360_v2 = vld [vmem:[#allocation2 + $0x1cf0] sm:$0xff] }
0x163a   :  { %v7292_v18 = vld [vmem:[#allocation2 + $0x1ad0] sm:$0xff] }
0x163b   :  { %10518 = vmatpush2.bf16.msra.mxu1 %v15991_v62  ;;  %v7320_v62 = vld [vmem:[#allocation2 + $0x1bb0] sm:$0xff] }
0x163c   :  { %10555 = vmatpush1.bf16.msra.mxu0 %v16055_v7  ;;  %10519 = vmatprep.subr.bf16.mxu1 %v15984_v5  ;;  %v16207_v7 = vcombine.low %v7388_v26, %v7392_v21  ;;  %v16143_v5 = vcombine.low %v7324_v46, %v7328_v53  ;;  %v16136_v1 = vcombine.high %v7316_v48, %v7320_v62  ;;  %v7348_v21 = vld [vmem:[#allocation2 + $0x1c90] sm:$0xff] }
0x163d   :  { %10556 = vmatprep.subr.bf16.mxu0 %v16048_v0  ;;  %v16200_v0 = vcombine.high %v7380_v17, %v7384_v4  ;;  %v7352_v46 = vld [vmem:[#allocation2 + $0x1cb0] sm:$0xff] }
0x163e   :  { %v7284_v53 = vld [vmem:[#allocation2 + $0x1a90] sm:$0xff] }
0x163f   :  { %10520 = vmatpush2.bf16.msra.mxu1 %v15983_v13  ;;  %v7312_v13 = vld [vmem:[#allocation2 + $0x1b70] sm:$0xff] }
0x1640   :  { %10557 = vmatpush1.bf16.msra.mxu0 %v16047_v25  ;;  %10521 = vmatprep.subr.bf16.mxu1 %v15976_v20  ;;  %v16199_v25 = vcombine.low %v7380_v17, %v7384_v4  ;;  %v16135_v20 = vcombine.low %v7316_v48, %v7320_v62  ;;  %v16128_v49 = vcombine.high %v7308_v35, %v7312_v13  ;;  %v7340_v4 = vld [vmem:[#allocation2 + $0x1c50] sm:$0xff] }
0x1641   :  { %10558 = vmatprep.subr.bf16.mxu0 %v16040_v36  ;;  %v16192_v36 = vcombine.high %v7372_v23, %v7376_v60  ;;  %v7344_v48 = vld [vmem:[#allocation2 + $0x1c70] sm:$0xff] }
0x1642   :  { %v7276_v62 = vld [vmem:[#allocation2 + $0x1a50] sm:$0xff] }
0x1643   :  { %10522 = vmatpush2.bf16.msra.mxu1 %v15975_v43  ;;  %v7304_v43 = vld [vmem:[#allocation2 + $0x1b30] sm:$0xff] }
0x1644   :  { %10559 = vmatpush1.bf16.msra.mxu0 %v16039_v59  ;;  %10523 = vmatprep.subr.bf16.mxu1 %v15968_v32  ;;  %v16191_v59 = vcombine.low %v7372_v23, %v7376_v60  ;;  %v16127_v32 = vcombine.low %v7308_v35, %v7312_v13  ;;  %v16120_v34 = vcombine.high %v7300_v47, %v7304_v43  ;;  %v7332_v60 = vld [vmem:[#allocation2 + $0x1c10] sm:$0xff] }
0x1645   :  { %10560 = vmatprep.subr.bf16.mxu0 %v16032_v14  ;;  %v16184_v14 = vcombine.high %v7364_v29, %v7368_v27  ;;  %v7336_v35 = vld [vmem:[#allocation2 + $0x1c30] sm:$0xff] }
0x1646   :  { %v7268_v13 = vld [vmem:[#allocation2 + $0x1a10] sm:$0xff] }
0x1647   :  { %10524 = vmatpush2.bf16.msra.mxu1 %v15967_v51  ;;  %v7296_v51 = vld [vmem:[#allocation2 + $0x1af0] sm:$0xff] }
0x1648   :  { %10561 = vmatpush1.bf16.msra.mxu0 %v16031_v58  ;;  %10525 = vmatprep.subr.bf16.mxu1 %v15960_v16  ;;  %v16183_v58 = vcombine.low %v7364_v29, %v7368_v27  ;;  %v16119_v16 = vcombine.low %v7300_v47, %v7304_v43  ;;  %v16112_v26 = vcombine.high %v7292_v18, %v7296_v51  ;;  %v7452_v27 = vld [vmem:[#allocation2 + $0x1fd0] sm:$0xff]  ;;  %v7005_v43 = vld [vmem:[#allocation2 + $0x11d8] sm:$0xff] }
0x1649   :  { %10562 = vmatprep.subr.bf16.mxu0 %v16024_v39  ;;  %v16176_v39 = vcombine.high %v7356_v55, %v7360_v2  ;;  %v7456_v47 = vld [vmem:[#allocation2 + $0x1ff0] sm:$0xff] }
0x164b   :  { %10526 = vmatpush2.bf16.msra.mxu1 %v15959_v57  ;;  %v7288_v57 = vld [vmem:[#allocation2 + $0x1ab0] sm:$0xff] }
0x164c   :  { %10563 = vmatpush1.bf16.msra.mxu0 %v16023_v12  ;;  %10601 = vmatprep.subr.bf16.mxu1 %v16208_v8  ;;  %v16175_v12 = vcombine.low %v7356_v55, %v7360_v2  ;;  %v16111_v8 = vcombine.low %v7292_v18, %v7296_v51  ;;  %v16104_v17 = vcombine.high %v7284_v53, %v7288_v57  ;;  %v7444_v2 = vld [vmem:[#allocation2 + $0x1f90] sm:$0xff]  ;;  %v6997_v51 = vld [vmem:[#allocation2 + $0x1198] sm:$0xff] }
0x164d   :  { %10564 = vmatprep.subr.bf16.mxu0 %v16144_v38  ;;  %v16168_v38 = vcombine.high %v7348_v21, %v7352_v46  ;;  %v7448_v18 = vld [vmem:[#allocation2 + $0x1fb0] sm:$0xff] }
0x164e   :  { %10528 = vmatmul.mubr.bf16.vlgmr.msra.gmra.mxu1 %v18156_v10 }
0x164f   :  { %10537 = vmatprep.mubr.bf16.mxu1 %v18171_v22  ;;  %10602 = vmatpush1.bf16.msra.mxu1 %v16207_v7  ;;  %v7280_v7 = vld [vmem:[#allocation2 + $0x1a70] sm:$0xff] }
0x1650   :  { %10565 = vmatpush2.bf16.msra.mxu0 %v16143_v5  ;;  %10603 = vmatprep.subr.bf16.mxu1 %v16200_v0  ;;  %v16167_v5 = vcombine.low %v7348_v21, %v7352_v46  ;;  %v16103_v0 = vcombine.low %v7284_v53, %v7288_v57  ;;  %v16096_v23 = vcombine.high %v7276_v62, %v7280_v7  ;;  %v7436_v46 = vld [vmem:[#allocation2 + $0x1f50] sm:$0xff]  ;;  %v6989_v57 = vld [vmem:[#allocation2 + $0x1158] sm:$0xff] }
0x1651   :  { %10566 = vmatprep.subr.bf16.mxu0 %v16136_v1  ;;  %v16160_v1 = vcombine.high %v7340_v4, %v7344_v48  ;;  %v7440_v53 = vld [vmem:[#allocation2 + $0x1f70] sm:$0xff] }
0x1653   :  { %10604 = vmatpush1.bf16.msra.mxu1 %v16199_v25  ;;  %v7272_v25 = vld [vmem:[#allocation2 + $0x1a30] sm:$0xff] }
0x1654   :  { %10567 = vmatpush2.bf16.msra.mxu0 %v16135_v20  ;;  %10605 = vmatprep.subr.bf16.mxu1 %v16192_v36  ;;  %v16159_v20 = vcombine.low %v7340_v4, %v7344_v48  ;;  %v16095_v36 = vcombine.low %v7276_v62, %v7280_v7  ;;  %v16088_v29 = vcombine.high %v7268_v13, %v7272_v25  ;;  %v7428_v48 = vld [vmem:[#allocation2 + $0x1f10] sm:$0xff]  ;;  %v6981_v7 = vld [vmem:[#allocation2 + $0x1118] sm:$0xff] }
0x1655   :  { %10568 = vmatprep.subr.bf16.mxu0 %v16128_v49  ;;  %v16152_v49 = vcombine.high %v7332_v60, %v7336_v35  ;;  %v7432_v62 = vld [vmem:[#allocation2 + $0x1f30] sm:$0xff] }
0x1656   :  { %10538 = vmatmul.mubr.bf16.gmra.mxu1 %v18169_v15 }
0x1657   :  { %10606 = vmatpush1.bf16.msra.mxu1 %v16191_v59  ;;  %10633 = vmatprep.mubr.bf16.mxu1 %v18181_v61  ;;  %v7009_v59 = vld [vmem:[#allocation2 + $0x11f8] sm:$0xff] }
0x1658   :  { %10569 = vmatpush2.bf16.msra.mxu0 %v16127_v32  ;;  %10607 = vmatprep.subr.bf16.mxu1 %v16184_v14  ;;  %v16151_v32 = vcombine.low %v7332_v60, %v7336_v35  ;;  %v16087_v14 = vcombine.low %v7268_v13, %v7272_v25  ;;  %v15826_v55 = vcombine.high %v7005_v43, %v7009_v59  ;;  %v7420_v35 = vld [vmem:[#allocation2 + $0x1ed0] sm:$0xff]  ;;  %v6973_v25 = vld [vmem:[#allocation2 + $0x10d8] sm:$0xff] }
0x1659   :  { %10570 = vmatprep.subr.bf16.mxu0 %v16120_v34  ;;  %v16272_v34 = vcombine.high %v7452_v27, %v7456_v47  ;;  %v7424_v13 = vld [vmem:[#allocation2 + $0x1ef0] sm:$0xff] }
0x165b   :  { %10608 = vmatpush1.bf16.msra.mxu1 %v16183_v58  ;;  %v7001_v58 = vld [vmem:[#allocation2 + $0x11b8] sm:$0xff] }
0x165c   :  { %10571 = vmatpush2.bf16.msra.mxu0 %v16119_v16  ;;  %10609 = vmatprep.subr.bf16.mxu1 %v16176_v39  ;;  %v16271_v16 = vcombine.low %v7452_v27, %v7456_v47  ;;  %v15825_v39 = vcombine.low %v7005_v43, %v7009_v59  ;;  %v15818_v21 = vcombine.high %v6997_v51, %v7001_v58  ;;  %v7412_v47 = vld [vmem:[#allocation2 + $0x1e90] sm:$0xff]  ;;  %v6965_v59 = vld [vmem:[#allocation2 + $0x1098] sm:$0xff] }
0x165d   :  { %10572 = vmatprep.subr.bf16.mxu0 %v16112_v26  ;;  %v16264_v26 = vcombine.high %v7444_v2, %v7448_v18  ;;  %v7416_v43 = vld [vmem:[#allocation2 + $0x1eb0] sm:$0xff] }
0x165f   :  { %10610 = vmatpush1.bf16.msra.mxu1 %v16175_v12  ;;  %v6993_v12 = vld [vmem:[#allocation2 + $0x1178] sm:$0xff] }
0x1660   :  { %10573 = vmatpush2.bf16.msra.mxu0 %v16111_v8  ;;  %10611 = vmatprep.subr.bf16.mxu1 %v16168_v38  ;;  %v16263_v8 = vcombine.low %v7444_v2, %v7448_v18  ;;  %v15817_v38 = vcombine.low %v6997_v51, %v7001_v58  ;;  %v15810_v4 = vcombine.high %v6989_v57, %v6993_v12  ;;  %v7404_v18 = vld [vmem:[#allocation2 + $0x1e50] sm:$0xff]  ;;  %v6961_v58 = vld [vmem:[#allocation2 + $0x1078] sm:$0xff] }
0x1661   :  { %10574 = vmatprep.subr.bf16.mxu0 %v16104_v17  ;;  %v16256_v17 = vcombine.high %v7436_v46, %v7440_v53  ;;  %v7408_v51 = vld [vmem:[#allocation2 + $0x1e70] sm:$0xff] }
0x1663   :  { %10612 = vmatpush1.bf16.msra.mxu1 %v16167_v5  ;;  %v6985_v5 = vld [vmem:[#allocation2 + $0x1138] sm:$0xff] }
0x1664   :  { %10575 = vmatpush2.bf16.msra.mxu0 %v16103_v0  ;;  %10613 = vmatprep.subr.bf16.mxu1 %v16160_v1  ;;  %v16255_v0 = vcombine.low %v7436_v46, %v7440_v53  ;;  %v15809_v1 = vcombine.low %v6989_v57, %v6993_v12  ;;  %v15802_v60 = vcombine.high %v6981_v7, %v6985_v5  ;;  %v7396_v46 = vld [vmem:[#allocation2 + $0x1e10] sm:$0xff]  ;;  %v6949_v57 = vld [vmem:[#allocation2 + $0x1018] sm:$0xff] }
0x1665   :  { %10576 = vmatprep.subr.bf16.mxu0 %v16096_v23  ;;  %v16248_v23 = vcombine.high %v7428_v48, %v7432_v62  ;;  %v7400_v53 = vld [vmem:[#allocation2 + $0x1e30] sm:$0xff]  ;;  %v6953_v12 = vld [vmem:[#allocation2 + $0x1038] sm:$0xff] }
0x1667   :  { %10614 = vmatpush1.bf16.msra.mxu1 %v16159_v20  ;;  %v6977_v20 = vld [vmem:[#allocation2 + $0x10f8] sm:$0xff] }
0x1668   :  { %10577 = vmatpush2.bf16.msra.mxu0 %v16095_v36  ;;  %10615 = vmatprep.subr.bf16.mxu1 %v16152_v49  ;;  %v16247_v36 = vcombine.low %v7428_v48, %v7432_v62  ;;  %v15801_v49 = vcombine.low %v6981_v7, %v6985_v5  ;;  %v15794_v27 = vcombine.high %v6973_v25, %v6977_v20  ;;  %v7133_v48 = vld [vmem:[#allocation2 + $0x15d8] sm:$0xff] }
0x1669   :  { %10578 = vmatprep.subr.bf16.mxu0 %v16088_v29  ;;  %v16240_v29 = vcombine.high %v7420_v35, %v7424_v13  ;;  %v7137_v62 = vld [vmem:[#allocation2 + $0x15f8] sm:$0xff] }
0x166a   :  { %v7069_v7 = vld [vmem:[#allocation2 + $0x13d8] sm:$0xff] }
0x166b   :  { %10616 = vmatpush1.bf16.msra.mxu1 %v16151_v32  ;;  %v6969_v32 = vld [vmem:[#allocation2 + $0x10b8] sm:$0xff] }
0x166c   :  { %10579 = vmatpush2.bf16.msra.mxu0 %v16087_v14  ;;  %10617 = vmatprep.subr.bf16.mxu1 %v16272_v34  ;;  %v16239_v14 = vcombine.low %v7420_v35, %v7424_v13  ;;  %v15793_v34 = vcombine.low %v6973_v25, %v6977_v20  ;;  %v15786_v2 = vcombine.high %v6965_v59, %v6969_v32  ;;  %v7073_v5 = vld [vmem:[#allocation2 + $0x13f8] sm:$0xff] }
0x166d   :  { %10654 = vmatprep.subr.bf16.mxu0 %v15826_v55  ;;  %v16232_v55 = vcombine.high %v7412_v47, %v7416_v43  ;;  %v7125_v35 = vld [vmem:[#allocation2 + $0x1598] sm:$0xff] }
0x166e   :  { %v7129_v13 = vld [vmem:[#allocation2 + $0x15b8] sm:$0xff] }
0x166f   :  { %10581 = vmatmul.mubr.bf16.vlgmr.msra.gmra.mxu0 %v18190_v9  ;;  %10618 = vmatpush2.bf16.msra.mxu1 %v16271_v16  ;;  %v16231_v16 = vcombine.low %v7412_v47, %v7416_v43  ;;  %v7061_v25 = vld [vmem:[#allocation2 + $0x1398] sm:$0xff] }
0x1670   :  { %10590 = vmatprep.mubr.bf16.mxu0 %v18193_v19  ;;  %10655 = vmatpush1.bf16.msra.mxu0 %v15825_v39  ;;  %v15785_v39 = vcombine.low %v6965_v59, %v6969_v32  ;;  %v7065_v20 = vld [vmem:[#allocation2 + $0x13b8] sm:$0xff] }
0x1671   :  { %10619 = vmatprep.subr.bf16.mxu1 %v16264_v26  ;;  %10656 = vmatprep.subr.bf16.mxu0 %v15818_v21  ;;  %v16224_v26 = vcombine.high %v7404_v18, %v7408_v51  ;;  %v15882_v47 = vcombine.high %v7061_v25, %v7065_v20  ;;  %v7117_v43 = vld [vmem:[#allocation2 + $0x1558] sm:$0xff] }
0x1672   :  { %v7121_v59 = vld [vmem:[#allocation2 + $0x1578] sm:$0xff] }
0x1673   :  { %10620 = vmatpush2.bf16.msra.mxu1 %v16263_v8  ;;  %v16223_v8 = vcombine.low %v7404_v18, %v7408_v51  ;;  %v7053_v32 = vld [vmem:[#allocation2 + $0x1358] sm:$0xff]  ;;  %v15938_v18 = vcombine.high %v7117_v43, %v7121_v59 }
0x1674   :  { %10657 = vmatpush1.bf16.msra.mxu0 %v15817_v38  ;;  %10621 = vmatprep.subr.bf16.mxu1 %v16256_v17  ;;  %v16216_v17 = vcombine.high %v7396_v46, %v7400_v53 }
0x1675   :  { %10658 = vmatprep.subr.bf16.mxu0 %v15810_v4  ;;  %v15770_v4 = vcombine.high %v6949_v57, %v6953_v12 }
0x1677   :  { %10591 = vmatmul.mubr.bf16.gmra.mxu0 %v18197_v50  ;;  %10622 = vmatpush2.bf16.msra.mxu1 %v16255_v0  ;;  %v16215_v0 = vcombine.low %v7396_v46, %v7400_v53  ;;  %v15937_v46 = vcombine.low %v7117_v43, %v7121_v59  ;;  %v7085_v59 = vld [vmem:[#allocation2 + $0x1458] sm:$0xff] }
0x1678   :  { %10659 = vmatpush1.bf16.msra.mxu0 %v15809_v1  ;;  %10686 = vmatprep.mubr.bf16.mxu0 %v18124_v37  ;;  %v6957_v37 = vld [vmem:[#allocation2 + $0x1058] sm:$0xff]  ;;  %v15769_v1 = vcombine.low %v6949_v57, %v6953_v12 }
0x1679   :  { %10623 = vmatprep.subr.bf16.mxu1 %v16248_v23  ;;  %10660 = vmatprep.subr.bf16.mxu0 %v15802_v60  ;;  %v15778_v21 = vcombine.high %v6957_v37, %v6961_v58  ;;  %v15777_v38 = vcombine.low %v6957_v37, %v6961_v58  ;;  %v15954_v23 = vcombine.high %v7133_v48, %v7137_v62  ;;  %v7109_v58 = vld [vmem:[#allocation2 + $0x1518] sm:$0xff] }
0x167a   :  { %v15890_v60 = vcombine.high %v7069_v7, %v7073_v5 }
0x167b   :  { %10624 = vmatpush2.bf16.msra.mxu1 %v16247_v36  ;;  %v15953_v36 = vcombine.low %v7133_v48, %v7137_v62  ;;  %v7041_v48 = vld [vmem:[#allocation2 + $0x12f8] sm:$0xff] }
0x167c   :  { %10661 = vmatpush1.bf16.msra.mxu0 %v15801_v49  ;;  %10625 = vmatprep.subr.bf16.mxu1 %v16240_v29  ;;  %v15889_v49 = vcombine.low %v7069_v7, %v7073_v5  ;;  %v15946_v29 = vcombine.high %v7125_v35, %v7129_v13 }
0x167d   :  { %10662 = vmatprep.subr.bf16.mxu0 %v15794_v27  ;;  %v18248_v27 = vpop.f32.mrf.mxu0 }
0x167f   :  { %10626 = vmatpush2.bf16.msra.mxu1 %v16239_v14  ;;  %v7057_v14 = vld [vmem:[#allocation2 + $0x1378] sm:$0xff]  ;;  %v18254_v51 = vpop.f32.mrf.mxu0 }
0x1680   :  { %10663 = vmatpush1.bf16.msra.mxu0 %v15793_v34  ;;  %10627 = vmatprep.subr.bf16.mxu1 %v16232_v55  ;;  %v18251_v34 = vpop.f32.mrf.mxu1  ;;  %v15945_v55 = vcombine.low %v7125_v35, %v7129_v13  ;;  %v15874_v37 = vcombine.high %v7053_v32, %v7057_v14  ;;  %v15873_v53 = vcombine.low %v7053_v32, %v7057_v14  ;;  %v7097_v35 = vld [vmem:[#allocation2 + $0x14b8] sm:$0xff] }
0x1681   :  { %10664 = vmatprep.subr.bf16.mxu0 %v15786_v2  ;;  %v15881_v2 = vcombine.low %v7061_v25, %v7065_v20  ;;  %v18258_v12 = vpop.f32.mrf.mxu0  ;;  %v7029_v13 = vld [vmem:[#allocation2 + $0x1298] sm:$0xff] }
0x1682   :  { %v7033_v25 = vld [vmem:[#allocation2 + $0x12b8] sm:$0xff] }
0x1683   :  { %10628 = vmatpush2.bf16.msra.mxu1 %v16231_v16  ;;  %v7113_v16 = vld [vmem:[#allocation2 + $0x1538] sm:$0xff]  ;;  %v15850_v43 = vcombine.high %v7029_v13, %v7033_v25 }
0x1684   :  { %10665 = vmatpush1.bf16.msra.mxu0 %v15785_v39  ;;  %10629 = vmatprep.subr.bf16.mxu1 %v16224_v26  ;;  %v7045_v39 = vld [vmem:[#allocation2 + $0x1318] sm:$0xff]  ;;  %v15930_v57 = vcombine.high %v7109_v58, %v7113_v16  ;;  %v15929_v7 = vcombine.low %v7109_v58, %v7113_v16 }
0x1685   :  { %10666 = vmatprep.subr.bf16.mxu0 %v15778_v21  ;;  %v7049_v26 = vld [vmem:[#allocation2 + $0x1338] sm:$0xff]  ;;  %v18256_v21 = vpop.f32.mrf.mxu1 }
0x1686   :  { %v15865_v5 = vcombine.low %v7045_v39, %v7049_v26  ;;  %v7089_v32 = vld [vmem:[#allocation2 + $0x1478] sm:$0xff] }
0x1687   :  { %10630 = vmatpush2.bf16.msra.mxu1 %v16223_v8  ;;  %v15866_v8 = vcombine.high %v7045_v39, %v7049_v26  ;;  %v18261_v62 = vpop.f32.mrf.mxu1  ;;  %v7021_v14 = vld [vmem:[#allocation2 + $0x1258] sm:$0xff]  ;;  %v15906_v58 = vcombine.high %v7085_v59, %v7089_v32 }
0x1688   :  { %10667 = vmatpush1.bf16.msra.mxu0 %v15777_v38  ;;  %10631 = vmatprep.subr.bf16.mxu1 %v16216_v17  ;;  %v7101_v38 = vld [vmem:[#allocation2 + $0x14d8] sm:$0xff] }
0x1689   :  { %10668 = vmatprep.subr.bf16.mxu0 %v15770_v4  ;;  %v7105_v17 = vld [vmem:[#allocation2 + $0x14f8] sm:$0xff]  ;;  %v18266_v20 = vpop.f32.mrf.mxu1 }
0x168a   :  { %v7037_v4 = vld [vmem:[#allocation2 + $0x12d8] sm:$0xff] }
0x168b   :  { %10632 = vmatpush2.bf16.msra.mxu1 %v16215_v0  ;;  %v15922_v0 = vcombine.high %v7101_v38, %v7105_v17  ;;  %v7077_v26 = vld [vmem:[#allocation2 + $0x1418] sm:$0xff] }
0x168c   :  { %10669 = vmatpush1.bf16.msra.mxu0 %v15769_v1  ;;  %10707 = vmatprep.subr.bf16.mxu1 %v15954_v23  ;;  %v18264_v1 = vpop.f32.mrf.mxu0  ;;  %v15858_v23 = vcombine.high %v7037_v4, %v7041_v48 }
0x168d   :  { %10670 = vmatprep.subr.bf16.mxu0 %v15890_v60  ;;  %v7093_v60 = vld [vmem:[#allocation2 + $0x1498] sm:$0xff] }
0x168e   :  { %10634 = vmatmul.mubr.bf16.vlgmr.msra.gmra.mxu1 %v18210_v3 }
0x168f   :  { %10643 = vmatprep.mubr.bf16.mxu1 %v18212_v40  ;;  %10708 = vmatpush1.bf16.msra.mxu1 %v15953_v36  ;;  %v18268_v36 = vpop.f32.mrf.mxu0 }
0x1690   :  { %10671 = vmatpush2.bf16.msra.mxu0 %v15889_v49  ;;  %10709 = vmatprep.subr.bf16.mxu1 %v15946_v29  ;;  %v15921_v49 = vcombine.low %v7101_v38, %v7105_v17  ;;  %v15914_v29 = vcombine.high %v7093_v60, %v7097_v35  ;;  %v15905_v38 = vcombine.low %v7085_v59, %v7089_v32  ;;  %v7193_v59 = vld [vmem:[#allocation2 + $0x17b8] sm:$0xff] }
0x1691   :  { %10672 = vmatprep.subr.bf16.mxu0 %v15882_v47  ;;  %v18270_v47 = vpop.f32.mrf.mxu1  ;;  %v7253_v32 = vld [vmem:[#allocation2 + $0x1998] sm:$0xff] }
0x1693   :  { %10710 = vmatpush1.bf16.msra.mxu1 %v15945_v55  ;;  %v7025_v55 = vld [vmem:[#allocation2 + $0x1278] sm:$0xff]  ;;  %v18274_v16 = vpop.f32.mrf.mxu1 }
0x1694   :  { %10673 = vmatpush2.bf16.msra.mxu0 %v15881_v2  ;;  %10711 = vmatprep.subr.bf16.mxu1 %v15938_v18  ;;  %v18272_v2 = vpop.f32.mrf.mxu0  ;;  %v15913_v18 = vcombine.low %v7093_v60, %v7097_v35  ;;  %v15842_v39 = vcombine.high %v7021_v14, %v7025_v55  ;;  %v15841_v17 = vcombine.low %v7021_v14, %v7025_v55  ;;  %v7265_v60 = vld [vmem:[#allocation2 + $0x19f8] sm:$0xff] }
0x1695   :  { %10674 = vmatprep.subr.bf16.mxu0 %v15874_v37  ;;  %v15849_v37 = vcombine.low %v7029_v13, %v7033_v25  ;;  %v7257_v14 = vld [vmem:[#allocation2 + $0x19b8] sm:$0xff] }
0x1696   :  { %10644 = vmatmul.mubr.bf16.gmra.mxu1 %v18216_v6 }
0x1697   :  { %10712 = vmatpush1.bf16.msra.mxu1 %v15937_v46  ;;  %10739 = vmatprep.mubr.bf16.mxu1 %v18154_v31  ;;  %v15857_v31 = vcombine.low %v7037_v4, %v7041_v48  ;;  %v7081_v46 = vld [vmem:[#allocation2 + $0x1438] sm:$0xff]  ;;  %v18278_v48 = vpop.f32.mrf.mxu1 }
0x1698   :  { %10675 = vmatpush2.bf16.msra.mxu0 %v15873_v53  ;;  %10713 = vmatprep.subr.bf16.mxu1 %v15930_v57  ;;  %v7013_v53 = vld [vmem:[#allocation2 + $0x1218] sm:$0xff]  ;;  %v15898_v4 = vcombine.high %v7077_v26, %v7081_v46  ;;  %v15897_v13 = vcombine.low %v7077_v26, %v7081_v46  ;;  %v16074_v26 = vcombine.high %v7253_v32, %v7257_v14 }
0x1699   :  { %10676 = vmatprep.subr.bf16.mxu0 %v15866_v8  ;;  %v7017_v57 = vld [vmem:[#allocation2 + $0x1238] sm:$0xff]  ;;  %v18276_v8 = vpop.f32.mrf.mxu0 }
0x169a   :  { %v15833_v25 = vcombine.low %v7013_v53, %v7017_v57  ;;  %v7181_v46 = vld [vmem:[#allocation2 + $0x1758] sm:$0xff] }
0x169b   :  { %10714 = vmatpush1.bf16.msra.mxu1 %v15929_v7  ;;  %v15834_v7 = vcombine.high %v7013_v53, %v7017_v57  ;;  %v18280_v35 = vpop.f32.mrf.mxu0  ;;  %v7185_v53 = vld [vmem:[#allocation2 + $0x1778] sm:$0xff] }
0x169c   :  { %10677 = vmatpush2.bf16.msra.mxu0 %v15865_v5  ;;  %10715 = vmatprep.subr.bf16.mxu1 %v15922_v0  ;;  %v7197_v5 = vld [vmem:[#allocation2 + $0x17d8] sm:$0xff] }
0x169d   :  { %10678 = vmatprep.subr.bf16.mxu0 %v15858_v23  ;;  %v7201_v0 = vld [vmem:[#allocation2 + $0x17f8] sm:$0xff]  ;;  %v18284_v55 = vpop.f32.mrf.mxu0 }
0x169e   :  { %v7261_v23 = vld [vmem:[#allocation2 + $0x19d8] sm:$0xff] }
0x169f   :  { %10716 = vmatpush1.bf16.msra.mxu1 %v15921_v49  ;;  %v16018_v49 = vcombine.high %v7197_v5, %v7201_v0  ;;  %v7245_v57 = vld [vmem:[#allocation2 + $0x1958] sm:$0xff] }
0x16a0   :  { %10679 = vmatpush2.bf16.msra.mxu0 %v15857_v31  ;;  %10717 = vmatprep.subr.bf16.mxu1 %v15914_v29  ;;  %v18282_v31 = vpop.f32.mrf.mxu1  ;;  %v16082_v29 = vcombine.high %v7261_v23, %v7265_v60 }
0x16a1   :  { %10680 = vmatprep.subr.bf16.mxu0 %v15850_v43  ;;  %v7189_v43 = vld [vmem:[#allocation2 + $0x1798] sm:$0xff] }
0x16a3   :  { %10718 = vmatpush1.bf16.msra.mxu1 %v15913_v18  ;;  %v18286_v18 = vpop.f32.mrf.mxu1 }
0x16a4   :  { %10681 = vmatpush2.bf16.msra.mxu0 %v15849_v37  ;;  %10719 = vmatprep.subr.bf16.mxu1 %v15906_v58  ;;  %v16017_v37 = vcombine.low %v7197_v5, %v7201_v0  ;;  %v16081_v58 = vcombine.low %v7261_v23, %v7265_v60  ;;  %v16073_v5 = vcombine.low %v7253_v32, %v7257_v14  ;;  %v7173_v60 = vld [vmem:[#allocation2 + $0x1718] sm:$0xff] }
0x16a5   :  { %10682 = vmatprep.subr.bf16.mxu0 %v15842_v39  ;;  %v16010_v39 = vcombine.high %v7189_v43, %v7193_v59  ;;  %v16002_v0 = vcombine.high %v7181_v46, %v7185_v53  ;;  %v7165_v32 = vld [vmem:[#allocation2 + $0x16d8] sm:$0xff] }
0x16a6   :  { %v7169_v14 = vld [vmem:[#allocation2 + $0x16f8] sm:$0xff] }
0x16a7   :  { %10720 = vmatpush1.bf16.msra.mxu1 %v15905_v38  ;;  %v7249_v38 = vld [vmem:[#allocation2 + $0x1978] sm:$0xff] }
0x16a8   :  { %10683 = vmatpush2.bf16.msra.mxu0 %v15841_v17  ;;  %10721 = vmatprep.subr.bf16.mxu1 %v15898_v4  ;;  %v18288_v17 = vpop.f32.mrf.mxu0  ;;  %v18290_v4 = vpop.f32.mrf.mxu1  ;;  %v16066_v23 = vcombine.high %v7245_v57, %v7249_v38 }
0x16a9   :  { %10684 = vmatprep.subr.bf16.mxu0 %v15834_v7  ;;  %v16009_v7 = vcombine.low %v7189_v43, %v7193_v59  ;;  %v16065_v43 = vcombine.low %v7245_v57, %v7249_v38 }
0x16aa   :  { %v18296_v54 = vpop.f32.mrf.mxu1 }
0x16ab   :  { %10722 = vmatpush1.bf16.msra.mxu1 %v15897_v13  ;;  %v7177_v13 = vld [vmem:[#allocation2 + $0x1738] sm:$0xff] }
0x16ac   :  { %10685 = vmatpush2.bf16.msra.mxu0 %v15833_v25  ;;  %10723 = vmatprep.subr.bf16.mxu1 %v16018_v49  ;;  %v7237_v25 = vld [vmem:[#allocation2 + $0x1918] sm:$0xff]  ;;  %v15993_v63 = vcombine.low %v7173_v60, %v7177_v13 }
0x16ad   :  { %10760 = vmatprep.subr.bf16.mxu0 %v16082_v29  ;;  %v7241_v49 = vld [vmem:[#allocation2 + $0x1938] sm:$0xff]  ;;  %v18294_v29 = vpop.f32.mrf.mxu0 }
0x16ae   :  { %v16058_v59 = vcombine.high %v7237_v25, %v7241_v49 }
0x16af   :  { %10687 = vmatmul.mubr.bf16.vlgmr.msra.gmra.mxu0 %v18122_v11  ;;  %10724 = vmatpush2.bf16.msra.mxu1 %v16017_v37  ;;  %v16001_v11 = vcombine.low %v7181_v46, %v7185_v53  ;;  %v7229_v37 = vld [vmem:[#allocation2 + $0x18d8] sm:$0xff]  ;;  %v16057_v46 = vcombine.low %v7237_v25, %v7241_v49  ;;  %v15986_v53 = vcombine.high %v7165_v32, %v7169_v14 }
0x16b0   :  { %10696 = vmatprep.mubr.bf16.mxu0 %v18139_v56  ;;  %10761 = vmatpush1.bf16.msra.mxu0 %v16081_v58  ;;  %v15994_v56 = vcombine.high %v7173_v60, %v7177_v13  ;;  %v7233_v58 = vld [vmem:[#allocation2 + $0x18f8] sm:$0xff] }
0x16b1   :  { %10725 = vmatprep.subr.bf16.mxu1 %v16010_v39  ;;  %10762 = vmatprep.subr.bf16.mxu0 %v16074_v26  ;;  %v18298_v39 = vpop.f32.mrf.mxu0  ;;  %v18300_v26 = vpop.f32.mrf.mxu1  ;;  %v16050_v38 = vcombine.high %v7229_v37, %v7233_v58  ;;  %v16049_v60 = vcombine.low %v7229_v37, %v7233_v58  ;;  %v7149_v49 = vld [vmem:[#allocation2 + $0x1658] sm:$0xff] }
0x16b2   :  { %v7141_v58 = vld [vmem:[#allocation2 + $0x1618] sm:$0xff] }
0x16b3   :  { %10726 = vmatpush2.bf16.msra.mxu1 %v16009_v7  ;;  %v18304_v57 = vpop.f32.mrf.mxu0  ;;  %v7157_v7 = vld [vmem:[#allocation2 + $0x1698] sm:$0xff]  ;;  %v18306_v28 = vpop.f32.mrf.mxu1 }
0x16b4   :  { %10763 = vmatpush1.bf16.msra.mxu0 %v16073_v5  ;;  %10727 = vmatprep.subr.bf16.mxu1 %v16002_v0  ;;  %v7161_v5 = vld [vmem:[#allocation2 + $0x16b8] sm:$0xff] }
0x16b5   :  { %10764 = vmatprep.subr.bf16.mxu0 %v16066_v23  ;;  %v7221_v0 = vld [vmem:[#allocation2 + $0x1898] sm:$0xff]  ;;  %v15978_v13 = vcombine.high %v7157_v7, %v7161_v5  ;;  %v15977_v30 = vcombine.low %v7157_v7, %v7161_v5 }
0x16b6   :  { %v7225_v23 = vld [vmem:[#allocation2 + $0x18b8] sm:$0xff] }
0x16b7   :  { %10697 = vmatmul.mubr.bf16.gmra.mxu0 %v18137_v24  ;;  %10728 = vmatpush2.bf16.msra.mxu1 %v16001_v11  ;;  %v15985_v24 = vcombine.low %v7165_v32, %v7169_v14  ;;  %v16042_v25 = vcombine.high %v7221_v0, %v7225_v23  ;;  %v7153_v11 = vld [vmem:[#allocation2 + $0x1678] sm:$0xff] }
0x16b8   :  { %10765 = vmatpush1.bf16.msra.mxu0 %v16065_v43  ;;  %10792 = vmatprep.mubr.bf16.mxu0 %v18147_v52  ;;  %v18308_v52 = vpop.f32.mrf.mxu0  ;;  %v7213_v43 = vld [vmem:[#allocation2 + $0x1858] sm:$0xff]  ;;  %v15970_v32 = vcombine.high %v7149_v49, %v7153_v11  ;;  %v15969_v44 = vcombine.low %v7149_v49, %v7153_v11 }
0x16b9   :  { %10729 = vmatprep.subr.bf16.mxu1 %v15994_v56  ;;  %10766 = vmatprep.subr.bf16.mxu0 %v16058_v59  ;;  %v7217_v56 = vld [vmem:[#allocation2 + $0x1878] sm:$0xff]  ;;  %v18310_v59 = vpop.f32.mrf.mxu1 }
0x16ba   :  { %v18312_v14 = vpop.f32.mrf.mxu0  ;;  %v16034_v37 = vcombine.high %v7213_v43, %v7217_v56 }
0x16bb   :  { %10730 = vmatpush2.bf16.msra.mxu1 %v15993_v63  ;;  %v16041_v63 = vcombine.low %v7221_v0, %v7225_v23  ;;  %v18314_v45 = vpop.f32.mrf.mxu1  ;;  %v7389_v23 = vld [vmem:[#allocation2 + $0x1dd8] sm:$0xff] }
0x16bc   :  { %10767 = vmatpush1.bf16.msra.mxu0 %v16057_v46  ;;  %10731 = vmatprep.subr.bf16.mxu1 %v15986_v53  ;;  %v7145_v46 = vld [vmem:[#allocation2 + $0x1638] sm:$0xff]  ;;  %v18316_v5 = vpop.f32.mrf.mxu0 }
0x16bd   :  { %10768 = vmatprep.subr.bf16.mxu0 %v16050_v38  ;;  %v7205_v53 = vld [vmem:[#allocation2 + $0x1818] sm:$0xff]  ;;  %v15962_v7 = vcombine.high %v7141_v58, %v7145_v46  ;;  %v18318_v42 = vpop.f32.mrf.mxu1  ;;  %v15961_v6 = vcombine.low %v7141_v58, %v7145_v46 }
0x16be   :  { %v7209_v38 = vld [vmem:[#allocation2 + $0x1838] sm:$0xff]  ;;  %v18320_v41 = vpop.f32.mrf.mxu0 }
0x16bf   :  { %10732 = vmatpush2.bf16.msra.mxu1 %v15985_v24  ;;  %v16033_v24 = vcombine.low %v7213_v43, %v7217_v56  ;;  %v16026_v0 = vcombine.high %v7205_v53, %v7209_v38  ;;  %18834 = vst [vmem:[#allocation31_spill] sm:$0xff] %v18320_v41  ;;  %v18322_v11 = vpop.f32.mrf.mxu1  ;;  %v7381_v56 = vld [vmem:[#allocation2 + $0x1d98] sm:$0xff] }
0x16c0   :  { %10769 = vmatpush1.bf16.msra.mxu0 %v16049_v60  ;;  %10733 = vmatprep.subr.bf16.mxu1 %v15978_v13  ;;  %v7393_v60 = vld [vmem:[#allocation2 + $0x1df8] sm:$0xff]  ;;  %18835 = vst [vmem:[#allocation32_spill] sm:$0xff] %v18322_v11  ;;  %v18324_v40 = vpop.f32.mrf.mxu0 }
0x16c1   :  { %10770 = vmatprep.subr.bf16.mxu0 %v16042_v25  ;;  %v7325_v13 = vld [vmem:[#allocation2 + $0x1bd8] sm:$0xff]  ;;  %v16210_v49 = vcombine.high %v7389_v23, %v7393_v60  ;;  %18836 = vst [vmem:[#allocation33_spill] sm:$0xff] %v18324_v40  ;;  %v16209_v3 = vcombine.low %v7389_v23, %v7393_v60  ;;  %v18326_v58 = vpop.f32.mrf.mxu1 }
0x16c2   :  { %v7329_v25 = vld [vmem:[#allocation2 + $0x1bf8] sm:$0xff]  ;;  %18837 = vst [vmem:[#allocation34_spill] sm:$0xff] %v18326_v58 }
0x16c3   :  { %10734 = vmatpush2.bf16.msra.mxu1 %v15977_v30  ;;  %v16025_v30 = vcombine.low %v7205_v53, %v7209_v38  ;;  %v16146_v43 = vcombine.high %v7325_v13, %v7329_v25  ;;  %v16145_v41 = vcombine.low %v7325_v13, %v7329_v25  ;;  %v7373_v53 = vld [vmem:[#allocation2 + $0x1d58] sm:$0xff]  ;;  %v18332_v13 = vpop.f32.mrf.mxu1 }
0x16c4   :  { %10771 = vmatpush1.bf16.msra.mxu0 %v16041_v63  ;;  %10735 = vmatprep.subr.bf16.mxu1 %v15970_v32  ;;  %v7385_v63 = vld [vmem:[#allocation2 + $0x1db8] sm:$0xff]  ;;  %18839 = vst [vmem:[#allocation36_spill] sm:$0xff] %v18332_v13 }
0x16c5   :  { %10772 = vmatprep.subr.bf16.mxu0 %v16034_v37  ;;  %v7317_v32 = vld [vmem:[#allocation2 + $0x1b98] sm:$0xff] }
0x16c6   :  { %v7321_v37 = vld [vmem:[#allocation2 + $0x1bb8] sm:$0xff] }
0x16c7   :  { %10736 = vmatpush2.bf16.msra.mxu1 %v15969_v44  ;;  %v16202_v44 = vcombine.high %v7381_v56, %v7385_v63  ;;  %v16138_v46 = vcombine.high %v7317_v32, %v7321_v37  ;;  %v7377_v38 = vld [vmem:[#allocation2 + $0x1d78] sm:$0xff]  ;;  %v16137_v23 = vcombine.low %v7317_v32, %v7321_v37 }
0x16c8   :  { %10773 = vmatpush1.bf16.msra.mxu0 %v16033_v24  ;;  %10737 = vmatprep.subr.bf16.mxu1 %v15962_v7  ;;  %v7309_v24 = vld [vmem:[#allocation2 + $0x1b58] sm:$0xff]  ;;  %v16194_v60 = vcombine.high %v7373_v53, %v7377_v38 }
0x16c9   :  { %10774 = vmatprep.subr.bf16.mxu0 %v16026_v0  ;;  %v7313_v7 = vld [vmem:[#allocation2 + $0x1b78] sm:$0xff]  ;;  %v18329_v0 = vpop.f32.mrf.mxu0 }
0x16ca   :  { %18838 = vst [vmem:[#allocation35_spill] sm:$0xff] %v18329_v0  ;;  %v16130_v25 = vcombine.high %v7309_v24, %v7313_v7  ;;  %v16193_v0 = vcombine.low %v7373_v53, %v7377_v38  ;;  %v7361_v32 = vld [vmem:[#allocation2 + $0x1cf8] sm:$0xff] }
0x16cb   :  { %10738 = vmatpush2.bf16.msra.mxu1 %v15961_v6  ;;  %v16201_v6 = vcombine.low %v7381_v56, %v7385_v63  ;;  %v18334_v11 = vpop.f32.mrf.mxu0  ;;  %v7357_v63 = vld [vmem:[#allocation2 + $0x1cd8] sm:$0xff] }
0x16cc   :  { %10775 = vmatpush1.bf16.msra.mxu0 %v16025_v30  ;;  %10813 = vmatprep.subr.bf16.mxu1 %v16210_v49  ;;  %v7365_v30 = vld [vmem:[#allocation2 + $0x1d18] sm:$0xff]  ;;  %v16177_v58 = vcombine.low %v7357_v63, %v7361_v32 }
0x16cd   :  { %10776 = vmatprep.subr.bf16.mxu0 %v16146_v43  ;;  %v7369_v49 = vld [vmem:[#allocation2 + $0x1d38] sm:$0xff] }
0x16ce   :  { %10740 = vmatmul.mubr.bf16.vlgmr.msra.gmra.mxu1 %v18156_v10  ;;  %v7301_v43 = vld [vmem:[#allocation2 + $0x1b18] sm:$0xff]  ;;  %v16185_v53 = vcombine.low %v7365_v30, %v7369_v49 }
0x16cf   :  { %10749 = vmatprep.mubr.bf16.mxu1 %v18171_v22  ;;  %10814 = vmatpush1.bf16.msra.mxu1 %v16209_v3  ;;  %v7305_v10 = vld [vmem:[#allocation2 + $0x1b38] sm:$0xff]  ;;  %v16129_v22 = vcombine.low %v7309_v24, %v7313_v7  ;;  %v16186_v3 = vcombine.high %v7365_v30, %v7369_v49  ;;  %v16178_v24 = vcombine.high %v7357_v63, %v7361_v32 }
0x16d0   :  { %10777 = vmatpush2.bf16.msra.mxu0 %v16145_v41  ;;  %10815 = vmatprep.subr.bf16.mxu1 %v16202_v44  ;;  %v18336_v41 = vpop.f32.mrf.mxu1  ;;  %v16122_v56 = vcombine.high %v7301_v43, %v7305_v10  ;;  %v7293_v37 = vld [vmem:[#allocation2 + $0x1ad8] sm:$0xff]  ;;  %v16121_v38 = vcombine.low %v7301_v43, %v7305_v10  ;;  %v10122_v32 = vadd.f32 %v18282_v31, %v18280_v35 }
0x16d1   :  { %10778 = vmatprep.subr.bf16.mxu0 %v16138_v46  ;;  %v7297_v44 = vld [vmem:[#allocation2 + $0x1af8] sm:$0xff]  ;;  %v18339_v46 = vpop.f32.mrf.mxu0 }
0x16d2   :  { %18840 = vst [vmem:[#allocation37_spill] sm:$0xff] %v18339_v46  ;;  %v18342_v7 = vpop.f32.mrf.mxu1  ;;  %v7341_v43 = vld [vmem:[#allocation2 + $0x1c58] sm:$0xff]  ;;  %v10118_v46 = vadd.f32 %v18274_v16, %v18272_v2 }
0x16d3   :  { %10816 = vmatpush1.bf16.msra.mxu1 %v16201_v6  ;;  %18841 = vst [vmem:[#allocation38_spill] sm:$0xff] %v18342_v7  ;;  %v16114_v6 = vcombine.high %v7293_v37, %v7297_v44  ;;  %v18344_v13 = vpop.f32.mrf.mxu0  ;;  %v7345_v10 = vld [vmem:[#allocation2 + $0x1c78] sm:$0xff] }
0x16d4   :  { %10779 = vmatpush2.bf16.msra.mxu0 %v16137_v23  ;;  %10817 = vmatprep.subr.bf16.mxu1 %v16194_v60  ;;  %v7349_v23 = vld [vmem:[#allocation2 + $0x1c98] sm:$0xff]  ;;  %v18346_v30 = vpop.f32.mrf.mxu1  ;;  %v16162_v63 = vcombine.high %v7341_v43, %v7345_v10 }
0x16d5   :  { %10780 = vmatprep.subr.bf16.mxu0 %v16130_v25  ;;  %v7353_v60 = vld [vmem:[#allocation2 + $0x1cb8] sm:$0xff] }
0x16d6   :  { %10750 = vmatmul.mubr.bf16.gmra.mxu1 %v18169_v15  ;;  %v7285_v25 = vld [vmem:[#allocation2 + $0x1a98] sm:$0xff]  ;;  %v16169_v40 = vcombine.low %v7349_v23, %v7353_v60 }
0x16d7   :  { %10818 = vmatpush1.bf16.msra.mxu1 %v16193_v0  ;;  %10845 = vmatprep.mubr.bf16.mxu1 %v18181_v61  ;;  %v7289_v15 = vld [vmem:[#allocation2 + $0x1ab8] sm:$0xff]  ;;  %v16113_v0 = vcombine.low %v7293_v37, %v7297_v44  ;;  %v16170_v61 = vcombine.high %v7349_v23, %v7353_v60  ;;  %v18352_v37 = vpop.f32.mrf.mxu1  ;;  %v16161_v23 = vcombine.low %v7341_v43, %v7345_v10 }
0x16d8   :  { %10781 = vmatpush2.bf16.msra.mxu0 %v16129_v22  ;;  %10819 = vmatprep.subr.bf16.mxu1 %v16186_v3  ;;  %v16106_v49 = vcombine.high %v7285_v25, %v7289_v15  ;;  %v7277_v22 = vld [vmem:[#allocation2 + $0x1a58] sm:$0xff]  ;;  %v16105_v7 = vcombine.low %v7285_v25, %v7289_v15  ;;  %v10120_v60 = vadd.f32 %v18278_v48, %v18276_v8 }
0x16d9   :  { %10782 = vmatprep.subr.bf16.mxu0 %v16122_v56  ;;  %v7281_v3 = vld [vmem:[#allocation2 + $0x1a78] sm:$0xff]  ;;  %v18348_v56 = vpop.f32.mrf.mxu0  ;;  %v10175_v25 = vadd.f32 %v18316_v5, %v10122_v32  ;;  %v18361_v15 = vpop.f32.mrf.mxu1  ;;  %v10112_v8 = vadd.f32 %v18266_v20, %v18264_v1  ;;  %v10171_v48 = vadd.f32 %v18308_v52, %v10118_v46  ;;  %v10106_v32 = vadd.f32 %v18251_v34, %v18248_v27 }
0x16da   :  { %v16098_v44 = vcombine.high %v7277_v22, %v7281_v3  ;;  %v16097_v35 = vcombine.low %v7277_v22, %v7281_v3  ;;  %v7453_v2 = vld [vmem:[#allocation2 + $0x1fd8] sm:$0xff]  ;;  %v10173_v43 = vadd.f32 %v18312_v14, %v10120_v60 }
0x16db   :  { %10820 = vmatpush1.bf16.msra.mxu1 %v16185_v53  ;;  %v7333_v53 = vld [vmem:[#allocation2 + $0x1c18] sm:$0xff]  ;;  %v10224_v1 = vadd.f32 %v18310_v59, %v10171_v48 }
0x16dc   :  { %10783 = vmatpush2.bf16.msra.mxu0 %v16121_v38  ;;  %10821 = vmatprep.subr.bf16.mxu1 %v16178_v24  ;;  %v7337_v38 = vld [vmem:[#allocation2 + $0x1c38] sm:$0xff]  ;;  %v10226_v14 = vadd.f32 %v18314_v45, %v10173_v43 }
0x16dd   :  { %10784 = vmatprep.subr.bf16.mxu0 %v16114_v6  ;;  %v7269_v24 = vld [vmem:[#allocation2 + $0x1a18] sm:$0xff]  ;;  %v16154_v31 = vcombine.high %v7333_v53, %v7337_v38  ;;  %v16153_v5 = vcombine.low %v7333_v53, %v7337_v38  ;;  %v10159_v53 = vadd.f32 %v18284_v55, %v10106_v32  ;;  %v10332_v32 = vadd.f32 %v18352_v37, %v18348_v56 }
0x16de   :  { %v7273_v6 = vld [vmem:[#allocation2 + $0x1a38] sm:$0xff] }
0x16df   :  { %10822 = vmatpush1.bf16.msra.mxu1 %v16177_v58  ;;  %v18356_v58 = vpop.f32.mrf.mxu0  ;;  %v7457_v16 = vld [vmem:[#allocation2 + $0x1ff8] sm:$0xff]  ;;  %v16089_v10 = vcombine.low %v7269_v24, %v7273_v6 }
0x16e0   :  { %10785 = vmatpush2.bf16.msra.mxu0 %v16113_v0  ;;  %10823 = vmatprep.subr.bf16.mxu1 %v16170_v61  ;;  %v16090_v61 = vcombine.high %v7269_v24, %v7273_v6  ;;  %v16274_v22 = vcombine.high %v7453_v2, %v7457_v16  ;;  %v7445_v46 = vld [vmem:[#allocation2 + $0x1f98] sm:$0xff]  ;;  %v16273_v59 = vcombine.low %v7453_v2, %v7457_v16 }
0x16e1   :  { %10786 = vmatprep.subr.bf16.mxu0 %v16106_v49  ;;  %v18363_v0 = vpop.f32.mrf.mxu0  ;;  %v18371_v49 = vpop.f32.mrf.mxu1  ;;  %v7449_v3 = vld [vmem:[#allocation2 + $0x1fb8] sm:$0xff] }
0x16e2   :  { %v7429_v55 = vld [vmem:[#allocation2 + $0x1f18] sm:$0xff] }
0x16e3   :  { %10824 = vmatpush1.bf16.msra.mxu1 %v16169_v40  ;;  %v10116_v40 = vadd.f32 %v18270_v47, %v18268_v36  ;;  %v10108_v36 = vadd.f32 %v18256_v21, %v18254_v51  ;;  %v10165_v47 = vadd.f32 %v18298_v39, %v10112_v8  ;;  %v18378_v20 = vpop.f32.mrf.mxu0  ;;  %v18386_v39 = vpop.f32.mrf.mxu1  ;;  %v7417_v8 = vld [vmem:[#allocation2 + $0x1eb8] sm:$0xff] }
0x16e4   :  { %10787 = vmatpush2.bf16.msra.mxu0 %v16105_v7  ;;  %10825 = vmatprep.subr.bf16.mxu1 %v16162_v63  ;;  %v10228_v7 = vadd.f32 %v18318_v42, %v10175_v25  ;;  %v10110_v42 = vadd.f32 %v18261_v62, %v18258_v12  ;;  %v7425_v25 = vld [vmem:[#allocation2 + $0x1ef8] sm:$0xff] }
0x16e5   :  { %10788 = vmatprep.subr.bf16.mxu0 %v16098_v44  ;;  %v10169_v52 = vadd.f32 %v18304_v57, %v10116_v40  ;;  %v10161_v63 = vadd.f32 %v18288_v17, %v10108_v36  ;;  %v10218_v51 = vadd.f32 %v18300_v26, %v10165_v47  ;;  %v18393_v57 = vpop.f32.mrf.mxu0  ;;  %v16266_v17 = vcombine.high %v7445_v46, %v7449_v3  ;;  %v7437_v26 = vld [vmem:[#allocation2 + $0x1f58] sm:$0xff]  ;;  %v18397_v34 = vpop.f32.mrf.mxu1  ;;  %v18408_v47 = vld [vmem:[#allocation4 + $0x30] sm:$0xff]  }
0x16e6   :  { %v10875_v21 = vpack.c.bf16 %v10228_v7, %v10224_v1  ;;  %v10163_v12 = vadd.f32 %v18294_v29, %v10110_v42  ;;  %v7441_v44 = vld [vmem:[#allocation2 + $0x1f78] sm:$0xff] }
0x16e7   :  { %10826 = vmatpush1.bf16.msra.mxu1 %v16161_v23  ;;  %v10222_v62 = vadd.f32 %v18306_v28, %v10169_v52  ;;  %v10214_v45 = vadd.f32 %v18290_v4, %v10161_v63  ;;  %v16265_v28 = vcombine.low %v7445_v46, %v7449_v3  ;;  %v10212_v4 = vadd.f32 %v18286_v18, %v10159_v53  ;;  %v18402_v6 = vpop.f32.mrf.mxu0  ;;  %v18404_v60 = vpop.f32.mrf.mxu1  ;;  %v7421_v18 = vld [vmem:[#allocation2 + $0x1ed8] sm:$0xff] }
0x16e8   :  { %10789 = vmatpush2.bf16.msra.mxu0 %v16097_v35  ;;  %10827 = vmatprep.subr.bf16.mxu1 %v16154_v31  ;;  %v10216_v38 = vadd.f32 %v18296_v54, %v10163_v12  ;;  %v16258_v29 = vcombine.high %v7437_v26, %v7441_v44  ;;  %v7433_v54 = vld [vmem:[#allocation2 + $0x1f38] sm:$0xff]  ;;  %v16257_v35 = vcombine.low %v7437_v26, %v7441_v44  ;;  %v18843_v26 = vld [vmem:[#allocation38_spill] sm:$0xff] }
0x16e9   :  { %10790 = vmatprep.subr.bf16.mxu0 %v16090_v61  ;;  %v10874_v24 = vpack.c.bf16 %v10226_v14, %v10222_v62  ;;  %v10867_v27 = vpack.c.bf16 %v10218_v51, %v10214_v45  ;;  %v10380_v31 = vpop.f32.mrf.mxu0  ;;  %v16249_v61 = vcombine.low %v7429_v55, %v7433_v54  ;;  %v16242_v2 = vcombine.high %v7421_v18, %v7425_v25  ;;  %v7413_v40 = vld [vmem:[#allocation2 + $0x1e98] sm:$0xff] }
0x16ea   :  { %v10866_v23 = vpack.c.bf16 %v10216_v38, %v10212_v4  ;;  %v16241_v7 = vcombine.low %v7421_v18, %v7425_v25  ;;  %v7397_v52 = vld [vmem:[#allocation2 + $0x1e18] sm:$0xff]  ;;  %v10334_v46 = vadd.f32 %v18361_v15, %v18356_v58  ;;  %v10330_v51 = vadd.f32 %v18346_v30, %v18344_v13  ;;  %v18845_v30 = vld [vmem:[#allocation34_spill] sm:$0xff] }
0x16eb   :  { %10828 = vmatpush1.bf16.msra.mxu1 %v16153_v5  ;;  %v10382_v16 = vpop.f32.mrf.mxu0  ;;  %v16234_v5 = vcombine.high %v7413_v40, %v7417_v8  ;;  %v7401_v14 = vld [vmem:[#allocation2 + $0x1e38] sm:$0xff]  ;;  %v10324_v12 = vadd.f32 %v18336_v41, %v18334_v11  ;;  %v18846_v11 = vld [vmem:[#allocation35_spill] sm:$0xff]  ;;  %v18847_v41 = vld [vmem:[#allocation36_spill] sm:$0xff] }
0x16ec   :  { %10791 = vmatpush2.bf16.msra.mxu0 %v16089_v10  ;;  %10829 = vmatprep.subr.bf16.mxu1 %v16274_v22  ;;  %v7405_v10 = vld [vmem:[#allocation2 + $0x1e58] sm:$0xff]  ;;  %v10383_v62 = vadd.f32 %v10382_v16, %v10330_v51  ;;  %v16217_v44 = vcombine.low %v7397_v52, %v7401_v14 }
0x16ed   :  { %10939 = vmatprep.subr.bf16.mxu0 %v10875_v21  ;;  %v10384_v43 = vpop.f32.mrf.mxu0  ;;  %v7409_v22 = vld [vmem:[#allocation2 + $0x1e78] sm:$0xff]  ;;  %v10377_v56 = vadd.f32 %v18402_v6, %v10324_v12 }
0x16ee   :  { %v16226_v1 = vcombine.high %v7405_v10, %v7409_v22  ;;  %v16225_v63 = vcombine.low %v7405_v10, %v7409_v22  ;;  %v10385_v15 = vadd.f32 %v10384_v43, %v10332_v32  ;;  %v18423_v53 = vld [vmem:[#allocation4 + $0x38] sm:$0xff]  }
0x16ef   :  { %10793 = vmatmul.mubr.bf16.vlgmr.msra.gmra.mxu0 %v18190_v9  ;;  %10830 = vmatpush2.bf16.msra.mxu1 %v16273_v59  ;;  %v16250_v9 = vcombine.high %v7429_v55, %v7433_v54  ;;  %v10386_v42 = vpop.f32.mrf.mxu0  ;;  %v16218_v59 = vcombine.high %v7397_v52, %v7401_v14  ;;  %v18844_v13 = vld [vmem:[#allocation33_spill] sm:$0xff]  ;;  %v18848_v54 = vld [vmem:[#allocation31_spill] sm:$0xff] }
0x16f0   :  { %10802 = vmatprep.mubr.bf16.mxu0 %v18193_v19  ;;  %10940 = vmatpush1.bf16.msra.mxu0 %v10874_v24  ;;  %v10433_v19 = vpop.f32.mrf.mxu1  ;;  %v10387_v21 = vadd.f32 %v10386_v42, %v10334_v46  ;;  %v10320_v38 = vadd.f32 %v18845_v30, %v18844_v13  ;;  %v10322_v24 = vadd.f32 %v18847_v41, %v18846_v11  ;;  %v18851_v16 = vld [vmem:[#allocation29_spill] sm:$0xff] }
0x16f1   :  { %10941 = vmatprep.subr.bf16.mxu0 %v10867_v27  ;;  %10831 = vmatprep.subr.bf16.mxu1 %v16266_v17  ;;  %v18842_v17 = vld [vmem:[#allocation37_spill] sm:$0xff] }
0x16f2   :  { %v10435_v48 = vpop.f32.mrf.mxu1  ;;  %v10328_v58 = vadd.f32 %v18843_v26, %v18842_v17  ;;  %v10373_v4 = vadd.f32 %v18378_v20, %v10320_v38  ;;  %v18850_v20 = vld [vmem:[#allocation28_spill] sm:$0xff] }
0x16f3   :  { %10832 = vmatpush2.bf16.msra.mxu1 %v16265_v28  ;;  %v10436_v37 = vadd.f32 %v10435_v48, %v10383_v62 }
0x16f4   :  { %10942 = vmatpush1.bf16.msra.mxu0 %v10866_v23  ;;  %10833 = vmatprep.subr.bf16.mxu1 %v16258_v29  ;;  %v10437_v36 = vpop.f32.mrf.mxu1  ;;  %v10381_v27 = vadd.f32 %v10380_v31, %v10328_v58  ;;  %v10430_v29 = vadd.f32 %v18404_v60, %v10377_v56  ;;  %v18849_v23 = vld [vmem:[#allocation32_spill] sm:$0xff]  ;;  %v10426_v18 = vadd.f32 %v18386_v39, %v10373_v4  ;;  %v10476_v39 = vpop.f32.mrf.mxu0 }
0x16f5   :  { %v10438_v28 = vadd.f32 %v10437_v36, %v10385_v15 }
0x16f6   :  { %v10439_v3 = vpop.f32.mrf.mxu1  ;;  %v10434_v6 = vadd.f32 %v10433_v19, %v10381_v27  ;;  %v18852_v19 = vld [vmem:[#allocation30_spill] sm:$0xff] }
0x16f7   :  { %10803 = vmatmul.mubr.bf16.gmra.mxu0 %v18197_v50  ;;  %10834 = vmatpush2.bf16.msra.mxu1 %v16257_v35  ;;  %v16233_v50 = vcombine.low %v7413_v40, %v7417_v8  ;;  %v10440_v45 = vadd.f32 %v10439_v3, %v10387_v21  ;;  %v10318_v35 = vadd.f32 %v18849_v23, %v18848_v54 }
0x16f8   :  { %10835 = vmatprep.subr.bf16.mxu1 %v16250_v9  ;;  %10959 = vmatprep.mubr.bf16.mxu0 %v18829_v33  ;;  %v10375_v9 = vadd.f32 %v18393_v57, %v10322_v24 }
0x16f9   :  { %v10877_v55 = vpack.c.bf16 %v10440_v45, %v10436_v37  ;;  %v10371_v25 = vadd.f32 %v18363_v0, %v10318_v35  ;;  %v10478_v0 = vpop.f32.mrf.mxu0 }
0x16fa   :  { %v10428_v31 = vadd.f32 %v18397_v34, %v10375_v9 }
0x16fb   :  { %10836 = vmatpush2.bf16.msra.mxu1 %v16249_v61  ;;  %v10876_v61 = vpack.c.bf16 %v10438_v28, %v10434_v6  ;;  %v10424_v60 = vadd.f32 %v18371_v49, %v10371_v25  ;;  %v10480_v34 = vpop.f32.mrf.mxu0 }
0x16fc   :  { %10837 = vmatprep.subr.bf16.mxu1 %v16242_v2  ;;  %v10869_v2 = vpack.c.bf16 %v10430_v29, %v10426_v18 }
0x16fd   :  { %v10868_v57 = vpack.c.bf16 %v10428_v31, %v10424_v60  ;;  %v10482_v49 = vpop.f32.mrf.mxu0  ;;  %v11215_v60 = vld [vmem:[#allocation2 + $0x21c0] sm:$0xff] }
0x16ff   :  { %10838 = vmatpush2.bf16.msra.mxu1 %v16241_v7  ;;  %16275 = vmatmul.mubr.msk.bf16.vlgmr.msra.gmra.mxu0 %vm321_vm3, %v18408_v47  ;;  %v10486_v40 = vpop.f32.mrf.mxu0 }
0x1700   :  { %10839 = vmatprep.subr.bf16.mxu1 %v16234_v5  ;;  %10969 = vmatprep.mubr.bf16.mxu0 %v18829_v33 }
0x1701   :  { %v10488_v48 = vpop.f32.mrf.mxu0 }
0x1703   :  { %10840 = vmatpush2.bf16.msra.mxu1 %v16233_v50  ;;  %v10490_v5 = vpop.f32.mrf.mxu0 }
0x1704   :  { %10841 = vmatprep.subr.bf16.mxu1 %v16226_v1 }
0x1705   :  { %v10492_v10 = vpop.f32.mrf.mxu0 }
0x1707   :  { %10842 = vmatpush2.bf16.msra.mxu1 %v16225_v63  ;;  %16276 = vmatmul.mubr.msk.bf16.gmra.mxu0 %vm321_vm3, %v18423_v53 }
0x1708   :  { %10843 = vmatprep.subr.bf16.mxu1 %v16218_v59  ;;  %11065 = vmatprep.mubr.bf16.mxu0 %v18829_v33 }
0x170b   :  { %10844 = vmatpush2.bf16.msra.mxu1 %v16217_v44 }
0x170c   :  { %10992 = vmatprep.subr.bf16.mxu1 %v10877_v55 }
0x170e   :  { %10846 = vmatmul.mubr.bf16.vlgmr.msra.gmra.mxu1 %v18850_v20  ;;  %v10529_v8 = vpop.f32.mrf.mxu1 }
0x170f   :  { %10855 = vmatprep.mubr.bf16.mxu1 %v18851_v16  ;;  %10993 = vmatpush1.bf16.msra.mxu1 %v10876_v61  ;;  %v10530_v9 = vadd.f32 %v10529_v8, %v10476_v39  ;;  %v11217_v16 = vld [vmem:[#allocation2 + $0x21e0] sm:$0xff] }
0x1710   :  { %10994 = vmatprep.subr.bf16.mxu1 %v10869_v2  ;;  %v10531_v7 = vpop.f32.mrf.mxu1  ;;  %v16311_v39 = vcombine.low %v11215_v60, %v11217_v16 }
0x1711   :  { %v10532_v37 = vadd.f32 %v10531_v7, %v10478_v0  ;;  %v16312_v0 = vcombine.high %v11215_v60, %v11217_v16  ;;  %v11209_v7 = vld [vmem:[#allocation2 + $0x2160] sm:$0xff] }
0x1712   :  { %v10533_v43 = vpop.f32.mrf.mxu1  ;;  %v11225_v60 = vld [vmem:[#allocation2 + $0x2260] sm:$0xff] }
0x1713   :  { %10995 = vmatpush1.bf16.msra.mxu1 %v10868_v57  ;;  %v10534_v27 = vadd.f32 %v10533_v43, %v10480_v34 }
0x1714   :  { %v10535_v22 = vpop.f32.mrf.mxu1 }
0x1715   :  { %v10536_v15 = vadd.f32 %v10535_v22, %v10482_v49  ;;  %v11211_v49 = vld [vmem:[#allocation2 + $0x2180] sm:$0xff] }
0x1716   :  { %10856 = vmatmul.mubr.bf16.gmra.mxu1 %v18852_v19  ;;  %v10539_v50 = vpop.f32.mrf.mxu1  ;;  %v11205_v22 = vld [vmem:[#allocation2 + $0x2120] sm:$0xff] }
0x1717   :  { %11012 = vmatprep.mubr.bf16.mxu1 %v18829_v33  ;;  %v10540_v30 = vadd.f32 %v10539_v50, %v10486_v40  ;;  %v11213_v40 = vld [vmem:[#allocation2 + $0x21a0] sm:$0xff] }
0x1718   :  { %v10541_v42 = vpop.f32.mrf.mxu1  ;;  %v16308_v8 = vcombine.high %v11211_v49, %v11213_v40 }
0x1719   :  { %v10542_v44 = vadd.f32 %v10541_v42, %v10488_v48  ;;  %v11207_v48 = vld [vmem:[#allocation2 + $0x2140] sm:$0xff] }
0x171a   :  { %v10543_v14 = vpop.f32.mrf.mxu1  ;;  %v16304_v43 = vcombine.high %v11207_v48, %v11209_v7  ;;  %v11201_v42 = vld [vmem:[#allocation2 + $0x20e0] sm:$0xff] }
0x171b   :  { %v10544_v17 = vadd.f32 %v10543_v14, %v10490_v5  ;;  %v16307_v5 = vcombine.low %v11211_v49, %v11213_v40 }
0x171c   :  { %v10545_v3 = vpop.f32.mrf.mxu1 }
0x171d   :  { %v10546_v13 = vadd.f32 %v10545_v3, %v10492_v10  ;;  %v11203_v10 = vld [vmem:[#allocation2 + $0x2100] sm:$0xff] }
0x171e   :  { %16277 = vmatmul.mubr.msk.bf16.vlgmr.msra.gmra.mxu1 %vm321_vm3, %v18408_v47  ;;  %v16300_v50 = vcombine.high %v11203_v10, %v11205_v22  ;;  %v11197_v3 = vld [vmem:[#allocation2 + $0x20a0] sm:$0xff] }
0x171f   :  { %11022 = vmatprep.mubr.bf16.mxu1 %v18829_v33 }
0x1726   :  { %16278 = vmatmul.mubr.msk.bf16.gmra.mxu1 %vm321_vm3, %v18423_v53 }
0x1727   :  { %11118 = vmatprep.mubr.bf16.mxu1 %v18829_v33 }
0x172f   :  { %v10582_v36 = vpop.f32.mrf.mxu0 }
0x1730   :  { %v10583_v61 = vadd.f32 %v10582_v36, %v10530_v9  ;;  %v16303_v36 = vcombine.low %v11207_v48, %v11209_v7  ;;  %v18467_v48 = vld [vmem:[#allocation2 + $0x29e0] sm:$0xff] }
0x1731   :  { %v10584_v1 = vpop.f32.mrf.mxu0 }
0x1732   :  { %v10585_v55 = vadd.f32 %v10584_v1, %v10532_v37  ;;  %v11199_v1 = vld [vmem:[#allocation2 + $0x20c0] sm:$0xff] }
0x1733   :  { %v10586_v52 = vpop.f32.mrf.mxu0  ;;  %v16296_v14 = vcombine.high %v11199_v1, %v11201_v42 }
0x1734   :  { %v10587_v6 = vadd.f32 %v10586_v52, %v10534_v27  ;;  %v16299_v52 = vcombine.low %v11203_v10, %v11205_v22 }
0x1735   :  { %v10588_v46 = vpop.f32.mrf.mxu0 }
0x1736   :  { %v10589_v11 = vadd.f32 %v10588_v46, %v10536_v15  ;;  %v11195_v46 = vld [vmem:[#allocation2 + $0x2080] sm:$0xff] }
0x1737   :  { %v10592_v63 = vpop.f32.mrf.mxu0  ;;  %v11249_v15 = vld [vmem:[#allocation2 + $0x23e0] sm:$0xff] }
0x1738   :  { %v10593_v28 = vadd.f32 %v10592_v63, %v10540_v30  ;;  %v16295_v63 = vcombine.low %v11199_v1, %v11201_v42  ;;  %v11243_v30 = vld [vmem:[#allocation2 + $0x2380] sm:$0xff] }
0x1739   :  { %v10594_v21 = vpop.f32.mrf.mxu0 }
0x173a   :  { %v10595_v41 = vadd.f32 %v10594_v21, %v10542_v44  ;;  %v11191_v21 = vld [vmem:[#allocation2 + $0x2040] sm:$0xff] }
0x173b   :  { %v10596_v12 = vpop.f32.mrf.mxu0 }
0x173c   :  { %v10597_v38 = vadd.f32 %v10596_v12, %v10544_v17 }
0x173d   :  { %v10598_v26 = vpop.f32.mrf.mxu0 }
0x173e   :  { %v10599_v24 = vadd.f32 %v10598_v26, %v10546_v13 }
0x174e   :  { %v10635_v51 = vpop.f32.mrf.mxu1 }
0x174f   :  { %v10636_v19 = vadd.f32 %v10635_v51, %v10583_v61  ;;  %v16292_v51 = vcombine.high %v11195_v46, %v11197_v3 }
0x1750   :  { %v10637_v59 = vpop.f32.mrf.mxu1 }
0x1751   :  { %v10638_v25 = vadd.f32 %v10637_v59, %v10585_v55  ;;  %v11193_v59 = vld [vmem:[#allocation2 + $0x2060] sm:$0xff] }
0x1752   :  { %v10639_v32 = vpop.f32.mrf.mxu1  ;;  %v16288_v12 = vcombine.high %v11191_v21, %v11193_v59  ;;  %v16287_v17 = vcombine.low %v11191_v21, %v11193_v59 }
0x1753   :  { %v10640_v2 = vadd.f32 %v10639_v32, %v10587_v6  ;;  %v16291_v32 = vcombine.low %v11195_v46, %v11197_v3  ;;  %v10883_v3 = vld [vmem:[#allocation6 + $0x480] ss:$8 sm:$0xf] }
0x1754   :  { %v10641_v62 = vpop.f32.mrf.mxu1 }
0x1755   :  { %v10642_v54 = vadd.f32 %v10641_v62, %v10589_v11  ;;  %v10870_v34 = vpack.c.bf16 %v10640_v2, %v10636_v19  ;;  %v11187_v62 = vld [vmem:[#allocation2 + $0x2000] sm:$0xff] }
0x1756   :  { %v10645_v45 = vpop.f32.mrf.mxu1  ;;  %v11239_v11 = vld [vmem:[#allocation2 + $0x2340] sm:$0xff] }
0x1757   :  { %v10646_v18 = vadd.f32 %v10645_v45, %v10593_v28  ;;  %v10871_v57 = vpack.c.bf16 %v10642_v54, %v10638_v25  ;;  %v11189_v45 = vld [vmem:[#allocation2 + $0x2020] sm:$0xff] }
0x1758   :  { %v10647_v58 = vpop.f32.mrf.mxu1  ;;  %v16284_v26 = vcombine.high %v11187_v62, %v11189_v45  ;;  %v16283_v44 = vcombine.low %v11187_v62, %v11189_v45  ;;  %v11235_v28 = vld [vmem:[#allocation2 + $0x2300] sm:$0xff] }
0x1759   :  { %v10648_v23 = vadd.f32 %v10647_v58, %v10595_v41  ;;  %v11247_v58 = vld [vmem:[#allocation2 + $0x23c0] sm:$0xff] }
0x175a   :  { %v10649_v56 = vpop.f32.mrf.mxu1  ;;  %v16344_v13 = vcombine.high %v11247_v58, %v11249_v15  ;;  %v11241_v41 = vld [vmem:[#allocation2 + $0x2360] sm:$0xff] }
0x175b   :  { %v10650_v4 = vadd.f32 %v10649_v56, %v10597_v38  ;;  %v11245_v38 = vld [vmem:[#allocation2 + $0x23a0] sm:$0xff]  ;;  %v16343_v56 = vcombine.low %v11247_v58, %v11249_v15  ;;  %v16336_v27 = vcombine.high %v11239_v11, %v11241_v41  ;;  %v18854_v58 = vld [vmem:[#allocation21_spill] sm:$0xff] }
0x175c   :  { %v10651_v29 = vpop.f32.mrf.mxu1  ;;  %v16340_v37 = vcombine.high %v11243_v30, %v11245_v38  ;;  %v11231_v54 = vld [vmem:[#allocation2 + $0x22c0] sm:$0xff] }
0x175d   :  { %v10652_v35 = vadd.f32 %v10651_v29, %v10599_v24  ;;  %v10878_v20 = vpack.c.bf16 %v10650_v4, %v10646_v18  ;;  %v16339_v24 = vcombine.low %v11243_v30, %v11245_v38  ;;  %v11237_v4 = vld [vmem:[#allocation2 + $0x2320] sm:$0xff]  ;;  %v16335_v29 = vcombine.low %v11239_v11, %v11241_v41 }
0x175e   :  { %v16332_v55 = vcombine.high %v11235_v28, %v11237_v4  ;;  %v16331_v9 = vcombine.low %v11235_v28, %v11237_v4  ;;  %v11227_v18 = vld [vmem:[#allocation2 + $0x2280] sm:$0xff] }
0x175f   :  { %v10879_v31 = vpack.c.bf16 %v10652_v35, %v10648_v23  ;;  %v11233_v23 = vld [vmem:[#allocation2 + $0x22e0] sm:$0xff] }
0x1760   :  { %v16328_v6 = vcombine.high %v11231_v54, %v11233_v23  ;;  %v11229_v25 = vld [vmem:[#allocation2 + $0x22a0] sm:$0xff]  ;;  %v16327_v61 = vcombine.low %v11231_v54, %v11233_v23 }
0x1761   :  { %11045 = vmatprep.subr.bf16.mxu0 %v10879_v31  ;;  %v16324_v2 = vcombine.high %v11227_v18, %v11229_v25 }
0x1762   :  { %11046 = vmatpush1.bf16.msra.mxu0 %v10878_v20  ;;  %v11223_v20 = vld [vmem:[#allocation2 + $0x2240] sm:$0xff] }
0x1763   :  { %11047 = vmatprep.subr.bf16.mxu0 %v10871_v57  ;;  %v16323_v57 = vcombine.low %v11227_v18, %v11229_v25  ;;  %v16320_v19 = vcombine.high %v11223_v20, %v11225_v60  ;;  %v16319_v40 = vcombine.low %v11223_v20, %v11225_v60 }
0x1766   :  { %11048 = vmatpush1.bf16.msra.mxu0 %v10870_v34  ;;  %v11221_v34 = vld [vmem:[#allocation2 + $0x2220] sm:$0xff] }
0x1767   :  { %12723 = vmatprep.subr.bf16.mxu0 %v16312_v0  ;;  %v11219_v0 = vld [vmem:[#allocation2 + $0x2200] sm:$0xff] }
0x1769   :  { %16279 = vmatmul.mubr.msk.bf16.vlgmr.msra.gmra.mxu0 %vm321_vm3, %v18408_v47 }
0x176a   :  { %11075 = vmatprep.mubr.bf16.mxu0 %v18829_v33  ;;  %12724 = vmatpush1.bf16.msra.mxu0 %v16311_v39  ;;  %v16316_v39 = vcombine.high %v11219_v0, %v11221_v34 }
0x176b   :  { %12725 = vmatprep.subr.bf16.mxu0 %v16308_v8  ;;  %v18465_v8 = vld [vmem:[#allocation2 + $0x29c0] sm:$0xff] }
0x176c   :  { %v16439_v20 = vcombine.low %v18465_v8, %v18467_v48 }
0x176e   :  { %12726 = vmatpush1.bf16.msra.mxu0 %v16307_v5  ;;  %v16315_v5 = vcombine.low %v11219_v0, %v11221_v34  ;;  %v11335_v34 = vld [vmem:[#allocation2 + $0x2940] sm:$0xff] }
0x176f   :  { %12727 = vmatprep.subr.bf16.mxu0 %v16304_v43  ;;  %v18457_v35 = vpop.f32.mrf.mxu0  ;;  %v16440_v43 = vcombine.high %v18465_v8, %v18467_v48 }
0x1771   :  { %16280 = vmatmul.mubr.msk.bf16.gmra.mxu0 %vm321_vm3, %v18423_v53  ;;  %v18459_v31 = vpop.f32.mrf.mxu0 }
0x1772   :  { %12728 = vmatpush1.bf16.msra.mxu0 %v16303_v36 }
0x1773   :  { %12729 = vmatprep.subr.bf16.mxu0 %v16300_v50  ;;  %v18461_v16 = vpop.f32.mrf.mxu0 }
0x1775   :  { %v18463_v49 = vpop.f32.mrf.mxu0 }
0x1776   :  { %12730 = vmatpush1.bf16.msra.mxu0 %v16299_v52 }
0x1777   :  { %12731 = vmatprep.subr.bf16.mxu0 %v16296_v14  ;;  %v18469_v7 = vpop.f32.mrf.mxu0 }
0x1779   :  { %v18473_v10 = vpop.f32.mrf.mxu0 }
0x177a   :  { %12732 = vmatpush1.bf16.msra.mxu0 %v16295_v63  ;;  %v10884_v63 = vld [vmem:[#allocation6 + $0x480] ss:$8 sm:$0xf0] }
0x177b   :  { %12733 = vmatprep.subr.bf16.mxu0 %v16292_v51  ;;  %v18475_v22 = vpop.f32.mrf.mxu0 }
0x177d   :  { %v18477_v36 = vpop.f32.mrf.mxu0 }
0x177e   :  { %12734 = vmatpush1.bf16.msra.mxu0 %v16291_v32  ;;  %v18497_v32 = vor.u32 %v10884_v63, %v10883_v3 }
0x177f   :  { %12735 = vmatprep.subr.bf16.mxu0 %v16288_v12 }
0x1780   :  { %v10894_v15 = vrot.slane %v18497_v32, %v18854_v58 }
0x1782   :  { %12736 = vmatpush1.bf16.msra.mxu0 %v16287_v17  ;;  %v18853_v17 = vld [vmem:[#allocation20_spill] sm:$0xff] }
0x1783   :  { %12737 = vmatprep.subr.bf16.mxu0 %v16284_v26  ;;  %v10890_v26 = vrot.slane %v18497_v32, %v18853_v17 }
0x1786   :  { %12738 = vmatpush1.bf16.msra.mxu0 %v16283_v44 }
0x1787   :  { %12739 = vmatprep.subr.bf16.mxu0 %v16344_v13 }
0x178a   :  { %12740 = vmatpush2.bf16.msra.mxu0 %v16343_v56 }
0x178b   :  { %12741 = vmatprep.subr.bf16.mxu0 %v16340_v37 }
0x178e   :  { %12742 = vmatpush2.bf16.msra.mxu0 %v16339_v24  ;;  %v18481_v1 = vpop.f32.mrf.mxu1 }
0x178f   :  { %12743 = vmatprep.subr.bf16.mxu0 %v16336_v27 }
0x1790   :  { %v18487_v14 = vpop.f32.mrf.mxu1 }
0x1792   :  { %12744 = vmatpush2.bf16.msra.mxu0 %v16335_v29  ;;  %v18493_v21 = vpop.f32.mrf.mxu1 }
0x1793   :  { %12745 = vmatprep.subr.bf16.mxu0 %v16332_v55 }
0x1794   :  { %v18501_v62 = vpop.f32.mrf.mxu1 }
0x1796   :  { %12746 = vmatpush2.bf16.msra.mxu0 %v16331_v9  ;;  %v18509_v13 = vpop.f32.mrf.mxu1  ;;  %v11339_v9 = vld [vmem:[#allocation2 + $0x2980] sm:$0xff] }
0x1797   :  { %12747 = vmatprep.subr.bf16.mxu0 %v16328_v6  ;;  %v11341_v6 = vld [vmem:[#allocation2 + $0x29a0] sm:$0xff] }
0x1798   :  { %v10753_v11 = vpop.f32.mrf.mxu1  ;;  %v16435_v63 = vcombine.low %v11339_v9, %v11341_v6 }
0x179a   :  { %12748 = vmatpush2.bf16.msra.mxu0 %v16327_v61  ;;  %v10755_v54 = vpop.f32.mrf.mxu1 }
0x179b   :  { %12749 = vmatprep.subr.bf16.mxu0 %v16324_v2 }
0x179c   :  { %v10757_v0 = vpop.f32.mrf.mxu1 }
0x179e   :  { %12750 = vmatpush2.bf16.msra.mxu0 %v16323_v57  ;;  %v16436_v57 = vcombine.high %v11339_v9, %v11341_v6 }
0x179f   :  { %12751 = vmatprep.subr.bf16.mxu0 %v16320_v19 }
0x17a2   :  { %12752 = vmatpush2.bf16.msra.mxu0 %v16319_v40  ;;  %v11337_v40 = vld [vmem:[#allocation2 + $0x2960] sm:$0xff] }
0x17a3   :  { %12753 = vmatprep.subr.bf16.mxu0 %v16316_v39  ;;  %v16432_v48 = vcombine.high %v11335_v34, %v11337_v40 }
0x17a6   :  { %12754 = vmatpush2.bf16.msra.mxu0 %v16315_v5 }
0x17a7   :  { %12829 = vmatprep.subr.bf16.mxu0 %v16440_v43 }
0x17af   :  { %v18479_v50 = vpop.f32.mrf.mxu0 }
0x17b1   :  { %v18483_v42 = vpop.f32.mrf.mxu0 }
0x17b3   :  { %v18485_v52 = vpop.f32.mrf.mxu0 }
0x17b5   :  { %v18489_v46 = vpop.f32.mrf.mxu0 }
0x17b7   :  { %v18491_v51 = vpop.f32.mrf.mxu0 }
0x17b9   :  { %v18495_v59 = vpop.f32.mrf.mxu0 }
0x17bb   :  { %v18499_v12 = vpop.f32.mrf.mxu0 }
0x17bd   :  { %v18503_v45 = vpop.f32.mrf.mxu0 }
0x17bf   :  { %v10961_v44 = vpop.f32.mrf.mxu0 }
0x17c0   :  { %v10962_v30 = vadd.f32 %v10961_v44, %v10890_v26 }
0x17c1   :  { %v10963_v38 = vpop.f32.mrf.mxu0 }
0x17c2   :  { %v10964_v56 = vadd.f32 %v10963_v38, %v10894_v15  ;;  %v11139_v24 = vmax.f32 %v10962_v30, 0.0 }
0x17c3   :  { %v10965_v37 = vpop.f32.mrf.mxu0 }
0x17c4   :  { %v10966_v41 = vadd.f32 %v10965_v37, %v10890_v26  ;;  %v11140_v28 = vmax.f32 %v10964_v56, 0.0  ;;  %v11331_v56 = vld [vmem:[#allocation2 + $0x2900] sm:$0xff] }
0x17c5   :  { %v10967_v27 = vpop.f32.mrf.mxu0  ;;  %v11333_v37 = vld [vmem:[#allocation2 + $0x2920] sm:$0xff] }
0x17c6   :  { %v11147_v4 = vmax.f32 %v10966_v41, 0.0  ;;  %v10968_v29 = vadd.f32 %v10967_v27, %v10894_v15  ;;  %v16431_v27 = vcombine.low %v11335_v34, %v11337_v40  ;;  %v16427_v9 = vcombine.low %v11331_v56, %v11333_v37 }
0x17c7   :  { %v10971_v55 = vpop.f32.mrf.mxu0  ;;  %v10758_v34 = vadd.f32 %v10757_v0, %v18477_v36  ;;  %v10752_v40 = vadd.f32 %v18509_v13, %v18469_v7  ;;  %v10746_v36 = vadd.f32 %v18493_v21, %v18461_v16  ;;  %v11319_v13 = vld [vmem:[#allocation2 + $0x2840] sm:$0xff] }
0x17c8   :  { %v11148_v23 = vmax.f32 %v10968_v29, 0.0  ;;  %v18511_v18 = vpack.c.bf16 %v11147_v4, %v11139_v24  ;;  %v10972_v25 = vadd.f32 %v10971_v55, %v10890_v26  ;;  %v16428_v4 = vcombine.high %v11331_v56, %v11333_v37  ;;  %v11327_v55 = vld [vmem:[#allocation2 + $0x28c0] sm:$0xff] }
0x17c9   :  { %v10973_v61 = vpop.f32.mrf.mxu0  ;;  %v10805_v7 = vadd.f32 %v18491_v51, %v10752_v40  ;;  %v11371_v40 = vld [vmem:[#allocation2 + $0x2b80] sm:$0xff] }
0x17ca   :  { %v18513_v2 = vpack.c.bf16 %v11148_v23, %v11140_v28  ;;  %v10974_v60 = vadd.f32 %v10973_v61, %v10894_v15  ;;  %v11155_v5 = vmax.f32 %v10972_v25, 0.0  ;;  %v11329_v23 = vld [vmem:[#allocation2 + $0x28e0] sm:$0xff] }
0x17cb   :  { %v10975_v19 = vpop.f32.mrf.mxu0  ;;  %v16424_v6 = vcombine.high %v11327_v55, %v11329_v23  ;;  %v11323_v25 = vld [vmem:[#allocation2 + $0x2880] sm:$0xff] }
0x17cc   :  { %12755 = vmatprep.mubr.bf16.mxu0 %v18513_v2  ;;  %v10976_v39 = vadd.f32 %v10975_v19, %v10890_v26  ;;  %v11156_v44 = vmax.f32 %v10974_v60, 0.0  ;;  %v11325_v61 = vld [vmem:[#allocation2 + $0x28a0] sm:$0xff]  ;;  %v10754_v19 = vadd.f32 %v10753_v11, %v18473_v10  ;;  %v10811_v10 = vadd.f32 %v18503_v45, %v10758_v34 }
0x17cd   :  { %12756 = vmatmul.mubr.bf16.vlgmr.msra.gmra.mxu0 %v18511_v18  ;;  %v10977_v43 = vpop.f32.mrf.mxu0  ;;  %v11321_v11 = vld [vmem:[#allocation2 + $0x2860] sm:$0xff] }
0x17ce   :  { %v18519_v3 = vpop.f32.mrf.mxu1  ;;  %12830 = vmatpush1.bf16.msra.mxu0 %v16439_v20  ;;  %v11163_v30 = vmax.f32 %v10976_v39, 0.0  ;;  %v10978_v8 = vadd.f32 %v10977_v43, %v10894_v15  ;;  %v10756_v20 = vadd.f32 %v10755_v54, %v18475_v22  ;;  %v16423_v43 = vcombine.low %v11327_v55, %v11329_v23 }
0x17cf   :  { %12831 = vmatprep.subr.bf16.mxu0 %v16436_v57  ;;  %v10748_v57 = vadd.f32 %v18501_v62, %v18463_v49  ;;  %v10744_v22 = vadd.f32 %v18487_v14, %v18459_v31  ;;  %v10807_v49 = vadd.f32 %v18495_v59, %v10754_v19  ;;  %v10799_v59 = vadd.f32 %v18485_v52, %v10746_v36 }
0x17d0   :  { %v10849_v38 = vpop.f32.mrf.mxu1  ;;  %v11164_v41 = vmax.f32 %v10978_v8, 0.0  ;;  %v18521_v24 = vpack.c.bf16 %v11163_v30, %v11155_v5  ;;  %v10809_v39 = vadd.f32 %v18499_v12, %v10756_v20  ;;  %v16419_v30 = vcombine.low %v11323_v25, %v11325_v61  ;;  %v11277_v20 = vld [vmem:[#allocation2 + $0x25a0] sm:$0xff] }
0x17d1   :  { %v10801_v54 = vadd.f32 %v18489_v46, %v10748_v57  ;;  %v10797_v0 = vadd.f32 %v18483_v42, %v10744_v22  ;;  %v10742_v46 = vadd.f32 %v18481_v1, %v18457_v35  ;;  %v16416_v8 = vcombine.high %v11319_v13, %v11321_v11 }
0x17d2   :  { %v10851_v26 = vpop.f32.mrf.mxu1  ;;  %12832 = vmatpush1.bf16.msra.mxu0 %v16435_v63  ;;  %v18523_v28 = vpack.c.bf16 %v11164_v41, %v11156_v44  ;;  %v16420_v63 = vcombine.high %v11323_v25, %v11325_v61  ;;  %v11317_v41 = vld [vmem:[#allocation2 + $0x2820] sm:$0xff] }
0x17d3   :  { %12833 = vmatprep.subr.bf16.mxu0 %v16432_v48  ;;  %v10850_v51 = vadd.f32 %v10849_v38, %v10797_v0  ;;  %v11315_v48 = vld [vmem:[#allocation2 + $0x2800] sm:$0xff]  ;;  %v10795_v42 = vadd.f32 %v18479_v50, %v10742_v46  ;;  %v10852_v56 = vadd.f32 %v10851_v26, %v10799_v59 }
0x17d4   :  { %v10853_v29 = vpop.f32.mrf.mxu1  ;;  %12765 = vmatprep.mubr.bf16.mxu0 %v18523_v28  ;;  %v18855_v38 = vld [vmem:[#allocation22_spill] sm:$0xff]  ;;  %v16412_v50 = vcombine.high %v11315_v48, %v11317_v41 }
0x17d5   :  { %12766 = vmatmul.mubr.bf16.gmra.mxu0 %v18521_v24  ;;  %v10854_v44 = vadd.f32 %v10853_v29, %v10801_v54  ;;  %v10848_v52 = vadd.f32 %v18519_v3, %v10795_v42  ;;  %v16415_v29 = vcombine.low %v11319_v13, %v11321_v11  ;;  %v18553_v55 = vrot.slane %v18497_v32, %v18855_v38  ;;  %v11275_v61 = vld [vmem:[#allocation2 + $0x2580] sm:$0xff] }
0x17d6   :  { %v10857_v15 = vpop.f32.mrf.mxu1  ;;  %12834 = vmatpush1.bf16.msra.mxu0 %v16431_v27  ;;  %v11279_v27 = vld [vmem:[#allocation2 + $0x25c0] sm:$0xff]  ;;  %v16411_v3 = vcombine.low %v11315_v48, %v11317_v41  ;;  %v16371_v36 = vcombine.low %v11275_v61, %v11277_v20 }
0x17d7   :  { %12835 = vmatprep.subr.bf16.mxu0 %v16428_v4  ;;  %v10858_v45 = vadd.f32 %v10857_v15, %v10805_v7  ;;  %v11281_v4 = vld [vmem:[#allocation2 + $0x25e0] sm:$0xff]  ;;  %v10873_v1 = vpack.c.bf16 %v10854_v44, %v10850_v51  ;;  %v10872_v15 = vpack.c.bf16 %v10852_v56, %v10848_v52 }
0x17d8   :  { %v10859_v60 = vpop.f32.mrf.mxu1  ;;  %v16376_v26 = vcombine.high %v11279_v27, %v11281_v4  ;;  %v16375_v34 = vcombine.low %v11279_v27, %v11281_v4  ;;  %v11367_v7 = vld [vmem:[#allocation2 + $0x2b40] sm:$0xff] }
0x17d9   :  { %v10860_v31 = vadd.f32 %v10859_v60, %v10807_v49  ;;  %v11267_v13 = vld [vmem:[#allocation2 + $0x2500] sm:$0xff] }
0x17da   :  { %v10861_v5 = vpop.f32.mrf.mxu1  ;;  %12836 = vmatpush1.bf16.msra.mxu0 %v16427_v9  ;;  %v11375_v9 = vld [vmem:[#allocation2 + $0x2bc0] sm:$0xff] }
0x17db   :  { %12837 = vmatprep.subr.bf16.mxu0 %v16424_v6  ;;  %v10862_v12 = vadd.f32 %v10861_v5, %v10809_v39  ;;  %v11377_v6 = vld [vmem:[#allocation2 + $0x2be0] sm:$0xff]  ;;  %v16372_v5 = vcombine.high %v11275_v61, %v11277_v20 }
0x17dc   :  { %v10863_v62 = vpop.f32.mrf.mxu1  ;;  %v16472_v19 = vcombine.high %v11375_v9, %v11377_v6  ;;  %v11373_v39 = vld [vmem:[#allocation2 + $0x2ba0] sm:$0xff]  ;;  %v16471_v22 = vcombine.low %v11375_v9, %v11377_v6 }
0x17dd   :  { %v10864_v14 = vadd.f32 %v10863_v62, %v10811_v10  ;;  %v10880_v37 = vpack.c.bf16 %v10862_v12, %v10858_v45  ;;  %v16468_v10 = vcombine.high %v11371_v40, %v11373_v39  ;;  %v11369_v12 = vld [vmem:[#allocation2 + $0x2b60] sm:$0xff] }
0x17de   :  { %12838 = vmatpush1.bf16.msra.mxu0 %v16423_v43  ;;  %v18547_v16 = vpop.f32.mrf.mxu1  ;;  %v11271_v43 = vld [vmem:[#allocation2 + $0x2540] sm:$0xff]  ;;  %v16464_v44 = vcombine.high %v11367_v7, %v11369_v12  ;;  %v16463_v51 = vcombine.low %v11367_v7, %v11369_v12 }
0x17df   :  { %v10881_v21 = vpack.c.bf16 %v10864_v14, %v10860_v31  ;;  %12839 = vmatprep.subr.bf16.mxu0 %v16420_v63  ;;  %v11273_v63 = vld [vmem:[#allocation2 + $0x2560] sm:$0xff] }
0x17e0   :  { %v11016_v35 = vpop.f32.mrf.mxu1  ;;  %v16368_v62 = vcombine.high %v11271_v43, %v11273_v63  ;;  %v11269_v11 = vld [vmem:[#allocation2 + $0x2520] sm:$0xff]  ;;  %v16367_v31 = vcombine.low %v11271_v43, %v11273_v63 }
0x17e1   :  { %11098 = vmatprep.subr.bf16.mxu1 %v10881_v21  ;;  %v11017_v60 = vadd.f32 %v11016_v35, %v18553_v55  ;;  %v11363_v14 = vld [vmem:[#allocation2 + $0x2b00] sm:$0xff]  ;;  %v16364_v59 = vcombine.high %v11267_v13, %v11269_v11 }
0x17e2   :  { %11099 = vmatpush1.bf16.msra.mxu1 %v10880_v37  ;;  %12840 = vmatpush1.bf16.msra.mxu0 %v16419_v30  ;;  %v18555_v23 = vpop.f32.mrf.mxu1  ;;  %v11365_v46 = vld [vmem:[#allocation2 + $0x2b20] sm:$0xff] }
0x17e3   :  { %11100 = vmatprep.subr.bf16.mxu1 %v10873_v1  ;;  %12841 = vmatprep.subr.bf16.mxu0 %v16416_v8  ;;  %v11142_v54 = vmax.f32 %v11017_v60, 0.0  ;;  %v11263_v45 = vld [vmem:[#allocation2 + $0x24c0] sm:$0xff]  ;;  %v16460_v21 = vcombine.high %v11363_v14, %v11365_v46  ;;  %v16363_v8 = vcombine.low %v11267_v13, %v11269_v11  ;;  %v16459_v27 = vcombine.low %v11363_v14, %v11365_v46 }
0x17e4   :  { %v11020_v25 = vpop.f32.mrf.mxu1  ;;  %v11265_v30 = vld [vmem:[#allocation2 + $0x24e0] sm:$0xff] }
0x17e5   :  { %v11021_v57 = vadd.f32 %v11020_v25, %v18553_v55  ;;  %v11359_v48 = vld [vmem:[#allocation2 + $0x2ac0] sm:$0xff]  ;;  %v16360_v56 = vcombine.high %v11263_v45, %v11265_v30  ;;  %v16359_v4 = vcombine.low %v11263_v45, %v11265_v30 }
0x17e6   :  { %11101 = vmatpush1.bf16.msra.mxu1 %v10872_v15  ;;  %12842 = vmatpush1.bf16.msra.mxu0 %v16415_v29  ;;  %v11361_v42 = vld [vmem:[#allocation2 + $0x2ae0] sm:$0xff] }
0x17e7   :  { %12843 = vmatprep.subr.bf16.mxu0 %v16412_v50  ;;  %12776 = vmatprep.subr.bf16.mxu1 %v16376_v26  ;;  %v11150_v49 = vmax.f32 %v11021_v57, 0.0  ;;  %v11259_v37 = vld [vmem:[#allocation2 + $0x2480] sm:$0xff]  ;;  %v16455_v26 = vcombine.low %v11359_v48, %v11361_v42 }
0x17e8   :  { %v11261_v41 = vld [vmem:[#allocation2 + $0x24a0] sm:$0xff] }
0x17e9   :  { %16281 = vmatmul.mubr.msk.bf16.vlgmr.msra.gmra.mxu1 %vm321_vm3, %v18408_v47  ;;  %v16467_v47 = vcombine.low %v11371_v40, %v11373_v39  ;;  %v18562_v0 = vpack.c.bf16 %v11150_v49, %v11142_v54  ;;  %v11355_v35 = vld [vmem:[#allocation2 + $0x2a80] sm:$0xff]  ;;  %v16356_v52 = vcombine.high %v11259_v37, %v11261_v41  ;;  %v16355_v9 = vcombine.low %v11259_v37, %v11261_v41  ;;  %v18567_v49 = vld [vmem:[#allocation2 + $0x21c8] sm:$0xff] }
0x17ea   :  { %11128 = vmatprep.mubr.bf16.mxu1 %v18829_v33  ;;  %12844 = vmatpush1.bf16.msra.mxu0 %v16411_v3  ;;  %v11357_v1 = vld [vmem:[#allocation2 + $0x2aa0] sm:$0xff] }
0x17eb   :  { %12845 = vmatprep.subr.bf16.mxu0 %v16472_v19  ;;  %12777 = vmatpush1.bf16.msra.mxu1 %v16375_v34  ;;  %v11255_v29 = vld [vmem:[#allocation2 + $0x2440] sm:$0xff]  ;;  %v16452_v15 = vcombine.high %v11355_v35, %v11357_v1  ;;  %v16451_v60 = vcombine.low %v11355_v35, %v11357_v1 }
0x17ec   :  { %12778 = vmatprep.subr.bf16.mxu1 %v16372_v5  ;;  %v11257_v50 = vld [vmem:[#allocation2 + $0x2460] sm:$0xff] }
0x17ed   :  { %v11351_v6 = vld [vmem:[#allocation2 + $0x2a40] sm:$0xff]  ;;  %v16352_v61 = vcombine.high %v11255_v29, %v11257_v50  ;;  %v16351_v19 = vcombine.low %v11255_v29, %v11257_v50  ;;  %v18856_v29 = vld [vmem:[#allocation23_spill] sm:$0xff] }
0x17ee   :  { %12846 = vmatpush2.bf16.msra.mxu0 %v16471_v22  ;;  %v11353_v25 = vld [vmem:[#allocation2 + $0x2a60] sm:$0xff]  ;;  %v10898_v50 = vrot.slane %v18497_v32, %v18856_v29 }
0x17ef   :  { %12847 = vmatprep.subr.bf16.mxu0 %v16468_v10  ;;  %12779 = vmatpush1.bf16.msra.mxu1 %v16371_v36  ;;  %v11251_v20 = vld [vmem:[#allocation2 + $0x2400] sm:$0xff]  ;;  %v16448_v57 = vcombine.high %v11351_v6, %v11353_v25  ;;  %v16447_v63 = vcombine.low %v11351_v6, %v11353_v25  ;;  %v18569_v10 = vld [vmem:[#allocation2 + $0x21e8] sm:$0xff] }
0x17f0   :  { %12780 = vmatprep.subr.bf16.mxu1 %v16368_v62  ;;  %v11253_v3 = vld [vmem:[#allocation2 + $0x2420] sm:$0xff]  ;;  %v16314_v13 = vcombine.high %v18567_v49, %v18569_v10 }
0x17f1   :  { %16282 = vmatmul.mubr.msk.bf16.gmra.mxu1 %vm321_vm3, %v18423_v53  ;;  %v16456_v53 = vcombine.high %v11359_v48, %v11361_v42  ;;  %v11347_v34 = vld [vmem:[#allocation2 + $0x2a00] sm:$0xff]  ;;  %v16348_v39 = vcombine.high %v11251_v20, %v11253_v3  ;;  %v16347_v54 = vcombine.low %v11251_v20, %v11253_v3  ;;  %v11019_v20 = vadd.f32 %v18555_v23, %v10898_v50 }
0x17f2   :  { %12848 = vmatpush2.bf16.msra.mxu0 %v16467_v47  ;;  %12808 = vmatprep.mubr.bf16.mxu1 %v18562_v0  ;;  %v11349_v40 = vld [vmem:[#allocation2 + $0x2a20] sm:$0xff] }
0x17f3   :  { %12849 = vmatprep.subr.bf16.mxu0 %v16464_v44  ;;  %12781 = vmatpush1.bf16.msra.mxu1 %v16367_v31  ;;  %v11311_v5 = vld [vmem:[#allocation2 + $0x27c0] sm:$0xff]  ;;  %v16444_v22 = vcombine.high %v11347_v34, %v11349_v40  ;;  %v16443_v62 = vcombine.low %v11347_v34, %v11349_v40 }
0x17f4   :  { %12782 = vmatprep.subr.bf16.mxu1 %v16364_v59  ;;  %v11313_v43 = vld [vmem:[#allocation2 + $0x27e0] sm:$0xff] }
0x17f5   :  { %v16408_v36 = vcombine.high %v11311_v5, %v11313_v43  ;;  %v11307_v7 = vld [vmem:[#allocation2 + $0x2780] sm:$0xff]  ;;  %v16407_v11 = vcombine.low %v11311_v5, %v11313_v43  ;;  %v11149_v5 = vmax.f32 %v11019_v20, 0.0  ;;  %v11212_v20 = vld [vmem:[#allocation2 + $0x2188] sm:$0xff] }
0x17f6   :  { %12850 = vmatpush2.bf16.msra.mxu0 %v16463_v51  ;;  %v11309_v12 = vld [vmem:[#allocation2 + $0x27a0] sm:$0xff] }
0x17f7   :  { %12851 = vmatprep.subr.bf16.mxu0 %v16460_v21  ;;  %12783 = vmatpush1.bf16.msra.mxu1 %v16363_v8  ;;  %v16404_v47 = vcombine.high %v11307_v7, %v11309_v12  ;;  %v11303_v44 = vld [vmem:[#allocation2 + $0x2740] sm:$0xff]  ;;  %v16403_v14 = vcombine.low %v11307_v7, %v11309_v12  ;;  %v11024_v21 = vpop.f32.mrf.mxu1 }
0x17f8   :  { %12784 = vmatprep.subr.bf16.mxu1 %v16360_v56  ;;  %v11305_v31 = vld [vmem:[#allocation2 + $0x2760] sm:$0xff]  ;;  %v11025_v7 = vadd.f32 %v11024_v21, %v10898_v50 }
0x17f9   :  { %v16400_v46 = vcombine.high %v11303_v44, %v11305_v31  ;;  %v11299_v59 = vld [vmem:[#allocation2 + $0x2700] sm:$0xff]  ;;  %v16399_v30 = vcombine.low %v11303_v44, %v11305_v31  ;;  %v11026_v37 = vpop.f32.mrf.mxu1 }
0x17fa   :  { %12852 = vmatpush2.bf16.msra.mxu0 %v16459_v27  ;;  %v11301_v45 = vld [vmem:[#allocation2 + $0x2720] sm:$0xff] }
0x17fb   :  { %12853 = vmatprep.subr.bf16.mxu0 %v16456_v53  ;;  %12785 = vmatpush1.bf16.msra.mxu1 %v16359_v4  ;;  %v16396_v51 = vcombine.high %v11299_v59, %v11301_v45  ;;  %v11295_v8 = vld [vmem:[#allocation2 + $0x26c0] sm:$0xff]  ;;  %v16395_v42 = vcombine.low %v11299_v59, %v11301_v45  ;;  %v11028_v35 = vpop.f32.mrf.mxu1  ;;  %v11157_v45 = vmax.f32 %v11025_v7, 0.0 }
0x17fc   :  { %12786 = vmatprep.subr.bf16.mxu1 %v16356_v52  ;;  %v11297_v48 = vld [vmem:[#allocation2 + $0x26e0] sm:$0xff]  ;;  %v11029_v12 = vadd.f32 %v11028_v35, %v10898_v50 }
0x17fd   :  { %v16392_v56 = vcombine.high %v11295_v8, %v11297_v48  ;;  %v11291_v41 = vld [vmem:[#allocation2 + $0x2680] sm:$0xff]  ;;  %v16391_v53 = vcombine.low %v11295_v8, %v11297_v48 }
0x17fe   :  { %12854 = vmatpush2.bf16.msra.mxu0 %v16455_v26  ;;  %v11293_v27 = vld [vmem:[#allocation2 + $0x26a0] sm:$0xff] }
0x17ff   :  { %12855 = vmatprep.subr.bf16.mxu0 %v16452_v15  ;;  %12787 = vmatpush1.bf16.msra.mxu1 %v16355_v9  ;;  %v16388_v4 = vcombine.high %v11291_v41, %v11293_v27  ;;  %v11287_v1 = vld [vmem:[#allocation2 + $0x2640] sm:$0xff]  ;;  %v16387_v26 = vcombine.low %v11291_v41, %v11293_v27  ;;  %v11030_v9 = vpop.f32.mrf.mxu1 }
0x1800   :  { %12788 = vmatprep.subr.bf16.mxu1 %v16352_v61  ;;  %v11289_v52 = vld [vmem:[#allocation2 + $0x2660] sm:$0xff]  ;;  %v11015_v61 = vadd.f32 %v18547_v16, %v10898_v50 }
0x1801   :  { %v16384_v15 = vcombine.high %v11287_v1, %v11289_v52  ;;  %v11283_v6 = vld [vmem:[#allocation2 + $0x2600] sm:$0xff]  ;;  %v16383_v3 = vcombine.low %v11287_v1, %v11289_v52 }
0x1802   :  { %12856 = vmatpush2.bf16.msra.mxu0 %v16451_v60  ;;  %v11285_v25 = vld [vmem:[#allocation2 + $0x2620] sm:$0xff]  ;;  %v11027_v60 = vadd.f32 %v11026_v37, %v18553_v55 }
0x1803   :  { %12857 = vmatprep.subr.bf16.mxu0 %v16448_v57  ;;  %12789 = vmatpush1.bf16.msra.mxu1 %v16351_v19  ;;  %v11031_v57 = vadd.f32 %v11030_v9, %v18553_v55  ;;  %v16380_v19 = vcombine.high %v11283_v6, %v11285_v25  ;;  %v11407_v34 = vld [vmem:[#allocation2 + $0x2dc0] sm:$0xff]  ;;  %v16379_v43 = vcombine.low %v11283_v6, %v11285_v25 }
0x1804   :  { %12790 = vmatprep.subr.bf16.mxu1 %v16348_v39  ;;  %v11409_v40 = vld [vmem:[#allocation2 + $0x2de0] sm:$0xff]  ;;  %v11141_v39 = vmax.f32 %v11015_v61, 0.0 }
0x1805   :  { %v16504_v16 = vcombine.high %v11407_v34, %v11409_v40  ;;  %v11405_v23 = vld [vmem:[#allocation2 + $0x2da0] sm:$0xff] }
0x1806   :  { %12858 = vmatpush2.bf16.msra.mxu0 %v16447_v63  ;;  %v11158_v63 = vmax.f32 %v11027_v60, 0.0  ;;  %v11401_v59 = vld [vmem:[#allocation2 + $0x2d60] sm:$0xff] }
0x1807   :  { %12859 = vmatprep.subr.bf16.mxu0 %v16444_v22  ;;  %12791 = vmatpush1.bf16.msra.mxu1 %v16347_v54  ;;  %v11166_v22 = vmax.f32 %v11031_v57, 0.0  ;;  %v11403_v54 = vld [vmem:[#allocation2 + $0x2d80] sm:$0xff] }
0x1808   :  { %12792 = vmatprep.subr.bf16.mxu1 %v16408_v36  ;;  %v18579_v36 = vpack.c.bf16 %v11149_v5, %v11141_v39  ;;  %v16500_v31 = vcombine.high %v11403_v54, %v11405_v23  ;;  %v16499_v8 = vcombine.low %v11403_v54, %v11405_v23  ;;  %v11395_v37 = vld [vmem:[#allocation2 + $0x2d00] sm:$0xff]  ;;  %v16313_v39 = vcombine.low %v18567_v49, %v18569_v10 }
0x1809   :  { %v11397_v41 = vld [vmem:[#allocation2 + $0x2d20] sm:$0xff] }
0x180a   :  { %12860 = vmatpush2.bf16.msra.mxu0 %v16443_v62  ;;  %v18857_v62 = vld [vmem:[#allocation25_spill] sm:$0xff]  ;;  %v11391_v6 = vld [vmem:[#allocation2 + $0x2cc0] sm:$0xff] }
0x180b   :  { %12935 = vmatprep.subr.bf16.mxu0 %v16314_v13  ;;  %12793 = vmatpush2.bf16.msra.mxu1 %v16407_v11  ;;  %v10906_v55 = vrot.slane %v18497_v32, %v18857_v62  ;;  %v16503_v13 = vcombine.low %v11407_v34, %v11409_v40  ;;  %v18583_v11 = vpack.c.bf16 %v11166_v22, %v11158_v63  ;;  %v11393_v25 = vld [vmem:[#allocation2 + $0x2ce0] sm:$0xff]  ;;  %v18603_v63 = vld [vmem:[#allocation2 + $0x25c8] sm:$0xff] }
0x180c   :  { %12794 = vmatprep.subr.bf16.mxu1 %v16404_v47  ;;  %v18858_v47 = vld [vmem:[#allocation24_spill] sm:$0xff]  ;;  %v16491_v34 = vcombine.low %v11395_v37, %v11397_v41  ;;  %v18605_v22 = vld [vmem:[#allocation2 + $0x25e8] sm:$0xff]  ;;  %v11387_v23 = vld [vmem:[#allocation2 + $0x2c80] sm:$0xff] }
0x180d   :  { %v18587_v44 = vrot.slane %v18497_v32, %v18858_v47  ;;  %v11389_v7 = vld [vmem:[#allocation2 + $0x2ca0] sm:$0xff]  ;;  %v11210_v62 = vld [vmem:[#allocation2 + $0x2168] sm:$0xff]  ;;  %v16377_v49 = vcombine.low %v18603_v63, %v18605_v22 }
0x180f   :  { %12795 = vmatpush2.bf16.msra.mxu1 %v16403_v14 }
0x1810   :  { %12796 = vmatprep.subr.bf16.mxu1 %v16400_v46  ;;  %v11399_v46 = vld [vmem:[#allocation2 + $0x2d40] sm:$0xff] }
0x1811   :  { %v16495_v1 = vcombine.low %v11399_v46, %v11401_v59 }
0x1813   :  { %12797 = vmatpush2.bf16.msra.mxu1 %v16399_v30  ;;  %v11165_v30 = vmax.f32 %v11029_v12, 0.0  ;;  %v11208_v12 = vld [vmem:[#allocation2 + $0x2148] sm:$0xff] }
0x1814   :  { %12798 = vmatprep.subr.bf16.mxu1 %v16396_v51 }
0x1817   :  { %12799 = vmatpush2.bf16.msra.mxu1 %v16395_v42  ;;  %v16496_v42 = vcombine.high %v11399_v46, %v11401_v59 }
0x1818   :  { %12800 = vmatprep.subr.bf16.mxu1 %v16392_v56 }
0x181b   :  { %12801 = vmatpush2.bf16.msra.mxu1 %v16391_v53  ;;  %v18592_v53 = vpack.c.bf16 %v11165_v30, %v11157_v45  ;;  %v16484_v30 = vcombine.high %v11387_v23, %v11389_v7 }
0x181c   :  { %12802 = vmatprep.subr.bf16.mxu1 %v16388_v4 }
0x181f   :  { %12803 = vmatpush2.bf16.msra.mxu1 %v16387_v26 }
0x1820   :  { %12804 = vmatprep.subr.bf16.mxu1 %v16384_v15  ;;  %v16492_v15 = vcombine.high %v11395_v37, %v11397_v41  ;;  %v16483_v37 = vcombine.low %v11387_v23, %v11389_v7  ;;  %v16305_v41 = vcombine.low %v11208_v12, %v11210_v62 }
0x1823   :  { %12805 = vmatpush2.bf16.msra.mxu1 %v16383_v3  ;;  %v11214_v3 = vld [vmem:[#allocation2 + $0x21a8] sm:$0xff] }
0x1824   :  { %12806 = vmatprep.subr.bf16.mxu1 %v16380_v19  ;;  %v16309_v10 = vcombine.low %v11212_v20, %v11214_v3 }
0x1827   :  { %12807 = vmatpush2.bf16.msra.mxu1 %v16379_v43  ;;  %v16488_v43 = vcombine.high %v11391_v6, %v11393_v25 }
0x1828   :  { %12882 = vmatprep.subr.bf16.mxu1 %v16504_v16  ;;  %v16310_v16 = vcombine.high %v11212_v20, %v11214_v3  ;;  %v11196_v20 = vld [vmem:[#allocation2 + $0x2088] sm:$0xff] }
0x1829   :  { %v11067_v14 = vpop.f32.mrf.mxu0  ;;  %v11198_v3 = vld [vmem:[#allocation2 + $0x20a8] sm:$0xff] }
0x182a   :  { %12809 = vmatmul.mubr.bf16.vlgmr.msra.gmra.mxu1 %v18579_v36  ;;  %v11068_v51 = vadd.f32 %v11067_v14, %v10906_v55  ;;  %v16487_v14 = vcombine.low %v11391_v6, %v11393_v25  ;;  %v11439_v25 = vld [vmem:[#allocation2 + $0x2fc0] sm:$0xff]  ;;  %v16293_v23 = vcombine.low %v11196_v20, %v11198_v3 }
0x182b   :  { %v11069_v21 = vpop.f32.mrf.mxu0  ;;  %12883 = vmatpush1.bf16.msra.mxu1 %v16503_v13  ;;  %12818 = vmatprep.mubr.bf16.mxu1 %v18583_v11 }
0x182c   :  { %v11070_v48 = vadd.f32 %v11069_v21, %v18587_v44  ;;  %12884 = vmatprep.subr.bf16.mxu1 %v16500_v31  ;;  %v11143_v4 = vmax.f32 %v11068_v51, 0.0  ;;  %v16306_v51 = vcombine.high %v11208_v12, %v11210_v62  ;;  %v11206_v21 = vld [vmem:[#allocation2 + $0x2128] sm:$0xff]  ;;  %v11431_v62 = vld [vmem:[#allocation2 + $0x2f40] sm:$0xff] }
0x182d   :  { %v11071_v56 = vpop.f32.mrf.mxu0 }
0x182e   :  { %v11072_v27 = vadd.f32 %v11071_v56, %v10906_v55  ;;  %v11144_v52 = vmax.f32 %v11070_v48, 0.0  ;;  %v11383_v48 = vld [vmem:[#allocation2 + $0x2c40] sm:$0xff] }
0x182f   :  { %v11073_v35 = vpop.f32.mrf.mxu0  ;;  %12885 = vmatpush1.bf16.msra.mxu1 %v16499_v8 }
0x1830   :  { %v11151_v50 = vmax.f32 %v11072_v27, 0.0  ;;  %v11074_v26 = vadd.f32 %v11073_v35, %v18587_v44  ;;  %12886 = vmatprep.subr.bf16.mxu1 %v16496_v42  ;;  %v11385_v42 = vld [vmem:[#allocation2 + $0x2c60] sm:$0xff] }
0x1831   :  { %v11077_v9 = vpop.f32.mrf.mxu0  ;;  %v11379_v35 = vld [vmem:[#allocation2 + $0x2c00] sm:$0xff] }
0x1832   :  { %v11152_v61 = vmax.f32 %v11074_v26, 0.0  ;;  %12819 = vmatmul.mubr.bf16.gmra.mxu1 %v18592_v53  ;;  %v18596_v60 = vpack.c.bf16 %v11151_v50, %v11143_v4  ;;  %v11078_v57 = vadd.f32 %v11077_v9, %v10906_v55  ;;  %v16480_v4 = vcombine.high %v11383_v48, %v11385_v42  ;;  %v11202_v50 = vld [vmem:[#allocation2 + $0x20e8] sm:$0xff] }
0x1833   :  { %v11079_v19 = vpop.f32.mrf.mxu0  ;;  %12887 = vmatpush1.bf16.msra.mxu1 %v16495_v1  ;;  %v11381_v1 = vld [vmem:[#allocation2 + $0x2c20] sm:$0xff]  ;;  %v16479_v26 = vcombine.low %v11383_v48, %v11385_v42 }
0x1834   :  { %v18598_v40 = vpack.c.bf16 %v11152_v61, %v11144_v52  ;;  %v11080_v5 = vadd.f32 %v11079_v19, %v18587_v44  ;;  %12888 = vmatprep.subr.bf16.mxu1 %v16492_v15  ;;  %v11159_v47 = vmax.f32 %v11078_v57, 0.0  ;;  %v11200_v52 = vld [vmem:[#allocation2 + $0x20c8] sm:$0xff]  ;;  %v16476_v9 = vcombine.high %v11379_v35, %v11381_v1  ;;  %v11441_v61 = vld [vmem:[#allocation2 + $0x2fe0] sm:$0xff] }
0x1835   :  { %v11081_v54 = vpop.f32.mrf.mxu0  ;;  %v16298_v6 = vcombine.high %v11200_v52, %v11202_v50  ;;  %v16475_v57 = vcombine.low %v11379_v35, %v11381_v1  ;;  %v16297_v19 = vcombine.low %v11200_v52, %v11202_v50 }
0x1836   :  { %12861 = vmatprep.mubr.bf16.mxu0 %v18598_v40  ;;  %v11082_v13 = vadd.f32 %v11081_v54, %v10906_v55  ;;  %v11160_v46 = vmax.f32 %v11080_v5, 0.0  ;;  %v11204_v55 = vld [vmem:[#allocation2 + $0x2108] sm:$0xff]  ;;  %v11435_v5 = vld [vmem:[#allocation2 + $0x2f80] sm:$0xff]  ;;  %v16535_v54 = vcombine.low %v11439_v25, %v11441_v61 }
0x1837   :  { %12862 = vmatmul.mubr.bf16.vlgmr.msra.gmra.mxu0 %v18596_v60  ;;  %v11083_v31 = vpop.f32.mrf.mxu0  ;;  %12889 = vmatpush1.bf16.msra.mxu1 %v16491_v34  ;;  %v16301_v15 = vcombine.low %v11204_v55, %v11206_v21  ;;  %v16536_v34 = vcombine.high %v11439_v25, %v11441_v61 }
0x1838   :  { %12936 = vmatpush1.bf16.msra.mxu0 %v16313_v39  ;;  %v11167_v59 = vmax.f32 %v11082_v13, 0.0  ;;  %v11084_v45 = vadd.f32 %v11083_v31, %v18587_v44  ;;  %12890 = vmatprep.subr.bf16.mxu1 %v16488_v43  ;;  %v16302_v44 = vcombine.high %v11204_v55, %v11206_v21  ;;  %v16294_v39 = vcombine.high %v11196_v20, %v11198_v3  ;;  %v11437_v43 = vld [vmem:[#allocation2 + $0x2fa0] sm:$0xff]  ;;  %v11250_v55 = vld [vmem:[#allocation2 + $0x23e8] sm:$0xff] }
0x1839   :  { %12937 = vmatprep.subr.bf16.mxu0 %v16310_v16  ;;  %v11192_v16 = vld [vmem:[#allocation2 + $0x2048] sm:$0xff]  ;;  %v16532_v7 = vcombine.high %v11435_v5, %v11437_v43  ;;  %v11433_v13 = vld [vmem:[#allocation2 + $0x2f60] sm:$0xff]  ;;  %v16531_v31 = vcombine.low %v11435_v5, %v11437_v43 }
0x183a   :  { %v11168_v8 = vmax.f32 %v11084_v45, 0.0  ;;  %v18612_v56 = vpack.c.bf16 %v11167_v59, %v11159_v47  ;;  %v11190_v47 = vld [vmem:[#allocation2 + $0x2028] sm:$0xff]  ;;  %v11427_v45 = vld [vmem:[#allocation2 + $0x2f00] sm:$0xff]  ;;  %v16527_v21 = vcombine.low %v11431_v62, %v11433_v13 }
0x183b   :  { %12891 = vmatpush1.bf16.msra.mxu1 %v16487_v14 }
0x183c   :  { %12938 = vmatpush1.bf16.msra.mxu0 %v16309_v10  ;;  %v18614_v27 = vpack.c.bf16 %v11168_v8, %v11160_v46  ;;  %12892 = vmatprep.subr.bf16.mxu1 %v16484_v30  ;;  %v11188_v10 = vld [vmem:[#allocation2 + $0x2008] sm:$0xff]  ;;  %v16528_v46 = vcombine.high %v11431_v62, %v11433_v13  ;;  %v11429_v30 = vld [vmem:[#allocation2 + $0x2f20] sm:$0xff] }
0x183d   :  { %12939 = vmatprep.subr.bf16.mxu0 %v16306_v51  ;;  %v16286_v59 = vcombine.high %v11188_v10, %v11190_v47  ;;  %v11248_v51 = vld [vmem:[#allocation2 + $0x23c8] sm:$0xff]  ;;  %v16285_v8 = vcombine.low %v11188_v10, %v11190_v47  ;;  %v16524_v48 = vcombine.high %v11427_v45, %v11429_v30  ;;  %v16523_v35 = vcombine.low %v11427_v45, %v11429_v30 }
0x183e   :  { %12871 = vmatprep.mubr.bf16.mxu0 %v18614_v27  ;;  %v16346_v42 = vcombine.high %v11248_v51, %v11250_v55  ;;  %v16345_v1 = vcombine.low %v11248_v51, %v11250_v55  ;;  %v16378_v45 = vcombine.high %v18603_v63, %v18605_v22  ;;  %v11224_v51 = vld [vmem:[#allocation2 + $0x2248] sm:$0xff] }
0x183f   :  { %12872 = vmatmul.mubr.bf16.gmra.mxu0 %v18612_v56  ;;  %12893 = vmatpush1.bf16.msra.mxu1 %v16483_v37  ;;  %v11423_v37 = vld [vmem:[#allocation2 + $0x2ec0] sm:$0xff]  ;;  %v11226_v55 = vld [vmem:[#allocation2 + $0x2268] sm:$0xff] }
0x1840   :  { %12940 = vmatpush1.bf16.msra.mxu0 %v16305_v41  ;;  %12967 = vmatprep.mubr.bf16.mxu0 %v18513_v2  ;;  %v11194_v2 = vld [vmem:[#allocation2 + $0x2068] sm:$0xff]  ;;  %v11425_v41 = vld [vmem:[#allocation2 + $0x2ee0] sm:$0xff] }
0x1841   :  { %12941 = vmatprep.subr.bf16.mxu0 %v16302_v44  ;;  %12894 = vmatprep.subr.bf16.mxu1 %v16480_v4  ;;  %v16290_v12 = vcombine.high %v11192_v16, %v11194_v2  ;;  %v16289_v14 = vcombine.low %v11192_v16, %v11194_v2  ;;  %v11244_v44 = vld [vmem:[#allocation2 + $0x2388] sm:$0xff]  ;;  %v16520_v52 = vcombine.high %v11423_v37, %v11425_v41 }
0x1842   :  { %v11246_v4 = vld [vmem:[#allocation2 + $0x23a8] sm:$0xff]  ;;  %v16519_v25 = vcombine.low %v11423_v37, %v11425_v41  ;;  %v16321_v37 = vcombine.low %v11224_v51, %v11226_v55 }
0x1843   :  { %12895 = vmatpush1.bf16.msra.mxu1 %v16479_v26  ;;  %v16342_v50 = vcombine.high %v11244_v44, %v11246_v4  ;;  %v11419_v26 = vld [vmem:[#allocation2 + $0x2e80] sm:$0xff]  ;;  %v16341_v61 = vcombine.low %v11244_v44, %v11246_v4  ;;  %v11344_v44 = vld [vmem:[#allocation2 + $0x29c8] sm:$0xff] }
0x1844   :  { %12942 = vmatpush1.bf16.msra.mxu0 %v16301_v15  ;;  %12896 = vmatprep.subr.bf16.mxu1 %v16476_v9  ;;  %v11421_v15 = vld [vmem:[#allocation2 + $0x2ea0] sm:$0xff]  ;;  %v11240_v9 = vld [vmem:[#allocation2 + $0x2348] sm:$0xff] }
0x1845   :  { %12943 = vmatprep.subr.bf16.mxu0 %v16298_v6  ;;  %v11242_v6 = vld [vmem:[#allocation2 + $0x2368] sm:$0xff]  ;;  %v16516_v20 = vcombine.high %v11419_v26, %v11421_v15  ;;  %v16515_v5 = vcombine.low %v11419_v26, %v11421_v15 }
0x1846   :  { %v16338_v3 = vcombine.high %v11240_v9, %v11242_v6  ;;  %v16337_v43 = vcombine.low %v11240_v9, %v11242_v6  ;;  %v11346_v4 = vld [vmem:[#allocation2 + $0x29e8] sm:$0xff] }
0x1847   :  { %12897 = vmatpush1.bf16.msra.mxu1 %v16475_v57  ;;  %v11415_v57 = vld [vmem:[#allocation2 + $0x2e40] sm:$0xff]  ;;  %v16441_v26 = vcombine.low %v11344_v44, %v11346_v4  ;;  %v11336_v9 = vld [vmem:[#allocation2 + $0x2948] sm:$0xff] }
0x1848   :  { %12944 = vmatpush1.bf16.msra.mxu0 %v16297_v19  ;;  %12898 = vmatprep.subr.bf16.mxu1 %v16536_v34  ;;  %v11417_v19 = vld [vmem:[#allocation2 + $0x2e60] sm:$0xff]  ;;  %v11236_v34 = vld [vmem:[#allocation2 + $0x2308] sm:$0xff] }
0x1849   :  { %12945 = vmatprep.subr.bf16.mxu0 %v16294_v39  ;;  %v11238_v39 = vld [vmem:[#allocation2 + $0x2328] sm:$0xff]  ;;  %v16512_v16 = vcombine.high %v11415_v57, %v11417_v19  ;;  %v16511_v62 = vcombine.low %v11415_v57, %v11417_v19 }
0x184a   :  { %v16334_v2 = vcombine.high %v11236_v34, %v11238_v39  ;;  %v16333_v13 = vcombine.low %v11236_v34, %v11238_v39  ;;  %v11338_v6 = vld [vmem:[#allocation2 + $0x2968] sm:$0xff] }
0x184b   :  { %12899 = vmatpush2.bf16.msra.mxu1 %v16535_v54  ;;  %v11411_v54 = vld [vmem:[#allocation2 + $0x2e00] sm:$0xff]  ;;  %v16433_v57 = vcombine.low %v11336_v9, %v11338_v6  ;;  %v11328_v34 = vld [vmem:[#allocation2 + $0x28c8] sm:$0xff] }
0x184c   :  { %12946 = vmatpush1.bf16.msra.mxu0 %v16293_v23  ;;  %12900 = vmatprep.subr.bf16.mxu1 %v16532_v7  ;;  %v11413_v23 = vld [vmem:[#allocation2 + $0x2e20] sm:$0xff]  ;;  %v11232_v7 = vld [vmem:[#allocation2 + $0x22c8] sm:$0xff] }
0x184d   :  { %12947 = vmatprep.subr.bf16.mxu0 %v16290_v12  ;;  %v11234_v12 = vld [vmem:[#allocation2 + $0x22e8] sm:$0xff]  ;;  %v16508_v10 = vcombine.high %v11411_v54, %v11413_v23 }
0x184e   :  { %v16330_v47 = vcombine.high %v11232_v7, %v11234_v12  ;;  %v11330_v39 = vld [vmem:[#allocation2 + $0x28e8] sm:$0xff] }
0x184f   :  { %12901 = vmatpush2.bf16.msra.mxu1 %v16531_v31  ;;  %v11228_v31 = vld [vmem:[#allocation2 + $0x2288] sm:$0xff] }
0x1850   :  { %12948 = vmatpush1.bf16.msra.mxu0 %v16289_v14  ;;  %12902 = vmatprep.subr.bf16.mxu1 %v16528_v46  ;;  %v11230_v14 = vld [vmem:[#allocation2 + $0x22a8] sm:$0xff]  ;;  %v16507_v46 = vcombine.low %v11411_v54, %v11413_v23 }
0x1851   :  { %12949 = vmatprep.subr.bf16.mxu0 %v16286_v59  ;;  %v16329_v59 = vcombine.low %v11232_v7, %v11234_v12  ;;  %v16326_v30 = vcombine.high %v11228_v31, %v11230_v14  ;;  %v11320_v54 = vld [vmem:[#allocation2 + $0x2848] sm:$0xff] }
0x1852   :  { %v11322_v23 = vld [vmem:[#allocation2 + $0x2868] sm:$0xff] }
0x1853   :  { %12903 = vmatpush2.bf16.msra.mxu1 %v16527_v21  ;;  %v16325_v21 = vcombine.low %v11228_v31, %v11230_v14  ;;  %v16418_v12 = vcombine.high %v11320_v54, %v11322_v23  ;;  %v11264_v63 = vld [vmem:[#allocation2 + $0x24c8] sm:$0xff] }
0x1854   :  { %12950 = vmatpush1.bf16.msra.mxu0 %v16285_v8  ;;  %12904 = vmatprep.subr.bf16.mxu1 %v16524_v48  ;;  %v16322_v8 = vcombine.high %v11224_v51, %v11226_v55  ;;  %v11220_v48 = vld [vmem:[#allocation2 + $0x2208] sm:$0xff] }
0x1855   :  { %12951 = vmatprep.subr.bf16.mxu0 %v16346_v42  ;;  %v11222_v42 = vld [vmem:[#allocation2 + $0x2228] sm:$0xff] }
0x1856   :  { %v16318_v41 = vcombine.high %v11220_v48, %v11222_v42  ;;  %v11368_v51 = vld [vmem:[#allocation2 + $0x2b48] sm:$0xff] }
0x1857   :  { %12905 = vmatpush2.bf16.msra.mxu1 %v16523_v35  ;;  %v16317_v35 = vcombine.low %v11220_v48, %v11222_v42  ;;  %v11370_v55 = vld [vmem:[#allocation2 + $0x2b68] sm:$0xff] }
0x1858   :  { %12952 = vmatpush2.bf16.msra.mxu0 %v16345_v1  ;;  %12906 = vmatprep.subr.bf16.mxu1 %v16520_v52  ;;  %v16442_v1 = vcombine.high %v11344_v44, %v11346_v4  ;;  %v11340_v52 = vld [vmem:[#allocation2 + $0x2988] sm:$0xff] }
0x1859   :  { %12953 = vmatprep.subr.bf16.mxu0 %v16342_v50  ;;  %v11342_v50 = vld [vmem:[#allocation2 + $0x29a8] sm:$0xff] }
0x185a   :  { %v16438_v15 = vcombine.high %v11340_v52, %v11342_v50  ;;  %v11364_v48 = vld [vmem:[#allocation2 + $0x2b08] sm:$0xff] }
0x185b   :  { %12907 = vmatpush2.bf16.msra.mxu1 %v16519_v25  ;;  %v16437_v25 = vcombine.low %v11340_v52, %v11342_v50  ;;  %v11366_v42 = vld [vmem:[#allocation2 + $0x2b28] sm:$0xff] }
0x185c   :  { %12954 = vmatpush2.bf16.msra.mxu0 %v16341_v61  ;;  %12908 = vmatprep.subr.bf16.mxu1 %v16516_v20  ;;  %v16434_v61 = vcombine.high %v11336_v9, %v11338_v6  ;;  %v11332_v20 = vld [vmem:[#allocation2 + $0x2908] sm:$0xff] }
0x185d   :  { %12955 = vmatprep.subr.bf16.mxu0 %v16338_v3  ;;  %v11334_v3 = vld [vmem:[#allocation2 + $0x2928] sm:$0xff] }
0x185e   :  { %v16430_v19 = vcombine.high %v11332_v20, %v11334_v3  ;;  %v11360_v44 = vld [vmem:[#allocation2 + $0x2ac8] sm:$0xff] }
0x185f   :  { %12909 = vmatpush2.bf16.msra.mxu1 %v16515_v5  ;;  %v16429_v5 = vcombine.low %v11332_v20, %v11334_v3  ;;  %v11362_v4 = vld [vmem:[#allocation2 + $0x2ae8] sm:$0xff]  ;;  %v18859_v3 = vld [vmem:[#allocation26_spill] sm:$0xff] }
0x1860   :  { %12956 = vmatpush2.bf16.msra.mxu0 %v16337_v43  ;;  %12910 = vmatprep.subr.bf16.mxu1 %v16512_v16  ;;  %v11324_v43 = vld [vmem:[#allocation2 + $0x2888] sm:$0xff]  ;;  %v16425_v16 = vcombine.low %v11328_v34, %v11330_v39 }
0x1861   :  { %12957 = vmatprep.subr.bf16.mxu0 %v16334_v2  ;;  %v11356_v52 = vld [vmem:[#allocation2 + $0x2a88] sm:$0xff] }
0x1862   :  { %v11358_v50 = vld [vmem:[#allocation2 + $0x2aa8] sm:$0xff] }
0x1863   :  { %12911 = vmatpush2.bf16.msra.mxu1 %v16511_v62  ;;  %v11316_v62 = vld [vmem:[#allocation2 + $0x2808] sm:$0xff] }
0x1864   :  { %12958 = vmatpush2.bf16.msra.mxu0 %v16333_v13  ;;  %12912 = vmatprep.subr.bf16.mxu1 %v16508_v10  ;;  %v16417_v13 = vcombine.low %v11320_v54, %v11322_v23  ;;  %v11376_v10 = vld [vmem:[#allocation2 + $0x2bc8] sm:$0xff] }
0x1865   :  { %12959 = vmatprep.subr.bf16.mxu0 %v16330_v47  ;;  %v11378_v47 = vld [vmem:[#allocation2 + $0x2be8] sm:$0xff] }
0x1866   :  { %v16474_v14 = vcombine.high %v11376_v10, %v11378_v47  ;;  %v11352_v9 = vld [vmem:[#allocation2 + $0x2a48] sm:$0xff] }
0x1867   :  { %12913 = vmatpush2.bf16.msra.mxu1 %v16507_v46  ;;  %v11372_v46 = vld [vmem:[#allocation2 + $0x2b88] sm:$0xff] }
0x1868   :  { %12960 = vmatpush2.bf16.msra.mxu0 %v16329_v59  ;;  %12988 = vmatprep.subr.bf16.mxu1 %v16378_v45  ;;  %v11374_v59 = vld [vmem:[#allocation2 + $0x2ba8] sm:$0xff]  ;;  %v16473_v45 = vcombine.low %v11376_v10, %v11378_v47 }
0x1869   :  { %12961 = vmatprep.subr.bf16.mxu0 %v16326_v30  ;;  %v16470_v30 = vcombine.high %v11372_v46, %v11374_v59  ;;  %v11354_v6 = vld [vmem:[#allocation2 + $0x2a68] sm:$0xff] }
0x186a   :  { %v16450_v20 = vcombine.high %v11352_v9, %v11354_v6  ;;  %v11276_v47 = vld [vmem:[#allocation2 + $0x2588] sm:$0xff] }
0x186b   :  { %v11266_v22 = vld [vmem:[#allocation2 + $0x24e8] sm:$0xff] }
0x186c   :  { %12962 = vmatpush2.bf16.msra.mxu0 %v16325_v21  ;;  %v16469_v21 = vcombine.low %v11372_v46, %v11374_v59 }
0x186d   :  { %12963 = vmatprep.subr.bf16.mxu0 %v16322_v8  ;;  %v16466_v8 = vcombine.high %v11368_v51, %v11370_v55 }
0x1870   :  { %12964 = vmatpush2.bf16.msra.mxu0 %v16321_v37  ;;  %v16465_v37 = vcombine.low %v11368_v51, %v11370_v55 }
0x1871   :  { %12965 = vmatprep.subr.bf16.mxu0 %v16318_v41  ;;  %v16462_v41 = vcombine.high %v11364_v48, %v11366_v42 }
0x1874   :  { %12966 = vmatpush2.bf16.msra.mxu0 %v16317_v35  ;;  %v16461_v35 = vcombine.low %v11364_v48, %v11366_v42  ;;  %v11274_v48 = vld [vmem:[#allocation2 + $0x2568] sm:$0xff] }
0x1875   :  { %13041 = vmatprep.subr.bf16.mxu0 %v16442_v1  ;;  %v16458_v1 = vcombine.high %v11360_v44, %v11362_v4 }
0x1877   :  { %12968 = vmatmul.mubr.bf16.vlgmr.msra.gmra.mxu0 %v18511_v18  ;;  %v16426_v18 = vcombine.high %v11328_v34, %v11330_v39  ;;  %v11350_v34 = vld [vmem:[#allocation2 + $0x2a28] sm:$0xff] }
0x1878   :  { %13042 = vmatpush1.bf16.msra.mxu0 %v16441_v26  ;;  %12977 = vmatprep.mubr.bf16.mxu0 %v18523_v28  ;;  %v11326_v28 = vld [vmem:[#allocation2 + $0x28a8] sm:$0xff]  ;;  %v16457_v26 = vcombine.low %v11360_v44, %v11362_v4 }
0x1879   :  { %13043 = vmatprep.subr.bf16.mxu0 %v16438_v15  ;;  %v16422_v2 = vcombine.high %v11324_v43, %v11326_v28  ;;  %v16421_v7 = vcombine.low %v11324_v43, %v11326_v28  ;;  %v16454_v15 = vcombine.high %v11356_v52, %v11358_v50  ;;  %v18860_v39 = vld [vmem:[#allocation27_spill] sm:$0xff]  ;;  %v16449_v43 = vcombine.low %v11352_v9, %v11354_v6 }
0x187c   :  { %13044 = vmatpush1.bf16.msra.mxu0 %v16437_v25  ;;  %v16453_v25 = vcombine.low %v11356_v52, %v11358_v50  ;;  %v11268_v50 = vld [vmem:[#allocation2 + $0x2508] sm:$0xff] }
0x187d   :  { %13045 = vmatprep.subr.bf16.mxu0 %v16434_v61 }
0x187f   :  { %12978 = vmatmul.mubr.bf16.gmra.mxu0 %v18521_v24  ;;  %v11318_v24 = vld [vmem:[#allocation2 + $0x2828] sm:$0xff] }
0x1880   :  { %13046 = vmatpush1.bf16.msra.mxu0 %v16433_v57  ;;  %13073 = vmatprep.mubr.bf16.mxu0 %v18598_v40  ;;  %v16414_v40 = vcombine.high %v11316_v62, %v11318_v24  ;;  %v16413_v31 = vcombine.low %v11316_v62, %v11318_v24  ;;  %v10918_v57 = vrot.slane %v18497_v32, %v18859_v3 }
0x1881   :  { %13047 = vmatprep.subr.bf16.mxu0 %v16430_v19  ;;  %v11348_v19 = vld [vmem:[#allocation2 + $0x2a08] sm:$0xff] }
0x1882   :  { %v16445_v62 = vcombine.low %v11348_v19, %v11350_v34 }
0x1884   :  { %13048 = vmatpush1.bf16.msra.mxu0 %v16429_v5  ;;  %v10914_v5 = vrot.slane %v18497_v32, %v18860_v39  ;;  %v11278_v32 = vld [vmem:[#allocation2 + $0x25a8] sm:$0xff] }
0x1885   :  { %13049 = vmatprep.subr.bf16.mxu0 %v16426_v18  ;;  %v16374_v55 = vcombine.high %v11276_v47, %v11278_v32  ;;  %v11252_v39 = vld [vmem:[#allocation2 + $0x2408] sm:$0xff] }
0x1888   :  { %13050 = vmatpush1.bf16.msra.mxu0 %v16425_v16  ;;  %v16446_v16 = vcombine.high %v11348_v19, %v11350_v34  ;;  %v11258_v19 = vld [vmem:[#allocation2 + $0x2468] sm:$0xff] }
0x1889   :  { %13051 = vmatprep.subr.bf16.mxu0 %v16422_v2 }
0x188c   :  { %13052 = vmatpush1.bf16.msra.mxu0 %v16421_v7 }
0x188d   :  { %13053 = vmatprep.subr.bf16.mxu0 %v16418_v12 }
0x1890   :  { %13054 = vmatpush1.bf16.msra.mxu0 %v16417_v13 }
0x1891   :  { %13055 = vmatprep.subr.bf16.mxu0 %v16414_v40 }
0x1894   :  { %13056 = vmatpush1.bf16.msra.mxu0 %v16413_v31 }
0x1895   :  { %13057 = vmatprep.subr.bf16.mxu0 %v16474_v14 }
0x1898   :  { %13058 = vmatpush2.bf16.msra.mxu0 %v16473_v45 }
0x1899   :  { %13059 = vmatprep.subr.bf16.mxu0 %v16470_v30 }
0x189c   :  { %13060 = vmatpush2.bf16.msra.mxu0 %v16469_v21 }
0x189d   :  { %13061 = vmatprep.subr.bf16.mxu0 %v16466_v8  ;;  %v11272_v8 = vld [vmem:[#allocation2 + $0x2548] sm:$0xff] }
0x189e   :  { %v16369_v9 = vcombine.low %v11272_v8, %v11274_v48 }
0x18a0   :  { %13062 = vmatpush2.bf16.msra.mxu0 %v16465_v37 }
0x18a1   :  { %13063 = vmatprep.subr.bf16.mxu0 %v16462_v41 }
0x18a4   :  { %13064 = vmatpush2.bf16.msra.mxu0 %v16461_v35  ;;  %v16373_v35 = vcombine.low %v11276_v47, %v11278_v32  ;;  %v11302_v47 = vld [vmem:[#allocation2 + $0x2728] sm:$0xff] }
0x18a5   :  { %13065 = vmatprep.subr.bf16.mxu0 %v16458_v1  ;;  %v16370_v1 = vcombine.high %v11272_v8, %v11274_v48 }
0x18a8   :  { %13066 = vmatpush2.bf16.msra.mxu0 %v16457_v26  ;;  %v11270_v26 = vld [vmem:[#allocation2 + $0x2528] sm:$0xff] }
0x18a9   :  { %v11120_v61 = vpop.f32.mrf.mxu1  ;;  %13067 = vmatprep.subr.bf16.mxu0 %v16454_v15  ;;  %v16366_v6 = vcombine.high %v11268_v50, %v11270_v26 }
0x18aa   :  { %v11121_v23 = vadd.f32 %v11120_v61, %v10914_v5  ;;  %v11262_v61 = vld [vmem:[#allocation2 + $0x24a8] sm:$0xff] }
0x18ab   :  { %v11122_v18 = vpop.f32.mrf.mxu1 }
0x18ac   :  { %13068 = vmatpush2.bf16.msra.mxu0 %v16453_v25  ;;  %v11123_v2 = vadd.f32 %v11122_v18, %v10918_v57  ;;  %v11145_v31 = vmax.f32 %v11121_v23, 0.0  ;;  %v11260_v25 = vld [vmem:[#allocation2 + $0x2488] sm:$0xff] }
0x18ad   :  { %v11124_v28 = vpop.f32.mrf.mxu1  ;;  %13069 = vmatprep.subr.bf16.mxu0 %v16450_v20  ;;  %v16361_v20 = vcombine.low %v11264_v63, %v11266_v22  ;;  %v16358_v3 = vcombine.high %v11260_v25, %v11262_v61  ;;  %v16357_v34 = vcombine.low %v11260_v25, %v11262_v61  ;;  %v11310_v23 = vld [vmem:[#allocation2 + $0x27a8] sm:$0xff] }
0x18ae   :  { %v11125_v54 = vadd.f32 %v11124_v28, %v10914_v5  ;;  %v11146_v40 = vmax.f32 %v11123_v2, 0.0  ;;  %v11314_v28 = vld [vmem:[#allocation2 + $0x27e8] sm:$0xff] }
0x18af   :  { %v11126_v7 = vpop.f32.mrf.mxu1  ;;  %v11400_v25 = vld [vmem:[#allocation2 + $0x2d48] sm:$0xff] }
0x18b0   :  { %v11127_v12 = vadd.f32 %v11126_v7, %v10918_v57  ;;  %13070 = vmatpush2.bf16.msra.mxu0 %v16449_v43  ;;  %v11153_v24 = vmax.f32 %v11125_v54, 0.0  ;;  %v11312_v43 = vld [vmem:[#allocation2 + $0x27c8] sm:$0xff] }
0x18b1   :  { %v11130_v13 = vpop.f32.mrf.mxu1  ;;  %13071 = vmatprep.subr.bf16.mxu0 %v16446_v16  ;;  %v16410_v2 = vcombine.high %v11312_v43, %v11314_v28  ;;  %v11308_v54 = vld [vmem:[#allocation2 + $0x2788] sm:$0xff]  ;;  %v16409_v7 = vcombine.low %v11312_v43, %v11314_v28 }
0x18b2   :  { %v11154_v10 = vmax.f32 %v11127_v12, 0.0  ;;  %v11131_v14 = vadd.f32 %v11130_v13, %v10914_v5  ;;  %v18631_v30 = vpack.c.bf16 %v11153_v24, %v11145_v31  ;;  %v16406_v12 = vcombine.high %v11308_v54, %v11310_v23  ;;  %v11306_v24 = vld [vmem:[#allocation2 + $0x2768] sm:$0xff] }
0x18b3   :  { %v11132_v46 = vpop.f32.mrf.mxu1  ;;  %v16405_v13 = vcombine.low %v11308_v54, %v11310_v23  ;;  %v11402_v61 = vld [vmem:[#allocation2 + $0x2d68] sm:$0xff] }
0x18b4   :  { %v18629_v59 = vpack.c.bf16 %v11154_v10, %v11146_v40  ;;  %v11133_v45 = vadd.f32 %v11132_v46, %v10918_v57  ;;  %13072 = vmatpush2.bf16.msra.mxu0 %v16445_v62  ;;  %v11161_v42 = vmax.f32 %v11131_v14, 0.0  ;;  %v11304_v62 = vld [vmem:[#allocation2 + $0x2748] sm:$0xff] }
0x18b5   :  { %v11134_v51 = vpop.f32.mrf.mxu1  ;;  %v16402_v40 = vcombine.high %v11304_v62, %v11306_v24  ;;  %v11300_v10 = vld [vmem:[#allocation2 + $0x2708] sm:$0xff]  ;;  %v16401_v32 = vcombine.low %v11304_v62, %v11306_v24 }
0x18b6   :  { %v11135_v21 = vadd.f32 %v11134_v51, %v10914_v5  ;;  %12914 = vmatprep.mubr.bf16.mxu1 %v18629_v59  ;;  %v11162_v41 = vmax.f32 %v11133_v45, 0.0  ;;  %v11254_v5 = vld [vmem:[#allocation2 + $0x2428] sm:$0xff]  ;;  %v16398_v31 = vcombine.high %v11300_v10, %v11302_v47  ;;  %v16397_v45 = vcombine.low %v11300_v10, %v11302_v47 }
0x18b7   :  { %13074 = vmatmul.mubr.bf16.vlgmr.msra.gmra.mxu0 %v18596_v60  ;;  %v11136_v37 = vpop.f32.mrf.mxu1  ;;  %12915 = vmatmul.mubr.bf16.vlgmr.msra.gmra.mxu1 %v18631_v30  ;;  %v16350_v18 = vcombine.high %v11252_v39, %v11254_v5  ;;  %v16349_v16 = vcombine.low %v11252_v39, %v11254_v5  ;;  %v11296_v14 = vld [vmem:[#allocation2 + $0x26c8] sm:$0xff] }
0x18b8   :  { %v11169_v44 = vmax.f32 %v11135_v21, 0.0  ;;  %v11137_v4 = vadd.f32 %v11136_v37, %v10918_v57  ;;  %12989 = vmatpush1.bf16.msra.mxu1 %v16377_v49  ;;  %13083 = vmatprep.mubr.bf16.mxu0 %v18614_v27  ;;  %v16365_v49 = vcombine.low %v11268_v50, %v11270_v26  ;;  %v16362_v27 = vcombine.high %v11264_v63, %v11266_v22  ;;  %v11256_v57 = vld [vmem:[#allocation2 + $0x2448] sm:$0xff] }
0x18b9   :  { %12990 = vmatprep.subr.bf16.mxu1 %v16374_v55  ;;  %v11298_v46 = vld [vmem:[#allocation2 + $0x26e8] sm:$0xff] }
0x18ba   :  { %v11170_v52 = vmax.f32 %v11137_v4, 0.0  ;;  %v18640_v15 = vpack.c.bf16 %v11169_v44, %v11161_v42  ;;  %v16394_v51 = vcombine.high %v11296_v14, %v11298_v46  ;;  %v11292_v55 = vld [vmem:[#allocation2 + $0x2688] sm:$0xff]  ;;  %v16393_v8 = vcombine.low %v11296_v14, %v11298_v46 }
0x18bb   :  { %v11294_v21 = vld [vmem:[#allocation2 + $0x26a8] sm:$0xff] }
0x18bc   :  { %v18642_v60 = vpack.c.bf16 %v11170_v52, %v11162_v41  ;;  %12991 = vmatpush1.bf16.msra.mxu1 %v16373_v35  ;;  %v16390_v48 = vcombine.high %v11292_v55, %v11294_v21  ;;  %v11288_v42 = vld [vmem:[#allocation2 + $0x2648] sm:$0xff]  ;;  %v16389_v41 = vcombine.low %v11292_v55, %v11294_v21 }
0x18bd   :  { %12992 = vmatprep.subr.bf16.mxu1 %v16370_v1  ;;  %v11290_v37 = vld [vmem:[#allocation2 + $0x2668] sm:$0xff] }
0x18be   :  { %12924 = vmatprep.mubr.bf16.mxu1 %v18642_v60  ;;  %v16386_v44 = vcombine.high %v11288_v42, %v11290_v37  ;;  %v11284_v4 = vld [vmem:[#allocation2 + $0x2608] sm:$0xff]  ;;  %v16385_v1 = vcombine.low %v11288_v42, %v11290_v37 }
0x18bf   :  { %12925 = vmatmul.mubr.bf16.gmra.mxu1 %v18640_v15  ;;  %13084 = vmatmul.mubr.bf16.gmra.mxu0 %v18612_v56  ;;  %v16354_v56 = vcombine.high %v11256_v57, %v11258_v19  ;;  %v11286_v35 = vld [vmem:[#allocation2 + $0x2628] sm:$0xff] }
0x18c0   :  { %12993 = vmatpush1.bf16.msra.mxu1 %v16369_v9  ;;  %13020 = vmatprep.mubr.bf16.mxu1 %v18562_v0  ;;  %v16353_v0 = vcombine.low %v11256_v57, %v11258_v19  ;;  %v16382_v52 = vcombine.high %v11284_v4, %v11286_v35  ;;  %v11408_v50 = vld [vmem:[#allocation2 + $0x2dc8] sm:$0xff]  ;;  %v16381_v9 = vcombine.low %v11284_v4, %v11286_v35 }
0x18c1   :  { %12994 = vmatprep.subr.bf16.mxu1 %v16366_v6  ;;  %13210 = vmatprep.mubr.bf16.mxu0 %v18829_v33  ;;  %v11410_v26 = vld [vmem:[#allocation2 + $0x2de8] sm:$0xff] }
0x18c2   :  { %v16506_v6 = vcombine.high %v11408_v50, %v11410_v26  ;;  %v11404_v63 = vld [vmem:[#allocation2 + $0x2d88] sm:$0xff] }
0x18c3   :  { %v11406_v22 = vld [vmem:[#allocation2 + $0x2da8] sm:$0xff] }
0x18c4   :  { %12995 = vmatpush1.bf16.msra.mxu1 %v16365_v49  ;;  %v16505_v49 = vcombine.low %v11408_v50, %v11410_v26  ;;  %v11396_v57 = vld [vmem:[#allocation2 + $0x2d08] sm:$0xff] }
0x18c5   :  { %12996 = vmatprep.subr.bf16.mxu1 %v16362_v27  ;;  %v16502_v27 = vcombine.high %v11404_v63, %v11406_v22  ;;  %v11398_v19 = vld [vmem:[#allocation2 + $0x2d28] sm:$0xff] }
0x18c6   :  { %v11392_v39 = vld [vmem:[#allocation2 + $0x2cc8] sm:$0xff] }
0x18c7   :  { %v11394_v5 = vld [vmem:[#allocation2 + $0x2ce8] sm:$0xff] }
0x18c8   :  { %12997 = vmatpush1.bf16.msra.mxu1 %v16361_v20  ;;  %v16501_v20 = vcombine.low %v11404_v63, %v11406_v22  ;;  %v16489_v43 = vcombine.low %v11392_v39, %v11394_v5  ;;  %v11440_v62 = vld [vmem:[#allocation2 + $0x2fc8] sm:$0xff] }
0x18c9   :  { %12998 = vmatprep.subr.bf16.mxu1 %v16358_v3  ;;  %v16498_v3 = vcombine.high %v11400_v25, %v11402_v61  ;;  %v11442_v24 = vld [vmem:[#allocation2 + $0x2fe8] sm:$0xff] }
0x18ca   :  { %v11436_v10 = vld [vmem:[#allocation2 + $0x2f88] sm:$0xff] }
0x18cb   :  { %v11438_v47 = vld [vmem:[#allocation2 + $0x2fa8] sm:$0xff] }
0x18cc   :  { %12999 = vmatpush1.bf16.msra.mxu1 %v16357_v34  ;;  %v16497_v34 = vcombine.low %v11400_v25, %v11402_v61  ;;  %v11432_v14 = vld [vmem:[#allocation2 + $0x2f48] sm:$0xff]  ;;  %v12757_v61 = vpop.f32.mrf.mxu0 }
0x18cd   :  { %13000 = vmatprep.subr.bf16.mxu1 %v16354_v56  ;;  %v16494_v56 = vcombine.high %v11396_v57, %v11398_v19  ;;  %v11434_v46 = vld [vmem:[#allocation2 + $0x2f68] sm:$0xff] }
0x18ce   :  { %v11428_v55 = vld [vmem:[#allocation2 + $0x2f08] sm:$0xff] }
0x18cf   :  { %v11430_v21 = vld [vmem:[#allocation2 + $0x2f28] sm:$0xff] }
0x18d0   :  { %13001 = vmatpush1.bf16.msra.mxu1 %v16353_v0  ;;  %v11388_v0 = vld [vmem:[#allocation2 + $0x2c88] sm:$0xff] }
0x18d1   :  { %13002 = vmatprep.subr.bf16.mxu1 %v16350_v18  ;;  %v11390_v18 = vld [vmem:[#allocation2 + $0x2ca8] sm:$0xff] }
0x18d2   :  { %v16486_v28 = vcombine.high %v11388_v0, %v11390_v18  ;;  %v16485_v54 = vcombine.low %v11388_v0, %v11390_v18  ;;  %v11424_v42 = vld [vmem:[#allocation2 + $0x2ec8] sm:$0xff] }
0x18d3   :  { %v11426_v37 = vld [vmem:[#allocation2 + $0x2ee8] sm:$0xff] }
0x18d4   :  { %13003 = vmatpush1.bf16.msra.mxu1 %v16349_v16  ;;  %v11384_v16 = vld [vmem:[#allocation2 + $0x2c48] sm:$0xff] }
0x18d5   :  { %13004 = vmatprep.subr.bf16.mxu1 %v16410_v2  ;;  %v11386_v2 = vld [vmem:[#allocation2 + $0x2c68] sm:$0xff] }
0x18d6   :  { %v16482_v23 = vcombine.high %v11384_v16, %v11386_v2  ;;  %v11420_v4 = vld [vmem:[#allocation2 + $0x2e88] sm:$0xff] }
0x18d7   :  { %v11422_v35 = vld [vmem:[#allocation2 + $0x2ea8] sm:$0xff] }
0x18d8   :  { %13005 = vmatpush2.bf16.msra.mxu1 %v16409_v7  ;;  %v11380_v7 = vld [vmem:[#allocation2 + $0x2c08] sm:$0xff] }
0x18d9   :  { %13006 = vmatprep.subr.bf16.mxu1 %v16406_v12  ;;  %v16481_v12 = vcombine.low %v11384_v16, %v11386_v2  ;;  %v11416_v50 = vld [vmem:[#allocation2 + $0x2e48] sm:$0xff] }
0x18da   :  { %v11418_v26 = vld [vmem:[#allocation2 + $0x2e68] sm:$0xff] }
0x18db   :  { %v11412_v63 = vld [vmem:[#allocation2 + $0x2e08] sm:$0xff] }
0x18dc   :  { %13007 = vmatpush2.bf16.msra.mxu1 %v16405_v13  ;;  %v11414_v22 = vld [vmem:[#allocation2 + $0x2e28] sm:$0xff] }
0x18dd   :  { %13008 = vmatprep.subr.bf16.mxu1 %v16402_v40  ;;  %v16538_v40 = vcombine.high %v11440_v62, %v11442_v24  ;;  %v16509_v25 = vcombine.low %v11412_v63, %v11414_v22 }
0x18e0   :  { %13009 = vmatpush2.bf16.msra.mxu1 %v16401_v32  ;;  %v16537_v32 = vcombine.low %v11440_v62, %v11442_v24 }
0x18e1   :  { %13010 = vmatprep.subr.bf16.mxu1 %v16398_v31  ;;  %v16534_v31 = vcombine.high %v11436_v10, %v11438_v47 }
0x18e4   :  { %13011 = vmatpush2.bf16.msra.mxu1 %v16397_v45  ;;  %v16533_v45 = vcombine.low %v11436_v10, %v11438_v47 }
0x18e5   :  { %13012 = vmatprep.subr.bf16.mxu1 %v16394_v51  ;;  %v16530_v51 = vcombine.high %v11432_v14, %v11434_v46 }
0x18e8   :  { %13013 = vmatpush2.bf16.msra.mxu1 %v16393_v8  ;;  %v16529_v8 = vcombine.low %v11432_v14, %v11434_v46 }
0x18e9   :  { %13014 = vmatprep.subr.bf16.mxu1 %v16390_v48  ;;  %v16526_v48 = vcombine.high %v11428_v55, %v11430_v21 }
0x18ec   :  { %13015 = vmatpush2.bf16.msra.mxu1 %v16389_v41  ;;  %v16525_v41 = vcombine.low %v11428_v55, %v11430_v21 }
0x18ed   :  { %13016 = vmatprep.subr.bf16.mxu1 %v16386_v44  ;;  %v16522_v44 = vcombine.high %v11424_v42, %v11426_v37 }
0x18f0   :  { %13017 = vmatpush2.bf16.msra.mxu1 %v16385_v1  ;;  %v16521_v1 = vcombine.low %v11424_v42, %v11426_v37 }
0x18f1   :  { %13018 = vmatprep.subr.bf16.mxu1 %v16382_v52  ;;  %v16518_v52 = vcombine.high %v11420_v4, %v11422_v35 }
0x18f4   :  { %13019 = vmatpush2.bf16.msra.mxu1 %v16381_v9  ;;  %v16517_v9 = vcombine.low %v11420_v4, %v11422_v35 }
0x18f5   :  { %13094 = vmatprep.subr.bf16.mxu1 %v16506_v6  ;;  %v16514_v6 = vcombine.high %v11416_v50, %v11418_v26 }
0x18f7   :  { %13021 = vmatmul.mubr.bf16.vlgmr.msra.gmra.mxu1 %v18579_v36  ;;  %v16493_v36 = vcombine.low %v11396_v57, %v11398_v19 }
0x18f8   :  { %13030 = vmatprep.mubr.bf16.mxu1 %v18583_v11  ;;  %13095 = vmatpush1.bf16.msra.mxu1 %v16505_v49  ;;  %v16490_v11 = vcombine.high %v11392_v39, %v11394_v5  ;;  %v16513_v49 = vcombine.low %v11416_v50, %v11418_v26 }
0x18f9   :  { %13096 = vmatprep.subr.bf16.mxu1 %v16502_v27  ;;  %v16510_v27 = vcombine.high %v11412_v63, %v11414_v22 }
0x18fc   :  { %13097 = vmatpush1.bf16.msra.mxu1 %v16501_v20  ;;  %v12759_v20 = vpop.f32.mrf.mxu0 }
0x18fd   :  { %13098 = vmatprep.subr.bf16.mxu1 %v16498_v3 }
0x18fe   :  { %v12761_v3 = vpop.f32.mrf.mxu0 }
0x18ff   :  { %13031 = vmatmul.mubr.bf16.gmra.mxu1 %v18592_v53  ;;  %v11382_v53 = vld [vmem:[#allocation2 + $0x2c28] sm:$0xff] }
0x1900   :  { %13099 = vmatpush1.bf16.msra.mxu1 %v16497_v34  ;;  %13126 = vmatprep.mubr.bf16.mxu1 %v18629_v59  ;;  %v16478_v59 = vcombine.high %v11380_v7, %v11382_v53  ;;  %v16477_v13 = vcombine.low %v11380_v7, %v11382_v53  ;;  %v12763_v57 = vpop.f32.mrf.mxu0 }
0x1901   :  { %13100 = vmatprep.subr.bf16.mxu1 %v16494_v56  ;;  %v12810_v56 = vpop.f32.mrf.mxu1 }
0x1902   :  { %v12767_v19 = vpop.f32.mrf.mxu0  ;;  %v12811_v42 = vadd.f32 %v12810_v56, %v12757_v61  ;;  %v17349_v56 = vld [vmem:[#allocation8 + $0x6e8] ss:$8 sps:$4 sm:$0xff]  }
0x1903   :  { %v12812_v5 = vpop.f32.mrf.mxu1 }
0x1904   :  { %13101 = vmatpush1.bf16.msra.mxu1 %v16493_v36  ;;  %v12769_v34 = vpop.f32.mrf.mxu0  ;;  %v12813_v14 = vadd.f32 %v12812_v5, %v12759_v20  ;;  %v18657_v20 = vld [vmem:[#allocation4 + $0x30] sm:$0xff]   ;;  %v17352_v5 = vld [vmem:[#allocation8 + $0x6d8] ss:$8 sps:$4 sm:$0xff]  }
0x1905   :  { %13102 = vmatprep.subr.bf16.mxu1 %v16490_v11  ;;  %v12814_v11 = vpop.f32.mrf.mxu1 }
0x1906   :  { %v12771_v39 = vpop.f32.mrf.mxu0  ;;  %v12815_v46 = vadd.f32 %v12814_v11, %v12761_v3  ;;  %v18662_v3 = vld [vmem:[#allocation4 + $0x38] sm:$0xff]   ;;  %v17355_v11 = vld [vmem:[#allocation8 + $0x6c8] ss:$8 sps:$4 sm:$0xff]  }
0x1907   :  { %v12816_v18 = vpop.f32.mrf.mxu1 }
0x1908   :  { %13103 = vmatpush1.bf16.msra.mxu1 %v16489_v43  ;;  %v12773_v36 = vpop.f32.mrf.mxu0 }
0x1909   :  { %13104 = vmatprep.subr.bf16.mxu1 %v16486_v28 }
0x190a   :  { %v12863_v0 = vpop.f32.mrf.mxu0 }
0x190b   :  { %v12864_v63 = vadd.f32 %v12863_v0, %v12811_v42  ;;  %v17363_v0 = vld [vmem:[#allocation8 + $0x6bc] ss:$8 sps:$4 sm:$0xff]   ;;  %v17427_v42 = vld [vmem:[#allocation8 + $0x708] ss:$8 sps:$4 sm:$0xff]  }
0x190c   :  { %13105 = vmatpush1.bf16.msra.mxu1 %v16485_v54  ;;  %v12865_v43 = vpop.f32.mrf.mxu0 }
0x190d   :  { %13106 = vmatprep.subr.bf16.mxu1 %v16482_v23  ;;  %v12866_v4 = vadd.f32 %v12865_v43, %v12813_v14  ;;  %v17367_v43 = vld [vmem:[#allocation8 + $0x6a8] ss:$8 sps:$4 sm:$0xff]  }
0x190e   :  { %v12867_v28 = vpop.f32.mrf.mxu0 }
0x190f   :  { %v12868_v50 = vadd.f32 %v12867_v28, %v12815_v46  ;;  %v17373_v28 = vld [vmem:[#allocation8 + $0x698] ss:$8 sps:$4 sm:$0xff]  }
0x1910   :  { %13107 = vmatpush1.bf16.msra.mxu1 %v16481_v12  ;;  %v12869_v16 = vpop.f32.mrf.mxu0 }
0x1911   :  { %13108 = vmatprep.subr.bf16.mxu1 %v16478_v59 }
0x1912   :  { %v12873_v54 = vpop.f32.mrf.mxu0 }
0x1914   :  { %13109 = vmatpush1.bf16.msra.mxu1 %v16477_v13  ;;  %v12875_v53 = vpop.f32.mrf.mxu0 }
0x1915   :  { %13110 = vmatprep.subr.bf16.mxu1 %v16538_v40  ;;  %v12817_v40 = vadd.f32 %v12816_v18, %v12763_v57  ;;  %v17346_v57 = vld [vmem:[#allocation8 + $0x6f8] ss:$8 sps:$4 sm:$0xff]  }
0x1916   :  { %v12877_v62 = vpop.f32.mrf.mxu0  ;;  %v17361_v18 = vld [vmem:[#allocation8 + $0x6b8] ss:$8 sps:$4 sm:$0xff]  }
0x1917   :  { %v12870_v21 = vadd.f32 %v12869_v16, %v12817_v40  ;;  %v17379_v16 = vld [vmem:[#allocation8 + $0x688] ss:$8 sps:$4 sm:$0xff]  }
0x1918   :  { %13111 = vmatpush2.bf16.msra.mxu1 %v16537_v32 }
0x1919   :  { %13112 = vmatprep.subr.bf16.mxu1 %v16534_v31 }
0x191c   :  { %13113 = vmatpush2.bf16.msra.mxu1 %v16533_v45  ;;  %v12879_v45 = vpop.f32.mrf.mxu0 }
0x191d   :  { %13114 = vmatprep.subr.bf16.mxu1 %v16530_v51 }
0x1920   :  { %13115 = vmatpush2.bf16.msra.mxu1 %v16529_v8 }
0x1921   :  { %13116 = vmatprep.subr.bf16.mxu1 %v16526_v48 }
0x1924   :  { %13117 = vmatpush2.bf16.msra.mxu1 %v16525_v41 }
0x1925   :  { %13118 = vmatprep.subr.bf16.mxu1 %v16522_v44 }
0x1928   :  { %13119 = vmatpush2.bf16.msra.mxu1 %v16521_v1 }
0x1929   :  { %13120 = vmatprep.subr.bf16.mxu1 %v16518_v52 }
0x192c   :  { %13121 = vmatpush2.bf16.msra.mxu1 %v16517_v9 }
0x192d   :  { %13122 = vmatprep.subr.bf16.mxu1 %v16514_v6 }
0x1930   :  { %13123 = vmatpush2.bf16.msra.mxu1 %v16513_v49 }
0x1931   :  { %13124 = vmatprep.subr.bf16.mxu1 %v16510_v27 }
0x1934   :  { %13125 = vmatpush2.bf16.msra.mxu1 %v16509_v25 }
0x1937   :  { %13127 = vmatmul.mubr.bf16.vlgmr.msra.gmra.mxu1 %v18631_v30  ;;  %v12820_v30 = vpop.f32.mrf.mxu1  ;;  %v12969_v40 = vpop.f32.mrf.mxu0 }
0x1938   :  { %13136 = vmatprep.mubr.bf16.mxu1 %v18642_v60  ;;  %v12821_v32 = vadd.f32 %v12820_v30, %v12767_v19  ;;  %v17348_v19 = vld [vmem:[#allocation8 + $0x6fc] ss:$8 sps:$4 sm:$0xff]   ;;  %v17369_v30 = vld [vmem:[#allocation8 + $0x6ac] ss:$8 sps:$4 sm:$0xff]  }
0x1939   :  { %v12822_v60 = vpop.f32.mrf.mxu1 }
0x193a   :  { %v12823_v10 = vadd.f32 %v12822_v60, %v12769_v34  ;;  %v12874_v37 = vadd.f32 %v12873_v54, %v12821_v32  ;;  %v17351_v34 = vld [vmem:[#allocation8 + $0x6ec] ss:$8 sps:$4 sm:$0xff]   ;;  %v17375_v60 = vld [vmem:[#allocation8 + $0x69c] ss:$8 sps:$4 sm:$0xff]   ;;  %v17385_v54 = vld [vmem:[#allocation8 + $0x778] ss:$8 sps:$4 sm:$0xff]  }
0x193b   :  { %v17415_v32 = vld [vmem:[#allocation8 + $0x728] ss:$8 sps:$4 sm:$0xff]  }
0x193c   :  { %v12876_v8 = vadd.f32 %v12875_v53, %v12823_v10  ;;  %v17399_v53 = vld [vmem:[#allocation8 + $0x75c] ss:$8 sps:$4 sm:$0xff]   ;;  %v12971_v10 = vpop.f32.mrf.mxu0 }
0x193f   :  { %13137 = vmatmul.mubr.bf16.gmra.mxu1 %v18640_v15  ;;  %v12824_v15 = vpop.f32.mrf.mxu1 }
0x1940   :  { %13263 = vmatprep.mubr.bf16.mxu1 %v18829_v33  ;;  %v12825_v24 = vadd.f32 %v12824_v15, %v12771_v39  ;;  %v17354_v39 = vld [vmem:[#allocation8 + $0x6dc] ss:$8 sps:$4 sm:$0xff]   ;;  %v17381_v15 = vld [vmem:[#allocation8 + $0x68c] ss:$8 sps:$4 sm:$0xff]  }
0x1941   :  { %v12826_v2 = vpop.f32.mrf.mxu1 }
0x1942   :  { %v12827_v47 = vadd.f32 %v12826_v2, %v12773_v36  ;;  %v12878_v51 = vadd.f32 %v12877_v62, %v12825_v24  ;;  %v17357_v36 = vld [vmem:[#allocation8 + $0x6cc] ss:$8 sps:$4 sm:$0xff]   ;;  %v17387_v2 = vld [vmem:[#allocation8 + $0x77c] ss:$8 sps:$4 sm:$0xff]   ;;  %v17403_v62 = vld [vmem:[#allocation8 + $0x748] ss:$8 sps:$4 sm:$0xff]  }
0x1943   :  { %v17411_v24 = vld [vmem:[#allocation8 + $0x73c] ss:$8 sps:$4 sm:$0xff]  }
0x1944   :  { %v12880_v48 = vadd.f32 %v12879_v45, %v12827_v47  ;;  %v12973_v47 = vpop.f32.mrf.mxu0 }
0x1946   :  { %v12975_v14 = vpop.f32.mrf.mxu0 }
0x1948   :  { %v12979_v45 = vpop.f32.mrf.mxu0 }
0x1977   :  { %v12916_v23 = vpop.f32.mrf.mxu1 }
0x1978   :  { %v12917_v25 = vadd.f32 %v12916_v23, %v12864_v63  ;;  %v17393_v23 = vld [vmem:[#allocation8 + $0x76c] ss:$8 sps:$4 sm:$0xff]  }
0x1979   :  { %v12918_v7 = vpop.f32.mrf.mxu1 }
0x197a   :  { %v12919_v9 = vadd.f32 %v12918_v7, %v12866_v4  ;;  %v17391_v7 = vld [vmem:[#allocation8 + $0x768] ss:$8 sps:$4 sm:$0xff]  }
0x197b   :  { %v12920_v12 = vpop.f32.mrf.mxu1 }
0x197c   :  { %v12921_v22 = vadd.f32 %v12920_v12, %v12868_v50  ;;  %v17397_v12 = vld [vmem:[#allocation8 + $0x758] ss:$8 sps:$4 sm:$0xff]  }
0x197d   :  { %v12922_v59 = vpop.f32.mrf.mxu1 }
0x197e   :  { %v12923_v35 = vadd.f32 %v12922_v59, %v12870_v21  ;;  %v13147_v61 = vpack.c.bf16 %v12921_v22, %v12917_v25  ;;  %v17405_v59 = vld [vmem:[#allocation8 + $0x74c] ss:$8 sps:$4 sm:$0xff]   ;;  %v17423_v21 = vld [vmem:[#allocation8 + $0x71c] ss:$8 sps:$4 sm:$0xff]  }
0x197f   :  { %v12926_v13 = vpop.f32.mrf.mxu1 }
0x1980   :  { %v12927_v26 = vadd.f32 %v12926_v13, %v12874_v37  ;;  %v13148_v27 = vpack.c.bf16 %v12923_v35, %v12919_v9  ;;  %v17409_v13 = vld [vmem:[#allocation8 + $0x738] ss:$8 sps:$4 sm:$0xff]  }
0x1981   :  { %v12928_v31 = vpop.f32.mrf.mxu1 }
0x1982   :  { %v12929_v1 = vadd.f32 %v12928_v31, %v12876_v8  ;;  %v17417_v31 = vld [vmem:[#allocation8 + $0x72c] ss:$8 sps:$4 sm:$0xff]   ;;  %v12981_v8 = vpop.f32.mrf.mxu0 }
0x1983   :  { %v12930_v55 = vpop.f32.mrf.mxu1 }
0x1984   :  { %v12931_v41 = vadd.f32 %v12930_v55, %v12878_v51  ;;  %v17421_v55 = vld [vmem:[#allocation8 + $0x718] ss:$8 sps:$4 sm:$0xff]  }
0x1985   :  { %v12932_v44 = vpop.f32.mrf.mxu1 }
0x1986   :  { %v12933_v52 = vadd.f32 %v12932_v44, %v12880_v48  ;;  %v13151_v49 = vpack.c.bf16 %v12931_v41, %v12927_v26  ;;  %v17429_v48 = vld [vmem:[#allocation8 + $0x70c] ss:$8 sps:$4 sm:$0xff]   ;;  %v12983_v41 = vpop.f32.mrf.mxu0 }
0x1988   :  { %v13152_v6 = vpack.c.bf16 %v12933_v52, %v12929_v1  ;;  %v12985_v4 = vpop.f32.mrf.mxu0 }
0x198a   :  { %13190 = vmatprep.subr.bf16.mxu0 %v13152_v6  ;;  %v13075_v35 = vpop.f32.mrf.mxu0 }
0x198b   :  { %13191 = vmatpush1.bf16.msra.mxu0 %v13151_v49 }
0x198c   :  { %13192 = vmatprep.subr.bf16.mxu0 %v13148_v27  ;;  %v13077_v52 = vpop.f32.mrf.mxu0 }
0x198e   :  { %v13079_v26 = vpop.f32.mrf.mxu0 }
0x198f   :  { %13193 = vmatpush1.bf16.msra.mxu0 %v13147_v61 }
0x1990   :  { %13692 = vmatprep.subr.bf16.mxu0 %v17348_v19  ;;  %v13081_v6 = vpop.f32.mrf.mxu0 }
0x1992   :  { %16539 = vmatmul.mubr.msk.bf16.vlgmr.msra.gmra.mxu0 %vm321_vm3, %v18657_v20  ;;  %v13085_v22 = vpop.f32.mrf.mxu0 }
0x1993   :  { %13220 = vmatprep.mubr.bf16.mxu0 %v18829_v33  ;;  %13693 = vmatpush1.bf16.msra.mxu0 %v17346_v57 }
0x1994   :  { %13694 = vmatprep.subr.bf16.mxu0 %v17351_v34  ;;  %v13087_v25 = vpop.f32.mrf.mxu0 }
0x1996   :  { %v13089_v19 = vpop.f32.mrf.mxu0 }
0x1997   :  { %13695 = vmatpush1.bf16.msra.mxu0 %v17349_v56 }
0x1998   :  { %13696 = vmatprep.subr.bf16.mxu0 %v17354_v39 }
0x199a   :  { %16540 = vmatmul.mubr.msk.bf16.gmra.mxu0 %vm321_vm3, %v18662_v3 }
0x199b   :  { %13697 = vmatpush1.bf16.msra.mxu0 %v17352_v5 }
0x199c   :  { %13698 = vmatprep.subr.bf16.mxu0 %v17357_v36 }
0x199f   :  { %13699 = vmatpush1.bf16.msra.mxu0 %v17355_v11 }
0x19a0   :  { %13700 = vmatprep.subr.bf16.mxu0 %v17363_v0 }
0x19a3   :  { %13701 = vmatpush1.bf16.msra.mxu0 %v17361_v18 }
0x19a4   :  { %13702 = vmatprep.subr.bf16.mxu0 %v17369_v30  ;;  %v13091_v30 = vpop.f32.mrf.mxu0 }
0x19a7   :  { %13703 = vmatpush1.bf16.msra.mxu0 %v17367_v43 }
0x19a8   :  { %13704 = vmatprep.subr.bf16.mxu0 %v17375_v60 }
0x19ab   :  { %13705 = vmatpush1.bf16.msra.mxu0 %v17373_v28 }
0x19ac   :  { %13706 = vmatprep.subr.bf16.mxu0 %v17381_v15 }
0x19af   :  { %13707 = vmatpush1.bf16.msra.mxu0 %v17379_v16 }
0x19b0   :  { %13708 = vmatprep.subr.bf16.mxu0 %v17387_v2 }
0x19b3   :  { %13709 = vmatpush2.bf16.msra.mxu0 %v17385_v54 }
0x19b4   :  { %13710 = vmatprep.subr.bf16.mxu0 %v17393_v23 }
0x19b7   :  { %13711 = vmatpush2.bf16.msra.mxu0 %v17391_v7  ;;  %v13022_v46 = vpop.f32.mrf.mxu1 }
0x19b8   :  { %13712 = vmatprep.subr.bf16.mxu0 %v17399_v53  ;;  %v13023_v54 = vadd.f32 %v13022_v46, %v12969_v40  ;;  %v17360_v40 = vld [vmem:[#allocation8 + $0x7fc] ss:$8 sps:$4 sm:$0xff]  }
0x19b9   :  { %v13024_v51 = vpop.f32.mrf.mxu1 }
0x19ba   :  { %v13025_v18 = vadd.f32 %v13024_v51, %v12971_v10  ;;  %v13076_v10 = vadd.f32 %v13075_v35, %v13023_v54  ;;  %v17382_v35 = vld [vmem:[#allocation8 + $0x7b8] ss:$8 sps:$4 sm:$0xff]  }
0x19bb   :  { %13713 = vmatpush2.bf16.msra.mxu0 %v17397_v12  ;;  %v13026_v37 = vpop.f32.mrf.mxu1 }
0x19bc   :  { %13714 = vmatprep.subr.bf16.mxu0 %v17405_v59  ;;  %v13027_v43 = vadd.f32 %v13026_v37, %v12973_v47  ;;  %v13078_v12 = vadd.f32 %v13077_v52, %v13025_v18  ;;  %v17370_v37 = vld [vmem:[#allocation8 + $0x7d8] ss:$8 sps:$4 sm:$0xff]   ;;  %v17396_v52 = vld [vmem:[#allocation8 + $0x79c] ss:$8 sps:$4 sm:$0xff]  }
0x19bd   :  { %v13028_v44 = vpop.f32.mrf.mxu1 }
0x19be   :  { %v13029_v39 = vadd.f32 %v13028_v44, %v12975_v14  ;;  %v17376_v44 = vld [vmem:[#allocation8 + $0x7c8] ss:$8 sps:$4 sm:$0xff]  }
0x19bf   :  { %13715 = vmatpush2.bf16.msra.mxu0 %v17403_v62  ;;  %v13032_v1 = vpop.f32.mrf.mxu1 }
0x19c0   :  { %13716 = vmatprep.subr.bf16.mxu0 %v17411_v24  ;;  %v13033_v11 = vadd.f32 %v13032_v1, %v12979_v45  ;;  %v13082_v15 = vadd.f32 %v13081_v6, %v13029_v39  ;;  %v17388_v1 = vld [vmem:[#allocation8 + $0x7a8] ss:$8 sps:$4 sm:$0xff]   ;;  %v17406_v6 = vld [vmem:[#allocation8 + $0x878] ss:$8 sps:$4 sm:$0xff]  }
0x19c1   :  { %v13034_v50 = vpop.f32.mrf.mxu1 }
0x19c2   :  { %v13035_v5 = vadd.f32 %v13034_v50, %v12981_v8  ;;  %v13086_v23 = vadd.f32 %v13085_v22, %v13033_v11  ;;  %v17366_v8 = vld [vmem:[#allocation8 + $0x7ec] ss:$8 sps:$4 sm:$0xff]   ;;  %v17394_v50 = vld [vmem:[#allocation8 + $0x798] ss:$8 sps:$4 sm:$0xff]   ;;  %v17412_v22 = vld [vmem:[#allocation8 + $0x868] ss:$8 sps:$4 sm:$0xff]  }
0x19c3   :  { %13717 = vmatpush2.bf16.msra.mxu0 %v17409_v13  ;;  %v13036_v9 = vpop.f32.mrf.mxu1  ;;  %v13080_v13 = vadd.f32 %v13079_v26, %v13027_v43  ;;  %v17402_v26 = vld [vmem:[#allocation8 + $0x78c] ss:$8 sps:$4 sm:$0xff]   ;;  %v17433_v11 = vld [vmem:[#allocation8 + $0x828] ss:$8 sps:$4 sm:$0xff]  }
0x19c4   :  { %13718 = vmatprep.subr.bf16.mxu0 %v17417_v31  ;;  %v13037_v34 = vadd.f32 %v13036_v9, %v12983_v41  ;;  %v13088_v16 = vadd.f32 %v13087_v25, %v13035_v5  ;;  %v17378_v41 = vld [vmem:[#allocation8 + $0x7cc] ss:$8 sps:$4 sm:$0xff]   ;;  %v17400_v9 = vld [vmem:[#allocation8 + $0x788] ss:$8 sps:$4 sm:$0xff]  }
0x19c5   :  { %v13038_v63 = vpop.f32.mrf.mxu1  ;;  %v17426_v25 = vld [vmem:[#allocation8 + $0x84c] ss:$8 sps:$4 sm:$0xff]  }
0x19c6   :  { %v13039_v36 = vadd.f32 %v13038_v63, %v12985_v4  ;;  %v13090_v60 = vadd.f32 %v13089_v19, %v13037_v34  ;;  %v17384_v4 = vld [vmem:[#allocation8 + $0x7bc] ss:$8 sps:$4 sm:$0xff]   ;;  %v17414_v63 = vld [vmem:[#allocation8 + $0x86c] ss:$8 sps:$4 sm:$0xff]   ;;  %v17430_v19 = vld [vmem:[#allocation8 + $0x838] ss:$8 sps:$4 sm:$0xff]  }
0x19c7   :  { %13719 = vmatpush2.bf16.msra.mxu0 %v17415_v32  ;;  %v13156_v34 = vld [vmem:[#allocation6 + $0x4c0] ss:$8 sm:$0xf] }
0x19c8   :  { %13720 = vmatprep.subr.bf16.mxu0 %v17423_v21  ;;  %v13092_v2 = vadd.f32 %v13091_v30, %v13039_v36  ;;  %v17358_v21 = vld [vmem:[#allocation8 + $0x7f8] ss:$8 sps:$4 sm:$0xff]   ;;  %v13165_v39 = vrot.slane %v13156_v34, %v18854_v58  ;;  %v17435_v36 = vld [vmem:[#allocation8 + $0x82c] ss:$8 sps:$4 sm:$0xff]  }
0x19cb   :  { %13721 = vmatpush2.bf16.msra.mxu0 %v17421_v55 }
0x19cc   :  { %13722 = vmatprep.subr.bf16.mxu0 %v17429_v48  ;;  %v17364_v48 = vld [vmem:[#allocation8 + $0x7e8] ss:$8 sps:$4 sm:$0xff]  }
0x19cf   :  { %13723 = vmatpush2.bf16.msra.mxu0 %v17427_v42  ;;  %v17372_v42 = vld [vmem:[#allocation8 + $0x7dc] ss:$8 sps:$4 sm:$0xff]  }
0x19f7   :  { %v13128_v49 = vpop.f32.mrf.mxu1 }
0x19f8   :  { %v13129_v55 = vadd.f32 %v13128_v49, %v13076_v10  ;;  %v17420_v49 = vld [vmem:[#allocation8 + $0x85c] ss:$8 sps:$4 sm:$0xff]  }
0x19f9   :  { %v13130_v27 = vpop.f32.mrf.mxu1 }
0x19fa   :  { %v13131_v31 = vadd.f32 %v13130_v27, %v13078_v12  ;;  %v17418_v27 = vld [vmem:[#allocation8 + $0x858] ss:$8 sps:$4 sm:$0xff]   ;;  %v17441_v12 = vld [vmem:[#allocation8 + $0x80c] ss:$8 sps:$4 sm:$0xff]  }
0x19fb   :  { %v13132_v61 = vpop.f32.mrf.mxu1 }
0x19fc   :  { %v13133_v45 = vadd.f32 %v13132_v61, %v13080_v13  ;;  %v17424_v61 = vld [vmem:[#allocation8 + $0x848] ss:$8 sps:$4 sm:$0xff]  }
0x19fd   :  { %v13134_v57 = vpop.f32.mrf.mxu1 }
0x19fe   :  { %v13135_v59 = vadd.f32 %v13134_v57, %v13082_v15  ;;  %v13149_v46 = vpack.c.bf16 %v13133_v45, %v13129_v55  ;;  %v17432_v57 = vld [vmem:[#allocation8 + $0x83c] ss:$8 sps:$4 sm:$0xff]   ;;  %v17436_v15 = vld [vmem:[#allocation8 + $0x818] ss:$8 sps:$4 sm:$0xff]  }
0x19ff   :  { %v13138_v56 = vpop.f32.mrf.mxu1 }
0x1a00   :  { %v13139_v32 = vadd.f32 %v13138_v56, %v13086_v23  ;;  %v13150_v51 = vpack.c.bf16 %v13135_v59, %v13131_v31  ;;  %v13161_v56 = vrot.slane %v13156_v34, %v18853_v17 }
0x1a01   :  { %v13140_v0 = vpop.f32.mrf.mxu1 }
0x1a02   :  { %v13141_v62 = vadd.f32 %v13140_v0, %v13088_v16 }
0x1a03   :  { %v13142_v28 = vpop.f32.mrf.mxu1 }
0x1a04   :  { %v13143_v7 = vadd.f32 %v13142_v28, %v13090_v60  ;;  %v17438_v60 = vld [vmem:[#allocation8 + $0x81c] ss:$8 sps:$4 sm:$0xff]  }
0x1a05   :  { %v13144_v53 = vpop.f32.mrf.mxu1 }
0x1a06   :  { %v13145_v24 = vadd.f32 %v13144_v53, %v13092_v2  ;;  %v13153_v47 = vpack.c.bf16 %v13143_v7, %v13139_v32 }
0x1a08   :  { %v13154_v14 = vpack.c.bf16 %v13145_v24, %v13141_v62  ;;  %v17439_v62 = vld [vmem:[#allocation8 + $0x808] ss:$8 sps:$4 sm:$0xff]  }
0x1a0a   :  { %13243 = vmatprep.subr.bf16.mxu1 %v13154_v14 }
0x1a0b   :  { %13244 = vmatpush1.bf16.msra.mxu1 %v13153_v47 }
0x1a0c   :  { %13245 = vmatprep.subr.bf16.mxu1 %v13150_v51 }
0x1a0f   :  { %13246 = vmatpush1.bf16.msra.mxu1 %v13149_v46 }
0x1a10   :  { %13745 = vmatprep.subr.bf16.mxu1 %v17360_v40 }
0x1a12   :  { %16541 = vmatmul.mubr.msk.bf16.vlgmr.msra.gmra.mxu1 %vm321_vm3, %v18657_v20  ;;  %v17390_v20 = vld [vmem:[#allocation8 + $0x7ac] ss:$8 sps:$4 sm:$0xff]  }
0x1a13   :  { %13273 = vmatprep.mubr.bf16.mxu1 %v18829_v33  ;;  %13746 = vmatpush1.bf16.msra.mxu1 %v17358_v21 }
0x1a14   :  { %13747 = vmatprep.subr.bf16.mxu1 %v17366_v8 }
0x1a17   :  { %13748 = vmatpush1.bf16.msra.mxu1 %v17364_v48 }
0x1a18   :  { %13749 = vmatprep.subr.bf16.mxu1 %v17372_v42 }
0x1a1a   :  { %16542 = vmatmul.mubr.msk.bf16.gmra.mxu1 %vm321_vm3, %v18662_v3  ;;  %v17408_v3 = vld [vmem:[#allocation8 + $0x87c] ss:$8 sps:$4 sm:$0xff]  }
0x1a1b   :  { %13750 = vmatpush1.bf16.msra.mxu1 %v17370_v37  ;;  %v13173_v37 = vrot.slane %v13156_v34, %v18855_v38 }
0x1a1c   :  { %13751 = vmatprep.subr.bf16.mxu1 %v17378_v41  ;;  %v13169_v41 = vrot.slane %v13156_v34, %v18856_v29 }
0x1a1f   :  { %13752 = vmatpush1.bf16.msra.mxu1 %v17376_v44 }
0x1a20   :  { %13753 = vmatprep.subr.bf16.mxu1 %v17384_v4 }
0x1a23   :  { %13754 = vmatpush1.bf16.msra.mxu1 %v17382_v35 }
0x1a24   :  { %13755 = vmatprep.subr.bf16.mxu1 %v17390_v20 }
0x1a27   :  { %13756 = vmatpush1.bf16.msra.mxu1 %v17388_v1 }
0x1a28   :  { %13757 = vmatprep.subr.bf16.mxu1 %v17396_v52 }
0x1a2b   :  { %13758 = vmatpush1.bf16.msra.mxu1 %v17394_v50 }
0x1a2c   :  { %13759 = vmatprep.subr.bf16.mxu1 %v17402_v26 }
0x1a2f   :  { %13760 = vmatpush1.bf16.msra.mxu1 %v17400_v9 }
0x1a30   :  { %13761 = vmatprep.subr.bf16.mxu1 %v17408_v3 }
0x1a33   :  { %13762 = vmatpush2.bf16.msra.mxu1 %v17406_v6 }
0x1a34   :  { %13763 = vmatprep.subr.bf16.mxu1 %v17414_v63 }
0x1a37   :  { %13764 = vmatpush2.bf16.msra.mxu1 %v17412_v22 }
0x1a38   :  { %13765 = vmatprep.subr.bf16.mxu1 %v17420_v49 }
0x1a3b   :  { %13766 = vmatpush2.bf16.msra.mxu1 %v17418_v27 }
0x1a3c   :  { %13767 = vmatprep.subr.bf16.mxu1 %v17426_v25 }
0x1a3f   :  { %13768 = vmatpush2.bf16.msra.mxu1 %v17424_v61 }
0x1a40   :  { %13769 = vmatprep.subr.bf16.mxu1 %v17432_v57 }
0x1a43   :  { %13770 = vmatpush2.bf16.msra.mxu1 %v17430_v19 }
0x1a44   :  { %13771 = vmatprep.subr.bf16.mxu1 %v17435_v36 }
0x1a47   :  { %13772 = vmatpush2.bf16.msra.mxu1 %v17433_v11 }
0x1a48   :  { %13773 = vmatprep.subr.bf16.mxu1 %v17438_v60  ;;  %v18861_v60 = vld [vmem:[#allocation16_spill] sm:$0xff] }
0x1a4b   :  { %13774 = vmatpush2.bf16.msra.mxu1 %v17436_v15  ;;  %v18863_v15 = vld [vmem:[#allocation18_spill] sm:$0xff] }
0x1a4c   :  { %13775 = vmatprep.subr.bf16.mxu1 %v17441_v12 }
0x1a4f   :  { %13776 = vmatpush2.bf16.msra.mxu1 %v17439_v62 }
0x1a52   :  { %v13212_v5 = vpop.f32.mrf.mxu0 }
0x1a53   :  { %v13213_v0 = vadd.f32 %v13212_v5, %v13161_v56 }
0x1a54   :  { %v13214_v18 = vpop.f32.mrf.mxu0 }
0x1a55   :  { %v13215_v30 = vadd.f32 %v13214_v18, %v13165_v39  ;;  %v13284_v16 = vmax.f32 %v13213_v0, 0.0  ;;  %v13810_v0 = vld [vmem:[#allocation8 + $0x888] sm:$0x77] }
0x1a56   :  { %v13216_v43 = vpop.f32.mrf.mxu0  ;;  %v16608_v18 = vcombine.high %v13810_v0, %v13810_v0 }
0x1a57   :  { %v13217_v28 = vadd.f32 %v13216_v43, %v13161_v56  ;;  %v13285_v54 = vmax.f32 %v13215_v30, 0.0  ;;  %v16607_v30 = vcombine.low %v13810_v0, %v13810_v0  ;;  %v17481_v0 = vld [vmem:[#allocation8 + $0x974] ss:$8 sps:$4 sm:$0xff]  }
0x1a58   :  { %v13218_v2 = vpop.f32.mrf.mxu0  ;;  %16609 = vmatprep.subr.msk.bf16.mxu0 %vm113_vm0, %v16608_v18 }
0x1a59   :  { %v13288_v23 = vmax.f32 %v13217_v28, 0.0  ;;  %v13219_v7 = vadd.f32 %v13218_v2, %v13165_v39  ;;  %v13817_v43 = vsel %vm113_vm0, %v16607_v30, 0  ;;  %v18862_v28 = vld [vmem:[#allocation17_spill] sm:$0xff] }
0x1a5a   :  { %v13222_v53 = vpop.f32.mrf.mxu0  ;;  %v17479_v30 = vld [vmem:[#allocation8 + $0x970] ss:$8 sps:$4 sm:$0xff]  }
0x1a5b   :  { %v13289_v59 = vmax.f32 %v13219_v7, 0.0  ;;  %v13300_v24 = vpack.c.bf16 %v13288_v23, %v13284_v16  ;;  %v13223_v13 = vadd.f32 %v13222_v53, %v13161_v56  ;;  %v18864_v16 = vld [vmem:[#allocation19_spill] sm:$0xff] }
0x1a5c   :  { %v13224_v32 = vpop.f32.mrf.mxu0 }
0x1a5d   :  { %v13301_v31 = vpack.c.bf16 %v13289_v59, %v13285_v54  ;;  %v13225_v14 = vadd.f32 %v13224_v32, %v13165_v39  ;;  %v13292_v47 = vmax.f32 %v13223_v13, 0.0 }
0x1a5e   :  { %v13226_v10 = vpop.f32.mrf.mxu0 }
0x1a5f   :  { %v13227_v45 = vadd.f32 %v13226_v10, %v13161_v56  ;;  %13724 = vmatprep.mubr.bf16.mxu0 %v13301_v31  ;;  %v13293_v55 = vmax.f32 %v13225_v14, 0.0 }
0x1a60   :  { %v13228_v51 = vpop.f32.mrf.mxu0  ;;  %13725 = vmatmul.mubr.bf16.vlgmr.msra.gmra.mxu0 %v13300_v24 }
0x1a61   :  { %v13296_v40 = vmax.f32 %v13227_v45, 0.0  ;;  %v13229_v46 = vadd.f32 %v13228_v51, %v13165_v39  ;;  %13837 = vmatpush1.bf16.msra.mxu0 %v13817_v43  ;;  %v17484_v43 = vld [vmem:[#allocation8 + $0x964] ss:$8 sps:$4 sm:$0xff]  }
0x1a63   :  { %v13297_v21 = vmax.f32 %v13229_v46, 0.0  ;;  %v13304_v8 = vpack.c.bf16 %v13296_v40, %v13292_v47 }
0x1a65   :  { %v13305_v48 = vpack.c.bf16 %v13297_v21, %v13293_v55 }
0x1a67   :  { %13734 = vmatprep.mubr.bf16.mxu0 %v13305_v48 }
0x1a68   :  { %13735 = vmatmul.mubr.bf16.gmra.mxu0 %v13304_v8 }
0x1a69   :  { %13854 = vmatprep.mubr.bf16.mxu0 %v18829_v33 }
0x1a70   :  { %16610 = vmatmul.mubr.msk.bf16.vlgmr.msra.gmra.mxu0 %vm100_vm1, %v18861_v60 }
0x1a71   :  { %13864 = vmatprep.mubr.bf16.mxu0 %v18829_v33 }
0x1a78   :  { %16611 = vmatmul.mubr.msk.bf16.gmra.mxu0 %vm100_vm1, %v18862_v28  ;;  %v17482_v28 = vld [vmem:[#allocation8 + $0x960] ss:$8 sps:$4 sm:$0xff]  }
0x1a79   :  { %13874 = vmatprep.mubr.bf16.mxu0 %v18829_v33 }
0x1a80   :  { %16612 = vmatmul.mubr.msk.bf16.gmra.mxu0 %vm100_vm1, %v18863_v15  ;;  %v17487_v15 = vld [vmem:[#allocation8 + $0x954] ss:$8 sps:$4 sm:$0xff]  }
0x1a81   :  { %13884 = vmatprep.mubr.bf16.mxu0 %v18829_v33 }
0x1a88   :  { %16613 = vmatmul.mubr.msk.bf16.gmra.mxu0 %vm100_vm1, %v18864_v16 }
0x1a89   :  { %14093 = vmatprep.mubr.bf16.mxu0 %v18829_v33 }
0x1ad2   :  { %v13265_v42 = vpop.f32.mrf.mxu1 }
0x1ad3   :  { %v13266_v1 = vadd.f32 %v13265_v42, %v13169_v41 }
0x1ad4   :  { %v13267_v44 = vpop.f32.mrf.mxu1 }
0x1ad5   :  { %v13268_v35 = vadd.f32 %v13267_v44, %v13173_v37  ;;  %v13286_v63 = vmax.f32 %v13266_v1, 0.0  ;;  %v17446_v1 = vld [vmem:[#allocation4 + $0x70] sm:$0xff]  }
0x1ad6   :  { %v13269_v4 = vpop.f32.mrf.mxu1 }
0x1ad7   :  { %v13270_v20 = vadd.f32 %v13269_v4, %v13169_v41  ;;  %v13287_v3 = vmax.f32 %v13268_v35, 0.0  ;;  %v17444_v35 = vld [vmem:[#allocation4 + $0x60] sm:$0xff]  }
0x1ad8   :  { %v13271_v52 = vpop.f32.mrf.mxu1 }
0x1ad9   :  { %v13272_v50 = vadd.f32 %v13271_v52, %v13173_v37  ;;  %v13290_v26 = vmax.f32 %v13270_v20, 0.0  ;;  %v17445_v20 = vld [vmem:[#allocation4 + $0x68] sm:$0xff]   ;;  %v17447_v52 = vld [vmem:[#allocation4 + $0x78] sm:$0xff]  }
0x1ada   :  { %v13275_v9 = vpop.f32.mrf.mxu1 }
0x1adb   :  { %v13291_v6 = vmax.f32 %v13272_v50, 0.0  ;;  %v13302_v27 = vpack.c.bf16 %v13290_v26, %v13286_v63  ;;  %v13276_v29 = vadd.f32 %v13275_v9, %v13169_v41  ;;  %v17452_v50 = vld [vmem:[#allocation8 + $0x900] ss:$8 sps:$4 sm:$0xff]   ;;  %v17454_v26 = vld [vmem:[#allocation8 + $0x904] ss:$8 sps:$4 sm:$0xff]  }
0x1adc   :  { %v13277_v22 = vpop.f32.mrf.mxu1  ;;  %v17457_v9 = vld [vmem:[#allocation8 + $0x8f4] ss:$8 sps:$4 sm:$0xff]   ;;  %v17458_v63 = vld [vmem:[#allocation8 + $0x8e0] ss:$8 sps:$4 sm:$0xff]  }
0x1add   :  { %v13303_v49 = vpack.c.bf16 %v13291_v6, %v13287_v3  ;;  %v13278_v61 = vadd.f32 %v13277_v22, %v13173_v37  ;;  %v13294_v5 = vmax.f32 %v13276_v29, 0.0  ;;  %v17455_v3 = vld [vmem:[#allocation8 + $0x8f0] ss:$8 sps:$4 sm:$0xff]   ;;  %v17460_v6 = vld [vmem:[#allocation8 + $0x8e4] ss:$8 sps:$4 sm:$0xff]  }
0x1ade   :  { %v13279_v25 = vpop.f32.mrf.mxu1  ;;  %v17463_v22 = vld [vmem:[#allocation8 + $0x8d4] ss:$8 sps:$4 sm:$0xff]   ;;  %v17472_v29 = vld [vmem:[#allocation8 + $0x8a4] ss:$8 sps:$4 sm:$0xff]  }
0x1adf   :  { %v13280_v38 = vadd.f32 %v13279_v25, %v13169_v41  ;;  %13777 = vmatprep.mubr.bf16.mxu1 %v13303_v49  ;;  %v13295_v56 = vmax.f32 %v13278_v61, 0.0  ;;  %v17461_v49 = vld [vmem:[#allocation8 + $0x8d0] ss:$8 sps:$4 sm:$0xff]   ;;  %v17464_v25 = vld [vmem:[#allocation8 + $0x8c0] ss:$8 sps:$4 sm:$0xff]  }
0x1ae0   :  { %v13281_v57 = vpop.f32.mrf.mxu1  ;;  %13778 = vmatmul.mubr.bf16.vlgmr.msra.gmra.mxu1 %v13302_v27  ;;  %v17466_v27 = vld [vmem:[#allocation8 + $0x8c4] ss:$8 sps:$4 sm:$0xff]   ;;  %v17469_v61 = vld [vmem:[#allocation8 + $0x8b4] ss:$8 sps:$4 sm:$0xff]  }
0x1ae1   :  { %v13282_v19 = vadd.f32 %v13281_v57, %v13173_v37  ;;  %v13298_v34 = vmax.f32 %v13280_v38, 0.0  ;;  %v17467_v38 = vld [vmem:[#allocation8 + $0x8b0] ss:$8 sps:$4 sm:$0xff]  }
0x1ae3   :  { %v13299_v39 = vmax.f32 %v13282_v19, 0.0  ;;  %v13306_v11 = vpack.c.bf16 %v13298_v34, %v13294_v5  ;;  %v17470_v19 = vld [vmem:[#allocation8 + $0x8a0] ss:$8 sps:$4 sm:$0xff]   ;;  %v17475_v34 = vld [vmem:[#allocation8 + $0x894] ss:$8 sps:$4 sm:$0xff]  }
0x1ae4   :  { %v17478_v5 = vld [vmem:[#allocation8 + $0x984] ss:$8 sps:$4 sm:$0xff]  }
0x1ae5   :  { %v13307_v36 = vpack.c.bf16 %v13299_v39, %v13295_v56  ;;  %v17473_v39 = vld [vmem:[#allocation8 + $0x890] ss:$8 sps:$4 sm:$0xff]  }
0x1ae7   :  { %13787 = vmatprep.mubr.bf16.mxu1 %v13307_v36 }
0x1ae8   :  { %13788 = vmatmul.mubr.bf16.gmra.mxu1 %v13306_v11  ;;  %v17476_v11 = vld [vmem:[#allocation8 + $0x980] ss:$8 sps:$4 sm:$0xff]  }
0x1ae9   :  { %13959 = vmatprep.mubr.bf16.mxu1 %v18829_v33 }
0x1b20   :  { %v13726_v2 = vpop.f32.mrf.mxu0 }
0x1b22   :  { %v13728_v54 = vpop.f32.mrf.mxu0 }
0x1b24   :  { %v13730_v23 = vpop.f32.mrf.mxu0 }
0x1b26   :  { %v13732_v7 = vpop.f32.mrf.mxu0 }
0x1b28   :  { %v13736_v12 = vpop.f32.mrf.mxu0 }
0x1b2a   :  { %v13738_v24 = vpop.f32.mrf.mxu0 }
0x1b2c   :  { %v13740_v31 = vpop.f32.mrf.mxu0 }
0x1b2e   :  { %v13742_v45 = vpop.f32.mrf.mxu0 }
0x1b30   :  { %v18698_v57 = vpop.f32.mrf.mxu0 }
0x1b32   :  { %v18700_v56 = vpop.f32.mrf.mxu0 }
0x1b34   :  { %v18702_v36 = vpop.f32.mrf.mxu0 }
0x1b36   :  { %v18704_v18 = vpop.f32.mrf.mxu0 }
0x1b38   :  { %v13866_v60 = vpop.f32.mrf.mxu0 }
0x1b3a   :  { %v13868_v16 = vpop.f32.mrf.mxu0 }
0x1ba0   :  { %v13779_v53 = vpop.f32.mrf.mxu1 }
0x1ba1   :  { %v13780_v44 = vadd.f32 %v13779_v53, %v13726_v2  ;;  %v17485_v2 = vld [vmem:[#allocation8 + $0x950] ss:$8 sps:$4 sm:$0xff]  }
0x1ba2   :  { %v13781_v59 = vpop.f32.mrf.mxu1 }
0x1ba3   :  { %v13782_v8 = vadd.f32 %v13781_v59, %v13728_v54  ;;  %v17490_v54 = vld [vmem:[#allocation8 + $0x944] ss:$8 sps:$4 sm:$0xff]  }
0x1ba4   :  { %v13783_v62 = vpop.f32.mrf.mxu1 }
0x1ba5   :  { %v13784_v42 = vadd.f32 %v13783_v62, %v13730_v23  ;;  %v13870_v23 = vpop.f32.mrf.mxu0 }
0x1ba6   :  { %v13785_v13 = vpop.f32.mrf.mxu1 }
0x1ba7   :  { %v13786_v55 = vadd.f32 %v13785_v13, %v13732_v7  ;;  %v13798_v4 = vpack.c.bf16 %v13784_v42, %v13780_v44  ;;  %v17488_v7 = vld [vmem:[#allocation8 + $0x940] ss:$8 sps:$4 sm:$0xff]   ;;  %v13872_v53 = vpop.f32.mrf.mxu0 }
0x1ba8   :  { %v13789_v32 = vpop.f32.mrf.mxu1 }
0x1ba9   :  { %v13790_v21 = vadd.f32 %v13789_v32, %v13736_v12  ;;  %v13799_v41 = vpack.c.bf16 %v13786_v55, %v13782_v8  ;;  %v13876_v62 = vpop.f32.mrf.mxu0 }
0x1baa   :  { %v13791_v14 = vpop.f32.mrf.mxu1 }
0x1bab   :  { %v13792_v40 = vadd.f32 %v13791_v14, %v13738_v24  ;;  %v13878_v32 = vpop.f32.mrf.mxu0 }
0x1bac   :  { %v13793_v10 = vpop.f32.mrf.mxu1 }
0x1bad   :  { %v13794_v47 = vadd.f32 %v13793_v10, %v13740_v31  ;;  %v13880_v10 = vpop.f32.mrf.mxu0 }
0x1bae   :  { %v13795_v51 = vpop.f32.mrf.mxu1 }
0x1baf   :  { %v13796_v46 = vadd.f32 %v13795_v51, %v13742_v45  ;;  %v13800_v37 = vpack.c.bf16 %v13794_v47, %v13790_v21  ;;  %v13882_v51 = vpop.f32.mrf.mxu0 }
0x1bb1   :  { %v13801_v48 = vpack.c.bf16 %v13796_v46, %v13792_v40  ;;  %v13886_v40 = vpop.f32.mrf.mxu0 }
0x1bb3   :  { %13939 = vmatprep.subr.bf16.mxu1 %v13801_v48  ;;  %v13888_v8 = vpop.f32.mrf.mxu0 }
0x1bb4   :  { %13940 = vmatpush1.bf16.msra.mxu1 %v13800_v37 }
0x1bb5   :  { %13941 = vmatprep.subr.bf16.mxu1 %v13799_v41  ;;  %v13890_v37 = vpop.f32.mrf.mxu0 }
0x1bb8   :  { %13942 = vmatpush1.bf16.msra.mxu1 %v13798_v4  ;;  %v13892_v4 = vpop.f32.mrf.mxu0 }
0x1bb9   :  { %14350 = vmatprep.subr.bf16.mxu1 %v17454_v26 }
0x1bbb   :  { %16618 = vmatmul.mubr.msk.bf16.vlgmr.msra.gmra.mxu1 %vm321_vm3, %v17444_v35 }
0x1bbc   :  { %13969 = vmatprep.mubr.bf16.mxu1 %v18829_v33  ;;  %14351 = vmatpush1.bf16.msra.mxu1 %v17452_v50 }
0x1bbd   :  { %14352 = vmatprep.subr.bf16.mxu1 %v17457_v9 }
0x1bc0   :  { %14353 = vmatpush1.bf16.msra.mxu1 %v17455_v3 }
0x1bc1   :  { %14354 = vmatprep.subr.bf16.mxu1 %v17460_v6 }
0x1bc3   :  { %16619 = vmatmul.mubr.msk.bf16.gmra.mxu1 %vm321_vm3, %v17445_v20 }
0x1bc4   :  { %13979 = vmatprep.mubr.bf16.mxu1 %v18829_v33  ;;  %14355 = vmatpush1.bf16.msra.mxu1 %v17458_v63 }
0x1bc5   :  { %14356 = vmatprep.subr.bf16.mxu1 %v17463_v22 }
0x1bc8   :  { %14357 = vmatpush1.bf16.msra.mxu1 %v17461_v49 }
0x1bc9   :  { %14358 = vmatprep.subr.bf16.mxu1 %v17466_v27 }
0x1bcb   :  { %16620 = vmatmul.mubr.msk.bf16.gmra.mxu1 %vm321_vm3, %v17446_v1 }
0x1bcc   :  { %13989 = vmatprep.mubr.bf16.mxu1 %v18829_v33  ;;  %14359 = vmatpush1.bf16.msra.mxu1 %v17464_v25 }
0x1bcd   :  { %14360 = vmatprep.subr.bf16.mxu1 %v17469_v61 }
0x1bd0   :  { %14361 = vmatpush1.bf16.msra.mxu1 %v17467_v38 }
0x1bd1   :  { %14362 = vmatprep.subr.bf16.mxu1 %v17472_v29 }
0x1bd3   :  { %16621 = vmatmul.mubr.msk.bf16.gmra.mxu1 %vm321_vm3, %v17447_v52 }
0x1bd4   :  { %14363 = vmatpush1.bf16.msra.mxu1 %v17470_v19 }
0x1bd5   :  { %14364 = vmatprep.subr.bf16.mxu1 %v17475_v34 }
0x1bd8   :  { %14365 = vmatpush1.bf16.msra.mxu1 %v17473_v39 }
0x1bd9   :  { %14366 = vmatprep.subr.bf16.mxu1 %v17478_v5 }
0x1bdc   :  { %14367 = vmatpush2.bf16.msra.mxu1 %v17476_v11 }
0x1bdd   :  { %14368 = vmatprep.subr.bf16.mxu1 %v17481_v0 }
0x1be0   :  { %14369 = vmatpush2.bf16.msra.mxu1 %v17479_v30 }
0x1be1   :  { %14370 = vmatprep.subr.bf16.mxu1 %v17484_v43 }
0x1be4   :  { %14371 = vmatpush2.bf16.msra.mxu1 %v17482_v28  ;;  %v18710_v28 = vld [vmem:[#allocation4] sm:$0xff]  }
0x1be5   :  { %14372 = vmatprep.subr.bf16.mxu1 %v17487_v15  ;;  %v17496_v15 = vld [vmem:[#allocation8 + $0x924] ss:$8 sps:$4 sm:$0xff]  }
0x1be8   :  { %14373 = vmatpush2.bf16.msra.mxu1 %v17485_v2  ;;  %v17499_v2 = vld [vmem:[#allocation8 + $0x914] ss:$8 sps:$4 sm:$0xff]  }
0x1be9   :  { %14374 = vmatprep.subr.bf16.mxu1 %v17490_v54  ;;  %v17497_v54 = vld [vmem:[#allocation8 + $0x910] ss:$8 sps:$4 sm:$0xff]  }
0x1bec   :  { %14375 = vmatpush2.bf16.msra.mxu1 %v17488_v7 }
0x1c7b   :  { %v13961_v12 = vpop.f32.mrf.mxu1 }
0x1c7c   :  { %v13962_v30 = vadd.f32 %v13961_v12, %v18698_v57  ;;  %v18725_v57 = vld [vmem:[#allocation4 + $0x18] sm:$0xff]  }
0x1c7d   :  { %v13963_v59 = vpop.f32.mrf.mxu1 }
0x1c7e   :  { %v13964_v39 = vadd.f32 %v13963_v59, %v18700_v56  ;;  %v18720_v56 = vld [vmem:[#allocation4 + $0x10] sm:$0xff]  }
0x1c7f   :  { %v13965_v24 = vpop.f32.mrf.mxu1 }
0x1c80   :  { %v13966_v5 = vadd.f32 %v13965_v24, %v18702_v36  ;;  %v17493_v36 = vld [vmem:[#allocation8 + $0x934] ss:$8 sps:$4 sm:$0xff]  }
0x1c81   :  { %v13967_v13 = vpop.f32.mrf.mxu1  ;;  %14376 = vmatprep.subr.bf16.mxu1 %v17493_v36 }
0x1c82   :  { %v13968_v29 = vadd.f32 %v13967_v13, %v18704_v18  ;;  %v14008_v43 = vpack.c.bf16 %v13966_v5, %v13962_v30  ;;  %v18715_v18 = vld [vmem:[#allocation4 + $0x8] sm:$0xff]  }
0x1c83   :  { %v13971_v31 = vpop.f32.mrf.mxu1 }
0x1c84   :  { %v13972_v34 = vadd.f32 %v13971_v31, %v13866_v60  ;;  %v14009_v0 = vpack.c.bf16 %v13968_v29, %v13964_v39  ;;  %v17491_v60 = vld [vmem:[#allocation8 + $0x930] ss:$8 sps:$4 sm:$0xff]  }
0x1c85   :  { %v13973_v14 = vpop.f32.mrf.mxu1  ;;  %14377 = vmatpush2.bf16.msra.mxu1 %v17491_v60 }
0x1c86   :  { %v13974_v25 = vadd.f32 %v13973_v14, %v13868_v16  ;;  %v17494_v16 = vld [vmem:[#allocation8 + $0x920] ss:$8 sps:$4 sm:$0xff]   ;;  %14378 = vmatprep.subr.bf16.mxu1 %v17496_v15 }
0x1c87   :  { %v13975_v45 = vpop.f32.mrf.mxu1 }
0x1c88   :  { %v13976_v61 = vadd.f32 %v13975_v45, %v13870_v23  ;;  %v14017_v23 = vld [vmem:[#allocation6 + $0x500] ss:$8 sm:$0x3] }
0x1c89   :  { %v13977_v47 = vpop.f32.mrf.mxu1  ;;  %14379 = vmatpush2.bf16.msra.mxu1 %v17494_v16  ;;  %v14022_v12 = vrot.slane %v14017_v23, %v18853_v17 }
0x1c8a   :  { %v13978_v22 = vadd.f32 %v13977_v47, %v13872_v53  ;;  %v14010_v11 = vpack.c.bf16 %v13976_v61, %v13972_v34  ;;  %14380 = vmatprep.subr.bf16.mxu1 %v17499_v2  ;;  %v14026_v53 = vrot.slane %v14017_v23, %v18854_v58 }
0x1c8b   :  { %v13981_v55 = vpop.f32.mrf.mxu1 }
0x1c8c   :  { %v13982_v27 = vadd.f32 %v13981_v55, %v13876_v62  ;;  %v14011_v19 = vpack.c.bf16 %v13978_v22, %v13974_v25 }
0x1c8d   :  { %v13983_v46 = vpop.f32.mrf.mxu1  ;;  %14381 = vmatpush2.bf16.msra.mxu1 %v17497_v54 }
0x1c8e   :  { %v13984_v9 = vadd.f32 %v13983_v46, %v13878_v32 }
0x1c8f   :  { %v13985_v21 = vpop.f32.mrf.mxu1 }
0x1c90   :  { %v13986_v6 = vadd.f32 %v13985_v21, %v13880_v10 }
0x1c91   :  { %v13987_v48 = vpop.f32.mrf.mxu1 }
0x1c92   :  { %v13988_v1 = vadd.f32 %v13987_v48, %v13882_v51  ;;  %v14012_v38 = vpack.c.bf16 %v13986_v6, %v13982_v27 }
0x1c93   :  { %v13991_v42 = vpop.f32.mrf.mxu1 }
0x1c94   :  { %v13992_v26 = vadd.f32 %v13991_v42, %v13886_v40  ;;  %v14013_v49 = vpack.c.bf16 %v13988_v1, %v13984_v9 }
0x1c95   :  { %v13993_v41 = vpop.f32.mrf.mxu1 }
0x1c96   :  { %v13994_v52 = vadd.f32 %v13993_v41, %v13888_v8 }
0x1c97   :  { %v13995_v44 = vpop.f32.mrf.mxu1 }
0x1c98   :  { %v13996_v35 = vadd.f32 %v13995_v44, %v13890_v37 }
0x1c99   :  { %v13997_v20 = vpop.f32.mrf.mxu1 }
0x1c9a   :  { %v13998_v50 = vadd.f32 %v13997_v20, %v13892_v4  ;;  %v14014_v63 = vpack.c.bf16 %v13996_v35, %v13992_v26 }
0x1c9c   :  { %v14015_v3 = vpack.c.bf16 %v13998_v50, %v13994_v52 }
0x1c9e   :  { %14069 = vmatprep.subr.bf16.mxu0 %v14015_v3 }
0x1c9f   :  { %14070 = vmatpush1.bf16.msra.mxu0 %v14014_v63 }
0x1ca0   :  { %14071 = vmatprep.subr.bf16.mxu0 %v14013_v49 }
0x1ca3   :  { %14072 = vmatpush1.bf16.msra.mxu0 %v14012_v38 }
0x1ca4   :  { %14073 = vmatprep.subr.bf16.mxu0 %v14011_v19 }
0x1ca7   :  { %14074 = vmatpush1.bf16.msra.mxu0 %v14010_v11 }
0x1ca8   :  { %14075 = vmatprep.subr.bf16.mxu0 %v14009_v0 }
0x1cab   :  { %14076 = vmatpush1.bf16.msra.mxu0 %v14008_v43 }
0x1cae   :  { %16626 = vmatmul.mubr.msk.bf16.vlgmr.msra.gmra.mxu0 %vm215_vm2, %v18710_v28 }
0x1caf   :  { %14103 = vmatprep.mubr.bf16.mxu0 %v18829_v33 }
0x1cb6   :  { %16627 = vmatmul.mubr.msk.bf16.gmra.mxu0 %vm215_vm2, %v18715_v18 }
0x1cb7   :  { %14113 = vmatprep.mubr.bf16.mxu0 %v18829_v33 }
0x1cbe   :  { %16628 = vmatmul.mubr.msk.bf16.gmra.mxu0 %vm215_vm2, %v18720_v56 }
0x1cbf   :  { %14123 = vmatprep.mubr.bf16.mxu0 %v18829_v33 }
0x1cc6   :  { %16629 = vmatmul.mubr.msk.bf16.gmra.mxu0 %vm215_vm2, %v18725_v57 }
0x1cc7   :  { %14476 = vmatprep.mubr.bf16.mxu0 %v18829_v33 }
0x1d6e   :  { %v14095_v7 = vpop.f32.mrf.mxu0 }
0x1d6f   :  { %v14096_v32 = vadd.f32 %v14095_v7, %v14022_v12 }
0x1d70   :  { %v14097_v59 = vpop.f32.mrf.mxu0 }
0x1d71   :  { %v14098_v24 = vadd.f32 %v14097_v59, %v14026_v53  ;;  %v14134_v55 = vmax.f32 %v14096_v32, 0.0 }
0x1d72   :  { %v14099_v62 = vpop.f32.mrf.mxu0 }
0x1d73   :  { %v14100_v13 = vadd.f32 %v14099_v62, %v14022_v12  ;;  %v14135_v47 = vmax.f32 %v14098_v24, 0.0 }
0x1d74   :  { %v14101_v31 = vpop.f32.mrf.mxu0 }
0x1d75   :  { %v14102_v14 = vadd.f32 %v14101_v31, %v14026_v53  ;;  %v14136_v10 = vmax.f32 %v14100_v13, 0.0 }
0x1d76   :  { %v14105_v45 = vpop.f32.mrf.mxu0 }
0x1d77   :  { %v14137_v51 = vmax.f32 %v14102_v14, 0.0  ;;  %v14150_v21 = vpack.c.bf16 %v14136_v10, %v14134_v55  ;;  %v14106_v37 = vadd.f32 %v14105_v45, %v14022_v12 }
0x1d78   :  { %v14107_v40 = vpop.f32.mrf.mxu0 }
0x1d79   :  { %v14151_v46 = vpack.c.bf16 %v14137_v51, %v14135_v47  ;;  %v14108_v48 = vadd.f32 %v14107_v40, %v14026_v53  ;;  %v14138_v52 = vmax.f32 %v14106_v37, 0.0 }
0x1d7a   :  { %v14109_v8 = vpop.f32.mrf.mxu0 }
0x1d7b   :  { %v14110_v42 = vadd.f32 %v14109_v8, %v14022_v12  ;;  %14382 = vmatprep.mubr.bf16.mxu1 %v14151_v46  ;;  %v14139_v20 = vmax.f32 %v14108_v48, 0.0 }
0x1d7c   :  { %v14111_v41 = vpop.f32.mrf.mxu0  ;;  %14383 = vmatmul.mubr.bf16.vlgmr.msra.gmra.mxu1 %v14150_v21 }
0x1d7d   :  { %v14112_v44 = vadd.f32 %v14111_v41, %v14026_v53  ;;  %v14140_v4 = vmax.f32 %v14110_v42, 0.0 }
0x1d7e   :  { %v14115_v35 = vpop.f32.mrf.mxu0 }
0x1d7f   :  { %v14141_v1 = vmax.f32 %v14112_v44, 0.0  ;;  %v14152_v9 = vpack.c.bf16 %v14140_v4, %v14138_v52  ;;  %v14116_v22 = vadd.f32 %v14115_v35, %v14022_v12  ;;  %v17500_v4 = vld [vmem:[#allocation8 + $0xa80] ss:$8 sps:$4 sm:$0xff]   ;;  %v17503_v52 = vld [vmem:[#allocation8 + $0x9f0] ss:$8 sps:$4 sm:$0xff]  }
0x1d80   :  { %v14117_v50 = vpop.f32.mrf.mxu0 }
0x1d81   :  { %v14153_v26 = vpack.c.bf16 %v14141_v1, %v14139_v20  ;;  %v14118_v6 = vadd.f32 %v14117_v50, %v14026_v53  ;;  %v14142_v19 = vmax.f32 %v14116_v22, 0.0  ;;  %v17501_v20 = vld [vmem:[#allocation8 + $0xa00] ss:$8 sps:$4 sm:$0xff]   ;;  %v17502_v1 = vld [vmem:[#allocation8 + $0xa70] ss:$8 sps:$4 sm:$0xff]  }
0x1d82   :  { %v14119_v3 = vpop.f32.mrf.mxu0  ;;  %v17504_v50 = vld [vmem:[#allocation8 + $0xa60] ss:$8 sps:$4 sm:$0xff]   ;;  %v17511_v22 = vld [vmem:[#allocation8 + $0x9b0] ss:$8 sps:$4 sm:$0xff]  }
0x1d83   :  { %v14120_v63 = vadd.f32 %v14119_v3, %v14022_v12  ;;  %14392 = vmatprep.mubr.bf16.mxu1 %v14153_v26  ;;  %v14143_v38 = vmax.f32 %v14118_v6, 0.0  ;;  %v17505_v26 = vld [vmem:[#allocation8 + $0x9e0] ss:$8 sps:$4 sm:$0xff]   ;;  %v17507_v3 = vld [vmem:[#allocation8 + $0x9d0] ss:$8 sps:$4 sm:$0xff]  }
0x1d84   :  { %v14121_v49 = vpop.f32.mrf.mxu0  ;;  %14393 = vmatmul.mubr.bf16.gmra.mxu1 %v14152_v9  ;;  %v17506_v9 = vld [vmem:[#allocation8 + $0xa50] ss:$8 sps:$4 sm:$0xff]   ;;  %v17508_v6 = vld [vmem:[#allocation8 + $0xa40] ss:$8 sps:$4 sm:$0xff]  }
0x1d85   :  { %v14122_v27 = vadd.f32 %v14121_v49, %v14026_v53  ;;  %v14144_v25 = vmax.f32 %v14120_v63, 0.0  ;;  %v17510_v63 = vld [vmem:[#allocation8 + $0xa30] ss:$8 sps:$4 sm:$0xff]   ;;  %v17512_v49 = vld [vmem:[#allocation8 + $0xa20] ss:$8 sps:$4 sm:$0xff]  }
0x1d86   :  { %v14125_v61 = vpop.f32.mrf.mxu0 }
0x1d87   :  { %v14145_v29 = vmax.f32 %v14122_v27, 0.0  ;;  %v14154_v5 = vpack.c.bf16 %v14144_v25, %v14142_v19  ;;  %v14126_v43 = vadd.f32 %v14125_v61, %v14022_v12  ;;  %v17513_v27 = vld [vmem:[#allocation8 + $0x9a0] ss:$8 sps:$4 sm:$0xff]   ;;  %v17514_v25 = vld [vmem:[#allocation8 + $0xa10] ss:$8 sps:$4 sm:$0xff]  }
0x1d88   :  { %v14127_v34 = vpop.f32.mrf.mxu0  ;;  %v17515_v61 = vld [vmem:[#allocation8 + $0x990] ss:$8 sps:$4 sm:$0xff]  }
0x1d89   :  { %v14155_v39 = vpack.c.bf16 %v14145_v29, %v14143_v38  ;;  %v14128_v0 = vadd.f32 %v14127_v34, %v14026_v53  ;;  %v14146_v54 = vmax.f32 %v14126_v43, 0.0  ;;  %v14432_v38 = vld [vmem:[#allocation6 + $0x540] ss:$8 sm:$0x3] }
0x1d8a   :  { %v14129_v11 = vpop.f32.mrf.mxu0  ;;  %v14437_v19 = vrot.slane %v14432_v38, %v18853_v17 }
0x1d8b   :  { %v14130_v30 = vadd.f32 %v14129_v11, %v14022_v12  ;;  %14402 = vmatprep.mubr.bf16.mxu1 %v14155_v39  ;;  %v14147_v16 = vmax.f32 %v14128_v0, 0.0 }
0x1d8c   :  { %v14131_v36 = vpop.f32.mrf.mxu0  ;;  %14403 = vmatmul.mubr.bf16.gmra.mxu1 %v14154_v5 }
0x1d8d   :  { %v14132_v60 = vadd.f32 %v14131_v36, %v14026_v53  ;;  %v14148_v15 = vmax.f32 %v14130_v30, 0.0 }
0x1d8f   :  { %v14149_v2 = vmax.f32 %v14132_v60, 0.0  ;;  %v14156_v7 = vpack.c.bf16 %v14148_v15, %v14146_v54 }
0x1d91   :  { %v14157_v23 = vpack.c.bf16 %v14149_v2, %v14147_v16 }
0x1d93   :  { %14412 = vmatprep.mubr.bf16.mxu1 %v14157_v23 }
0x1d94   :  { %14413 = vmatmul.mubr.bf16.gmra.mxu1 %v14156_v7 }
0x1d95   :  { %17147 = vmatprep.mubr.msk.bf16.mxu1 %vm215_vm2, %v18710_v28 }
0x1e3c   :  { %v14384_v59 = vpop.f32.mrf.mxu1 }
0x1e3e   :  { %v14386_v62 = vpop.f32.mrf.mxu1 }
0x1e40   :  { %v14388_v24 = vpop.f32.mrf.mxu1 }
0x1e41   :  { %v14423_v35 = vpack.c.bf16 %v14388_v24, %v14384_v59 }
0x1e42   :  { %v14390_v13 = vpop.f32.mrf.mxu1 }
0x1e43   :  { %v14424_v44 = vpack.c.bf16 %v14390_v13, %v14386_v62 }
0x1e44   :  { %v14394_v32 = vpop.f32.mrf.mxu1 }
0x1e46   :  { %v14396_v12 = vpop.f32.mrf.mxu1 }
0x1e48   :  { %v14398_v31 = vpop.f32.mrf.mxu1 }
0x1e49   :  { %v14425_v41 = vpack.c.bf16 %v14398_v31, %v14394_v32 }
0x1e4a   :  { %v14400_v14 = vpop.f32.mrf.mxu1 }
0x1e4b   :  { %v14426_v37 = vpack.c.bf16 %v14400_v14, %v14396_v12 }
0x1e4c   :  { %v14404_v53 = vpop.f32.mrf.mxu1 }
0x1e4e   :  { %v14406_v10 = vpop.f32.mrf.mxu1 }
0x1e50   :  { %v14408_v45 = vpop.f32.mrf.mxu1 }
0x1e51   :  { %v14427_v42 = vpack.c.bf16 %v14408_v45, %v14404_v53 }
0x1e52   :  { %v14410_v47 = vpop.f32.mrf.mxu1 }
0x1e53   :  { %v14428_v48 = vpack.c.bf16 %v14410_v47, %v14406_v10 }
0x1e54   :  { %v14414_v51 = vpop.f32.mrf.mxu1 }
0x1e56   :  { %v14416_v55 = vpop.f32.mrf.mxu1 }
0x1e58   :  { %v14418_v40 = vpop.f32.mrf.mxu1 }
0x1e59   :  { %v14429_v8 = vpack.c.bf16 %v14418_v40, %v14414_v51 }
0x1e5a   :  { %v14420_v46 = vpop.f32.mrf.mxu1 }
0x1e5b   :  { %v14430_v21 = vpack.c.bf16 %v14420_v46, %v14416_v55 }
0x1e5d   :  { %14452 = vmatprep.subr.bf16.mxu0 %v14430_v21 }
0x1e5e   :  { %14453 = vmatpush1.bf16.msra.mxu0 %v14429_v8 }
0x1e5f   :  { %14454 = vmatprep.subr.bf16.mxu0 %v14428_v48 }
0x1e62   :  { %14455 = vmatpush1.bf16.msra.mxu0 %v14427_v42 }
0x1e63   :  { %14456 = vmatprep.subr.bf16.mxu0 %v14426_v37 }
0x1e66   :  { %14457 = vmatpush1.bf16.msra.mxu0 %v14425_v41 }
0x1e67   :  { %14458 = vmatprep.subr.bf16.mxu0 %v14424_v44 }
0x1e6a   :  { %14459 = vmatpush1.bf16.msra.mxu0 %v14423_v35 }
0x1e6b   :  { %16881 = vmatprep.subr.bf16.mxu0 %v17500_v4 }
0x1e6d   :  { %16662 = vmatmul.mubr.msk.bf16.vlgmr.msra.gmra.mxu0 %vm215_vm2, %v18710_v28  ;;  %v17509_v28 = vld [vmem:[#allocation8 + $0x9c0] ss:$8 sps:$4 sm:$0xff]  }
0x1e6e   :  { %14486 = vmatprep.mubr.bf16.mxu0 %v18829_v33  ;;  %16882 = vmatpush3.bf16.msra.mxu0 %v17501_v20 }
0x1e6f   :  { %16883 = vmatprep.subr.bf16.mxu0 %v17502_v1 }
0x1e72   :  { %16884 = vmatpush3.bf16.msra.mxu0 %v17503_v52 }
0x1e73   :  { %16885 = vmatprep.subr.bf16.mxu0 %v17504_v50 }
0x1e75   :  { %16663 = vmatmul.mubr.msk.bf16.gmra.mxu0 %vm215_vm2, %v18715_v18 }
0x1e76   :  { %14496 = vmatprep.mubr.bf16.mxu0 %v18829_v33  ;;  %16886 = vmatpush3.bf16.msra.mxu0 %v17505_v26 }
0x1e77   :  { %16887 = vmatprep.subr.bf16.mxu0 %v17506_v9 }
0x1e7a   :  { %16888 = vmatpush3.bf16.msra.mxu0 %v17507_v3 }
0x1e7b   :  { %16889 = vmatprep.subr.bf16.mxu0 %v17508_v6 }
0x1e7d   :  { %16664 = vmatmul.mubr.msk.bf16.gmra.mxu0 %vm215_vm2, %v18720_v56 }
0x1e7e   :  { %14506 = vmatprep.mubr.bf16.mxu0 %v18829_v33  ;;  %16890 = vmatpush3.bf16.msra.mxu0 %v17509_v28  ;;  %v14441_v33 = vrot.slane %v14432_v38, %v18854_v58  ;;  %v17518_v38 = vld [vmem:[#allocation8 + $0xae0] ss:$8 sps:$4 sm:$0xff]  }
0x1e7f   :  { %16891 = vmatprep.subr.bf16.mxu0 %v17510_v63 }
0x1e82   :  { %16892 = vmatpush3.bf16.msra.mxu0 %v17511_v22 }
0x1e83   :  { %16893 = vmatprep.subr.bf16.mxu0 %v17512_v49 }
0x1e85   :  { %16665 = vmatmul.mubr.msk.bf16.gmra.mxu0 %vm215_vm2, %v18725_v57 }
0x1e86   :  { %16894 = vmatpush3.bf16.msra.mxu0 %v17513_v27 }
0x1e87   :  { %16895 = vmatprep.subr.bf16.mxu0 %v17514_v25  ;;  %v17516_v25 = vld [vmem:[#allocation8 + $0xb00] ss:$8 sps:$4 sm:$0xff]  }
0x1e8a   :  { %16896 = vmatpush3.bf16.msra.mxu0 %v17515_v61  ;;  %v17517_v61 = vld [vmem:[#allocation8 + $0xaf0] ss:$8 sps:$4 sm:$0xff]  }
0x1e8b   :  { %17155 = vmatprep.subr.bf16.mxu0 %v17516_v25 }
0x1f2d   :  { %v14478_v29 = vpop.f32.mrf.mxu0 }
0x1f2e   :  { %v14479_v0 = vadd.f32 %v14478_v29, %v14437_v19  ;;  %v17519_v29 = vld [vmem:[#allocation8 + $0xad0] ss:$8 sps:$4 sm:$0xff]  }
0x1f2f   :  { %v14480_v34 = vpop.f32.mrf.mxu0 }
0x1f30   :  { %v14481_v5 = vadd.f32 %v14480_v34, %v14441_v33  ;;  %v14517_v2 = vmax.f32 %v14479_v0, 0.0 }
0x1f31   :  { %v14482_v39 = vpop.f32.mrf.mxu0 }
0x1f32   :  { %v14483_v11 = vadd.f32 %v14482_v39, %v14437_v19  ;;  %v14518_v15 = vmax.f32 %v14481_v5, 0.0 }
0x1f33   :  { %v14484_v30 = vpop.f32.mrf.mxu0 }
0x1f34   :  { %v14485_v43 = vadd.f32 %v14484_v30, %v14441_v33  ;;  %v14519_v36 = vmax.f32 %v14483_v11, 0.0 }
0x1f35   :  { %v14488_v60 = vpop.f32.mrf.mxu0 }
0x1f36   :  { %v14520_v16 = vmax.f32 %v14485_v43, 0.0  ;;  %v14533_v7 = vpack.c.bf16 %v14519_v36, %v14517_v2  ;;  %v14489_v17 = vadd.f32 %v14488_v60, %v14437_v19 }
0x1f37   :  { %v14490_v54 = vpop.f32.mrf.mxu0 }
0x1f38   :  { %v14534_v23 = vpack.c.bf16 %v14520_v16, %v14518_v15  ;;  %v14491_v62 = vadd.f32 %v14490_v54, %v14441_v33  ;;  %v14521_v53 = vmax.f32 %v14489_v17, 0.0 }
0x1f39   :  { %v14492_v59 = vpop.f32.mrf.mxu0 }
0x1f3a   :  { %v14493_v58 = vadd.f32 %v14492_v59, %v14437_v19  ;;  %14701 = vmatprep.mubr.bf16.mxu0 %v14534_v23  ;;  %v14522_v31 = vmax.f32 %v14491_v62, 0.0 }
0x1f3b   :  { %v14494_v24 = vpop.f32.mrf.mxu0  ;;  %14702 = vmatmul.mubr.bf16.vlgmr.msra.gmra.mxu0 %v14533_v7 }
0x1f3c   :  { %v14495_v13 = vadd.f32 %v14494_v24, %v14441_v33  ;;  %v14523_v32 = vmax.f32 %v14493_v58, 0.0  ;;  %17156 = vmatpush3.bf16.msra.mxu0 %v17516_v25 }
0x1f3d   :  { %v14498_v12 = vpop.f32.mrf.mxu0  ;;  %17157 = vmatprep.subr.bf16.mxu0 %v17517_v61 }
0x1f3e   :  { %v14524_v14 = vmax.f32 %v14495_v13, 0.0  ;;  %v14535_v47 = vpack.c.bf16 %v14523_v32, %v14521_v53  ;;  %v14499_v46 = vadd.f32 %v14498_v12, %v14437_v19 }
0x1f3f   :  { %v14500_v10 = vpop.f32.mrf.mxu0 }
0x1f40   :  { %v14536_v45 = vpack.c.bf16 %v14524_v14, %v14522_v31  ;;  %v14501_v55 = vadd.f32 %v14500_v10, %v14441_v33  ;;  %v14525_v44 = vmax.f32 %v14499_v46, 0.0  ;;  %17158 = vmatpush3.bf16.msra.mxu0 %v17517_v61  ;;  %v14738_v46 = vld [vmem:[#allocation6 + $0x580] ss:$0 sm:$0xff] }
0x1f41   :  { %v14502_v51 = vpop.f32.mrf.mxu0  ;;  %17159 = vmatprep.subr.bf16.mxu0 %v17518_v38 }
0x1f42   :  { %v14503_v40 = vadd.f32 %v14502_v51, %v14437_v19  ;;  %14709 = vmatprep.mubr.bf16.mxu0 %v14536_v45  ;;  %v14526_v37 = vmax.f32 %v14501_v55, 0.0  ;;  %v17521_v45 = vld [vmem:[#allocation8 + $0xab0] ss:$8 sps:$4 sm:$0xff]   ;;  %v17524_v55 = vld [vmem:[#allocation8 + $0xb40] ss:$8 sps:$4 sm:$0xff]  }
0x1f43   :  { %v14504_v21 = vpop.f32.mrf.mxu0  ;;  %14710 = vmatmul.mubr.bf16.gmra.mxu0 %v14535_v47  ;;  %v17522_v47 = vld [vmem:[#allocation8 + $0xaa0] ss:$8 sps:$4 sm:$0xff]   ;;  %v17523_v51 = vld [vmem:[#allocation8 + $0xa90] ss:$8 sps:$4 sm:$0xff]  }
0x1f44   :  { %v14505_v8 = vadd.f32 %v14504_v21, %v14441_v33  ;;  %v14527_v48 = vmax.f32 %v14503_v40, 0.0  ;;  %17160 = vmatpush3.bf16.msra.mxu0 %v17518_v38  ;;  %v17525_v38 = vld [vmem:[#allocation8 + $0xb30] ss:$8 sps:$4 sm:$0xff]  }
0x1f45   :  { %v14508_v42 = vpop.f32.mrf.mxu0  ;;  %17161 = vmatprep.subr.bf16.mxu0 %v17519_v29 }
0x1f46   :  { %v14528_v41 = vmax.f32 %v14505_v8, 0.0  ;;  %v14537_v20 = vpack.c.bf16 %v14527_v48, %v14525_v44  ;;  %v14509_v26 = vadd.f32 %v14508_v42, %v14437_v19 }
0x1f47   :  { %v14510_v4 = vpop.f32.mrf.mxu0 }
0x1f48   :  { %v14538_v35 = vpack.c.bf16 %v14528_v41, %v14526_v37  ;;  %v14511_v52 = vadd.f32 %v14510_v4, %v14441_v33  ;;  %v14529_v22 = vmax.f32 %v14509_v26, 0.0  ;;  %17162 = vmatpush3.bf16.msra.mxu0 %v17519_v29  ;;  %v17526_v29 = vld [vmem:[#allocation8 + $0xb20] ss:$8 sps:$4 sm:$0xff]  }
0x1f49   :  { %v14512_v1 = vpop.f32.mrf.mxu0 }
0x1f4a   :  { %v14513_v50 = vadd.f32 %v14512_v1, %v14437_v19  ;;  %14717 = vmatprep.mubr.bf16.mxu0 %v14538_v35  ;;  %v14530_v28 = vmax.f32 %v14511_v52, 0.0 }
0x1f4b   :  { %v14514_v9 = vpop.f32.mrf.mxu0  ;;  %14718 = vmatmul.mubr.bf16.gmra.mxu0 %v14537_v20 }
0x1f4c   :  { %v14515_v3 = vadd.f32 %v14514_v9, %v14441_v33  ;;  %v14531_v6 = vmax.f32 %v14513_v50, 0.0  ;;  %v17520_v33 = vld [vmem:[#allocation8 + $0xac0] ss:$8 sps:$4 sm:$0xff]  }
0x1f4d   :  { %17163 = vmatprep.subr.bf16.mxu0 %v17520_v33 }
0x1f4e   :  { %v14532_v63 = vmax.f32 %v14515_v3, 0.0  ;;  %v14539_v27 = vpack.c.bf16 %v14531_v6, %v14529_v22  ;;  %17164 = vmatpush3.bf16.msra.mxu0 %v17520_v33  ;;  %v17527_v33 = vld [vmem:[#allocation8 + $0xb10] ss:$8 sps:$4 sm:$0xff]  }
0x1f4f   :  { %17165 = vmatprep.subr.bf16.mxu0 %v17521_v45 }
0x1f50   :  { %v14540_v49 = vpack.c.bf16 %v14532_v63, %v14530_v28 }
0x1f52   :  { %14725 = vmatprep.mubr.bf16.mxu0 %v14540_v49  ;;  %17166 = vmatpush3.bf16.msra.mxu0 %v17521_v45 }
0x1f53   :  { %14726 = vmatmul.mubr.bf16.gmra.mxu0 %v14539_v27  ;;  %17167 = vmatprep.subr.bf16.mxu0 %v17522_v47 }
0x1f56   :  { %17168 = vmatpush3.bf16.msra.mxu0 %v17522_v47  ;;  %v14966_v47 = vld [vmem:[#allocation6 + $0x600] ss:$0 sm:$0xff] }
0x1f57   :  { %17169 = vmatprep.subr.bf16.mxu0 %v17523_v51 }
0x1f5a   :  { %17170 = vmatpush3.bf16.msra.mxu0 %v17523_v51 }
0x1ffb   :  { %v16897_v19 = vpop.f32.mrf.mxu0 }
0x1ffd   :  { %v16898_v34 = vpop.f32.mrf.mxu0 }
0x1ffe   :  { %v16899_v53 = vadd.f32 %v16898_v34, %v16897_v19 }
0x1fff   :  { %v16900_v39 = vpop.f32.mrf.mxu0 }
0x2001   :  { %v16901_v5 = vpop.f32.mrf.mxu0 }
0x2002   :  { %v16902_v31 = vadd.f32 %v16901_v5, %v16900_v39  ;;  %v14832_v39 = vld [vmem:[#allocation6 + $0x5c0] ss:$0 sm:$0xff] }
0x2003   :  { %v16903_v11 = vpop.f32.mrf.mxu0 }
0x2004   :  { %v14734_v10 = vpack.c.bf16 %v16902_v31, %v16899_v53 }
0x2005   :  { %v16904_v0 = vpop.f32.mrf.mxu0 }
0x2006   :  { %v16905_v12 = vadd.f32 %v16904_v0, %v16903_v11 }
0x2007   :  { %v16906_v30 = vpop.f32.mrf.mxu0 }
0x2009   :  { %v16907_v43 = vpop.f32.mrf.mxu0 }
0x200a   :  { %v16908_v13 = vadd.f32 %v16907_v43, %v16906_v30 }
0x200b   :  { %v16909_v36 = vpop.f32.mrf.mxu0 }
0x200c   :  { %v14735_v14 = vpack.c.bf16 %v16908_v13, %v16905_v12 }
0x200d   :  { %v16910_v60 = vpop.f32.mrf.mxu0 }
0x200e   :  { %v16911_v17 = vadd.f32 %v16910_v60, %v16909_v36 }
0x200f   :  { %v16912_v15 = vpop.f32.mrf.mxu0 }
0x2011   :  { %v16913_v16 = vpop.f32.mrf.mxu0 }
0x2012   :  { %v16914_v59 = vadd.f32 %v16913_v16, %v16912_v15 }
0x2013   :  { %v16915_v2 = vpop.f32.mrf.mxu0 }
0x2014   :  { %v14736_v32 = vpack.c.bf16 %v16914_v59, %v16911_v17 }
0x2015   :  { %v16916_v54 = vpop.f32.mrf.mxu0 }
0x2016   :  { %v16917_v62 = vadd.f32 %v16916_v54, %v16915_v2 }
0x2017   :  { %v16918_v23 = vpop.f32.mrf.mxu0 }
0x2019   :  { %v16919_v7 = vpop.f32.mrf.mxu0 }
0x201a   :  { %v16920_v58 = vadd.f32 %v16919_v7, %v16918_v23 }
0x201c   :  { %v14737_v24 = vpack.c.bf16 %v16920_v58, %v16917_v62 }
0x201e   :  { %17139 = vmatprep.subr.bf16.mxu1 %v14737_v24 }
0x201f   :  { %17140 = vmatpush3.bf16.msra.mxu1 %v14737_v24 }
0x2020   :  { %17141 = vmatprep.subr.bf16.mxu1 %v14736_v32 }
0x2023   :  { %17142 = vmatpush3.bf16.msra.mxu1 %v14736_v32 }
0x2024   :  { %17143 = vmatprep.subr.bf16.mxu1 %v14735_v14 }
0x2027   :  { %17144 = vmatpush3.bf16.msra.mxu1 %v14735_v14 }
0x2028   :  { %17145 = vmatprep.subr.bf16.mxu1 %v14734_v10 }
0x202b   :  { %17146 = vmatpush3.bf16.msra.mxu1 %v14734_v10 }
0x202c   :  { %17179 = vmatprep.subr.bf16.mxu1 %v17524_v55 }
0x202e   :  { %17148 = vmatmul.mubr.msk.bf16.vlgmr.msra.gmra.mxu1 %vm215_vm2, %v18715_v18 }
0x202f   :  { %17151 = vmatprep.mubr.msk.bf16.mxu1 %vm215_vm2, %v18720_v56  ;;  %17180 = vmatpush3.bf16.msra.mxu1 %v17524_v55 }
0x2030   :  { %17181 = vmatprep.subr.bf16.mxu1 %v17525_v38 }
0x2033   :  { %17182 = vmatpush3.bf16.msra.mxu1 %v17525_v38 }
0x2034   :  { %17183 = vmatprep.subr.bf16.mxu1 %v17526_v29 }
0x2036   :  { %17152 = vmatmul.mubr.msk.bf16.gmra.mxu1 %vm215_vm2, %v18725_v57 }
0x2037   :  { %17184 = vmatpush3.bf16.msra.mxu1 %v17526_v29 }
0x2038   :  { %17185 = vmatprep.subr.bf16.mxu1 %v17527_v33 }
0x203b   :  { %17186 = vmatpush3.bf16.msra.mxu1 %v17527_v33 }
0x20ee   :  { %v17149_v40 = vpop.f32.mrf.mxu1 }
0x20ef   :  { %v14782_v48 = vadd.f32 %v17149_v40, %v14738_v46 }
0x20f0   :  { %v14773_v18 = vpop.f32.mrf.mxu1 }
0x20f1   :  { %v14774_v56 = vadd.f32 %v14773_v18, %v14738_v46  ;;  %v14806_v35 = vmax.f32 %v14782_v48, 0.0 }
0x20f2   :  { %v17150_v21 = vpop.f32.mrf.mxu1 }
0x20f3   :  { %v14785_v8 = vadd.f32 %v17150_v21, %v14738_v46  ;;  %v14804_v44 = vmax.f32 %v14774_v56, 0.0 }
0x20f4   :  { %v14776_v57 = vpop.f32.mrf.mxu1 }
0x20f5   :  { %v14777_v42 = vadd.f32 %v14776_v57, %v14738_v46  ;;  %v14807_v37 = vmax.f32 %v14785_v8, 0.0 }
0x20f6   :  { %v17153_v41 = vpop.f32.mrf.mxu1 }
0x20f7   :  { %v14805_v4 = vmax.f32 %v14777_v42, 0.0  ;;  %v14813_v52 = vpack.c.bf16 %v14807_v37, %v14806_v35  ;;  %v14798_v3 = vadd.f32 %v17153_v41, %v14738_v46 }
0x20f8   :  { %v14789_v20 = vpop.f32.mrf.mxu1 }
0x20f9   :  { %v14812_v1 = vpack.c.bf16 %v14805_v4, %v14804_v44  ;;  %v14790_v26 = vadd.f32 %v14789_v20, %v14738_v46  ;;  %v14810_v27 = vmax.f32 %v14798_v3, 0.0 }
0x20fa   :  { %v17154_v50 = vpop.f32.mrf.mxu1 }
0x20fb   :  { %v14801_v9 = vadd.f32 %v17154_v50, %v14738_v46  ;;  %17171 = vmatprep.mubr.bf16.mxu0 %v14812_v1  ;;  %v14808_v22 = vmax.f32 %v14790_v26, 0.0 }
0x20fc   :  { %v14792_v6 = vpop.f32.mrf.mxu1  ;;  %17172 = vmatmul.mubr.bf16.vlgmr.msra.gmra.mxu0 %v14813_v52 }
0x20fd   :  { %v14793_v28 = vadd.f32 %v14792_v6, %v14738_v46  ;;  %v14811_v63 = vmax.f32 %v14801_v9, 0.0 }
0x20ff   :  { %v14809_v49 = vmax.f32 %v14793_v28, 0.0  ;;  %v14815_v61 = vpack.c.bf16 %v14811_v63, %v14810_v27 }
0x2101   :  { %v14814_v25 = vpack.c.bf16 %v14809_v49, %v14808_v22 }
0x2103   :  { %17175 = vmatprep.mubr.bf16.mxu0 %v14814_v25 }
0x2104   :  { %17176 = vmatmul.mubr.bf16.gmra.mxu0 %v14815_v61 }
0x21bc   :  { %v17173_v19 = vpop.f32.mrf.mxu0 }
0x21bd   :  { %v14924_v30 = vadd.f32 %v17173_v19, %v14832_v39 }
0x21be   :  { %v14915_v34 = vpop.f32.mrf.mxu0 }
0x21bf   :  { %v14916_v11 = vadd.f32 %v14915_v34, %v14832_v39  ;;  %v14948_v54 = vmax.f32 %v14924_v30, 0.0 }
0x21c0   :  { %v17174_v5 = vpop.f32.mrf.mxu0 }
0x21c1   :  { %v14927_v0 = vadd.f32 %v17174_v5, %v14832_v39  ;;  %v14946_v16 = vmax.f32 %v14916_v11, 0.0 }
0x21c2   :  { %v14918_v43 = vpop.f32.mrf.mxu0 }
0x21c3   :  { %v14919_v36 = vadd.f32 %v14918_v43, %v14832_v39  ;;  %v14949_v60 = vmax.f32 %v14927_v0, 0.0 }
0x21c4   :  { %v17177_v15 = vpop.f32.mrf.mxu0 }
0x21c5   :  { %v14947_v2 = vmax.f32 %v14919_v36, 0.0  ;;  %v14955_v59 = vpack.c.bf16 %v14949_v60, %v14948_v54  ;;  %v14940_v24 = vadd.f32 %v17177_v15, %v14832_v39 }
0x21c6   :  { %v14931_v23 = vpop.f32.mrf.mxu0 }
0x21c7   :  { %v14954_v7 = vpack.c.bf16 %v14947_v2, %v14946_v16  ;;  %v14932_v58 = vadd.f32 %v14931_v23, %v14832_v39  ;;  %v14952_v53 = vmax.f32 %v14940_v24, 0.0 }
0x21c8   :  { %v17178_v62 = vpop.f32.mrf.mxu0 }
0x21c9   :  { %v14943_v17 = vadd.f32 %v17178_v62, %v14832_v39  ;;  %17187 = vmatprep.mubr.msk.bf16.mxu1 %vm215_vm2, %v14954_v7  ;;  %v14950_v31 = vmax.f32 %v14932_v58, 0.0 }
0x21ca   :  { %v14934_v13 = vpop.f32.mrf.mxu0  ;;  %17188 = vmatmul.mubr.msk.bf16.vlgmr.msra.gmra.mxu1 %vm215_vm2, %v14955_v59 }
0x21cb   :  { %v14935_v32 = vadd.f32 %v14934_v13, %v14832_v39  ;;  %v14953_v12 = vmax.f32 %v14943_v17, 0.0 }
0x21cd   :  { %v14951_v14 = vmax.f32 %v14935_v32, 0.0  ;;  %v14957_v45 = vpack.c.bf16 %v14953_v12, %v14952_v53 }
0x21cf   :  { %v14956_v10 = vpack.c.bf16 %v14951_v14, %v14950_v31 }
0x21d1   :  { %17191 = vmatprep.mubr.msk.bf16.mxu1 %vm215_vm2, %v14956_v10 }
0x21d2   :  { %17192 = vmatmul.mubr.msk.bf16.gmra.mxu1 %vm215_vm2, %v14957_v45 }
0x228a   :  { %v17189_v51 = vpop.f32.mrf.mxu1 }
0x228b   :  { %v15046_v55 = vadd.f32 %v17189_v51, %v14966_v47 }
0x228c   :  { %v15037_v40 = vpop.f32.mrf.mxu1 }
0x228d   :  { %15071 = vst.msk [vmem:[%s18794_s5 + $0x10] sm:$0xff] %vm15068_vm6, %v15046_v55  ;;  %v15038_v18 = vadd.f32 %v15037_v40, %v14966_v47 }
0x228e   :  { %v17190_v46 = vpop.f32.mrf.mxu1 }
0x228f   :  { %15069 = vst.msk [vmem:[%s18794_s5] sm:$0xff] %vm15068_vm6, %v15038_v18  ;;  %v15049_v21 = vadd.f32 %v17190_v46, %v14966_v47 }
0x2290   :  { %v15040_v56 = vpop.f32.mrf.mxu1 }
0x2291   :  { %15072 = vst.msk [vmem:[%s18794_s5 + $0x18] sm:$0xff] %vm15068_vm6, %v15049_v21  ;;  %v15041_v8 = vadd.f32 %v15040_v56, %v14966_v47 }
0x2292   :  { %v17193_v48 = vpop.f32.mrf.mxu1 }
0x2293   :  { %15070 = vst.msk [vmem:[%s18794_s5 + $0x8] sm:$0xff] %vm15068_vm6, %v15041_v8  ;;  %v15062_v57 = vadd.f32 %v17193_v48, %v14966_v47 }
0x2294   :  { %v15053_v42 = vpop.f32.mrf.mxu1 }
0x2295   :  { %15075 = vst.msk [vmem:[%s18794_s5 + $0x30] sm:$0xff] %vm15068_vm6, %v15062_v57  ;;  %v15054_v37 = vadd.f32 %v15053_v42, %v14966_v47 }
0x2296   :  { %v17194_v41 = vpop.f32.mrf.mxu1 }
0x2297   :  { %15073 = vst.msk [vmem:[%s18794_s5 + $0x20] sm:$0xff] %vm15068_vm6, %v15054_v37  ;;  %v15065_v44 = vadd.f32 %v17194_v41, %v14966_v47 }
0x2298   :  { %v15056_v4 = vpop.f32.mrf.mxu1 }
0x2299   :  { %15076 = vst.msk [vmem:[%s18794_s5 + $0x38] sm:$0xff] %vm15068_vm6, %v15065_v44  ;;  %v15057_v35 = vadd.f32 %v15056_v4, %v14966_v47 }
0x229b   :  { %15074 = vst.msk [vmem:[%s18794_s5 + $0x28] sm:$0xff] %vm15068_vm6, %v15057_v35 }
0x229c   :  { %15081 = vsyncpa [#allocation5], 1 }
0x229d   :  { %15082 = vsyncpa [#allocation7], 1 }
0x229e   :  { %15083 = vsyncmov [#allocation3] }
0x22a1   :  { %s15084_s11 = vpop.sfrf %15083 }
0x22a2   :  { %p16702_p6 = scmp.ne.s32.totalorder %s15084_s11, 0 }
0x22a4   :  { %15088 = shalt.err (%p16702_p6)  }

</bundles_post_ra>
